<compile_context>
chip_gen: v7x
topology: tpu7x:2x2x1
jax: 0.10.0
libtpu: 0.0.40
codegen_flags: <defaults>
</compile_context>

<pallas_src>
import jax
import jax.numpy as jnp
from jax.experimental import pallas as pl
from jax.experimental.pallas import tpu as pltpu


# ---------------------------------------------------------------------------
# Fused whole-network kernel (runs once per image / grid step)
# ---------------------------------------------------------------------------
def _critic_kernel(x_ref, w1_ref, b1_ref, w2_ref, b2_ref, w3_ref, b3_ref,
                   w4_ref, b4_ref, w5_ref, b5_ref, o_ref,
                   h1_ref, h2_ref, h3_ref):
    # x_ref block: (1, 21, 2, 11, 16C) bf16
    #   x_ref[0, u, s, t, :] = space_to_depth4(input_NHWC)[u, 2t+s, :]
    f32, bf16 = jnp.float32, jnp.bfloat16

    # -------- conv1: (after s2d-4) 2x2 stride-1 conv, 16C -> 32 channels ----
    # Output stored column-parity split: h1_ref[s, ho*10 + t, :] = h1[ho, 2t+s, :]
    rowA = [x_ref[0, r, 0, 0:10, :] for r in range(21)]   # even cols 0,2,...,18
    rowB = [x_ref[0, r, 1, 0:10, :] for r in range(21)]   # odd  cols 1,3,...,19
    rowC = [x_ref[0, r, 0, 1:11, :] for r in range(21)]   # even cols 2,4,...,20
    for s, (c0, c1) in ((0, (rowA, rowB)), (1, (rowB, rowC))):
        blocks = []
        for ho in range(20):
            # pieces in (di, dj) order -> must match w1 flattening
            blocks.append(jnp.concatenate(
                [c0[ho], c1[ho], c0[ho + 1], c1[ho + 1]], axis=1))   # (10, 64C)
        p1 = jnp.concatenate(blocks, axis=0)                          # (200, 64C)
        h1 = jnp.dot(p1, w1_ref[...], preferred_element_type=f32)
        h1 = jnp.maximum(h1 + b1_ref[...], 0.0)
        h1_ref[s] = h1.astype(bf16)                                   # (200, 32)

    # -------- conv2: 4x4 stride-2 conv, 32 -> 64 channels -------------------
    # h1[2p+i, 2q+j, :] == h1_ref[j%2, (2p+i)*10 + q + j//2, :]
    blocks = []
    for p in range(9):
        pieces = []
        for i in range(4):
            base = (2 * p + i) * 10
            for j in range(4):
                start = base + j // 2
                pieces.append(h1_ref[j % 2, start:start + 9, :])      # (9, 32)
        blocks.append(jnp.concatenate(pieces, axis=1))                # (9, 512)
    p2 = jnp.concatenate(blocks, axis=0)                              # (81, 512)
    h2 = jnp.dot(p2, w2_ref[...], preferred_element_type=f32)
    h2 = jnp.maximum(h2 + b2_ref[...], 0.0)
    h2_ref[...] = h2.astype(bf16)                                     # (81, 64)  rows = p*9+q

    # -------- conv3: 3x3 stride-1 conv, 64 -> 64 channels --------------------
    blocks = []
    for r in range(7):
        pieces = []
        for i in range(3):
            base = (r + i) * 9
            for j in range(3):
                pieces.append(h2_ref[base + j: base + j + 7, :])      # (7, 64)
        blocks.append(jnp.concatenate(pieces, axis=1))                # (7, 576)
    p3 = jnp.concatenate(blocks, axis=0)                              # (49, 576)
    h3 = jnp.dot(p3, w3_ref[...], preferred_element_type=f32)
    h3 = jnp.maximum(h3 + b3_ref[...], 0.0)
    h3_ref[...] = h3.astype(bf16)                                     # (49, 64)  rows = h*7+w

    # -------- fc1 (3136 -> 512, ReLU) + value head (512 -> 1) ----------------
    # Flatten in (h, w, c) order (w4 was permuted accordingly at prep time).
    fc_in = jnp.concatenate([h3_ref[rw:rw + 1, :] for rw in range(49)], axis=1)  # (1, 3136)
    h4 = jnp.dot(fc_in, w4_ref[...], preferred_element_type=f32)
    h4 = jnp.maximum(h4 + b4_ref[...], 0.0)                           # (1, 512) f32
    # Value head as VPU multiply + lane reduction (w5 kept f32, no MXU pass).
    v = jnp.sum(h4 * w5_ref[...], axis=-1, keepdims=True) + b5_ref[...]   # (1, 1)
    o_ref[...] = jnp.broadcast_to(v[None], (1, 1, 128))


# ---------------------------------------------------------------------------
# Parameter init (PyTorch default uniform) and one-time weight preparation
# ---------------------------------------------------------------------------
def init_critic_params(key, in_channels):
    ks = jax.random.split(key, 10)

    def uniform(k, shape, fan_in):
        bound = 1.0 / (fan_in ** 0.5)
        return jax.random.uniform(k, shape, jnp.float32, -bound, bound)

    p = {}
    p["w1"] = uniform(ks[0], (32, in_channels, 8, 8), in_channels * 8 * 8)
    p["b1"] = uniform(ks[1], (32,), in_channels * 8 * 8)
    p["w2"] = uniform(ks[2], (64, 32, 4, 4), 32 * 4 * 4)
    p["b2"] = uniform(ks[3], (64,), 32 * 4 * 4)
    p["w3"] = uniform(ks[4], (64, 64, 3, 3), 64 * 3 * 3)
    p["b3"] = uniform(ks[5], (64,), 64 * 3 * 3)
    p["w4"] = uniform(ks[6], (512, 64 * 7 * 7), 64 * 7 * 7)   # Linear: (out, in)
    p["b4"] = uniform(ks[7], (512,), 64 * 7 * 7)
    p["w5"] = uniform(ks[8], (1, 512), 512)
    p["b5"] = uniform(ks[9], (1,), 512)
    return p


def prepare_params(params):
    """One-time flatten / permute / cast of the PyTorch-layout parameters."""
    f32, bf16 = jnp.float32, jnp.bfloat16
    C = params["w1"].shape[1]
    prep = {}

    # conv1: 8x8 stride-4 becomes a 2x2 stride-1 conv on the s2d-4 input.
    # Kernel patch lane order: (di, dj, dh, dw, c); original i=4*di+dh, j=4*dj+dw.
    w1 = params["w1"].astype(f32).reshape(32, C, 2, 4, 2, 4)
    w1 = w1.transpose(2, 4, 3, 5, 1, 0).reshape(64 * C, 32)
    prep["w1"] = w1.astype(bf16)
    prep["b1"] = params["b1"].reshape(1, 32).astype(f32)

    # conv2 / conv3: patch lane order (i, j, c_in).
    prep["w2"] = params["w2"].astype(f32).transpose(2, 3, 1, 0).reshape(16 * 32, 64).astype(bf16)
    prep["b2"] = params["b2"].reshape(1, 64).astype(f32)
    prep["w3"] = params["w3"].astype(f32).transpose(2, 3, 1, 0).reshape(9 * 64, 64).astype(bf16)
    prep["b3"] = params["b3"].reshape(1, 64).astype(f32)

    # fc1: permute input features from PyTorch NCHW-flatten (c,h,w) to (h,w,c).
    w4 = params["w4"].astype(f32).reshape(512, 64, 7, 7)
    w4 = w4.transpose(0, 2, 3, 1).reshape(512, 7 * 7 * 64)
    prep["w4"] = w4.T.astype(bf16)                                     # (3136, 512)
    prep["b4"] = params["b4"].reshape(1, 512).astype(f32)

    # fc2 (value head): kept f32 and applied as VPU multiply + lane reduce.
    prep["w5"] = params["w5"].reshape(1, 512).astype(f32)
    prep["b5"] = params["b5"].reshape(1, 1).astype(f32)
    return prep


# ---------------------------------------------------------------------------
# Forward pass
# ---------------------------------------------------------------------------
def _prep_input(x):
    """NCHW float -> bf16 -> NHWC -> space-to-depth(4) -> column-parity split.

    Returns (B, 21, 2, 11, 16*C) with xs[b,u,s,t,:] = s2d4(x_nhwc)[b, u, 2t+s, :].
    Pure bandwidth-only XLA prep on the raw input (same bytes as the NHWC
    transpose); this is what lets every conv use contiguous in-VMEM slices.
    """
    B, C, H, W = x.shape
    x = jnp.transpose(x.astype(jnp.bfloat16), (0, 2, 3, 1))            # (B,84,84,C)
    x = x.reshape(B, 21, 4, 21, 4, C).transpose(0, 1, 3, 2, 4, 5)      # (B,21,21,4,4,C)
    x = x.reshape(B, 21, 21, 16 * C)
    x = jnp.pad(x, ((0, 0), (0, 0), (0, 1), (0, 0)))                   # pad odd phase
    x = x.reshape(B, 21, 11, 2, 16 * C).transpose(0, 1, 3, 2, 4)       # (B,21,2,11,16C)
    return x


def critic_forward(prep, x):
    B, C, H, W = x.shape
    assert H == 84 and W == 84, "Critic requires 84x84 inputs (fc expects 64*7*7)"
    xs = _prep_input(x)

    def full_spec(a):
        return pl.BlockSpec(a.shape, lambda b, _nd=a.ndim: (0,) * _nd)

    out = pl.pallas_call(
        _critic_kernel,
        out_shape=jax.ShapeDtypeStruct((B, 1, 128), jnp.float32),
        grid=(B,),
        in_specs=[
            pl.BlockSpec((1, 21, 2, 11, 16 * C), lambda b: (b, 0, 0, 0, 0)),
            full_spec(prep["w1"]), full_spec(prep["b1"]),
            full_spec(prep["w2"]), full_spec(prep["b2"]),
            full_spec(prep["w3"]), full_spec(prep["b3"]),
            full_spec(prep["w4"]), full_spec(prep["b4"]),
            full_spec(prep["w5"]), full_spec(prep["b5"]),
        ],
        out_specs=pl.BlockSpec((1, 1, 128), lambda b: (b, 0, 0)),
        scratch_shapes=[
            pltpu.VMEM((2, 200, 32), jnp.bfloat16),   # h1, column-parity split
            pltpu.VMEM((81, 64), jnp.bfloat16),       # h2, rows = p*9 + q
            pltpu.VMEM((49, 64), jnp.bfloat16),       # h3, rows = h*7 + w
        ],
        compiler_params=pltpu.CompilerParams(
            dimension_semantics=("parallel",),        # batch steps -> megacore sharding
            vmem_limit_bytes=32 * 1024 * 1024,
        ),
    )(xs, prep["w1"], prep["b1"], prep["w2"], prep["b2"],
      prep["w3"], prep["b3"], prep["w4"], prep["b4"], prep["w5"], prep["b5"])
    return out[:, 0, :1]                                                # (B, 1) f32


# ---------------------------------------------------------------------------
# Pure-JAX f32 reference (mirrors the PyTorch module exactly)
# ---------------------------------------------------------------------------
def critic_reference(params, x):
    x = x.astype(jnp.float32)
    dn = ("NCHW", "OIHW", "NCHW")
    y = jax.lax.conv_general_dilated(x, params["w1"], (4, 4), "VALID", dimension_numbers=dn)
    y = jax.nn.relu(y + params["b1"][None, :, None, None])
    y = jax.lax.conv_general_dilated(y, params["w2"], (2, 2), "VALID", dimension_numbers=dn)
    y = jax.nn.relu(y + params["b2"][None, :, None, None])
    y = jax.lax.conv_general_dilated(y, params["w3"], (1, 1), "VALID", dimension_numbers=dn)
    y = jax.nn.relu(y + params["b3"][None, :, None, None])
    f = y.reshape(y.shape[0], -1)                     # NCHW flatten = (c, h, w) order
    h = jax.nn.relu(f @ params["w4"].T + params["b4"])
    return h @ params["w5"].T + params["b5"]


if __name__ == "__main__":
    key = jax.random.PRNGKey(0)
    k_param, k_input = jax.random.split(key)

    in_channels = 4
    # 84x84 spatial is required by the module (fc expects 64*7*7 features).
    x = jax.random.uniform(k_input, (2, in_channels, 84, 84), jnp.float32)

    params = init_critic_params(k_param, in_channels)
    prep = prepare_params(params)                     # one-time weight prep (hoisted)

    value = jax.jit(critic_forward)(prep, x)
    value = jax.block_until_ready(value)

    assert value.shape == (2, 1) and value.dtype == jnp.float32

    # bf16-matmul / f32-accumulate vs f32 reference: expect ~1e-3 abs error here.
    ref = critic_reference(params, x)
    err = float(jnp.max(jnp.abs(value - ref)))
    assert err < 3e-2, f"mismatch vs f32 reference: max abs err {err}"

    print("KERNEL_OK")
</pallas_src>

<mosaic_0001>
module attributes {stable_mosaic.version = 11 : i64} {
  func.func @_critic_kernel(%arg0: i32, %arg1: memref<1x21x2x11x64xbf16, #tpu.memory_space<vmem>>, %arg2: memref<256x32xbf16, #tpu.memory_space<vmem>>, %arg3: memref<1x32xf32, #tpu.memory_space<vmem>>, %arg4: memref<512x64xbf16, #tpu.memory_space<vmem>>, %arg5: memref<1x64xf32, #tpu.memory_space<vmem>>, %arg6: memref<576x64xbf16, #tpu.memory_space<vmem>>, %arg7: memref<1x64xf32, #tpu.memory_space<vmem>>, %arg8: memref<3136x512xbf16, #tpu.memory_space<vmem>>, %arg9: memref<1x512xf32, #tpu.memory_space<vmem>>, %arg10: memref<1x512xf32, #tpu.memory_space<vmem>>, %arg11: memref<1x1xf32, #tpu.memory_space<vmem>>, %arg12: memref<1x1x128xf32, #tpu.memory_space<vmem>>, %arg13: memref<2x200x32xbf16, #tpu.memory_space<vmem>>, %arg14: memref<81x64xbf16, #tpu.memory_space<vmem>>, %arg15: memref<49x64xbf16, #tpu.memory_space<vmem>>) attributes {dimension_semantics = [#tpu.dimension_semantics<parallel>], iteration_bounds = array<i64: 2>, scalar_prefetch = 0 : i64, scratch_operands = 3 : i64, tpu.core_type = #tpu.core_type<tc>, window_params = [{transform_indices = @transform_0, window_bounds = array<i64: 1, 21, 2, 11, 64>}, {pipeline_mode = #tpu.pipeline_mode<synchronous>, transform_indices = @transform_1, window_bounds = array<i64: 256, 32>}, {pipeline_mode = #tpu.pipeline_mode<synchronous>, transform_indices = @transform_2, window_bounds = array<i64: 1, 32>}, {pipeline_mode = #tpu.pipeline_mode<synchronous>, transform_indices = @transform_3, window_bounds = array<i64: 512, 64>}, {pipeline_mode = #tpu.pipeline_mode<synchronous>, transform_indices = @transform_4, window_bounds = array<i64: 1, 64>}, {pipeline_mode = #tpu.pipeline_mode<synchronous>, transform_indices = @transform_5, window_bounds = array<i64: 576, 64>}, {pipeline_mode = #tpu.pipeline_mode<synchronous>, transform_indices = @transform_6, window_bounds = array<i64: 1, 64>}, {pipeline_mode = #tpu.pipeline_mode<synchronous>, transform_indices = @transform_7, window_bounds = array<i64: 3136, 512>}, {pipeline_mode = #tpu.pipeline_mode<synchronous>, transform_indices = @transform_8, window_bounds = array<i64: 1, 512>}, {pipeline_mode = #tpu.pipeline_mode<synchronous>, transform_indices = @transform_9, window_bounds = array<i64: 1, 512>}, {pipeline_mode = #tpu.pipeline_mode<synchronous>, transform_indices = @transform_10, window_bounds = array<i64: 1, 1>}, {transform_indices = @transform_11, window_bounds = array<i64: 1, 1, 128>}]} {
    %c0 = arith.constant 0 : index
    %c0_0 = arith.constant 0 : index
    %c0_1 = arith.constant 0 : index
    %c0_2 = arith.constant 0 : index
    %c0_3 = arith.constant 0 : index
    %0 = vector.load %arg1[%c0, %c0_0, %c0_1, %c0_2, %c0_3] : memref<1x21x2x11x64xbf16, #tpu.memory_space<vmem>>, vector<1x1x1x10x64xbf16>
    %1 = vector.shape_cast %0 : vector<1x1x1x10x64xbf16> to vector<10x64xbf16>
    %c0_4 = arith.constant 0 : index
    %c1 = arith.constant 1 : index
    %c0_5 = arith.constant 0 : index
    %c0_6 = arith.constant 0 : index
    %c0_7 = arith.constant 0 : index
    %2 = vector.load %arg1[%c0_4, %c1, %c0_5, %c0_6, %c0_7] : memref<1x21x2x11x64xbf16, #tpu.memory_space<vmem>>, vector<1x1x1x10x64xbf16>
    %3 = vector.shape_cast %2 : vector<1x1x1x10x64xbf16> to vector<10x64xbf16>
    %c0_8 = arith.constant 0 : index
    %c2 = arith.constant 2 : index
    %c0_9 = arith.constant 0 : index
    %c0_10 = arith.constant 0 : index
    %c0_11 = arith.constant 0 : index
    %4 = vector.load %arg1[%c0_8, %c2, %c0_9, %c0_10, %c0_11] : memref<1x21x2x11x64xbf16, #tpu.memory_space<vmem>>, vector<1x1x1x10x64xbf16>
    %5 = vector.shape_cast %4 : vector<1x1x1x10x64xbf16> to vector<10x64xbf16>
    %c0_12 = arith.constant 0 : index
    %c3 = arith.constant 3 : index
    %c0_13 = arith.constant 0 : index
    %c0_14 = arith.constant 0 : index
    %c0_15 = arith.constant 0 : index
    %6 = vector.load %arg1[%c0_12, %c3, %c0_13, %c0_14, %c0_15] : memref<1x21x2x11x64xbf16, #tpu.memory_space<vmem>>, vector<1x1x1x10x64xbf16>
    %7 = vector.shape_cast %6 : vector<1x1x1x10x64xbf16> to vector<10x64xbf16>
    %c0_16 = arith.constant 0 : index
    %c4 = arith.constant 4 : index
    %c0_17 = arith.constant 0 : index
    %c0_18 = arith.constant 0 : index
    %c0_19 = arith.constant 0 : index
    %8 = vector.load %arg1[%c0_16, %c4, %c0_17, %c0_18, %c0_19] : memref<1x21x2x11x64xbf16, #tpu.memory_space<vmem>>, vector<1x1x1x10x64xbf16>
    %9 = vector.shape_cast %8 : vector<1x1x1x10x64xbf16> to vector<10x64xbf16>
    %c0_20 = arith.constant 0 : index
    %c5 = arith.constant 5 : index
    %c0_21 = arith.constant 0 : index
    %c0_22 = arith.constant 0 : index
    %c0_23 = arith.constant 0 : index
    %10 = vector.load %arg1[%c0_20, %c5, %c0_21, %c0_22, %c0_23] : memref<1x21x2x11x64xbf16, #tpu.memory_space<vmem>>, vector<1x1x1x10x64xbf16>
    %11 = vector.shape_cast %10 : vector<1x1x1x10x64xbf16> to vector<10x64xbf16>
    %c0_24 = arith.constant 0 : index
    %c6 = arith.constant 6 : index
    %c0_25 = arith.constant 0 : index
    %c0_26 = arith.constant 0 : index
    %c0_27 = arith.constant 0 : index
    %12 = vector.load %arg1[%c0_24, %c6, %c0_25, %c0_26, %c0_27] : memref<1x21x2x11x64xbf16, #tpu.memory_space<vmem>>, vector<1x1x1x10x64xbf16>
    %13 = vector.shape_cast %12 : vector<1x1x1x10x64xbf16> to vector<10x64xbf16>
    %c0_28 = arith.constant 0 : index
    %c7 = arith.constant 7 : index
    %c0_29 = arith.constant 0 : index
    %c0_30 = arith.constant 0 : index
    %c0_31 = arith.constant 0 : index
    %14 = vector.load %arg1[%c0_28, %c7, %c0_29, %c0_30, %c0_31] : memref<1x21x2x11x64xbf16, #tpu.memory_space<vmem>>, vector<1x1x1x10x64xbf16>
    %15 = vector.shape_cast %14 : vector<1x1x1x10x64xbf16> to vector<10x64xbf16>
    %c0_32 = arith.constant 0 : index
    %c8 = arith.constant 8 : index
    %c0_33 = arith.constant 0 : index
    %c0_34 = arith.constant 0 : index
    %c0_35 = arith.constant 0 : index
    %16 = vector.load %arg1[%c0_32, %c8, %c0_33, %c0_34, %c0_35] : memref<1x21x2x11x64xbf16, #tpu.memory_space<vmem>>, vector<1x1x1x10x64xbf16>
    %17 = vector.shape_cast %16 : vector<1x1x1x10x64xbf16> to vector<10x64xbf16>
    %c0_36 = arith.constant 0 : index
    %c9 = arith.constant 9 : index
    %c0_37 = arith.constant 0 : index
    %c0_38 = arith.constant 0 : index
    %c0_39 = arith.constant 0 : index
    %18 = vector.load %arg1[%c0_36, %c9, %c0_37, %c0_38, %c0_39] : memref<1x21x2x11x64xbf16, #tpu.memory_space<vmem>>, vector<1x1x1x10x64xbf16>
    %19 = vector.shape_cast %18 : vector<1x1x1x10x64xbf16> to vector<10x64xbf16>
    %c0_40 = arith.constant 0 : index
    %c10 = arith.constant 10 : index
    %c0_41 = arith.constant 0 : index
    %c0_42 = arith.constant 0 : index
    %c0_43 = arith.constant 0 : index
    %20 = vector.load %arg1[%c0_40, %c10, %c0_41, %c0_42, %c0_43] : memref<1x21x2x11x64xbf16, #tpu.memory_space<vmem>>, vector<1x1x1x10x64xbf16>
    %21 = vector.shape_cast %20 : vector<1x1x1x10x64xbf16> to vector<10x64xbf16>
    %c0_44 = arith.constant 0 : index
    %c11 = arith.constant 11 : index
    %c0_45 = arith.constant 0 : index
    %c0_46 = arith.constant 0 : index
    %c0_47 = arith.constant 0 : index
    %22 = vector.load %arg1[%c0_44, %c11, %c0_45, %c0_46, %c0_47] : memref<1x21x2x11x64xbf16, #tpu.memory_space<vmem>>, vector<1x1x1x10x64xbf16>
    %23 = vector.shape_cast %22 : vector<1x1x1x10x64xbf16> to vector<10x64xbf16>
    %c0_48 = arith.constant 0 : index
    %c12 = arith.constant 12 : index
    %c0_49 = arith.constant 0 : index
    %c0_50 = arith.constant 0 : index
    %c0_51 = arith.constant 0 : index
    %24 = vector.load %arg1[%c0_48, %c12, %c0_49, %c0_50, %c0_51] : memref<1x21x2x11x64xbf16, #tpu.memory_space<vmem>>, vector<1x1x1x10x64xbf16>
    %25 = vector.shape_cast %24 : vector<1x1x1x10x64xbf16> to vector<10x64xbf16>
    %c0_52 = arith.constant 0 : index
    %c13 = arith.constant 13 : index
    %c0_53 = arith.constant 0 : index
    %c0_54 = arith.constant 0 : index
    %c0_55 = arith.constant 0 : index
    %26 = vector.load %arg1[%c0_52, %c13, %c0_53, %c0_54, %c0_55] : memref<1x21x2x11x64xbf16, #tpu.memory_space<vmem>>, vector<1x1x1x10x64xbf16>
    %27 = vector.shape_cast %26 : vector<1x1x1x10x64xbf16> to vector<10x64xbf16>
    %c0_56 = arith.constant 0 : index
    %c14 = arith.constant 14 : index
    %c0_57 = arith.constant 0 : index
    %c0_58 = arith.constant 0 : index
    %c0_59 = arith.constant 0 : index
    %28 = vector.load %arg1[%c0_56, %c14, %c0_57, %c0_58, %c0_59] : memref<1x21x2x11x64xbf16, #tpu.memory_space<vmem>>, vector<1x1x1x10x64xbf16>
    %29 = vector.shape_cast %28 : vector<1x1x1x10x64xbf16> to vector<10x64xbf16>
    %c0_60 = arith.constant 0 : index
    %c15 = arith.constant 15 : index
    %c0_61 = arith.constant 0 : index
    %c0_62 = arith.constant 0 : index
    %c0_63 = arith.constant 0 : index
    %30 = vector.load %arg1[%c0_60, %c15, %c0_61, %c0_62, %c0_63] : memref<1x21x2x11x64xbf16, #tpu.memory_space<vmem>>, vector<1x1x1x10x64xbf16>
    %31 = vector.shape_cast %30 : vector<1x1x1x10x64xbf16> to vector<10x64xbf16>
    %c0_64 = arith.constant 0 : index
    %c16 = arith.constant 16 : index
    %c0_65 = arith.constant 0 : index
    %c0_66 = arith.constant 0 : index
    %c0_67 = arith.constant 0 : index
    %32 = vector.load %arg1[%c0_64, %c16, %c0_65, %c0_66, %c0_67] : memref<1x21x2x11x64xbf16, #tpu.memory_space<vmem>>, vector<1x1x1x10x64xbf16>
    %33 = vector.shape_cast %32 : vector<1x1x1x10x64xbf16> to vector<10x64xbf16>
    %c0_68 = arith.constant 0 : index
    %c17 = arith.constant 17 : index
    %c0_69 = arith.constant 0 : index
    %c0_70 = arith.constant 0 : index
    %c0_71 = arith.constant 0 : index
    %34 = vector.load %arg1[%c0_68, %c17, %c0_69, %c0_70, %c0_71] : memref<1x21x2x11x64xbf16, #tpu.memory_space<vmem>>, vector<1x1x1x10x64xbf16>
    %35 = vector.shape_cast %34 : vector<1x1x1x10x64xbf16> to vector<10x64xbf16>
    %c0_72 = arith.constant 0 : index
    %c18 = arith.constant 18 : index
    %c0_73 = arith.constant 0 : index
    %c0_74 = arith.constant 0 : index
    %c0_75 = arith.constant 0 : index
    %36 = vector.load %arg1[%c0_72, %c18, %c0_73, %c0_74, %c0_75] : memref<1x21x2x11x64xbf16, #tpu.memory_space<vmem>>, vector<1x1x1x10x64xbf16>
    %37 = vector.shape_cast %36 : vector<1x1x1x10x64xbf16> to vector<10x64xbf16>
    %c0_76 = arith.constant 0 : index
    %c19 = arith.constant 19 : index
    %c0_77 = arith.constant 0 : index
    %c0_78 = arith.constant 0 : index
    %c0_79 = arith.constant 0 : index
    %38 = vector.load %arg1[%c0_76, %c19, %c0_77, %c0_78, %c0_79] : memref<1x21x2x11x64xbf16, #tpu.memory_space<vmem>>, vector<1x1x1x10x64xbf16>
    %39 = vector.shape_cast %38 : vector<1x1x1x10x64xbf16> to vector<10x64xbf16>
    %c0_80 = arith.constant 0 : index
    %c20 = arith.constant 20 : index
    %c0_81 = arith.constant 0 : index
    %c0_82 = arith.constant 0 : index
    %c0_83 = arith.constant 0 : index
    %40 = vector.load %arg1[%c0_80, %c20, %c0_81, %c0_82, %c0_83] : memref<1x21x2x11x64xbf16, #tpu.memory_space<vmem>>, vector<1x1x1x10x64xbf16>
    %41 = vector.shape_cast %40 : vector<1x1x1x10x64xbf16> to vector<10x64xbf16>
    %c0_84 = arith.constant 0 : index
    %c0_85 = arith.constant 0 : index
    %c1_86 = arith.constant 1 : index
    %c0_87 = arith.constant 0 : index
    %c0_88 = arith.constant 0 : index
    %42 = vector.load %arg1[%c0_84, %c0_85, %c1_86, %c0_87, %c0_88] : memref<1x21x2x11x64xbf16, #tpu.memory_space<vmem>>, vector<1x1x1x10x64xbf16>
    %43 = vector.shape_cast %42 : vector<1x1x1x10x64xbf16> to vector<10x64xbf16>
    %c0_89 = arith.constant 0 : index
    %c1_90 = arith.constant 1 : index
    %c1_91 = arith.constant 1 : index
    %c0_92 = arith.constant 0 : index
    %c0_93 = arith.constant 0 : index
    %44 = vector.load %arg1[%c0_89, %c1_90, %c1_91, %c0_92, %c0_93] : memref<1x21x2x11x64xbf16, #tpu.memory_space<vmem>>, vector<1x1x1x10x64xbf16>
    %45 = vector.shape_cast %44 : vector<1x1x1x10x64xbf16> to vector<10x64xbf16>
    %c0_94 = arith.constant 0 : index
    %c2_95 = arith.constant 2 : index
    %c1_96 = arith.constant 1 : index
    %c0_97 = arith.constant 0 : index
    %c0_98 = arith.constant 0 : index
    %46 = vector.load %arg1[%c0_94, %c2_95, %c1_96, %c0_97, %c0_98] : memref<1x21x2x11x64xbf16, #tpu.memory_space<vmem>>, vector<1x1x1x10x64xbf16>
    %47 = vector.shape_cast %46 : vector<1x1x1x10x64xbf16> to vector<10x64xbf16>
    %c0_99 = arith.constant 0 : index
    %c3_100 = arith.constant 3 : index
    %c1_101 = arith.constant 1 : index
    %c0_102 = arith.constant 0 : index
    %c0_103 = arith.constant 0 : index
    %48 = vector.load %arg1[%c0_99, %c3_100, %c1_101, %c0_102, %c0_103] : memref<1x21x2x11x64xbf16, #tpu.memory_space<vmem>>, vector<1x1x1x10x64xbf16>
    %49 = vector.shape_cast %48 : vector<1x1x1x10x64xbf16> to vector<10x64xbf16>
    %c0_104 = arith.constant 0 : index
    %c4_105 = arith.constant 4 : index
    %c1_106 = arith.constant 1 : index
    %c0_107 = arith.constant 0 : index
    %c0_108 = arith.constant 0 : index
    %50 = vector.load %arg1[%c0_104, %c4_105, %c1_106, %c0_107, %c0_108] : memref<1x21x2x11x64xbf16, #tpu.memory_space<vmem>>, vector<1x1x1x10x64xbf16>
    %51 = vector.shape_cast %50 : vector<1x1x1x10x64xbf16> to vector<10x64xbf16>
    %c0_109 = arith.constant 0 : index
    %c5_110 = arith.constant 5 : index
    %c1_111 = arith.constant 1 : index
    %c0_112 = arith.constant 0 : index
    %c0_113 = arith.constant 0 : index
    %52 = vector.load %arg1[%c0_109, %c5_110, %c1_111, %c0_112, %c0_113] : memref<1x21x2x11x64xbf16, #tpu.memory_space<vmem>>, vector<1x1x1x10x64xbf16>
    %53 = vector.shape_cast %52 : vector<1x1x1x10x64xbf16> to vector<10x64xbf16>
    %c0_114 = arith.constant 0 : index
    %c6_115 = arith.constant 6 : index
    %c1_116 = arith.constant 1 : index
    %c0_117 = arith.constant 0 : index
    %c0_118 = arith.constant 0 : index
    %54 = vector.load %arg1[%c0_114, %c6_115, %c1_116, %c0_117, %c0_118] : memref<1x21x2x11x64xbf16, #tpu.memory_space<vmem>>, vector<1x1x1x10x64xbf16>
    %55 = vector.shape_cast %54 : vector<1x1x1x10x64xbf16> to vector<10x64xbf16>
    %c0_119 = arith.constant 0 : index
    %c7_120 = arith.constant 7 : index
    %c1_121 = arith.constant 1 : index
    %c0_122 = arith.constant 0 : index
    %c0_123 = arith.constant 0 : index
    %56 = vector.load %arg1[%c0_119, %c7_120, %c1_121, %c0_122, %c0_123] : memref<1x21x2x11x64xbf16, #tpu.memory_space<vmem>>, vector<1x1x1x10x64xbf16>
    %57 = vector.shape_cast %56 : vector<1x1x1x10x64xbf16> to vector<10x64xbf16>
    %c0_124 = arith.constant 0 : index
    %c8_125 = arith.constant 8 : index
    %c1_126 = arith.constant 1 : index
    %c0_127 = arith.constant 0 : index
    %c0_128 = arith.constant 0 : index
    %58 = vector.load %arg1[%c0_124, %c8_125, %c1_126, %c0_127, %c0_128] : memref<1x21x2x11x64xbf16, #tpu.memory_space<vmem>>, vector<1x1x1x10x64xbf16>
    %59 = vector.shape_cast %58 : vector<1x1x1x10x64xbf16> to vector<10x64xbf16>
    %c0_129 = arith.constant 0 : index
    %c9_130 = arith.constant 9 : index
    %c1_131 = arith.constant 1 : index
    %c0_132 = arith.constant 0 : index
    %c0_133 = arith.constant 0 : index
    %60 = vector.load %arg1[%c0_129, %c9_130, %c1_131, %c0_132, %c0_133] : memref<1x21x2x11x64xbf16, #tpu.memory_space<vmem>>, vector<1x1x1x10x64xbf16>
    %61 = vector.shape_cast %60 : vector<1x1x1x10x64xbf16> to vector<10x64xbf16>
    %c0_134 = arith.constant 0 : index
    %c10_135 = arith.constant 10 : index
    %c1_136 = arith.constant 1 : index
    %c0_137 = arith.constant 0 : index
    %c0_138 = arith.constant 0 : index
    %62 = vector.load %arg1[%c0_134, %c10_135, %c1_136, %c0_137, %c0_138] : memref<1x21x2x11x64xbf16, #tpu.memory_space<vmem>>, vector<1x1x1x10x64xbf16>
    %63 = vector.shape_cast %62 : vector<1x1x1x10x64xbf16> to vector<10x64xbf16>
    %c0_139 = arith.constant 0 : index
    %c11_140 = arith.constant 11 : index
    %c1_141 = arith.constant 1 : index
    %c0_142 = arith.constant 0 : index
    %c0_143 = arith.constant 0 : index
    %64 = vector.load %arg1[%c0_139, %c11_140, %c1_141, %c0_142, %c0_143] : memref<1x21x2x11x64xbf16, #tpu.memory_space<vmem>>, vector<1x1x1x10x64xbf16>
    %65 = vector.shape_cast %64 : vector<1x1x1x10x64xbf16> to vector<10x64xbf16>
    %c0_144 = arith.constant 0 : index
    %c12_145 = arith.constant 12 : index
    %c1_146 = arith.constant 1 : index
    %c0_147 = arith.constant 0 : index
    %c0_148 = arith.constant 0 : index
    %66 = vector.load %arg1[%c0_144, %c12_145, %c1_146, %c0_147, %c0_148] : memref<1x21x2x11x64xbf16, #tpu.memory_space<vmem>>, vector<1x1x1x10x64xbf16>
    %67 = vector.shape_cast %66 : vector<1x1x1x10x64xbf16> to vector<10x64xbf16>
    %c0_149 = arith.constant 0 : index
    %c13_150 = arith.constant 13 : index
    %c1_151 = arith.constant 1 : index
    %c0_152 = arith.constant 0 : index
    %c0_153 = arith.constant 0 : index
    %68 = vector.load %arg1[%c0_149, %c13_150, %c1_151, %c0_152, %c0_153] : memref<1x21x2x11x64xbf16, #tpu.memory_space<vmem>>, vector<1x1x1x10x64xbf16>
    %69 = vector.shape_cast %68 : vector<1x1x1x10x64xbf16> to vector<10x64xbf16>
    %c0_154 = arith.constant 0 : index
    %c14_155 = arith.constant 14 : index
    %c1_156 = arith.constant 1 : index
    %c0_157 = arith.constant 0 : index
    %c0_158 = arith.constant 0 : index
    %70 = vector.load %arg1[%c0_154, %c14_155, %c1_156, %c0_157, %c0_158] : memref<1x21x2x11x64xbf16, #tpu.memory_space<vmem>>, vector<1x1x1x10x64xbf16>
    %71 = vector.shape_cast %70 : vector<1x1x1x10x64xbf16> to vector<10x64xbf16>
    %c0_159 = arith.constant 0 : index
    %c15_160 = arith.constant 15 : index
    %c1_161 = arith.constant 1 : index
    %c0_162 = arith.constant 0 : index
    %c0_163 = arith.constant 0 : index
    %72 = vector.load %arg1[%c0_159, %c15_160, %c1_161, %c0_162, %c0_163] : memref<1x21x2x11x64xbf16, #tpu.memory_space<vmem>>, vector<1x1x1x10x64xbf16>
    %73 = vector.shape_cast %72 : vector<1x1x1x10x64xbf16> to vector<10x64xbf16>
    %c0_164 = arith.constant 0 : index
    %c16_165 = arith.constant 16 : index
    %c1_166 = arith.constant 1 : index
    %c0_167 = arith.constant 0 : index
    %c0_168 = arith.constant 0 : index
    %74 = vector.load %arg1[%c0_164, %c16_165, %c1_166, %c0_167, %c0_168] : memref<1x21x2x11x64xbf16, #tpu.memory_space<vmem>>, vector<1x1x1x10x64xbf16>
    %75 = vector.shape_cast %74 : vector<1x1x1x10x64xbf16> to vector<10x64xbf16>
    %c0_169 = arith.constant 0 : index
    %c17_170 = arith.constant 17 : index
    %c1_171 = arith.constant 1 : index
    %c0_172 = arith.constant 0 : index
    %c0_173 = arith.constant 0 : index
    %76 = vector.load %arg1[%c0_169, %c17_170, %c1_171, %c0_172, %c0_173] : memref<1x21x2x11x64xbf16, #tpu.memory_space<vmem>>, vector<1x1x1x10x64xbf16>
    %77 = vector.shape_cast %76 : vector<1x1x1x10x64xbf16> to vector<10x64xbf16>
    %c0_174 = arith.constant 0 : index
    %c18_175 = arith.constant 18 : index
    %c1_176 = arith.constant 1 : index
    %c0_177 = arith.constant 0 : index
    %c0_178 = arith.constant 0 : index
    %78 = vector.load %arg1[%c0_174, %c18_175, %c1_176, %c0_177, %c0_178] : memref<1x21x2x11x64xbf16, #tpu.memory_space<vmem>>, vector<1x1x1x10x64xbf16>
    %79 = vector.shape_cast %78 : vector<1x1x1x10x64xbf16> to vector<10x64xbf16>
    %c0_179 = arith.constant 0 : index
    %c19_180 = arith.constant 19 : index
    %c1_181 = arith.constant 1 : index
    %c0_182 = arith.constant 0 : index
    %c0_183 = arith.constant 0 : index
    %80 = vector.load %arg1[%c0_179, %c19_180, %c1_181, %c0_182, %c0_183] : memref<1x21x2x11x64xbf16, #tpu.memory_space<vmem>>, vector<1x1x1x10x64xbf16>
    %81 = vector.shape_cast %80 : vector<1x1x1x10x64xbf16> to vector<10x64xbf16>
    %c0_184 = arith.constant 0 : index
    %c20_185 = arith.constant 20 : index
    %c1_186 = arith.constant 1 : index
    %c0_187 = arith.constant 0 : index
    %c0_188 = arith.constant 0 : index
    %82 = vector.load %arg1[%c0_184, %c20_185, %c1_186, %c0_187, %c0_188] : memref<1x21x2x11x64xbf16, #tpu.memory_space<vmem>>, vector<1x1x1x10x64xbf16>
    %83 = vector.shape_cast %82 : vector<1x1x1x10x64xbf16> to vector<10x64xbf16>
    %c0_189 = arith.constant 0 : index
    %c0_190 = arith.constant 0 : index
    %c0_191 = arith.constant 0 : index
    %c1_192 = arith.constant 1 : index
    %c0_193 = arith.constant 0 : index
    %84 = vector.load %arg1[%c0_189, %c0_190, %c0_191, %c1_192, %c0_193] : memref<1x21x2x11x64xbf16, #tpu.memory_space<vmem>>, vector<1x1x1x10x64xbf16>
    %85 = vector.shape_cast %84 : vector<1x1x1x10x64xbf16> to vector<10x64xbf16>
    %c0_194 = arith.constant 0 : index
    %c1_195 = arith.constant 1 : index
    %c0_196 = arith.constant 0 : index
    %c1_197 = arith.constant 1 : index
    %c0_198 = arith.constant 0 : index
    %86 = vector.load %arg1[%c0_194, %c1_195, %c0_196, %c1_197, %c0_198] : memref<1x21x2x11x64xbf16, #tpu.memory_space<vmem>>, vector<1x1x1x10x64xbf16>
    %87 = vector.shape_cast %86 : vector<1x1x1x10x64xbf16> to vector<10x64xbf16>
    %c0_199 = arith.constant 0 : index
    %c2_200 = arith.constant 2 : index
    %c0_201 = arith.constant 0 : index
    %c1_202 = arith.constant 1 : index
    %c0_203 = arith.constant 0 : index
    %88 = vector.load %arg1[%c0_199, %c2_200, %c0_201, %c1_202, %c0_203] : memref<1x21x2x11x64xbf16, #tpu.memory_space<vmem>>, vector<1x1x1x10x64xbf16>
    %89 = vector.shape_cast %88 : vector<1x1x1x10x64xbf16> to vector<10x64xbf16>
    %c0_204 = arith.constant 0 : index
    %c3_205 = arith.constant 3 : index
    %c0_206 = arith.constant 0 : index
    %c1_207 = arith.constant 1 : index
    %c0_208 = arith.constant 0 : index
    %90 = vector.load %arg1[%c0_204, %c3_205, %c0_206, %c1_207, %c0_208] : memref<1x21x2x11x64xbf16, #tpu.memory_space<vmem>>, vector<1x1x1x10x64xbf16>
    %91 = vector.shape_cast %90 : vector<1x1x1x10x64xbf16> to vector<10x64xbf16>
    %c0_209 = arith.constant 0 : index
    %c4_210 = arith.constant 4 : index
    %c0_211 = arith.constant 0 : index
    %c1_212 = arith.constant 1 : index
    %c0_213 = arith.constant 0 : index
    %92 = vector.load %arg1[%c0_209, %c4_210, %c0_211, %c1_212, %c0_213] : memref<1x21x2x11x64xbf16, #tpu.memory_space<vmem>>, vector<1x1x1x10x64xbf16>
    %93 = vector.shape_cast %92 : vector<1x1x1x10x64xbf16> to vector<10x64xbf16>
    %c0_214 = arith.constant 0 : index
    %c5_215 = arith.constant 5 : index
    %c0_216 = arith.constant 0 : index
    %c1_217 = arith.constant 1 : index
    %c0_218 = arith.constant 0 : index
    %94 = vector.load %arg1[%c0_214, %c5_215, %c0_216, %c1_217, %c0_218] : memref<1x21x2x11x64xbf16, #tpu.memory_space<vmem>>, vector<1x1x1x10x64xbf16>
    %95 = vector.shape_cast %94 : vector<1x1x1x10x64xbf16> to vector<10x64xbf16>
    %c0_219 = arith.constant 0 : index
    %c6_220 = arith.constant 6 : index
    %c0_221 = arith.constant 0 : index
    %c1_222 = arith.constant 1 : index
    %c0_223 = arith.constant 0 : index
    %96 = vector.load %arg1[%c0_219, %c6_220, %c0_221, %c1_222, %c0_223] : memref<1x21x2x11x64xbf16, #tpu.memory_space<vmem>>, vector<1x1x1x10x64xbf16>
    %97 = vector.shape_cast %96 : vector<1x1x1x10x64xbf16> to vector<10x64xbf16>
    %c0_224 = arith.constant 0 : index
    %c7_225 = arith.constant 7 : index
    %c0_226 = arith.constant 0 : index
    %c1_227 = arith.constant 1 : index
    %c0_228 = arith.constant 0 : index
    %98 = vector.load %arg1[%c0_224, %c7_225, %c0_226, %c1_227, %c0_228] : memref<1x21x2x11x64xbf16, #tpu.memory_space<vmem>>, vector<1x1x1x10x64xbf16>
    %99 = vector.shape_cast %98 : vector<1x1x1x10x64xbf16> to vector<10x64xbf16>
    %c0_229 = arith.constant 0 : index
    %c8_230 = arith.constant 8 : index
    %c0_231 = arith.constant 0 : index
    %c1_232 = arith.constant 1 : index
    %c0_233 = arith.constant 0 : index
    %100 = vector.load %arg1[%c0_229, %c8_230, %c0_231, %c1_232, %c0_233] : memref<1x21x2x11x64xbf16, #tpu.memory_space<vmem>>, vector<1x1x1x10x64xbf16>
    %101 = vector.shape_cast %100 : vector<1x1x1x10x64xbf16> to vector<10x64xbf16>
    %c0_234 = arith.constant 0 : index
    %c9_235 = arith.constant 9 : index
    %c0_236 = arith.constant 0 : index
    %c1_237 = arith.constant 1 : index
    %c0_238 = arith.constant 0 : index
    %102 = vector.load %arg1[%c0_234, %c9_235, %c0_236, %c1_237, %c0_238] : memref<1x21x2x11x64xbf16, #tpu.memory_space<vmem>>, vector<1x1x1x10x64xbf16>
    %103 = vector.shape_cast %102 : vector<1x1x1x10x64xbf16> to vector<10x64xbf16>
    %c0_239 = arith.constant 0 : index
    %c10_240 = arith.constant 10 : index
    %c0_241 = arith.constant 0 : index
    %c1_242 = arith.constant 1 : index
    %c0_243 = arith.constant 0 : index
    %104 = vector.load %arg1[%c0_239, %c10_240, %c0_241, %c1_242, %c0_243] : memref<1x21x2x11x64xbf16, #tpu.memory_space<vmem>>, vector<1x1x1x10x64xbf16>
    %105 = vector.shape_cast %104 : vector<1x1x1x10x64xbf16> to vector<10x64xbf16>
    %c0_244 = arith.constant 0 : index
    %c11_245 = arith.constant 11 : index
    %c0_246 = arith.constant 0 : index
    %c1_247 = arith.constant 1 : index
    %c0_248 = arith.constant 0 : index
    %106 = vector.load %arg1[%c0_244, %c11_245, %c0_246, %c1_247, %c0_248] : memref<1x21x2x11x64xbf16, #tpu.memory_space<vmem>>, vector<1x1x1x10x64xbf16>
    %107 = vector.shape_cast %106 : vector<1x1x1x10x64xbf16> to vector<10x64xbf16>
    %c0_249 = arith.constant 0 : index
    %c12_250 = arith.constant 12 : index
    %c0_251 = arith.constant 0 : index
    %c1_252 = arith.constant 1 : index
    %c0_253 = arith.constant 0 : index
    %108 = vector.load %arg1[%c0_249, %c12_250, %c0_251, %c1_252, %c0_253] : memref<1x21x2x11x64xbf16, #tpu.memory_space<vmem>>, vector<1x1x1x10x64xbf16>
    %109 = vector.shape_cast %108 : vector<1x1x1x10x64xbf16> to vector<10x64xbf16>
    %c0_254 = arith.constant 0 : index
    %c13_255 = arith.constant 13 : index
    %c0_256 = arith.constant 0 : index
    %c1_257 = arith.constant 1 : index
    %c0_258 = arith.constant 0 : index
    %110 = vector.load %arg1[%c0_254, %c13_255, %c0_256, %c1_257, %c0_258] : memref<1x21x2x11x64xbf16, #tpu.memory_space<vmem>>, vector<1x1x1x10x64xbf16>
    %111 = vector.shape_cast %110 : vector<1x1x1x10x64xbf16> to vector<10x64xbf16>
    %c0_259 = arith.constant 0 : index
    %c14_260 = arith.constant 14 : index
    %c0_261 = arith.constant 0 : index
    %c1_262 = arith.constant 1 : index
    %c0_263 = arith.constant 0 : index
    %112 = vector.load %arg1[%c0_259, %c14_260, %c0_261, %c1_262, %c0_263] : memref<1x21x2x11x64xbf16, #tpu.memory_space<vmem>>, vector<1x1x1x10x64xbf16>
    %113 = vector.shape_cast %112 : vector<1x1x1x10x64xbf16> to vector<10x64xbf16>
    %c0_264 = arith.constant 0 : index
    %c15_265 = arith.constant 15 : index
    %c0_266 = arith.constant 0 : index
    %c1_267 = arith.constant 1 : index
    %c0_268 = arith.constant 0 : index
    %114 = vector.load %arg1[%c0_264, %c15_265, %c0_266, %c1_267, %c0_268] : memref<1x21x2x11x64xbf16, #tpu.memory_space<vmem>>, vector<1x1x1x10x64xbf16>
    %115 = vector.shape_cast %114 : vector<1x1x1x10x64xbf16> to vector<10x64xbf16>
    %c0_269 = arith.constant 0 : index
    %c16_270 = arith.constant 16 : index
    %c0_271 = arith.constant 0 : index
    %c1_272 = arith.constant 1 : index
    %c0_273 = arith.constant 0 : index
    %116 = vector.load %arg1[%c0_269, %c16_270, %c0_271, %c1_272, %c0_273] : memref<1x21x2x11x64xbf16, #tpu.memory_space<vmem>>, vector<1x1x1x10x64xbf16>
    %117 = vector.shape_cast %116 : vector<1x1x1x10x64xbf16> to vector<10x64xbf16>
    %c0_274 = arith.constant 0 : index
    %c17_275 = arith.constant 17 : index
    %c0_276 = arith.constant 0 : index
    %c1_277 = arith.constant 1 : index
    %c0_278 = arith.constant 0 : index
    %118 = vector.load %arg1[%c0_274, %c17_275, %c0_276, %c1_277, %c0_278] : memref<1x21x2x11x64xbf16, #tpu.memory_space<vmem>>, vector<1x1x1x10x64xbf16>
    %119 = vector.shape_cast %118 : vector<1x1x1x10x64xbf16> to vector<10x64xbf16>
    %c0_279 = arith.constant 0 : index
    %c18_280 = arith.constant 18 : index
    %c0_281 = arith.constant 0 : index
    %c1_282 = arith.constant 1 : index
    %c0_283 = arith.constant 0 : index
    %120 = vector.load %arg1[%c0_279, %c18_280, %c0_281, %c1_282, %c0_283] : memref<1x21x2x11x64xbf16, #tpu.memory_space<vmem>>, vector<1x1x1x10x64xbf16>
    %121 = vector.shape_cast %120 : vector<1x1x1x10x64xbf16> to vector<10x64xbf16>
    %c0_284 = arith.constant 0 : index
    %c19_285 = arith.constant 19 : index
    %c0_286 = arith.constant 0 : index
    %c1_287 = arith.constant 1 : index
    %c0_288 = arith.constant 0 : index
    %122 = vector.load %arg1[%c0_284, %c19_285, %c0_286, %c1_287, %c0_288] : memref<1x21x2x11x64xbf16, #tpu.memory_space<vmem>>, vector<1x1x1x10x64xbf16>
    %123 = vector.shape_cast %122 : vector<1x1x1x10x64xbf16> to vector<10x64xbf16>
    %c0_289 = arith.constant 0 : index
    %c20_290 = arith.constant 20 : index
    %c0_291 = arith.constant 0 : index
    %c1_292 = arith.constant 1 : index
    %c0_293 = arith.constant 0 : index
    %124 = vector.load %arg1[%c0_289, %c20_290, %c0_291, %c1_292, %c0_293] : memref<1x21x2x11x64xbf16, #tpu.memory_space<vmem>>, vector<1x1x1x10x64xbf16>
    %125 = vector.shape_cast %124 : vector<1x1x1x10x64xbf16> to vector<10x64xbf16>
    %126 = tpu.concatenate %1, %43, %3, %45 in 1 : vector<10x64xbf16>, vector<10x64xbf16>, vector<10x64xbf16>, vector<10x64xbf16> -> vector<10x256xbf16>
    %127 = tpu.concatenate %3, %45, %5, %47 in 1 : vector<10x64xbf16>, vector<10x64xbf16>, vector<10x64xbf16>, vector<10x64xbf16> -> vector<10x256xbf16>
    %128 = tpu.concatenate %5, %47, %7, %49 in 1 : vector<10x64xbf16>, vector<10x64xbf16>, vector<10x64xbf16>, vector<10x64xbf16> -> vector<10x256xbf16>
    %129 = tpu.concatenate %7, %49, %9, %51 in 1 : vector<10x64xbf16>, vector<10x64xbf16>, vector<10x64xbf16>, vector<10x64xbf16> -> vector<10x256xbf16>
    %130 = tpu.concatenate %9, %51, %11, %53 in 1 : vector<10x64xbf16>, vector<10x64xbf16>, vector<10x64xbf16>, vector<10x64xbf16> -> vector<10x256xbf16>
    %131 = tpu.concatenate %11, %53, %13, %55 in 1 : vector<10x64xbf16>, vector<10x64xbf16>, vector<10x64xbf16>, vector<10x64xbf16> -> vector<10x256xbf16>
    %132 = tpu.concatenate %13, %55, %15, %57 in 1 : vector<10x64xbf16>, vector<10x64xbf16>, vector<10x64xbf16>, vector<10x64xbf16> -> vector<10x256xbf16>
    %133 = tpu.concatenate %15, %57, %17, %59 in 1 : vector<10x64xbf16>, vector<10x64xbf16>, vector<10x64xbf16>, vector<10x64xbf16> -> vector<10x256xbf16>
    %134 = tpu.concatenate %17, %59, %19, %61 in 1 : vector<10x64xbf16>, vector<10x64xbf16>, vector<10x64xbf16>, vector<10x64xbf16> -> vector<10x256xbf16>
    %135 = tpu.concatenate %19, %61, %21, %63 in 1 : vector<10x64xbf16>, vector<10x64xbf16>, vector<10x64xbf16>, vector<10x64xbf16> -> vector<10x256xbf16>
    %136 = tpu.concatenate %21, %63, %23, %65 in 1 : vector<10x64xbf16>, vector<10x64xbf16>, vector<10x64xbf16>, vector<10x64xbf16> -> vector<10x256xbf16>
    %137 = tpu.concatenate %23, %65, %25, %67 in 1 : vector<10x64xbf16>, vector<10x64xbf16>, vector<10x64xbf16>, vector<10x64xbf16> -> vector<10x256xbf16>
    %138 = tpu.concatenate %25, %67, %27, %69 in 1 : vector<10x64xbf16>, vector<10x64xbf16>, vector<10x64xbf16>, vector<10x64xbf16> -> vector<10x256xbf16>
    %139 = tpu.concatenate %27, %69, %29, %71 in 1 : vector<10x64xbf16>, vector<10x64xbf16>, vector<10x64xbf16>, vector<10x64xbf16> -> vector<10x256xbf16>
    %140 = tpu.concatenate %29, %71, %31, %73 in 1 : vector<10x64xbf16>, vector<10x64xbf16>, vector<10x64xbf16>, vector<10x64xbf16> -> vector<10x256xbf16>
    %141 = tpu.concatenate %31, %73, %33, %75 in 1 : vector<10x64xbf16>, vector<10x64xbf16>, vector<10x64xbf16>, vector<10x64xbf16> -> vector<10x256xbf16>
    %142 = tpu.concatenate %33, %75, %35, %77 in 1 : vector<10x64xbf16>, vector<10x64xbf16>, vector<10x64xbf16>, vector<10x64xbf16> -> vector<10x256xbf16>
    %143 = tpu.concatenate %35, %77, %37, %79 in 1 : vector<10x64xbf16>, vector<10x64xbf16>, vector<10x64xbf16>, vector<10x64xbf16> -> vector<10x256xbf16>
    %144 = tpu.concatenate %37, %79, %39, %81 in 1 : vector<10x64xbf16>, vector<10x64xbf16>, vector<10x64xbf16>, vector<10x64xbf16> -> vector<10x256xbf16>
    %145 = tpu.concatenate %39, %81, %41, %83 in 1 : vector<10x64xbf16>, vector<10x64xbf16>, vector<10x64xbf16>, vector<10x64xbf16> -> vector<10x256xbf16>
    %146 = tpu.concatenate %126, %127, %128, %129, %130, %131, %132, %133, %134, %135, %136, %137, %138, %139, %140, %141 in 0 : vector<10x256xbf16>, vector<10x256xbf16>, vector<10x256xbf16>, vector<10x256xbf16>, vector<10x256xbf16>, vector<10x256xbf16>, vector<10x256xbf16>, vector<10x256xbf16>, vector<10x256xbf16>, vector<10x256xbf16>, vector<10x256xbf16>, vector<10x256xbf16>, vector<10x256xbf16>, vector<10x256xbf16>, vector<10x256xbf16>, vector<10x256xbf16> -> vector<160x256xbf16>
    %147 = tpu.concatenate %142, %143, %144, %145 in 0 : vector<10x256xbf16>, vector<10x256xbf16>, vector<10x256xbf16>, vector<10x256xbf16> -> vector<40x256xbf16>
    %148 = tpu.concatenate %146, %147 in 0 : vector<160x256xbf16>, vector<40x256xbf16> -> vector<200x256xbf16>
    %c0_294 = arith.constant 0 : index
    %c0_295 = arith.constant 0 : index
    %149 = vector.load %arg2[%c0_294, %c0_295] : memref<256x32xbf16, #tpu.memory_space<vmem>>, vector<256x32xbf16>
    %cst = arith.constant dense<0.000000e+00> : vector<200x32xf32>
    %150 = tpu.matmul %148, %149, %cst {dimension_numbers = #tpu.dot_dimension_numbers<[1], [0], [0], [1], [0, 0, 1, 1], [], []>} : vector<200x256xbf16>, vector<256x32xbf16>, vector<200x32xf32> -> vector<200x32xf32>
    %c0_296 = arith.constant 0 : index
    %c0_297 = arith.constant 0 : index
    %151 = vector.load %arg3[%c0_296, %c0_297] : memref<1x32xf32, #tpu.memory_space<vmem>>, vector<1x32xf32>
    %152 = vector.broadcast %151 : vector<1x32xf32> to vector<200x32xf32>
    %153 = arith.addf %150, %152 : vector<200x32xf32>
    %cst_298 = arith.constant 0.000000e+00 : f32
    %154 = vector.broadcast %cst_298 : f32 to vector<200x32xf32>
    %155 = arith.maximumf %153, %154 : vector<200x32xf32>
    %156 = arith.truncf %155 : vector<200x32xf32> to vector<200x32xbf16>
    %c0_299 = arith.constant 0 : index
    %c0_300 = arith.constant 0 : index
    %c0_301 = arith.constant 0 : index
    %157 = vector.load %arg13[%c0_299, %c0_300, %c0_301] : memref<2x200x32xbf16, #tpu.memory_space<vmem>>, vector<1x200x32xbf16>
    %158 = vector.shape_cast %157 : vector<1x200x32xbf16> to vector<200x32xbf16>
    %159 = vector.shape_cast %156 : vector<200x32xbf16> to vector<1x200x32xbf16>
    tpu.vector_store %arg13[%c0_299, %c0_300, %c0_301], %159 {strides = array<i32>} : memref<2x200x32xbf16, #tpu.memory_space<vmem>>, vector<1x200x32xbf16>,
    %160 = tpu.concatenate %43, %85, %45, %87 in 1 : vector<10x64xbf16>, vector<10x64xbf16>, vector<10x64xbf16>, vector<10x64xbf16> -> vector<10x256xbf16>
    %161 = tpu.concatenate %45, %87, %47, %89 in 1 : vector<10x64xbf16>, vector<10x64xbf16>, vector<10x64xbf16>, vector<10x64xbf16> -> vector<10x256xbf16>
    %162 = tpu.concatenate %47, %89, %49, %91 in 1 : vector<10x64xbf16>, vector<10x64xbf16>, vector<10x64xbf16>, vector<10x64xbf16> -> vector<10x256xbf16>
    %163 = tpu.concatenate %49, %91, %51, %93 in 1 : vector<10x64xbf16>, vector<10x64xbf16>, vector<10x64xbf16>, vector<10x64xbf16> -> vector<10x256xbf16>
    %164 = tpu.concatenate %51, %93, %53, %95 in 1 : vector<10x64xbf16>, vector<10x64xbf16>, vector<10x64xbf16>, vector<10x64xbf16> -> vector<10x256xbf16>
    %165 = tpu.concatenate %53, %95, %55, %97 in 1 : vector<10x64xbf16>, vector<10x64xbf16>, vector<10x64xbf16>, vector<10x64xbf16> -> vector<10x256xbf16>
    %166 = tpu.concatenate %55, %97, %57, %99 in 1 : vector<10x64xbf16>, vector<10x64xbf16>, vector<10x64xbf16>, vector<10x64xbf16> -> vector<10x256xbf16>
    %167 = tpu.concatenate %57, %99, %59, %101 in 1 : vector<10x64xbf16>, vector<10x64xbf16>, vector<10x64xbf16>, vector<10x64xbf16> -> vector<10x256xbf16>
    %168 = tpu.concatenate %59, %101, %61, %103 in 1 : vector<10x64xbf16>, vector<10x64xbf16>, vector<10x64xbf16>, vector<10x64xbf16> -> vector<10x256xbf16>
    %169 = tpu.concatenate %61, %103, %63, %105 in 1 : vector<10x64xbf16>, vector<10x64xbf16>, vector<10x64xbf16>, vector<10x64xbf16> -> vector<10x256xbf16>
    %170 = tpu.concatenate %63, %105, %65, %107 in 1 : vector<10x64xbf16>, vector<10x64xbf16>, vector<10x64xbf16>, vector<10x64xbf16> -> vector<10x256xbf16>
    %171 = tpu.concatenate %65, %107, %67, %109 in 1 : vector<10x64xbf16>, vector<10x64xbf16>, vector<10x64xbf16>, vector<10x64xbf16> -> vector<10x256xbf16>
    %172 = tpu.concatenate %67, %109, %69, %111 in 1 : vector<10x64xbf16>, vector<10x64xbf16>, vector<10x64xbf16>, vector<10x64xbf16> -> vector<10x256xbf16>
    %173 = tpu.concatenate %69, %111, %71, %113 in 1 : vector<10x64xbf16>, vector<10x64xbf16>, vector<10x64xbf16>, vector<10x64xbf16> -> vector<10x256xbf16>
    %174 = tpu.concatenate %71, %113, %73, %115 in 1 : vector<10x64xbf16>, vector<10x64xbf16>, vector<10x64xbf16>, vector<10x64xbf16> -> vector<10x256xbf16>
    %175 = tpu.concatenate %73, %115, %75, %117 in 1 : vector<10x64xbf16>, vector<10x64xbf16>, vector<10x64xbf16>, vector<10x64xbf16> -> vector<10x256xbf16>
    %176 = tpu.concatenate %75, %117, %77, %119 in 1 : vector<10x64xbf16>, vector<10x64xbf16>, vector<10x64xbf16>, vector<10x64xbf16> -> vector<10x256xbf16>
    %177 = tpu.concatenate %77, %119, %79, %121 in 1 : vector<10x64xbf16>, vector<10x64xbf16>, vector<10x64xbf16>, vector<10x64xbf16> -> vector<10x256xbf16>
    %178 = tpu.concatenate %79, %121, %81, %123 in 1 : vector<10x64xbf16>, vector<10x64xbf16>, vector<10x64xbf16>, vector<10x64xbf16> -> vector<10x256xbf16>
    %179 = tpu.concatenate %81, %123, %83, %125 in 1 : vector<10x64xbf16>, vector<10x64xbf16>, vector<10x64xbf16>, vector<10x64xbf16> -> vector<10x256xbf16>
    %180 = tpu.concatenate %160, %161, %162, %163, %164, %165, %166, %167, %168, %169, %170, %171, %172, %173, %174, %175 in 0 : vector<10x256xbf16>, vector<10x256xbf16>, vector<10x256xbf16>, vector<10x256xbf16>, vector<10x256xbf16>, vector<10x256xbf16>, vector<10x256xbf16>, vector<10x256xbf16>, vector<10x256xbf16>, vector<10x256xbf16>, vector<10x256xbf16>, vector<10x256xbf16>, vector<10x256xbf16>, vector<10x256xbf16>, vector<10x256xbf16>, vector<10x256xbf16> -> vector<160x256xbf16>
    %181 = tpu.concatenate %176, %177, %178, %179 in 0 : vector<10x256xbf16>, vector<10x256xbf16>, vector<10x256xbf16>, vector<10x256xbf16> -> vector<40x256xbf16>
    %182 = tpu.concatenate %180, %181 in 0 : vector<160x256xbf16>, vector<40x256xbf16> -> vector<200x256xbf16>
    %c0_302 = arith.constant 0 : index
    %c0_303 = arith.constant 0 : index
    %183 = vector.load %arg2[%c0_302, %c0_303] : memref<256x32xbf16, #tpu.memory_space<vmem>>, vector<256x32xbf16>
    %cst_304 = arith.constant dense<0.000000e+00> : vector<200x32xf32>
    %184 = tpu.matmul %182, %183, %cst_304 {dimension_numbers = #tpu.dot_dimension_numbers<[1], [0], [0], [1], [0, 0, 1, 1], [], []>} : vector<200x256xbf16>, vector<256x32xbf16>, vector<200x32xf32> -> vector<200x32xf32>
    %c0_305 = arith.constant 0 : index
    %c0_306 = arith.constant 0 : index
    %185 = vector.load %arg3[%c0_305, %c0_306] : memref<1x32xf32, #tpu.memory_space<vmem>>, vector<1x32xf32>
    %186 = vector.broadcast %185 : vector<1x32xf32> to vector<200x32xf32>
    %187 = arith.addf %184, %186 : vector<200x32xf32>
    %cst_307 = arith.constant 0.000000e+00 : f32
    %188 = vector.broadcast %cst_307 : f32 to vector<200x32xf32>
    %189 = arith.maximumf %187, %188 : vector<200x32xf32>
    %190 = arith.truncf %189 : vector<200x32xf32> to vector<200x32xbf16>
    %c1_308 = arith.constant 1 : index
    %c0_309 = arith.constant 0 : index
    %c0_310 = arith.constant 0 : index
    %191 = vector.load %arg13[%c1_308, %c0_309, %c0_310] : memref<2x200x32xbf16, #tpu.memory_space<vmem>>, vector<1x200x32xbf16>
    %192 = vector.shape_cast %191 : vector<1x200x32xbf16> to vector<200x32xbf16>
    %193 = vector.shape_cast %190 : vector<200x32xbf16> to vector<1x200x32xbf16>
    tpu.vector_store %arg13[%c1_308, %c0_309, %c0_310], %193 {strides = array<i32>} : memref<2x200x32xbf16, #tpu.memory_space<vmem>>, vector<1x200x32xbf16>,
    %c0_311 = arith.constant 0 : index
    %c0_312 = arith.constant 0 : index
    %c0_313 = arith.constant 0 : index
    %194 = vector.load %arg13[%c0_311, %c0_312, %c0_313] : memref<2x200x32xbf16, #tpu.memory_space<vmem>>, vector<1x9x32xbf16>
    %195 = vector.shape_cast %194 : vector<1x9x32xbf16> to vector<9x32xbf16>
    %c1_314 = arith.constant 1 : index
    %c0_315 = arith.constant 0 : index
    %c0_316 = arith.constant 0 : index
    %196 = vector.load %arg13[%c1_314, %c0_315, %c0_316] : memref<2x200x32xbf16, #tpu.memory_space<vmem>>, vector<1x9x32xbf16>
    %197 = vector.shape_cast %196 : vector<1x9x32xbf16> to vector<9x32xbf16>
    %c0_317 = arith.constant 0 : index
    %c1_318 = arith.constant 1 : index
    %c0_319 = arith.constant 0 : index
    %198 = vector.load %arg13[%c0_317, %c1_318, %c0_319] : memref<2x200x32xbf16, #tpu.memory_space<vmem>>, vector<1x9x32xbf16>
    %199 = vector.shape_cast %198 : vector<1x9x32xbf16> to vector<9x32xbf16>
    %c1_320 = arith.constant 1 : index
    %c1_321 = arith.constant 1 : index
    %c0_322 = arith.constant 0 : index
    %200 = vector.load %arg13[%c1_320, %c1_321, %c0_322] : memref<2x200x32xbf16, #tpu.memory_space<vmem>>, vector<1x9x32xbf16>
    %201 = vector.shape_cast %200 : vector<1x9x32xbf16> to vector<9x32xbf16>
    %c0_323 = arith.constant 0 : index
    %c10_324 = arith.constant 10 : index
    %c0_325 = arith.constant 0 : index
    %202 = vector.load %arg13[%c0_323, %c10_324, %c0_325] : memref<2x200x32xbf16, #tpu.memory_space<vmem>>, vector<1x9x32xbf16>
    %203 = vector.shape_cast %202 : vector<1x9x32xbf16> to vector<9x32xbf16>
    %c1_326 = arith.constant 1 : index
    %c10_327 = arith.constant 10 : index
    %c0_328 = arith.constant 0 : index
    %204 = vector.load %arg13[%c1_326, %c10_327, %c0_328] : memref<2x200x32xbf16, #tpu.memory_space<vmem>>, vector<1x9x32xbf16>
    %205 = vector.shape_cast %204 : vector<1x9x32xbf16> to vector<9x32xbf16>
    %c0_329 = arith.constant 0 : index
    %c11_330 = arith.constant 11 : index
    %c0_331 = arith.constant 0 : index
    %206 = vector.load %arg13[%c0_329, %c11_330, %c0_331] : memref<2x200x32xbf16, #tpu.memory_space<vmem>>, vector<1x9x32xbf16>
    %207 = vector.shape_cast %206 : vector<1x9x32xbf16> to vector<9x32xbf16>
    %c1_332 = arith.constant 1 : index
    %c11_333 = arith.constant 11 : index
    %c0_334 = arith.constant 0 : index
    %208 = vector.load %arg13[%c1_332, %c11_333, %c0_334] : memref<2x200x32xbf16, #tpu.memory_space<vmem>>, vector<1x9x32xbf16>
    %209 = vector.shape_cast %208 : vector<1x9x32xbf16> to vector<9x32xbf16>
    %c0_335 = arith.constant 0 : index
    %c20_336 = arith.constant 20 : index
    %c0_337 = arith.constant 0 : index
    %210 = vector.load %arg13[%c0_335, %c20_336, %c0_337] : memref<2x200x32xbf16, #tpu.memory_space<vmem>>, vector<1x9x32xbf16>
    %211 = vector.shape_cast %210 : vector<1x9x32xbf16> to vector<9x32xbf16>
    %c1_338 = arith.constant 1 : index
    %c20_339 = arith.constant 20 : index
    %c0_340 = arith.constant 0 : index
    %212 = vector.load %arg13[%c1_338, %c20_339, %c0_340] : memref<2x200x32xbf16, #tpu.memory_space<vmem>>, vector<1x9x32xbf16>
    %213 = vector.shape_cast %212 : vector<1x9x32xbf16> to vector<9x32xbf16>
    %c0_341 = arith.constant 0 : index
    %c21 = arith.constant 21 : index
    %c0_342 = arith.constant 0 : index
    %214 = vector.load %arg13[%c0_341, %c21, %c0_342] : memref<2x200x32xbf16, #tpu.memory_space<vmem>>, vector<1x9x32xbf16>
    %215 = vector.shape_cast %214 : vector<1x9x32xbf16> to vector<9x32xbf16>
    %c1_343 = arith.constant 1 : index
    %c21_344 = arith.constant 21 : index
    %c0_345 = arith.constant 0 : index
    %216 = vector.load %arg13[%c1_343, %c21_344, %c0_345] : memref<2x200x32xbf16, #tpu.memory_space<vmem>>, vector<1x9x32xbf16>
    %217 = vector.shape_cast %216 : vector<1x9x32xbf16> to vector<9x32xbf16>
    %c0_346 = arith.constant 0 : index
    %c30 = arith.constant 30 : index
    %c0_347 = arith.constant 0 : index
    %218 = vector.load %arg13[%c0_346, %c30, %c0_347] : memref<2x200x32xbf16, #tpu.memory_space<vmem>>, vector<1x9x32xbf16>
    %219 = vector.shape_cast %218 : vector<1x9x32xbf16> to vector<9x32xbf16>
    %c1_348 = arith.constant 1 : index
    %c30_349 = arith.constant 30 : index
    %c0_350 = arith.constant 0 : index
    %220 = vector.load %arg13[%c1_348, %c30_349, %c0_350] : memref<2x200x32xbf16, #tpu.memory_space<vmem>>, vector<1x9x32xbf16>
    %221 = vector.shape_cast %220 : vector<1x9x32xbf16> to vector<9x32xbf16>
    %c0_351 = arith.constant 0 : index
    %c31 = arith.constant 31 : index
    %c0_352 = arith.constant 0 : index
    %222 = vector.load %arg13[%c0_351, %c31, %c0_352] : memref<2x200x32xbf16, #tpu.memory_space<vmem>>, vector<1x9x32xbf16>
    %223 = vector.shape_cast %222 : vector<1x9x32xbf16> to vector<9x32xbf16>
    %c1_353 = arith.constant 1 : index
    %c31_354 = arith.constant 31 : index
    %c0_355 = arith.constant 0 : index
    %224 = vector.load %arg13[%c1_353, %c31_354, %c0_355] : memref<2x200x32xbf16, #tpu.memory_space<vmem>>, vector<1x9x32xbf16>
    %225 = vector.shape_cast %224 : vector<1x9x32xbf16> to vector<9x32xbf16>
    %226 = tpu.concatenate %195, %197, %199, %201, %203, %205, %207, %209, %211, %213, %215, %217, %219, %221, %223, %225 in 1 : vector<9x32xbf16>, vector<9x32xbf16>, vector<9x32xbf16>, vector<9x32xbf16>, vector<9x32xbf16>, vector<9x32xbf16>, vector<9x32xbf16>, vector<9x32xbf16>, vector<9x32xbf16>, vector<9x32xbf16>, vector<9x32xbf16>, vector<9x32xbf16>, vector<9x32xbf16>, vector<9x32xbf16>, vector<9x32xbf16>, vector<9x32xbf16> -> vector<9x512xbf16>
    %c0_356 = arith.constant 0 : index
    %c20_357 = arith.constant 20 : index
    %c0_358 = arith.constant 0 : index
    %227 = vector.load %arg13[%c0_356, %c20_357, %c0_358] : memref<2x200x32xbf16, #tpu.memory_space<vmem>>, vector<1x9x32xbf16>
    %228 = vector.shape_cast %227 : vector<1x9x32xbf16> to vector<9x32xbf16>
    %c1_359 = arith.constant 1 : index
    %c20_360 = arith.constant 20 : index
    %c0_361 = arith.constant 0 : index
    %229 = vector.load %arg13[%c1_359, %c20_360, %c0_361] : memref<2x200x32xbf16, #tpu.memory_space<vmem>>, vector<1x9x32xbf16>
    %230 = vector.shape_cast %229 : vector<1x9x32xbf16> to vector<9x32xbf16>
    %c0_362 = arith.constant 0 : index
    %c21_363 = arith.constant 21 : index
    %c0_364 = arith.constant 0 : index
    %231 = vector.load %arg13[%c0_362, %c21_363, %c0_364] : memref<2x200x32xbf16, #tpu.memory_space<vmem>>, vector<1x9x32xbf16>
    %232 = vector.shape_cast %231 : vector<1x9x32xbf16> to vector<9x32xbf16>
    %c1_365 = arith.constant 1 : index
    %c21_366 = arith.constant 21 : index
    %c0_367 = arith.constant 0 : index
    %233 = vector.load %arg13[%c1_365, %c21_366, %c0_367] : memref<2x200x32xbf16, #tpu.memory_space<vmem>>, vector<1x9x32xbf16>
    %234 = vector.shape_cast %233 : vector<1x9x32xbf16> to vector<9x32xbf16>
    %c0_368 = arith.constant 0 : index
    %c30_369 = arith.constant 30 : index
    %c0_370 = arith.constant 0 : index
    %235 = vector.load %arg13[%c0_368, %c30_369, %c0_370] : memref<2x200x32xbf16, #tpu.memory_space<vmem>>, vector<1x9x32xbf16>
    %236 = vector.shape_cast %235 : vector<1x9x32xbf16> to vector<9x32xbf16>
    %c1_371 = arith.constant 1 : index
    %c30_372 = arith.constant 30 : index
    %c0_373 = arith.constant 0 : index
    %237 = vector.load %arg13[%c1_371, %c30_372, %c0_373] : memref<2x200x32xbf16, #tpu.memory_space<vmem>>, vector<1x9x32xbf16>
    %238 = vector.shape_cast %237 : vector<1x9x32xbf16> to vector<9x32xbf16>
    %c0_374 = arith.constant 0 : index
    %c31_375 = arith.constant 31 : index
    %c0_376 = arith.constant 0 : index
    %239 = vector.load %arg13[%c0_374, %c31_375, %c0_376] : memref<2x200x32xbf16, #tpu.memory_space<vmem>>, vector<1x9x32xbf16>
    %240 = vector.shape_cast %239 : vector<1x9x32xbf16> to vector<9x32xbf16>
    %c1_377 = arith.constant 1 : index
    %c31_378 = arith.constant 31 : index
    %c0_379 = arith.constant 0 : index
    %241 = vector.load %arg13[%c1_377, %c31_378, %c0_379] : memref<2x200x32xbf16, #tpu.memory_space<vmem>>, vector<1x9x32xbf16>
    %242 = vector.shape_cast %241 : vector<1x9x32xbf16> to vector<9x32xbf16>
    %c0_380 = arith.constant 0 : index
    %c40 = arith.constant 40 : index
    %c0_381 = arith.constant 0 : index
    %243 = vector.load %arg13[%c0_380, %c40, %c0_381] : memref<2x200x32xbf16, #tpu.memory_space<vmem>>, vector<1x9x32xbf16>
    %244 = vector.shape_cast %243 : vector<1x9x32xbf16> to vector<9x32xbf16>
    %c1_382 = arith.constant 1 : index
    %c40_383 = arith.constant 40 : index
    %c0_384 = arith.constant 0 : index
    %245 = vector.load %arg13[%c1_382, %c40_383, %c0_384] : memref<2x200x32xbf16, #tpu.memory_space<vmem>>, vector<1x9x32xbf16>
    %246 = vector.shape_cast %245 : vector<1x9x32xbf16> to vector<9x32xbf16>
    %c0_385 = arith.constant 0 : index
    %c41 = arith.constant 41 : index
    %c0_386 = arith.constant 0 : index
    %247 = vector.load %arg13[%c0_385, %c41, %c0_386] : memref<2x200x32xbf16, #tpu.memory_space<vmem>>, vector<1x9x32xbf16>
    %248 = vector.shape_cast %247 : vector<1x9x32xbf16> to vector<9x32xbf16>
    %c1_387 = arith.constant 1 : index
    %c41_388 = arith.constant 41 : index
    %c0_389 = arith.constant 0 : index
    %249 = vector.load %arg13[%c1_387, %c41_388, %c0_389] : memref<2x200x32xbf16, #tpu.memory_space<vmem>>, vector<1x9x32xbf16>
    %250 = vector.shape_cast %249 : vector<1x9x32xbf16> to vector<9x32xbf16>
    %c0_390 = arith.constant 0 : index
    %c50 = arith.constant 50 : index
    %c0_391 = arith.constant 0 : index
    %251 = vector.load %arg13[%c0_390, %c50, %c0_391] : memref<2x200x32xbf16, #tpu.memory_space<vmem>>, vector<1x9x32xbf16>
    %252 = vector.shape_cast %251 : vector<1x9x32xbf16> to vector<9x32xbf16>
    %c1_392 = arith.constant 1 : index
    %c50_393 = arith.constant 50 : index
    %c0_394 = arith.constant 0 : index
    %253 = vector.load %arg13[%c1_392, %c50_393, %c0_394] : memref<2x200x32xbf16, #tpu.memory_space<vmem>>, vector<1x9x32xbf16>
    %254 = vector.shape_cast %253 : vector<1x9x32xbf16> to vector<9x32xbf16>
    %c0_395 = arith.constant 0 : index
    %c51 = arith.constant 51 : index
    %c0_396 = arith.constant 0 : index
    %255 = vector.load %arg13[%c0_395, %c51, %c0_396] : memref<2x200x32xbf16, #tpu.memory_space<vmem>>, vector<1x9x32xbf16>
    %256 = vector.shape_cast %255 : vector<1x9x32xbf16> to vector<9x32xbf16>
    %c1_397 = arith.constant 1 : index
    %c51_398 = arith.constant 51 : index
    %c0_399 = arith.constant 0 : index
    %257 = vector.load %arg13[%c1_397, %c51_398, %c0_399] : memref<2x200x32xbf16, #tpu.memory_space<vmem>>, vector<1x9x32xbf16>
    %258 = vector.shape_cast %257 : vector<1x9x32xbf16> to vector<9x32xbf16>
    %259 = tpu.concatenate %228, %230, %232, %234, %236, %238, %240, %242, %244, %246, %248, %250, %252, %254, %256, %258 in 1 : vector<9x32xbf16>, vector<9x32xbf16>, vector<9x32xbf16>, vector<9x32xbf16>, vector<9x32xbf16>, vector<9x32xbf16>, vector<9x32xbf16>, vector<9x32xbf16>, vector<9x32xbf16>, vector<9x32xbf16>, vector<9x32xbf16>, vector<9x32xbf16>, vector<9x32xbf16>, vector<9x32xbf16>, vector<9x32xbf16>, vector<9x32xbf16> -> vector<9x512xbf16>
    %c0_400 = arith.constant 0 : index
    %c40_401 = arith.constant 40 : index
    %c0_402 = arith.constant 0 : index
    %260 = vector.load %arg13[%c0_400, %c40_401, %c0_402] : memref<2x200x32xbf16, #tpu.memory_space<vmem>>, vector<1x9x32xbf16>
    %261 = vector.shape_cast %260 : vector<1x9x32xbf16> to vector<9x32xbf16>
    %c1_403 = arith.constant 1 : index
    %c40_404 = arith.constant 40 : index
    %c0_405 = arith.constant 0 : index
    %262 = vector.load %arg13[%c1_403, %c40_404, %c0_405] : memref<2x200x32xbf16, #tpu.memory_space<vmem>>, vector<1x9x32xbf16>
    %263 = vector.shape_cast %262 : vector<1x9x32xbf16> to vector<9x32xbf16>
    %c0_406 = arith.constant 0 : index
    %c41_407 = arith.constant 41 : index
    %c0_408 = arith.constant 0 : index
    %264 = vector.load %arg13[%c0_406, %c41_407, %c0_408] : memref<2x200x32xbf16, #tpu.memory_space<vmem>>, vector<1x9x32xbf16>
    %265 = vector.shape_cast %264 : vector<1x9x32xbf16> to vector<9x32xbf16>
    %c1_409 = arith.constant 1 : index
    %c41_410 = arith.constant 41 : index
    %c0_411 = arith.constant 0 : index
    %266 = vector.load %arg13[%c1_409, %c41_410, %c0_411] : memref<2x200x32xbf16, #tpu.memory_space<vmem>>, vector<1x9x32xbf16>
    %267 = vector.shape_cast %266 : vector<1x9x32xbf16> to vector<9x32xbf16>
    %c0_412 = arith.constant 0 : index
    %c50_413 = arith.constant 50 : index
    %c0_414 = arith.constant 0 : index
    %268 = vector.load %arg13[%c0_412, %c50_413, %c0_414] : memref<2x200x32xbf16, #tpu.memory_space<vmem>>, vector<1x9x32xbf16>
    %269 = vector.shape_cast %268 : vector<1x9x32xbf16> to vector<9x32xbf16>
    %c1_415 = arith.constant 1 : index
    %c50_416 = arith.constant 50 : index
    %c0_417 = arith.constant 0 : index
    %270 = vector.load %arg13[%c1_415, %c50_416, %c0_417] : memref<2x200x32xbf16, #tpu.memory_space<vmem>>, vector<1x9x32xbf16>
    %271 = vector.shape_cast %270 : vector<1x9x32xbf16> to vector<9x32xbf16>
    %c0_418 = arith.constant 0 : index
    %c51_419 = arith.constant 51 : index
    %c0_420 = arith.constant 0 : index
    %272 = vector.load %arg13[%c0_418, %c51_419, %c0_420] : memref<2x200x32xbf16, #tpu.memory_space<vmem>>, vector<1x9x32xbf16>
    %273 = vector.shape_cast %272 : vector<1x9x32xbf16> to vector<9x32xbf16>
    %c1_421 = arith.constant 1 : index
    %c51_422 = arith.constant 51 : index
    %c0_423 = arith.constant 0 : index
    %274 = vector.load %arg13[%c1_421, %c51_422, %c0_423] : memref<2x200x32xbf16, #tpu.memory_space<vmem>>, vector<1x9x32xbf16>
    %275 = vector.shape_cast %274 : vector<1x9x32xbf16> to vector<9x32xbf16>
    %c0_424 = arith.constant 0 : index
    %c60 = arith.constant 60 : index
    %c0_425 = arith.constant 0 : index
    %276 = vector.load %arg13[%c0_424, %c60, %c0_425] : memref<2x200x32xbf16, #tpu.memory_space<vmem>>, vector<1x9x32xbf16>
    %277 = vector.shape_cast %276 : vector<1x9x32xbf16> to vector<9x32xbf16>
    %c1_426 = arith.constant 1 : index
    %c60_427 = arith.constant 60 : index
    %c0_428 = arith.constant 0 : index
    %278 = vector.load %arg13[%c1_426, %c60_427, %c0_428] : memref<2x200x32xbf16, #tpu.memory_space<vmem>>, vector<1x9x32xbf16>
    %279 = vector.shape_cast %278 : vector<1x9x32xbf16> to vector<9x32xbf16>
    %c0_429 = arith.constant 0 : index
    %c61 = arith.constant 61 : index
    %c0_430 = arith.constant 0 : index
    %280 = vector.load %arg13[%c0_429, %c61, %c0_430] : memref<2x200x32xbf16, #tpu.memory_space<vmem>>, vector<1x9x32xbf16>
    %281 = vector.shape_cast %280 : vector<1x9x32xbf16> to vector<9x32xbf16>
    %c1_431 = arith.constant 1 : index
    %c61_432 = arith.constant 61 : index
    %c0_433 = arith.constant 0 : index
    %282 = vector.load %arg13[%c1_431, %c61_432, %c0_433] : memref<2x200x32xbf16, #tpu.memory_space<vmem>>, vector<1x9x32xbf16>
    %283 = vector.shape_cast %282 : vector<1x9x32xbf16> to vector<9x32xbf16>
    %c0_434 = arith.constant 0 : index
    %c70 = arith.constant 70 : index
    %c0_435 = arith.constant 0 : index
    %284 = vector.load %arg13[%c0_434, %c70, %c0_435] : memref<2x200x32xbf16, #tpu.memory_space<vmem>>, vector<1x9x32xbf16>
    %285 = vector.shape_cast %284 : vector<1x9x32xbf16> to vector<9x32xbf16>
    %c1_436 = arith.constant 1 : index
    %c70_437 = arith.constant 70 : index
    %c0_438 = arith.constant 0 : index
    %286 = vector.load %arg13[%c1_436, %c70_437, %c0_438] : memref<2x200x32xbf16, #tpu.memory_space<vmem>>, vector<1x9x32xbf16>
    %287 = vector.shape_cast %286 : vector<1x9x32xbf16> to vector<9x32xbf16>
    %c0_439 = arith.constant 0 : index
    %c71 = arith.constant 71 : index
    %c0_440 = arith.constant 0 : index
    %288 = vector.load %arg13[%c0_439, %c71, %c0_440] : memref<2x200x32xbf16, #tpu.memory_space<vmem>>, vector<1x9x32xbf16>
    %289 = vector.shape_cast %288 : vector<1x9x32xbf16> to vector<9x32xbf16>
    %c1_441 = arith.constant 1 : index
    %c71_442 = arith.constant 71 : index
    %c0_443 = arith.constant 0 : index
    %290 = vector.load %arg13[%c1_441, %c71_442, %c0_443] : memref<2x200x32xbf16, #tpu.memory_space<vmem>>, vector<1x9x32xbf16>
    %291 = vector.shape_cast %290 : vector<1x9x32xbf16> to vector<9x32xbf16>
    %292 = tpu.concatenate %261, %263, %265, %267, %269, %271, %273, %275, %277, %279, %281, %283, %285, %287, %289, %291 in 1 : vector<9x32xbf16>, vector<9x32xbf16>, vector<9x32xbf16>, vector<9x32xbf16>, vector<9x32xbf16>, vector<9x32xbf16>, vector<9x32xbf16>, vector<9x32xbf16>, vector<9x32xbf16>, vector<9x32xbf16>, vector<9x32xbf16>, vector<9x32xbf16>, vector<9x32xbf16>, vector<9x32xbf16>, vector<9x32xbf16>, vector<9x32xbf16> -> vector<9x512xbf16>
    %c0_444 = arith.constant 0 : index
    %c60_445 = arith.constant 60 : index
    %c0_446 = arith.constant 0 : index
    %293 = vector.load %arg13[%c0_444, %c60_445, %c0_446] : memref<2x200x32xbf16, #tpu.memory_space<vmem>>, vector<1x9x32xbf16>
    %294 = vector.shape_cast %293 : vector<1x9x32xbf16> to vector<9x32xbf16>
    %c1_447 = arith.constant 1 : index
    %c60_448 = arith.constant 60 : index
    %c0_449 = arith.constant 0 : index
    %295 = vector.load %arg13[%c1_447, %c60_448, %c0_449] : memref<2x200x32xbf16, #tpu.memory_space<vmem>>, vector<1x9x32xbf16>
    %296 = vector.shape_cast %295 : vector<1x9x32xbf16> to vector<9x32xbf16>
    %c0_450 = arith.constant 0 : index
    %c61_451 = arith.constant 61 : index
    %c0_452 = arith.constant 0 : index
    %297 = vector.load %arg13[%c0_450, %c61_451, %c0_452] : memref<2x200x32xbf16, #tpu.memory_space<vmem>>, vector<1x9x32xbf16>
    %298 = vector.shape_cast %297 : vector<1x9x32xbf16> to vector<9x32xbf16>
    %c1_453 = arith.constant 1 : index
    %c61_454 = arith.constant 61 : index
    %c0_455 = arith.constant 0 : index
    %299 = vector.load %arg13[%c1_453, %c61_454, %c0_455] : memref<2x200x32xbf16, #tpu.memory_space<vmem>>, vector<1x9x32xbf16>
    %300 = vector.shape_cast %299 : vector<1x9x32xbf16> to vector<9x32xbf16>
    %c0_456 = arith.constant 0 : index
    %c70_457 = arith.constant 70 : index
    %c0_458 = arith.constant 0 : index
    %301 = vector.load %arg13[%c0_456, %c70_457, %c0_458] : memref<2x200x32xbf16, #tpu.memory_space<vmem>>, vector<1x9x32xbf16>
    %302 = vector.shape_cast %301 : vector<1x9x32xbf16> to vector<9x32xbf16>
    %c1_459 = arith.constant 1 : index
    %c70_460 = arith.constant 70 : index
    %c0_461 = arith.constant 0 : index
    %303 = vector.load %arg13[%c1_459, %c70_460, %c0_461] : memref<2x200x32xbf16, #tpu.memory_space<vmem>>, vector<1x9x32xbf16>
    %304 = vector.shape_cast %303 : vector<1x9x32xbf16> to vector<9x32xbf16>
    %c0_462 = arith.constant 0 : index
    %c71_463 = arith.constant 71 : index
    %c0_464 = arith.constant 0 : index
    %305 = vector.load %arg13[%c0_462, %c71_463, %c0_464] : memref<2x200x32xbf16, #tpu.memory_space<vmem>>, vector<1x9x32xbf16>
    %306 = vector.shape_cast %305 : vector<1x9x32xbf16> to vector<9x32xbf16>
    %c1_465 = arith.constant 1 : index
    %c71_466 = arith.constant 71 : index
    %c0_467 = arith.constant 0 : index
    %307 = vector.load %arg13[%c1_465, %c71_466, %c0_467] : memref<2x200x32xbf16, #tpu.memory_space<vmem>>, vector<1x9x32xbf16>
    %308 = vector.shape_cast %307 : vector<1x9x32xbf16> to vector<9x32xbf16>
    %c0_468 = arith.constant 0 : index
    %c80 = arith.constant 80 : index
    %c0_469 = arith.constant 0 : index
    %309 = vector.load %arg13[%c0_468, %c80, %c0_469] : memref<2x200x32xbf16, #tpu.memory_space<vmem>>, vector<1x9x32xbf16>
    %310 = vector.shape_cast %309 : vector<1x9x32xbf16> to vector<9x32xbf16>
    %c1_470 = arith.constant 1 : index
    %c80_471 = arith.constant 80 : index
    %c0_472 = arith.constant 0 : index
    %311 = vector.load %arg13[%c1_470, %c80_471, %c0_472] : memref<2x200x32xbf16, #tpu.memory_space<vmem>>, vector<1x9x32xbf16>
    %312 = vector.shape_cast %311 : vector<1x9x32xbf16> to vector<9x32xbf16>
    %c0_473 = arith.constant 0 : index
    %c81 = arith.constant 81 : index
    %c0_474 = arith.constant 0 : index
    %313 = vector.load %arg13[%c0_473, %c81, %c0_474] : memref<2x200x32xbf16, #tpu.memory_space<vmem>>, vector<1x9x32xbf16>
    %314 = vector.shape_cast %313 : vector<1x9x32xbf16> to vector<9x32xbf16>
    %c1_475 = arith.constant 1 : index
    %c81_476 = arith.constant 81 : index
    %c0_477 = arith.constant 0 : index
    %315 = vector.load %arg13[%c1_475, %c81_476, %c0_477] : memref<2x200x32xbf16, #tpu.memory_space<vmem>>, vector<1x9x32xbf16>
    %316 = vector.shape_cast %315 : vector<1x9x32xbf16> to vector<9x32xbf16>
    %c0_478 = arith.constant 0 : index
    %c90 = arith.constant 90 : index
    %c0_479 = arith.constant 0 : index
    %317 = vector.load %arg13[%c0_478, %c90, %c0_479] : memref<2x200x32xbf16, #tpu.memory_space<vmem>>, vector<1x9x32xbf16>
    %318 = vector.shape_cast %317 : vector<1x9x32xbf16> to vector<9x32xbf16>
    %c1_480 = arith.constant 1 : index
    %c90_481 = arith.constant 90 : index
    %c0_482 = arith.constant 0 : index
    %319 = vector.load %arg13[%c1_480, %c90_481, %c0_482] : memref<2x200x32xbf16, #tpu.memory_space<vmem>>, vector<1x9x32xbf16>
    %320 = vector.shape_cast %319 : vector<1x9x32xbf16> to vector<9x32xbf16>
    %c0_483 = arith.constant 0 : index
    %c91 = arith.constant 91 : index
    %c0_484 = arith.constant 0 : index
    %321 = vector.load %arg13[%c0_483, %c91, %c0_484] : memref<2x200x32xbf16, #tpu.memory_space<vmem>>, vector<1x9x32xbf16>
    %322 = vector.shape_cast %321 : vector<1x9x32xbf16> to vector<9x32xbf16>
    %c1_485 = arith.constant 1 : index
    %c91_486 = arith.constant 91 : index
    %c0_487 = arith.constant 0 : index
    %323 = vector.load %arg13[%c1_485, %c91_486, %c0_487] : memref<2x200x32xbf16, #tpu.memory_space<vmem>>, vector<1x9x32xbf16>
    %324 = vector.shape_cast %323 : vector<1x9x32xbf16> to vector<9x32xbf16>
    %325 = tpu.concatenate %294, %296, %298, %300, %302, %304, %306, %308, %310, %312, %314, %316, %318, %320, %322, %324 in 1 : vector<9x32xbf16>, vector<9x32xbf16>, vector<9x32xbf16>, vector<9x32xbf16>, vector<9x32xbf16>, vector<9x32xbf16>, vector<9x32xbf16>, vector<9x32xbf16>, vector<9x32xbf16>, vector<9x32xbf16>, vector<9x32xbf16>, vector<9x32xbf16>, vector<9x32xbf16>, vector<9x32xbf16>, vector<9x32xbf16>, vector<9x32xbf16> -> vector<9x512xbf16>
    %c0_488 = arith.constant 0 : index
    %c80_489 = arith.constant 80 : index
    %c0_490 = arith.constant 0 : index
    %326 = vector.load %arg13[%c0_488, %c80_489, %c0_490] : memref<2x200x32xbf16, #tpu.memory_space<vmem>>, vector<1x9x32xbf16>
    %327 = vector.shape_cast %326 : vector<1x9x32xbf16> to vector<9x32xbf16>
    %c1_491 = arith.constant 1 : index
    %c80_492 = arith.constant 80 : index
    %c0_493 = arith.constant 0 : index
    %328 = vector.load %arg13[%c1_491, %c80_492, %c0_493] : memref<2x200x32xbf16, #tpu.memory_space<vmem>>, vector<1x9x32xbf16>
    %329 = vector.shape_cast %328 : vector<1x9x32xbf16> to vector<9x32xbf16>
    %c0_494 = arith.constant 0 : index
    %c81_495 = arith.constant 81 : index
    %c0_496 = arith.constant 0 : index
    %330 = vector.load %arg13[%c0_494, %c81_495, %c0_496] : memref<2x200x32xbf16, #tpu.memory_space<vmem>>, vector<1x9x32xbf16>
    %331 = vector.shape_cast %330 : vector<1x9x32xbf16> to vector<9x32xbf16>
    %c1_497 = arith.constant 1 : index
    %c81_498 = arith.constant 81 : index
    %c0_499 = arith.constant 0 : index
    %332 = vector.load %arg13[%c1_497, %c81_498, %c0_499] : memref<2x200x32xbf16, #tpu.memory_space<vmem>>, vector<1x9x32xbf16>
    %333 = vector.shape_cast %332 : vector<1x9x32xbf16> to vector<9x32xbf16>
    %c0_500 = arith.constant 0 : index
    %c90_501 = arith.constant 90 : index
    %c0_502 = arith.constant 0 : index
    %334 = vector.load %arg13[%c0_500, %c90_501, %c0_502] : memref<2x200x32xbf16, #tpu.memory_space<vmem>>, vector<1x9x32xbf16>
    %335 = vector.shape_cast %334 : vector<1x9x32xbf16> to vector<9x32xbf16>
    %c1_503 = arith.constant 1 : index
    %c90_504 = arith.constant 90 : index
    %c0_505 = arith.constant 0 : index
    %336 = vector.load %arg13[%c1_503, %c90_504, %c0_505] : memref<2x200x32xbf16, #tpu.memory_space<vmem>>, vector<1x9x32xbf16>
    %337 = vector.shape_cast %336 : vector<1x9x32xbf16> to vector<9x32xbf16>
    %c0_506 = arith.constant 0 : index
    %c91_507 = arith.constant 91 : index
    %c0_508 = arith.constant 0 : index
    %338 = vector.load %arg13[%c0_506, %c91_507, %c0_508] : memref<2x200x32xbf16, #tpu.memory_space<vmem>>, vector<1x9x32xbf16>
    %339 = vector.shape_cast %338 : vector<1x9x32xbf16> to vector<9x32xbf16>
    %c1_509 = arith.constant 1 : index
    %c91_510 = arith.constant 91 : index
    %c0_511 = arith.constant 0 : index
    %340 = vector.load %arg13[%c1_509, %c91_510, %c0_511] : memref<2x200x32xbf16, #tpu.memory_space<vmem>>, vector<1x9x32xbf16>
    %341 = vector.shape_cast %340 : vector<1x9x32xbf16> to vector<9x32xbf16>
    %c0_512 = arith.constant 0 : index
    %c100 = arith.constant 100 : index
    %c0_513 = arith.constant 0 : index
    %342 = vector.load %arg13[%c0_512, %c100, %c0_513] : memref<2x200x32xbf16, #tpu.memory_space<vmem>>, vector<1x9x32xbf16>
    %343 = vector.shape_cast %342 : vector<1x9x32xbf16> to vector<9x32xbf16>
    %c1_514 = arith.constant 1 : index
    %c100_515 = arith.constant 100 : index
    %c0_516 = arith.constant 0 : index
    %344 = vector.load %arg13[%c1_514, %c100_515, %c0_516] : memref<2x200x32xbf16, #tpu.memory_space<vmem>>, vector<1x9x32xbf16>
    %345 = vector.shape_cast %344 : vector<1x9x32xbf16> to vector<9x32xbf16>
    %c0_517 = arith.constant 0 : index
    %c101 = arith.constant 101 : index
    %c0_518 = arith.constant 0 : index
    %346 = vector.load %arg13[%c0_517, %c101, %c0_518] : memref<2x200x32xbf16, #tpu.memory_space<vmem>>, vector<1x9x32xbf16>
    %347 = vector.shape_cast %346 : vector<1x9x32xbf16> to vector<9x32xbf16>
    %c1_519 = arith.constant 1 : index
    %c101_520 = arith.constant 101 : index
    %c0_521 = arith.constant 0 : index
    %348 = vector.load %arg13[%c1_519, %c101_520, %c0_521] : memref<2x200x32xbf16, #tpu.memory_space<vmem>>, vector<1x9x32xbf16>
    %349 = vector.shape_cast %348 : vector<1x9x32xbf16> to vector<9x32xbf16>
    %c0_522 = arith.constant 0 : index
    %c110 = arith.constant 110 : index
    %c0_523 = arith.constant 0 : index
    %350 = vector.load %arg13[%c0_522, %c110, %c0_523] : memref<2x200x32xbf16, #tpu.memory_space<vmem>>, vector<1x9x32xbf16>
    %351 = vector.shape_cast %350 : vector<1x9x32xbf16> to vector<9x32xbf16>
    %c1_524 = arith.constant 1 : index
    %c110_525 = arith.constant 110 : index
    %c0_526 = arith.constant 0 : index
    %352 = vector.load %arg13[%c1_524, %c110_525, %c0_526] : memref<2x200x32xbf16, #tpu.memory_space<vmem>>, vector<1x9x32xbf16>
    %353 = vector.shape_cast %352 : vector<1x9x32xbf16> to vector<9x32xbf16>
    %c0_527 = arith.constant 0 : index
    %c111 = arith.constant 111 : index
    %c0_528 = arith.constant 0 : index
    %354 = vector.load %arg13[%c0_527, %c111, %c0_528] : memref<2x200x32xbf16, #tpu.memory_space<vmem>>, vector<1x9x32xbf16>
    %355 = vector.shape_cast %354 : vector<1x9x32xbf16> to vector<9x32xbf16>
    %c1_529 = arith.constant 1 : index
    %c111_530 = arith.constant 111 : index
    %c0_531 = arith.constant 0 : index
    %356 = vector.load %arg13[%c1_529, %c111_530, %c0_531] : memref<2x200x32xbf16, #tpu.memory_space<vmem>>, vector<1x9x32xbf16>
    %357 = vector.shape_cast %356 : vector<1x9x32xbf16> to vector<9x32xbf16>
    %358 = tpu.concatenate %327, %329, %331, %333, %335, %337, %339, %341, %343, %345, %347, %349, %351, %353, %355, %357 in 1 : vector<9x32xbf16>, vector<9x32xbf16>, vector<9x32xbf16>, vector<9x32xbf16>, vector<9x32xbf16>, vector<9x32xbf16>, vector<9x32xbf16>, vector<9x32xbf16>, vector<9x32xbf16>, vector<9x32xbf16>, vector<9x32xbf16>, vector<9x32xbf16>, vector<9x32xbf16>, vector<9x32xbf16>, vector<9x32xbf16>, vector<9x32xbf16> -> vector<9x512xbf16>
    %c0_532 = arith.constant 0 : index
    %c100_533 = arith.constant 100 : index
    %c0_534 = arith.constant 0 : index
    %359 = vector.load %arg13[%c0_532, %c100_533, %c0_534] : memref<2x200x32xbf16, #tpu.memory_space<vmem>>, vector<1x9x32xbf16>
    %360 = vector.shape_cast %359 : vector<1x9x32xbf16> to vector<9x32xbf16>
    %c1_535 = arith.constant 1 : index
    %c100_536 = arith.constant 100 : index
    %c0_537 = arith.constant 0 : index
    %361 = vector.load %arg13[%c1_535, %c100_536, %c0_537] : memref<2x200x32xbf16, #tpu.memory_space<vmem>>, vector<1x9x32xbf16>
    %362 = vector.shape_cast %361 : vector<1x9x32xbf16> to vector<9x32xbf16>
    %c0_538 = arith.constant 0 : index
    %c101_539 = arith.constant 101 : index
    %c0_540 = arith.constant 0 : index
    %363 = vector.load %arg13[%c0_538, %c101_539, %c0_540] : memref<2x200x32xbf16, #tpu.memory_space<vmem>>, vector<1x9x32xbf16>
    %364 = vector.shape_cast %363 : vector<1x9x32xbf16> to vector<9x32xbf16>
    %c1_541 = arith.constant 1 : index
    %c101_542 = arith.constant 101 : index
    %c0_543 = arith.constant 0 : index
    %365 = vector.load %arg13[%c1_541, %c101_542, %c0_543] : memref<2x200x32xbf16, #tpu.memory_space<vmem>>, vector<1x9x32xbf16>
    %366 = vector.shape_cast %365 : vector<1x9x32xbf16> to vector<9x32xbf16>
    %c0_544 = arith.constant 0 : index
    %c110_545 = arith.constant 110 : index
    %c0_546 = arith.constant 0 : index
    %367 = vector.load %arg13[%c0_544, %c110_545, %c0_546] : memref<2x200x32xbf16, #tpu.memory_space<vmem>>, vector<1x9x32xbf16>
    %368 = vector.shape_cast %367 : vector<1x9x32xbf16> to vector<9x32xbf16>
    %c1_547 = arith.constant 1 : index
    %c110_548 = arith.constant 110 : index
    %c0_549 = arith.constant 0 : index
    %369 = vector.load %arg13[%c1_547, %c110_548, %c0_549] : memref<2x200x32xbf16, #tpu.memory_space<vmem>>, vector<1x9x32xbf16>
    %370 = vector.shape_cast %369 : vector<1x9x32xbf16> to vector<9x32xbf16>
    %c0_550 = arith.constant 0 : index
    %c111_551 = arith.constant 111 : index
    %c0_552 = arith.constant 0 : index
    %371 = vector.load %arg13[%c0_550, %c111_551, %c0_552] : memref<2x200x32xbf16, #tpu.memory_space<vmem>>, vector<1x9x32xbf16>
    %372 = vector.shape_cast %371 : vector<1x9x32xbf16> to vector<9x32xbf16>
    %c1_553 = arith.constant 1 : index
    %c111_554 = arith.constant 111 : index
    %c0_555 = arith.constant 0 : index
    %373 = vector.load %arg13[%c1_553, %c111_554, %c0_555] : memref<2x200x32xbf16, #tpu.memory_space<vmem>>, vector<1x9x32xbf16>
    %374 = vector.shape_cast %373 : vector<1x9x32xbf16> to vector<9x32xbf16>
    %c0_556 = arith.constant 0 : index
    %c120 = arith.constant 120 : index
    %c0_557 = arith.constant 0 : index
    %375 = vector.load %arg13[%c0_556, %c120, %c0_557] : memref<2x200x32xbf16, #tpu.memory_space<vmem>>, vector<1x9x32xbf16>
    %376 = vector.shape_cast %375 : vector<1x9x32xbf16> to vector<9x32xbf16>
    %c1_558 = arith.constant 1 : index
    %c120_559 = arith.constant 120 : index
    %c0_560 = arith.constant 0 : index
    %377 = vector.load %arg13[%c1_558, %c120_559, %c0_560] : memref<2x200x32xbf16, #tpu.memory_space<vmem>>, vector<1x9x32xbf16>
    %378 = vector.shape_cast %377 : vector<1x9x32xbf16> to vector<9x32xbf16>
    %c0_561 = arith.constant 0 : index
    %c121 = arith.constant 121 : index
    %c0_562 = arith.constant 0 : index
    %379 = vector.load %arg13[%c0_561, %c121, %c0_562] : memref<2x200x32xbf16, #tpu.memory_space<vmem>>, vector<1x9x32xbf16>
    %380 = vector.shape_cast %379 : vector<1x9x32xbf16> to vector<9x32xbf16>
    %c1_563 = arith.constant 1 : index
    %c121_564 = arith.constant 121 : index
    %c0_565 = arith.constant 0 : index
    %381 = vector.load %arg13[%c1_563, %c121_564, %c0_565] : memref<2x200x32xbf16, #tpu.memory_space<vmem>>, vector<1x9x32xbf16>
    %382 = vector.shape_cast %381 : vector<1x9x32xbf16> to vector<9x32xbf16>
    %c0_566 = arith.constant 0 : index
    %c130 = arith.constant 130 : index
    %c0_567 = arith.constant 0 : index
    %383 = vector.load %arg13[%c0_566, %c130, %c0_567] : memref<2x200x32xbf16, #tpu.memory_space<vmem>>, vector<1x9x32xbf16>
    %384 = vector.shape_cast %383 : vector<1x9x32xbf16> to vector<9x32xbf16>
    %c1_568 = arith.constant 1 : index
    %c130_569 = arith.constant 130 : index
    %c0_570 = arith.constant 0 : index
    %385 = vector.load %arg13[%c1_568, %c130_569, %c0_570] : memref<2x200x32xbf16, #tpu.memory_space<vmem>>, vector<1x9x32xbf16>
    %386 = vector.shape_cast %385 : vector<1x9x32xbf16> to vector<9x32xbf16>
    %c0_571 = arith.constant 0 : index
    %c131 = arith.constant 131 : index
    %c0_572 = arith.constant 0 : index
    %387 = vector.load %arg13[%c0_571, %c131, %c0_572] : memref<2x200x32xbf16, #tpu.memory_space<vmem>>, vector<1x9x32xbf16>
    %388 = vector.shape_cast %387 : vector<1x9x32xbf16> to vector<9x32xbf16>
    %c1_573 = arith.constant 1 : index
    %c131_574 = arith.constant 131 : index
    %c0_575 = arith.constant 0 : index
    %389 = vector.load %arg13[%c1_573, %c131_574, %c0_575] : memref<2x200x32xbf16, #tpu.memory_space<vmem>>, vector<1x9x32xbf16>
    %390 = vector.shape_cast %389 : vector<1x9x32xbf16> to vector<9x32xbf16>
    %391 = tpu.concatenate %360, %362, %364, %366, %368, %370, %372, %374, %376, %378, %380, %382, %384, %386, %388, %390 in 1 : vector<9x32xbf16>, vector<9x32xbf16>, vector<9x32xbf16>, vector<9x32xbf16>, vector<9x32xbf16>, vector<9x32xbf16>, vector<9x32xbf16>, vector<9x32xbf16>, vector<9x32xbf16>, vector<9x32xbf16>, vector<9x32xbf16>, vector<9x32xbf16>, vector<9x32xbf16>, vector<9x32xbf16>, vector<9x32xbf16>, vector<9x32xbf16> -> vector<9x512xbf16>
    %c0_576 = arith.constant 0 : index
    %c120_577 = arith.constant 120 : index
    %c0_578 = arith.constant 0 : index
    %392 = vector.load %arg13[%c0_576, %c120_577, %c0_578] : memref<2x200x32xbf16, #tpu.memory_space<vmem>>, vector<1x9x32xbf16>
    %393 = vector.shape_cast %392 : vector<1x9x32xbf16> to vector<9x32xbf16>
    %c1_579 = arith.constant 1 : index
    %c120_580 = arith.constant 120 : index
    %c0_581 = arith.constant 0 : index
    %394 = vector.load %arg13[%c1_579, %c120_580, %c0_581] : memref<2x200x32xbf16, #tpu.memory_space<vmem>>, vector<1x9x32xbf16>
    %395 = vector.shape_cast %394 : vector<1x9x32xbf16> to vector<9x32xbf16>
    %c0_582 = arith.constant 0 : index
    %c121_583 = arith.constant 121 : index
    %c0_584 = arith.constant 0 : index
    %396 = vector.load %arg13[%c0_582, %c121_583, %c0_584] : memref<2x200x32xbf16, #tpu.memory_space<vmem>>, vector<1x9x32xbf16>
    %397 = vector.shape_cast %396 : vector<1x9x32xbf16> to vector<9x32xbf16>
    %c1_585 = arith.constant 1 : index
    %c121_586 = arith.constant 121 : index
    %c0_587 = arith.constant 0 : index
    %398 = vector.load %arg13[%c1_585, %c121_586, %c0_587] : memref<2x200x32xbf16, #tpu.memory_space<vmem>>, vector<1x9x32xbf16>
    %399 = vector.shape_cast %398 : vector<1x9x32xbf16> to vector<9x32xbf16>
    %c0_588 = arith.constant 0 : index
    %c130_589 = arith.constant 130 : index
    %c0_590 = arith.constant 0 : index
    %400 = vector.load %arg13[%c0_588, %c130_589, %c0_590] : memref<2x200x32xbf16, #tpu.memory_space<vmem>>, vector<1x9x32xbf16>
    %401 = vector.shape_cast %400 : vector<1x9x32xbf16> to vector<9x32xbf16>
    %c1_591 = arith.constant 1 : index
    %c130_592 = arith.constant 130 : index
    %c0_593 = arith.constant 0 : index
    %402 = vector.load %arg13[%c1_591, %c130_592, %c0_593] : memref<2x200x32xbf16, #tpu.memory_space<vmem>>, vector<1x9x32xbf16>
    %403 = vector.shape_cast %402 : vector<1x9x32xbf16> to vector<9x32xbf16>
    %c0_594 = arith.constant 0 : index
    %c131_595 = arith.constant 131 : index
    %c0_596 = arith.constant 0 : index
    %404 = vector.load %arg13[%c0_594, %c131_595, %c0_596] : memref<2x200x32xbf16, #tpu.memory_space<vmem>>, vector<1x9x32xbf16>
    %405 = vector.shape_cast %404 : vector<1x9x32xbf16> to vector<9x32xbf16>
    %c1_597 = arith.constant 1 : index
    %c131_598 = arith.constant 131 : index
    %c0_599 = arith.constant 0 : index
    %406 = vector.load %arg13[%c1_597, %c131_598, %c0_599] : memref<2x200x32xbf16, #tpu.memory_space<vmem>>, vector<1x9x32xbf16>
    %407 = vector.shape_cast %406 : vector<1x9x32xbf16> to vector<9x32xbf16>
    %c0_600 = arith.constant 0 : index
    %c140 = arith.constant 140 : index
    %c0_601 = arith.constant 0 : index
    %408 = vector.load %arg13[%c0_600, %c140, %c0_601] : memref<2x200x32xbf16, #tpu.memory_space<vmem>>, vector<1x9x32xbf16>
    %409 = vector.shape_cast %408 : vector<1x9x32xbf16> to vector<9x32xbf16>
    %c1_602 = arith.constant 1 : index
    %c140_603 = arith.constant 140 : index
    %c0_604 = arith.constant 0 : index
    %410 = vector.load %arg13[%c1_602, %c140_603, %c0_604] : memref<2x200x32xbf16, #tpu.memory_space<vmem>>, vector<1x9x32xbf16>
    %411 = vector.shape_cast %410 : vector<1x9x32xbf16> to vector<9x32xbf16>
    %c0_605 = arith.constant 0 : index
    %c141 = arith.constant 141 : index
    %c0_606 = arith.constant 0 : index
    %412 = vector.load %arg13[%c0_605, %c141, %c0_606] : memref<2x200x32xbf16, #tpu.memory_space<vmem>>, vector<1x9x32xbf16>
    %413 = vector.shape_cast %412 : vector<1x9x32xbf16> to vector<9x32xbf16>
    %c1_607 = arith.constant 1 : index
    %c141_608 = arith.constant 141 : index
    %c0_609 = arith.constant 0 : index
    %414 = vector.load %arg13[%c1_607, %c141_608, %c0_609] : memref<2x200x32xbf16, #tpu.memory_space<vmem>>, vector<1x9x32xbf16>
    %415 = vector.shape_cast %414 : vector<1x9x32xbf16> to vector<9x32xbf16>
    %c0_610 = arith.constant 0 : index
    %c150 = arith.constant 150 : index
    %c0_611 = arith.constant 0 : index
    %416 = vector.load %arg13[%c0_610, %c150, %c0_611] : memref<2x200x32xbf16, #tpu.memory_space<vmem>>, vector<1x9x32xbf16>
    %417 = vector.shape_cast %416 : vector<1x9x32xbf16> to vector<9x32xbf16>
    %c1_612 = arith.constant 1 : index
    %c150_613 = arith.constant 150 : index
    %c0_614 = arith.constant 0 : index
    %418 = vector.load %arg13[%c1_612, %c150_613, %c0_614] : memref<2x200x32xbf16, #tpu.memory_space<vmem>>, vector<1x9x32xbf16>
    %419 = vector.shape_cast %418 : vector<1x9x32xbf16> to vector<9x32xbf16>
    %c0_615 = arith.constant 0 : index
    %c151 = arith.constant 151 : index
    %c0_616 = arith.constant 0 : index
    %420 = vector.load %arg13[%c0_615, %c151, %c0_616] : memref<2x200x32xbf16, #tpu.memory_space<vmem>>, vector<1x9x32xbf16>
    %421 = vector.shape_cast %420 : vector<1x9x32xbf16> to vector<9x32xbf16>
    %c1_617 = arith.constant 1 : index
    %c151_618 = arith.constant 151 : index
    %c0_619 = arith.constant 0 : index
    %422 = vector.load %arg13[%c1_617, %c151_618, %c0_619] : memref<2x200x32xbf16, #tpu.memory_space<vmem>>, vector<1x9x32xbf16>
    %423 = vector.shape_cast %422 : vector<1x9x32xbf16> to vector<9x32xbf16>
    %424 = tpu.concatenate %393, %395, %397, %399, %401, %403, %405, %407, %409, %411, %413, %415, %417, %419, %421, %423 in 1 : vector<9x32xbf16>, vector<9x32xbf16>, vector<9x32xbf16>, vector<9x32xbf16>, vector<9x32xbf16>, vector<9x32xbf16>, vector<9x32xbf16>, vector<9x32xbf16>, vector<9x32xbf16>, vector<9x32xbf16>, vector<9x32xbf16>, vector<9x32xbf16>, vector<9x32xbf16>, vector<9x32xbf16>, vector<9x32xbf16>, vector<9x32xbf16> -> vector<9x512xbf16>
    %c0_620 = arith.constant 0 : index
    %c140_621 = arith.constant 140 : index
    %c0_622 = arith.constant 0 : index
    %425 = vector.load %arg13[%c0_620, %c140_621, %c0_622] : memref<2x200x32xbf16, #tpu.memory_space<vmem>>, vector<1x9x32xbf16>
    %426 = vector.shape_cast %425 : vector<1x9x32xbf16> to vector<9x32xbf16>
    %c1_623 = arith.constant 1 : index
    %c140_624 = arith.constant 140 : index
    %c0_625 = arith.constant 0 : index
    %427 = vector.load %arg13[%c1_623, %c140_624, %c0_625] : memref<2x200x32xbf16, #tpu.memory_space<vmem>>, vector<1x9x32xbf16>
    %428 = vector.shape_cast %427 : vector<1x9x32xbf16> to vector<9x32xbf16>
    %c0_626 = arith.constant 0 : index
    %c141_627 = arith.constant 141 : index
    %c0_628 = arith.constant 0 : index
    %429 = vector.load %arg13[%c0_626, %c141_627, %c0_628] : memref<2x200x32xbf16, #tpu.memory_space<vmem>>, vector<1x9x32xbf16>
    %430 = vector.shape_cast %429 : vector<1x9x32xbf16> to vector<9x32xbf16>
    %c1_629 = arith.constant 1 : index
    %c141_630 = arith.constant 141 : index
    %c0_631 = arith.constant 0 : index
    %431 = vector.load %arg13[%c1_629, %c141_630, %c0_631] : memref<2x200x32xbf16, #tpu.memory_space<vmem>>, vector<1x9x32xbf16>
    %432 = vector.shape_cast %431 : vector<1x9x32xbf16> to vector<9x32xbf16>
    %c0_632 = arith.constant 0 : index
    %c150_633 = arith.constant 150 : index
    %c0_634 = arith.constant 0 : index
    %433 = vector.load %arg13[%c0_632, %c150_633, %c0_634] : memref<2x200x32xbf16, #tpu.memory_space<vmem>>, vector<1x9x32xbf16>
    %434 = vector.shape_cast %433 : vector<1x9x32xbf16> to vector<9x32xbf16>
    %c1_635 = arith.constant 1 : index
    %c150_636 = arith.constant 150 : index
    %c0_637 = arith.constant 0 : index
    %435 = vector.load %arg13[%c1_635, %c150_636, %c0_637] : memref<2x200x32xbf16, #tpu.memory_space<vmem>>, vector<1x9x32xbf16>
    %436 = vector.shape_cast %435 : vector<1x9x32xbf16> to vector<9x32xbf16>
    %c0_638 = arith.constant 0 : index
    %c151_639 = arith.constant 151 : index
    %c0_640 = arith.constant 0 : index
    %437 = vector.load %arg13[%c0_638, %c151_639, %c0_640] : memref<2x200x32xbf16, #tpu.memory_space<vmem>>, vector<1x9x32xbf16>
    %438 = vector.shape_cast %437 : vector<1x9x32xbf16> to vector<9x32xbf16>
    %c1_641 = arith.constant 1 : index
    %c151_642 = arith.constant 151 : index
    %c0_643 = arith.constant 0 : index
    %439 = vector.load %arg13[%c1_641, %c151_642, %c0_643] : memref<2x200x32xbf16, #tpu.memory_space<vmem>>, vector<1x9x32xbf16>
    %440 = vector.shape_cast %439 : vector<1x9x32xbf16> to vector<9x32xbf16>
    %c0_644 = arith.constant 0 : index
    %c160 = arith.constant 160 : index
    %c0_645 = arith.constant 0 : index
    %441 = vector.load %arg13[%c0_644, %c160, %c0_645] : memref<2x200x32xbf16, #tpu.memory_space<vmem>>, vector<1x9x32xbf16>
    %442 = vector.shape_cast %441 : vector<1x9x32xbf16> to vector<9x32xbf16>
    %c1_646 = arith.constant 1 : index
    %c160_647 = arith.constant 160 : index
    %c0_648 = arith.constant 0 : index
    %443 = vector.load %arg13[%c1_646, %c160_647, %c0_648] : memref<2x200x32xbf16, #tpu.memory_space<vmem>>, vector<1x9x32xbf16>
    %444 = vector.shape_cast %443 : vector<1x9x32xbf16> to vector<9x32xbf16>
    %c0_649 = arith.constant 0 : index
    %c161 = arith.constant 161 : index
    %c0_650 = arith.constant 0 : index
    %445 = vector.load %arg13[%c0_649, %c161, %c0_650] : memref<2x200x32xbf16, #tpu.memory_space<vmem>>, vector<1x9x32xbf16>
    %446 = vector.shape_cast %445 : vector<1x9x32xbf16> to vector<9x32xbf16>
    %c1_651 = arith.constant 1 : index
    %c161_652 = arith.constant 161 : index
    %c0_653 = arith.constant 0 : index
    %447 = vector.load %arg13[%c1_651, %c161_652, %c0_653] : memref<2x200x32xbf16, #tpu.memory_space<vmem>>, vector<1x9x32xbf16>
    %448 = vector.shape_cast %447 : vector<1x9x32xbf16> to vector<9x32xbf16>
    %c0_654 = arith.constant 0 : index
    %c170 = arith.constant 170 : index
    %c0_655 = arith.constant 0 : index
    %449 = vector.load %arg13[%c0_654, %c170, %c0_655] : memref<2x200x32xbf16, #tpu.memory_space<vmem>>, vector<1x9x32xbf16>
    %450 = vector.shape_cast %449 : vector<1x9x32xbf16> to vector<9x32xbf16>
    %c1_656 = arith.constant 1 : index
    %c170_657 = arith.constant 170 : index
    %c0_658 = arith.constant 0 : index
    %451 = vector.load %arg13[%c1_656, %c170_657, %c0_658] : memref<2x200x32xbf16, #tpu.memory_space<vmem>>, vector<1x9x32xbf16>
    %452 = vector.shape_cast %451 : vector<1x9x32xbf16> to vector<9x32xbf16>
    %c0_659 = arith.constant 0 : index
    %c171 = arith.constant 171 : index
    %c0_660 = arith.constant 0 : index
    %453 = vector.load %arg13[%c0_659, %c171, %c0_660] : memref<2x200x32xbf16, #tpu.memory_space<vmem>>, vector<1x9x32xbf16>
    %454 = vector.shape_cast %453 : vector<1x9x32xbf16> to vector<9x32xbf16>
    %c1_661 = arith.constant 1 : index
    %c171_662 = arith.constant 171 : index
    %c0_663 = arith.constant 0 : index
    %455 = vector.load %arg13[%c1_661, %c171_662, %c0_663] : memref<2x200x32xbf16, #tpu.memory_space<vmem>>, vector<1x9x32xbf16>
    %456 = vector.shape_cast %455 : vector<1x9x32xbf16> to vector<9x32xbf16>
    %457 = tpu.concatenate %426, %428, %430, %432, %434, %436, %438, %440, %442, %444, %446, %448, %450, %452, %454, %456 in 1 : vector<9x32xbf16>, vector<9x32xbf16>, vector<9x32xbf16>, vector<9x32xbf16>, vector<9x32xbf16>, vector<9x32xbf16>, vector<9x32xbf16>, vector<9x32xbf16>, vector<9x32xbf16>, vector<9x32xbf16>, vector<9x32xbf16>, vector<9x32xbf16>, vector<9x32xbf16>, vector<9x32xbf16>, vector<9x32xbf16>, vector<9x32xbf16> -> vector<9x512xbf16>
    %c0_664 = arith.constant 0 : index
    %c160_665 = arith.constant 160 : index
    %c0_666 = arith.constant 0 : index
    %458 = vector.load %arg13[%c0_664, %c160_665, %c0_666] : memref<2x200x32xbf16, #tpu.memory_space<vmem>>, vector<1x9x32xbf16>
    %459 = vector.shape_cast %458 : vector<1x9x32xbf16> to vector<9x32xbf16>
    %c1_667 = arith.constant 1 : index
    %c160_668 = arith.constant 160 : index
    %c0_669 = arith.constant 0 : index
    %460 = vector.load %arg13[%c1_667, %c160_668, %c0_669] : memref<2x200x32xbf16, #tpu.memory_space<vmem>>, vector<1x9x32xbf16>
    %461 = vector.shape_cast %460 : vector<1x9x32xbf16> to vector<9x32xbf16>
    %c0_670 = arith.constant 0 : index
    %c161_671 = arith.constant 161 : index
    %c0_672 = arith.constant 0 : index
    %462 = vector.load %arg13[%c0_670, %c161_671, %c0_672] : memref<2x200x32xbf16, #tpu.memory_space<vmem>>, vector<1x9x32xbf16>
    %463 = vector.shape_cast %462 : vector<1x9x32xbf16> to vector<9x32xbf16>
    %c1_673 = arith.constant 1 : index
    %c161_674 = arith.constant 161 : index
    %c0_675 = arith.constant 0 : index
    %464 = vector.load %arg13[%c1_673, %c161_674, %c0_675] : memref<2x200x32xbf16, #tpu.memory_space<vmem>>, vector<1x9x32xbf16>
    %465 = vector.shape_cast %464 : vector<1x9x32xbf16> to vector<9x32xbf16>
    %c0_676 = arith.constant 0 : index
    %c170_677 = arith.constant 170 : index
    %c0_678 = arith.constant 0 : index
    %466 = vector.load %arg13[%c0_676, %c170_677, %c0_678] : memref<2x200x32xbf16, #tpu.memory_space<vmem>>, vector<1x9x32xbf16>
    %467 = vector.shape_cast %466 : vector<1x9x32xbf16> to vector<9x32xbf16>
    %c1_679 = arith.constant 1 : index
    %c170_680 = arith.constant 170 : index
    %c0_681 = arith.constant 0 : index
    %468 = vector.load %arg13[%c1_679, %c170_680, %c0_681] : memref<2x200x32xbf16, #tpu.memory_space<vmem>>, vector<1x9x32xbf16>
    %469 = vector.shape_cast %468 : vector<1x9x32xbf16> to vector<9x32xbf16>
    %c0_682 = arith.constant 0 : index
    %c171_683 = arith.constant 171 : index
    %c0_684 = arith.constant 0 : index
    %470 = vector.load %arg13[%c0_682, %c171_683, %c0_684] : memref<2x200x32xbf16, #tpu.memory_space<vmem>>, vector<1x9x32xbf16>
    %471 = vector.shape_cast %470 : vector<1x9x32xbf16> to vector<9x32xbf16>
    %c1_685 = arith.constant 1 : index
    %c171_686 = arith.constant 171 : index
    %c0_687 = arith.constant 0 : index
    %472 = vector.load %arg13[%c1_685, %c171_686, %c0_687] : memref<2x200x32xbf16, #tpu.memory_space<vmem>>, vector<1x9x32xbf16>
    %473 = vector.shape_cast %472 : vector<1x9x32xbf16> to vector<9x32xbf16>
    %c0_688 = arith.constant 0 : index
    %c180 = arith.constant 180 : index
    %c0_689 = arith.constant 0 : index
    %474 = vector.load %arg13[%c0_688, %c180, %c0_689] : memref<2x200x32xbf16, #tpu.memory_space<vmem>>, vector<1x9x32xbf16>
    %475 = vector.shape_cast %474 : vector<1x9x32xbf16> to vector<9x32xbf16>
    %c1_690 = arith.constant 1 : index
    %c180_691 = arith.constant 180 : index
    %c0_692 = arith.constant 0 : index
    %476 = vector.load %arg13[%c1_690, %c180_691, %c0_692] : memref<2x200x32xbf16, #tpu.memory_space<vmem>>, vector<1x9x32xbf16>
    %477 = vector.shape_cast %476 : vector<1x9x32xbf16> to vector<9x32xbf16>
    %c0_693 = arith.constant 0 : index
    %c181 = arith.constant 181 : index
    %c0_694 = arith.constant 0 : index
    %478 = vector.load %arg13[%c0_693, %c181, %c0_694] : memref<2x200x32xbf16, #tpu.memory_space<vmem>>, vector<1x9x32xbf16>
    %479 = vector.shape_cast %478 : vector<1x9x32xbf16> to vector<9x32xbf16>
    %c1_695 = arith.constant 1 : index
    %c181_696 = arith.constant 181 : index
    %c0_697 = arith.constant 0 : index
    %480 = vector.load %arg13[%c1_695, %c181_696, %c0_697] : memref<2x200x32xbf16, #tpu.memory_space<vmem>>, vector<1x9x32xbf16>
    %481 = vector.shape_cast %480 : vector<1x9x32xbf16> to vector<9x32xbf16>
    %c0_698 = arith.constant 0 : index
    %c190 = arith.constant 190 : index
    %c0_699 = arith.constant 0 : index
    %482 = vector.load %arg13[%c0_698, %c190, %c0_699] : memref<2x200x32xbf16, #tpu.memory_space<vmem>>, vector<1x9x32xbf16>
    %483 = vector.shape_cast %482 : vector<1x9x32xbf16> to vector<9x32xbf16>
    %c1_700 = arith.constant 1 : index
    %c190_701 = arith.constant 190 : index
    %c0_702 = arith.constant 0 : index
    %484 = vector.load %arg13[%c1_700, %c190_701, %c0_702] : memref<2x200x32xbf16, #tpu.memory_space<vmem>>, vector<1x9x32xbf16>
    %485 = vector.shape_cast %484 : vector<1x9x32xbf16> to vector<9x32xbf16>
    %c0_703 = arith.constant 0 : index
    %c191 = arith.constant 191 : index
    %c0_704 = arith.constant 0 : index
    %486 = vector.load %arg13[%c0_703, %c191, %c0_704] : memref<2x200x32xbf16, #tpu.memory_space<vmem>>, vector<1x9x32xbf16>
    %487 = vector.shape_cast %486 : vector<1x9x32xbf16> to vector<9x32xbf16>
    %c1_705 = arith.constant 1 : index
    %c191_706 = arith.constant 191 : index
    %c0_707 = arith.constant 0 : index
    %488 = vector.load %arg13[%c1_705, %c191_706, %c0_707] : memref<2x200x32xbf16, #tpu.memory_space<vmem>>, vector<1x9x32xbf16>
    %489 = vector.shape_cast %488 : vector<1x9x32xbf16> to vector<9x32xbf16>
    %490 = tpu.concatenate %459, %461, %463, %465, %467, %469, %471, %473, %475, %477, %479, %481, %483, %485, %487, %489 in 1 : vector<9x32xbf16>, vector<9x32xbf16>, vector<9x32xbf16>, vector<9x32xbf16>, vector<9x32xbf16>, vector<9x32xbf16>, vector<9x32xbf16>, vector<9x32xbf16>, vector<9x32xbf16>, vector<9x32xbf16>, vector<9x32xbf16>, vector<9x32xbf16>, vector<9x32xbf16>, vector<9x32xbf16>, vector<9x32xbf16>, vector<9x32xbf16> -> vector<9x512xbf16>
    %491 = tpu.concatenate %226, %259, %292, %325, %358, %391, %424, %457, %490 in 0 : vector<9x512xbf16>, vector<9x512xbf16>, vector<9x512xbf16>, vector<9x512xbf16>, vector<9x512xbf16>, vector<9x512xbf16>, vector<9x512xbf16>, vector<9x512xbf16>, vector<9x512xbf16> -> vector<81x512xbf16>
    %c0_708 = arith.constant 0 : index
    %c0_709 = arith.constant 0 : index
    %492 = vector.load %arg4[%c0_708, %c0_709] : memref<512x64xbf16, #tpu.memory_space<vmem>>, vector<512x64xbf16>
    %cst_710 = arith.constant dense<0.000000e+00> : vector<81x64xf32>
    %493 = tpu.matmul %491, %492, %cst_710 {dimension_numbers = #tpu.dot_dimension_numbers<[1], [0], [0], [1], [0, 0, 1, 1], [], []>} : vector<81x512xbf16>, vector<512x64xbf16>, vector<81x64xf32> -> vector<81x64xf32>
    %c0_711 = arith.constant 0 : index
    %c0_712 = arith.constant 0 : index
    %494 = vector.load %arg5[%c0_711, %c0_712] : memref<1x64xf32, #tpu.memory_space<vmem>>, vector<1x64xf32>
    %495 = vector.broadcast %494 : vector<1x64xf32> to vector<81x64xf32>
    %496 = arith.addf %493, %495 : vector<81x64xf32>
    %cst_713 = arith.constant 0.000000e+00 : f32
    %497 = vector.broadcast %cst_713 : f32 to vector<81x64xf32>
    %498 = arith.maximumf %496, %497 : vector<81x64xf32>
    %499 = arith.truncf %498 : vector<81x64xf32> to vector<81x64xbf16>
    %c0_714 = arith.constant 0 : index
    %c0_715 = arith.constant 0 : index
    %500 = vector.load %arg14[%c0_714, %c0_715] : memref<81x64xbf16, #tpu.memory_space<vmem>>, vector<81x64xbf16>
    tpu.vector_store %arg14[%c0_714, %c0_715], %499 {strides = array<i32>} : memref<81x64xbf16, #tpu.memory_space<vmem>>, vector<81x64xbf16>,
    %c0_716 = arith.constant 0 : index
    %c0_717 = arith.constant 0 : index
    %501 = vector.load %arg14[%c0_716, %c0_717] : memref<81x64xbf16, #tpu.memory_space<vmem>>, vector<7x64xbf16>
    %c1_718 = arith.constant 1 : index
    %c0_719 = arith.constant 0 : index
    %502 = vector.load %arg14[%c1_718, %c0_719] : memref<81x64xbf16, #tpu.memory_space<vmem>>, vector<7x64xbf16>
    %c2_720 = arith.constant 2 : index
    %c0_721 = arith.constant 0 : index
    %503 = vector.load %arg14[%c2_720, %c0_721] : memref<81x64xbf16, #tpu.memory_space<vmem>>, vector<7x64xbf16>
    %c9_722 = arith.constant 9 : index
    %c0_723 = arith.constant 0 : index
    %504 = vector.load %arg14[%c9_722, %c0_723] : memref<81x64xbf16, #tpu.memory_space<vmem>>, vector<7x64xbf16>
    %c10_724 = arith.constant 10 : index
    %c0_725 = arith.constant 0 : index
    %505 = vector.load %arg14[%c10_724, %c0_725] : memref<81x64xbf16, #tpu.memory_space<vmem>>, vector<7x64xbf16>
    %c11_726 = arith.constant 11 : index
    %c0_727 = arith.constant 0 : index
    %506 = vector.load %arg14[%c11_726, %c0_727] : memref<81x64xbf16, #tpu.memory_space<vmem>>, vector<7x64xbf16>
    %c18_728 = arith.constant 18 : index
    %c0_729 = arith.constant 0 : index
    %507 = vector.load %arg14[%c18_728, %c0_729] : memref<81x64xbf16, #tpu.memory_space<vmem>>, vector<7x64xbf16>
    %c19_730 = arith.constant 19 : index
    %c0_731 = arith.constant 0 : index
    %508 = vector.load %arg14[%c19_730, %c0_731] : memref<81x64xbf16, #tpu.memory_space<vmem>>, vector<7x64xbf16>
    %c20_732 = arith.constant 20 : index
    %c0_733 = arith.constant 0 : index
    %509 = vector.load %arg14[%c20_732, %c0_733] : memref<81x64xbf16, #tpu.memory_space<vmem>>, vector<7x64xbf16>
    %510 = tpu.concatenate %501, %502, %503, %504, %505, %506, %507, %508, %509 in 1 : vector<7x64xbf16>, vector<7x64xbf16>, vector<7x64xbf16>, vector<7x64xbf16>, vector<7x64xbf16>, vector<7x64xbf16>, vector<7x64xbf16>, vector<7x64xbf16>, vector<7x64xbf16> -> vector<7x576xbf16>
    %c9_734 = arith.constant 9 : index
    %c0_735 = arith.constant 0 : index
    %511 = vector.load %arg14[%c9_734, %c0_735] : memref<81x64xbf16, #tpu.memory_space<vmem>>, vector<7x64xbf16>
    %c10_736 = arith.constant 10 : index
    %c0_737 = arith.constant 0 : index
    %512 = vector.load %arg14[%c10_736, %c0_737] : memref<81x64xbf16, #tpu.memory_space<vmem>>, vector<7x64xbf16>
    %c11_738 = arith.constant 11 : index
    %c0_739 = arith.constant 0 : index
    %513 = vector.load %arg14[%c11_738, %c0_739] : memref<81x64xbf16, #tpu.memory_space<vmem>>, vector<7x64xbf16>
    %c18_740 = arith.constant 18 : index
    %c0_741 = arith.constant 0 : index
    %514 = vector.load %arg14[%c18_740, %c0_741] : memref<81x64xbf16, #tpu.memory_space<vmem>>, vector<7x64xbf16>
    %c19_742 = arith.constant 19 : index
    %c0_743 = arith.constant 0 : index
    %515 = vector.load %arg14[%c19_742, %c0_743] : memref<81x64xbf16, #tpu.memory_space<vmem>>, vector<7x64xbf16>
    %c20_744 = arith.constant 20 : index
    %c0_745 = arith.constant 0 : index
    %516 = vector.load %arg14[%c20_744, %c0_745] : memref<81x64xbf16, #tpu.memory_space<vmem>>, vector<7x64xbf16>
    %c27 = arith.constant 27 : index
    %c0_746 = arith.constant 0 : index
    %517 = vector.load %arg14[%c27, %c0_746] : memref<81x64xbf16, #tpu.memory_space<vmem>>, vector<7x64xbf16>
    %c28 = arith.constant 28 : index
    %c0_747 = arith.constant 0 : index
    %518 = vector.load %arg14[%c28, %c0_747] : memref<81x64xbf16, #tpu.memory_space<vmem>>, vector<7x64xbf16>
    %c29 = arith.constant 29 : index
    %c0_748 = arith.constant 0 : index
    %519 = vector.load %arg14[%c29, %c0_748] : memref<81x64xbf16, #tpu.memory_space<vmem>>, vector<7x64xbf16>
    %520 = tpu.concatenate %511, %512, %513, %514, %515, %516, %517, %518, %519 in 1 : vector<7x64xbf16>, vector<7x64xbf16>, vector<7x64xbf16>, vector<7x64xbf16>, vector<7x64xbf16>, vector<7x64xbf16>, vector<7x64xbf16>, vector<7x64xbf16>, vector<7x64xbf16> -> vector<7x576xbf16>
    %c18_749 = arith.constant 18 : index
    %c0_750 = arith.constant 0 : index
    %521 = vector.load %arg14[%c18_749, %c0_750] : memref<81x64xbf16, #tpu.memory_space<vmem>>, vector<7x64xbf16>
    %c19_751 = arith.constant 19 : index
    %c0_752 = arith.constant 0 : index
    %522 = vector.load %arg14[%c19_751, %c0_752] : memref<81x64xbf16, #tpu.memory_space<vmem>>, vector<7x64xbf16>
    %c20_753 = arith.constant 20 : index
    %c0_754 = arith.constant 0 : index
    %523 = vector.load %arg14[%c20_753, %c0_754] : memref<81x64xbf16, #tpu.memory_space<vmem>>, vector<7x64xbf16>
    %c27_755 = arith.constant 27 : index
    %c0_756 = arith.constant 0 : index
    %524 = vector.load %arg14[%c27_755, %c0_756] : memref<81x64xbf16, #tpu.memory_space<vmem>>, vector<7x64xbf16>
    %c28_757 = arith.constant 28 : index
    %c0_758 = arith.constant 0 : index
    %525 = vector.load %arg14[%c28_757, %c0_758] : memref<81x64xbf16, #tpu.memory_space<vmem>>, vector<7x64xbf16>
    %c29_759 = arith.constant 29 : index
    %c0_760 = arith.constant 0 : index
    %526 = vector.load %arg14[%c29_759, %c0_760] : memref<81x64xbf16, #tpu.memory_space<vmem>>, vector<7x64xbf16>
    %c36 = arith.constant 36 : index
    %c0_761 = arith.constant 0 : index
    %527 = vector.load %arg14[%c36, %c0_761] : memref<81x64xbf16, #tpu.memory_space<vmem>>, vector<7x64xbf16>
    %c37 = arith.constant 37 : index
    %c0_762 = arith.constant 0 : index
    %528 = vector.load %arg14[%c37, %c0_762] : memref<81x64xbf16, #tpu.memory_space<vmem>>, vector<7x64xbf16>
    %c38 = arith.constant 38 : index
    %c0_763 = arith.constant 0 : index
    %529 = vector.load %arg14[%c38, %c0_763] : memref<81x64xbf16, #tpu.memory_space<vmem>>, vector<7x64xbf16>
    %530 = tpu.concatenate %521, %522, %523, %524, %525, %526, %527, %528, %529 in 1 : vector<7x64xbf16>, vector<7x64xbf16>, vector<7x64xbf16>, vector<7x64xbf16>, vector<7x64xbf16>, vector<7x64xbf16>, vector<7x64xbf16>, vector<7x64xbf16>, vector<7x64xbf16> -> vector<7x576xbf16>
    %c27_764 = arith.constant 27 : index
    %c0_765 = arith.constant 0 : index
    %531 = vector.load %arg14[%c27_764, %c0_765] : memref<81x64xbf16, #tpu.memory_space<vmem>>, vector<7x64xbf16>
    %c28_766 = arith.constant 28 : index
    %c0_767 = arith.constant 0 : index
    %532 = vector.load %arg14[%c28_766, %c0_767] : memref<81x64xbf16, #tpu.memory_space<vmem>>, vector<7x64xbf16>
    %c29_768 = arith.constant 29 : index
    %c0_769 = arith.constant 0 : index
    %533 = vector.load %arg14[%c29_768, %c0_769] : memref<81x64xbf16, #tpu.memory_space<vmem>>, vector<7x64xbf16>
    %c36_770 = arith.constant 36 : index
    %c0_771 = arith.constant 0 : index
    %534 = vector.load %arg14[%c36_770, %c0_771] : memref<81x64xbf16, #tpu.memory_space<vmem>>, vector<7x64xbf16>
    %c37_772 = arith.constant 37 : index
    %c0_773 = arith.constant 0 : index
    %535 = vector.load %arg14[%c37_772, %c0_773] : memref<81x64xbf16, #tpu.memory_space<vmem>>, vector<7x64xbf16>
    %c38_774 = arith.constant 38 : index
    %c0_775 = arith.constant 0 : index
    %536 = vector.load %arg14[%c38_774, %c0_775] : memref<81x64xbf16, #tpu.memory_space<vmem>>, vector<7x64xbf16>
    %c45 = arith.constant 45 : index
    %c0_776 = arith.constant 0 : index
    %537 = vector.load %arg14[%c45, %c0_776] : memref<81x64xbf16, #tpu.memory_space<vmem>>, vector<7x64xbf16>
    %c46 = arith.constant 46 : index
    %c0_777 = arith.constant 0 : index
    %538 = vector.load %arg14[%c46, %c0_777] : memref<81x64xbf16, #tpu.memory_space<vmem>>, vector<7x64xbf16>
    %c47 = arith.constant 47 : index
    %c0_778 = arith.constant 0 : index
    %539 = vector.load %arg14[%c47, %c0_778] : memref<81x64xbf16, #tpu.memory_space<vmem>>, vector<7x64xbf16>
    %540 = tpu.concatenate %531, %532, %533, %534, %535, %536, %537, %538, %539 in 1 : vector<7x64xbf16>, vector<7x64xbf16>, vector<7x64xbf16>, vector<7x64xbf16>, vector<7x64xbf16>, vector<7x64xbf16>, vector<7x64xbf16>, vector<7x64xbf16>, vector<7x64xbf16> -> vector<7x576xbf16>
    %c36_779 = arith.constant 36 : index
    %c0_780 = arith.constant 0 : index
    %541 = vector.load %arg14[%c36_779, %c0_780] : memref<81x64xbf16, #tpu.memory_space<vmem>>, vector<7x64xbf16>
    %c37_781 = arith.constant 37 : index
    %c0_782 = arith.constant 0 : index
    %542 = vector.load %arg14[%c37_781, %c0_782] : memref<81x64xbf16, #tpu.memory_space<vmem>>, vector<7x64xbf16>
    %c38_783 = arith.constant 38 : index
    %c0_784 = arith.constant 0 : index
    %543 = vector.load %arg14[%c38_783, %c0_784] : memref<81x64xbf16, #tpu.memory_space<vmem>>, vector<7x64xbf16>
    %c45_785 = arith.constant 45 : index
    %c0_786 = arith.constant 0 : index
    %544 = vector.load %arg14[%c45_785, %c0_786] : memref<81x64xbf16, #tpu.memory_space<vmem>>, vector<7x64xbf16>
    %c46_787 = arith.constant 46 : index
    %c0_788 = arith.constant 0 : index
    %545 = vector.load %arg14[%c46_787, %c0_788] : memref<81x64xbf16, #tpu.memory_space<vmem>>, vector<7x64xbf16>
    %c47_789 = arith.constant 47 : index
    %c0_790 = arith.constant 0 : index
    %546 = vector.load %arg14[%c47_789, %c0_790] : memref<81x64xbf16, #tpu.memory_space<vmem>>, vector<7x64xbf16>
    %c54 = arith.constant 54 : index
    %c0_791 = arith.constant 0 : index
    %547 = vector.load %arg14[%c54, %c0_791] : memref<81x64xbf16, #tpu.memory_space<vmem>>, vector<7x64xbf16>
    %c55 = arith.constant 55 : index
    %c0_792 = arith.constant 0 : index
    %548 = vector.load %arg14[%c55, %c0_792] : memref<81x64xbf16, #tpu.memory_space<vmem>>, vector<7x64xbf16>
    %c56 = arith.constant 56 : index
    %c0_793 = arith.constant 0 : index
    %549 = vector.load %arg14[%c56, %c0_793] : memref<81x64xbf16, #tpu.memory_space<vmem>>, vector<7x64xbf16>
    %550 = tpu.concatenate %541, %542, %543, %544, %545, %546, %547, %548, %549 in 1 : vector<7x64xbf16>, vector<7x64xbf16>, vector<7x64xbf16>, vector<7x64xbf16>, vector<7x64xbf16>, vector<7x64xbf16>, vector<7x64xbf16>, vector<7x64xbf16>, vector<7x64xbf16> -> vector<7x576xbf16>
    %c45_794 = arith.constant 45 : index
    %c0_795 = arith.constant 0 : index
    %551 = vector.load %arg14[%c45_794, %c0_795] : memref<81x64xbf16, #tpu.memory_space<vmem>>, vector<7x64xbf16>
    %c46_796 = arith.constant 46 : index
    %c0_797 = arith.constant 0 : index
    %552 = vector.load %arg14[%c46_796, %c0_797] : memref<81x64xbf16, #tpu.memory_space<vmem>>, vector<7x64xbf16>
    %c47_798 = arith.constant 47 : index
    %c0_799 = arith.constant 0 : index
    %553 = vector.load %arg14[%c47_798, %c0_799] : memref<81x64xbf16, #tpu.memory_space<vmem>>, vector<7x64xbf16>
    %c54_800 = arith.constant 54 : index
    %c0_801 = arith.constant 0 : index
    %554 = vector.load %arg14[%c54_800, %c0_801] : memref<81x64xbf16, #tpu.memory_space<vmem>>, vector<7x64xbf16>
    %c55_802 = arith.constant 55 : index
    %c0_803 = arith.constant 0 : index
    %555 = vector.load %arg14[%c55_802, %c0_803] : memref<81x64xbf16, #tpu.memory_space<vmem>>, vector<7x64xbf16>
    %c56_804 = arith.constant 56 : index
    %c0_805 = arith.constant 0 : index
    %556 = vector.load %arg14[%c56_804, %c0_805] : memref<81x64xbf16, #tpu.memory_space<vmem>>, vector<7x64xbf16>
    %c63 = arith.constant 63 : index
    %c0_806 = arith.constant 0 : index
    %557 = vector.load %arg14[%c63, %c0_806] : memref<81x64xbf16, #tpu.memory_space<vmem>>, vector<7x64xbf16>
    %c64 = arith.constant 64 : index
    %c0_807 = arith.constant 0 : index
    %558 = vector.load %arg14[%c64, %c0_807] : memref<81x64xbf16, #tpu.memory_space<vmem>>, vector<7x64xbf16>
    %c65 = arith.constant 65 : index
    %c0_808 = arith.constant 0 : index
    %559 = vector.load %arg14[%c65, %c0_808] : memref<81x64xbf16, #tpu.memory_space<vmem>>, vector<7x64xbf16>
    %560 = tpu.concatenate %551, %552, %553, %554, %555, %556, %557, %558, %559 in 1 : vector<7x64xbf16>, vector<7x64xbf16>, vector<7x64xbf16>, vector<7x64xbf16>, vector<7x64xbf16>, vector<7x64xbf16>, vector<7x64xbf16>, vector<7x64xbf16>, vector<7x64xbf16> -> vector<7x576xbf16>
    %c54_809 = arith.constant 54 : index
    %c0_810 = arith.constant 0 : index
    %561 = vector.load %arg14[%c54_809, %c0_810] : memref<81x64xbf16, #tpu.memory_space<vmem>>, vector<7x64xbf16>
    %c55_811 = arith.constant 55 : index
    %c0_812 = arith.constant 0 : index
    %562 = vector.load %arg14[%c55_811, %c0_812] : memref<81x64xbf16, #tpu.memory_space<vmem>>, vector<7x64xbf16>
    %c56_813 = arith.constant 56 : index
    %c0_814 = arith.constant 0 : index
    %563 = vector.load %arg14[%c56_813, %c0_814] : memref<81x64xbf16, #tpu.memory_space<vmem>>, vector<7x64xbf16>
    %c63_815 = arith.constant 63 : index
    %c0_816 = arith.constant 0 : index
    %564 = vector.load %arg14[%c63_815, %c0_816] : memref<81x64xbf16, #tpu.memory_space<vmem>>, vector<7x64xbf16>
    %c64_817 = arith.constant 64 : index
    %c0_818 = arith.constant 0 : index
    %565 = vector.load %arg14[%c64_817, %c0_818] : memref<81x64xbf16, #tpu.memory_space<vmem>>, vector<7x64xbf16>
    %c65_819 = arith.constant 65 : index
    %c0_820 = arith.constant 0 : index
    %566 = vector.load %arg14[%c65_819, %c0_820] : memref<81x64xbf16, #tpu.memory_space<vmem>>, vector<7x64xbf16>
    %c72 = arith.constant 72 : index
    %c0_821 = arith.constant 0 : index
    %567 = vector.load %arg14[%c72, %c0_821] : memref<81x64xbf16, #tpu.memory_space<vmem>>, vector<7x64xbf16>
    %c73 = arith.constant 73 : index
    %c0_822 = arith.constant 0 : index
    %568 = vector.load %arg14[%c73, %c0_822] : memref<81x64xbf16, #tpu.memory_space<vmem>>, vector<7x64xbf16>
    %c74 = arith.constant 74 : index
    %c0_823 = arith.constant 0 : index
    %569 = vector.load %arg14[%c74, %c0_823] : memref<81x64xbf16, #tpu.memory_space<vmem>>, vector<7x64xbf16>
    %570 = tpu.concatenate %561, %562, %563, %564, %565, %566, %567, %568, %569 in 1 : vector<7x64xbf16>, vector<7x64xbf16>, vector<7x64xbf16>, vector<7x64xbf16>, vector<7x64xbf16>, vector<7x64xbf16>, vector<7x64xbf16>, vector<7x64xbf16>, vector<7x64xbf16> -> vector<7x576xbf16>
    %571 = tpu.concatenate %510, %520, %530, %540, %550, %560, %570 in 0 : vector<7x576xbf16>, vector<7x576xbf16>, vector<7x576xbf16>, vector<7x576xbf16>, vector<7x576xbf16>, vector<7x576xbf16>, vector<7x576xbf16> -> vector<49x576xbf16>
    %c0_824 = arith.constant 0 : index
    %c0_825 = arith.constant 0 : index
    %572 = vector.load %arg6[%c0_824, %c0_825] : memref<576x64xbf16, #tpu.memory_space<vmem>>, vector<576x64xbf16>
    %cst_826 = arith.constant dense<0.000000e+00> : vector<49x64xf32>
    %573 = tpu.matmul %571, %572, %cst_826 {dimension_numbers = #tpu.dot_dimension_numbers<[1], [0], [0], [1], [0, 0, 1, 1], [], []>} : vector<49x576xbf16>, vector<576x64xbf16>, vector<49x64xf32> -> vector<49x64xf32>
    %c0_827 = arith.constant 0 : index
    %c0_828 = arith.constant 0 : index
    %574 = vector.load %arg7[%c0_827, %c0_828] : memref<1x64xf32, #tpu.memory_space<vmem>>, vector<1x64xf32>
    %575 = vector.broadcast %574 : vector<1x64xf32> to vector<49x64xf32>
    %576 = arith.addf %573, %575 : vector<49x64xf32>
    %cst_829 = arith.constant 0.000000e+00 : f32
    %577 = vector.broadcast %cst_829 : f32 to vector<49x64xf32>
    %578 = arith.maximumf %576, %577 : vector<49x64xf32>
    %579 = arith.truncf %578 : vector<49x64xf32> to vector<49x64xbf16>
    %c0_830 = arith.constant 0 : index
    %c0_831 = arith.constant 0 : index
    %580 = vector.load %arg15[%c0_830, %c0_831] : memref<49x64xbf16, #tpu.memory_space<vmem>>, vector<49x64xbf16>
    tpu.vector_store %arg15[%c0_830, %c0_831], %579 {strides = array<i32>} : memref<49x64xbf16, #tpu.memory_space<vmem>>, vector<49x64xbf16>,
    %c0_832 = arith.constant 0 : index
    %c0_833 = arith.constant 0 : index
    %581 = vector.load %arg15[%c0_832, %c0_833] : memref<49x64xbf16, #tpu.memory_space<vmem>>, vector<1x64xbf16>
    %c1_834 = arith.constant 1 : index
    %c0_835 = arith.constant 0 : index
    %582 = vector.load %arg15[%c1_834, %c0_835] : memref<49x64xbf16, #tpu.memory_space<vmem>>, vector<1x64xbf16>
    %c2_836 = arith.constant 2 : index
    %c0_837 = arith.constant 0 : index
    %583 = vector.load %arg15[%c2_836, %c0_837] : memref<49x64xbf16, #tpu.memory_space<vmem>>, vector<1x64xbf16>
    %c3_838 = arith.constant 3 : index
    %c0_839 = arith.constant 0 : index
    %584 = vector.load %arg15[%c3_838, %c0_839] : memref<49x64xbf16, #tpu.memory_space<vmem>>, vector<1x64xbf16>
    %c4_840 = arith.constant 4 : index
    %c0_841 = arith.constant 0 : index
    %585 = vector.load %arg15[%c4_840, %c0_841] : memref<49x64xbf16, #tpu.memory_space<vmem>>, vector<1x64xbf16>
    %c5_842 = arith.constant 5 : index
    %c0_843 = arith.constant 0 : index
    %586 = vector.load %arg15[%c5_842, %c0_843] : memref<49x64xbf16, #tpu.memory_space<vmem>>, vector<1x64xbf16>
    %c6_844 = arith.constant 6 : index
    %c0_845 = arith.constant 0 : index
    %587 = vector.load %arg15[%c6_844, %c0_845] : memref<49x64xbf16, #tpu.memory_space<vmem>>, vector<1x64xbf16>
    %c7_846 = arith.constant 7 : index
    %c0_847 = arith.constant 0 : index
    %588 = vector.load %arg15[%c7_846, %c0_847] : memref<49x64xbf16, #tpu.memory_space<vmem>>, vector<1x64xbf16>
    %c8_848 = arith.constant 8 : index
    %c0_849 = arith.constant 0 : index
    %589 = vector.load %arg15[%c8_848, %c0_849] : memref<49x64xbf16, #tpu.memory_space<vmem>>, vector<1x64xbf16>
    %c9_850 = arith.constant 9 : index
    %c0_851 = arith.constant 0 : index
    %590 = vector.load %arg15[%c9_850, %c0_851] : memref<49x64xbf16, #tpu.memory_space<vmem>>, vector<1x64xbf16>
    %c10_852 = arith.constant 10 : index
    %c0_853 = arith.constant 0 : index
    %591 = vector.load %arg15[%c10_852, %c0_853] : memref<49x64xbf16, #tpu.memory_space<vmem>>, vector<1x64xbf16>
    %c11_854 = arith.constant 11 : index
    %c0_855 = arith.constant 0 : index
    %592 = vector.load %arg15[%c11_854, %c0_855] : memref<49x64xbf16, #tpu.memory_space<vmem>>, vector<1x64xbf16>
    %c12_856 = arith.constant 12 : index
    %c0_857 = arith.constant 0 : index
    %593 = vector.load %arg15[%c12_856, %c0_857] : memref<49x64xbf16, #tpu.memory_space<vmem>>, vector<1x64xbf16>
    %c13_858 = arith.constant 13 : index
    %c0_859 = arith.constant 0 : index
    %594 = vector.load %arg15[%c13_858, %c0_859] : memref<49x64xbf16, #tpu.memory_space<vmem>>, vector<1x64xbf16>
    %c14_860 = arith.constant 14 : index
    %c0_861 = arith.constant 0 : index
    %595 = vector.load %arg15[%c14_860, %c0_861] : memref<49x64xbf16, #tpu.memory_space<vmem>>, vector<1x64xbf16>
    %c15_862 = arith.constant 15 : index
    %c0_863 = arith.constant 0 : index
    %596 = vector.load %arg15[%c15_862, %c0_863] : memref<49x64xbf16, #tpu.memory_space<vmem>>, vector<1x64xbf16>
    %c16_864 = arith.constant 16 : index
    %c0_865 = arith.constant 0 : index
    %597 = vector.load %arg15[%c16_864, %c0_865] : memref<49x64xbf16, #tpu.memory_space<vmem>>, vector<1x64xbf16>
    %c17_866 = arith.constant 17 : index
    %c0_867 = arith.constant 0 : index
    %598 = vector.load %arg15[%c17_866, %c0_867] : memref<49x64xbf16, #tpu.memory_space<vmem>>, vector<1x64xbf16>
    %c18_868 = arith.constant 18 : index
    %c0_869 = arith.constant 0 : index
    %599 = vector.load %arg15[%c18_868, %c0_869] : memref<49x64xbf16, #tpu.memory_space<vmem>>, vector<1x64xbf16>
    %c19_870 = arith.constant 19 : index
    %c0_871 = arith.constant 0 : index
    %600 = vector.load %arg15[%c19_870, %c0_871] : memref<49x64xbf16, #tpu.memory_space<vmem>>, vector<1x64xbf16>
    %c20_872 = arith.constant 20 : index
    %c0_873 = arith.constant 0 : index
    %601 = vector.load %arg15[%c20_872, %c0_873] : memref<49x64xbf16, #tpu.memory_space<vmem>>, vector<1x64xbf16>
    %c21_874 = arith.constant 21 : index
    %c0_875 = arith.constant 0 : index
    %602 = vector.load %arg15[%c21_874, %c0_875] : memref<49x64xbf16, #tpu.memory_space<vmem>>, vector<1x64xbf16>
    %c22 = arith.constant 22 : index
    %c0_876 = arith.constant 0 : index
    %603 = vector.load %arg15[%c22, %c0_876] : memref<49x64xbf16, #tpu.memory_space<vmem>>, vector<1x64xbf16>
    %c23 = arith.constant 23 : index
    %c0_877 = arith.constant 0 : index
    %604 = vector.load %arg15[%c23, %c0_877] : memref<49x64xbf16, #tpu.memory_space<vmem>>, vector<1x64xbf16>
    %c24 = arith.constant 24 : index
    %c0_878 = arith.constant 0 : index
    %605 = vector.load %arg15[%c24, %c0_878] : memref<49x64xbf16, #tpu.memory_space<vmem>>, vector<1x64xbf16>
    %c25 = arith.constant 25 : index
    %c0_879 = arith.constant 0 : index
    %606 = vector.load %arg15[%c25, %c0_879] : memref<49x64xbf16, #tpu.memory_space<vmem>>, vector<1x64xbf16>
    %c26 = arith.constant 26 : index
    %c0_880 = arith.constant 0 : index
    %607 = vector.load %arg15[%c26, %c0_880] : memref<49x64xbf16, #tpu.memory_space<vmem>>, vector<1x64xbf16>
    %c27_881 = arith.constant 27 : index
    %c0_882 = arith.constant 0 : index
    %608 = vector.load %arg15[%c27_881, %c0_882] : memref<49x64xbf16, #tpu.memory_space<vmem>>, vector<1x64xbf16>
    %c28_883 = arith.constant 28 : index
    %c0_884 = arith.constant 0 : index
    %609 = vector.load %arg15[%c28_883, %c0_884] : memref<49x64xbf16, #tpu.memory_space<vmem>>, vector<1x64xbf16>
    %c29_885 = arith.constant 29 : index
    %c0_886 = arith.constant 0 : index
    %610 = vector.load %arg15[%c29_885, %c0_886] : memref<49x64xbf16, #tpu.memory_space<vmem>>, vector<1x64xbf16>
    %c30_887 = arith.constant 30 : index
    %c0_888 = arith.constant 0 : index
    %611 = vector.load %arg15[%c30_887, %c0_888] : memref<49x64xbf16, #tpu.memory_space<vmem>>, vector<1x64xbf16>
    %c31_889 = arith.constant 31 : index
    %c0_890 = arith.constant 0 : index
    %612 = vector.load %arg15[%c31_889, %c0_890] : memref<49x64xbf16, #tpu.memory_space<vmem>>, vector<1x64xbf16>
    %c32 = arith.constant 32 : index
    %c0_891 = arith.constant 0 : index
    %613 = vector.load %arg15[%c32, %c0_891] : memref<49x64xbf16, #tpu.memory_space<vmem>>, vector<1x64xbf16>
    %c33 = arith.constant 33 : index
    %c0_892 = arith.constant 0 : index
    %614 = vector.load %arg15[%c33, %c0_892] : memref<49x64xbf16, #tpu.memory_space<vmem>>, vector<1x64xbf16>
    %c34 = arith.constant 34 : index
    %c0_893 = arith.constant 0 : index
    %615 = vector.load %arg15[%c34, %c0_893] : memref<49x64xbf16, #tpu.memory_space<vmem>>, vector<1x64xbf16>
    %c35 = arith.constant 35 : index
    %c0_894 = arith.constant 0 : index
    %616 = vector.load %arg15[%c35, %c0_894] : memref<49x64xbf16, #tpu.memory_space<vmem>>, vector<1x64xbf16>
    %c36_895 = arith.constant 36 : index
    %c0_896 = arith.constant 0 : index
    %617 = vector.load %arg15[%c36_895, %c0_896] : memref<49x64xbf16, #tpu.memory_space<vmem>>, vector<1x64xbf16>
    %c37_897 = arith.constant 37 : index
    %c0_898 = arith.constant 0 : index
    %618 = vector.load %arg15[%c37_897, %c0_898] : memref<49x64xbf16, #tpu.memory_space<vmem>>, vector<1x64xbf16>
    %c38_899 = arith.constant 38 : index
    %c0_900 = arith.constant 0 : index
    %619 = vector.load %arg15[%c38_899, %c0_900] : memref<49x64xbf16, #tpu.memory_space<vmem>>, vector<1x64xbf16>
    %c39 = arith.constant 39 : index
    %c0_901 = arith.constant 0 : index
    %620 = vector.load %arg15[%c39, %c0_901] : memref<49x64xbf16, #tpu.memory_space<vmem>>, vector<1x64xbf16>
    %c40_902 = arith.constant 40 : index
    %c0_903 = arith.constant 0 : index
    %621 = vector.load %arg15[%c40_902, %c0_903] : memref<49x64xbf16, #tpu.memory_space<vmem>>, vector<1x64xbf16>
    %c41_904 = arith.constant 41 : index
    %c0_905 = arith.constant 0 : index
    %622 = vector.load %arg15[%c41_904, %c0_905] : memref<49x64xbf16, #tpu.memory_space<vmem>>, vector<1x64xbf16>
    %c42 = arith.constant 42 : index
    %c0_906 = arith.constant 0 : index
    %623 = vector.load %arg15[%c42, %c0_906] : memref<49x64xbf16, #tpu.memory_space<vmem>>, vector<1x64xbf16>
    %c43 = arith.constant 43 : index
    %c0_907 = arith.constant 0 : index
    %624 = vector.load %arg15[%c43, %c0_907] : memref<49x64xbf16, #tpu.memory_space<vmem>>, vector<1x64xbf16>
    %c44 = arith.constant 44 : index
    %c0_908 = arith.constant 0 : index
    %625 = vector.load %arg15[%c44, %c0_908] : memref<49x64xbf16, #tpu.memory_space<vmem>>, vector<1x64xbf16>
    %c45_909 = arith.constant 45 : index
    %c0_910 = arith.constant 0 : index
    %626 = vector.load %arg15[%c45_909, %c0_910] : memref<49x64xbf16, #tpu.memory_space<vmem>>, vector<1x64xbf16>
    %c46_911 = arith.constant 46 : index
    %c0_912 = arith.constant 0 : index
    %627 = vector.load %arg15[%c46_911, %c0_912] : memref<49x64xbf16, #tpu.memory_space<vmem>>, vector<1x64xbf16>
    %c47_913 = arith.constant 47 : index
    %c0_914 = arith.constant 0 : index
    %628 = vector.load %arg15[%c47_913, %c0_914] : memref<49x64xbf16, #tpu.memory_space<vmem>>, vector<1x64xbf16>
    %c48 = arith.constant 48 : index
    %c0_915 = arith.constant 0 : index
    %629 = vector.load %arg15[%c48, %c0_915] : memref<49x64xbf16, #tpu.memory_space<vmem>>, vector<1x64xbf16>
    %630 = tpu.concatenate %581, %582, %583, %584, %585, %586, %587, %588, %589, %590, %591, %592, %593, %594, %595, %596 in 1 : vector<1x64xbf16>, vector<1x64xbf16>, vector<1x64xbf16>, vector<1x64xbf16>, vector<1x64xbf16>, vector<1x64xbf16>, vector<1x64xbf16>, vector<1x64xbf16>, vector<1x64xbf16>, vector<1x64xbf16>, vector<1x64xbf16>, vector<1x64xbf16>, vector<1x64xbf16>, vector<1x64xbf16>, vector<1x64xbf16>, vector<1x64xbf16> -> vector<1x1024xbf16>
    %631 = tpu.concatenate %597, %598, %599, %600, %601, %602, %603, %604, %605, %606, %607, %608, %609, %610, %611, %612 in 1 : vector<1x64xbf16>, vector<1x64xbf16>, vector<1x64xbf16>, vector<1x64xbf16>, vector<1x64xbf16>, vector<1x64xbf16>, vector<1x64xbf16>, vector<1x64xbf16>, vector<1x64xbf16>, vector<1x64xbf16>, vector<1x64xbf16>, vector<1x64xbf16>, vector<1x64xbf16>, vector<1x64xbf16>, vector<1x64xbf16>, vector<1x64xbf16> -> vector<1x1024xbf16>
    %632 = tpu.concatenate %613, %614, %615, %616, %617, %618, %619, %620, %621, %622, %623, %624, %625, %626, %627, %628 in 1 : vector<1x64xbf16>, vector<1x64xbf16>, vector<1x64xbf16>, vector<1x64xbf16>, vector<1x64xbf16>, vector<1x64xbf16>, vector<1x64xbf16>, vector<1x64xbf16>, vector<1x64xbf16>, vector<1x64xbf16>, vector<1x64xbf16>, vector<1x64xbf16>, vector<1x64xbf16>, vector<1x64xbf16>, vector<1x64xbf16>, vector<1x64xbf16> -> vector<1x1024xbf16>
    %633 = tpu.concatenate %630, %631, %632, %629 in 1 : vector<1x1024xbf16>, vector<1x1024xbf16>, vector<1x1024xbf16>, vector<1x64xbf16> -> vector<1x3136xbf16>
    %c0_916 = arith.constant 0 : index
    %c0_917 = arith.constant 0 : index
    %634 = vector.load %arg8[%c0_916, %c0_917] : memref<3136x512xbf16, #tpu.memory_space<vmem>>, vector<3136x512xbf16>
    %cst_918 = arith.constant dense<0.000000e+00> : vector<1x512xf32>
    %635 = tpu.matmul %633, %634, %cst_918 {dimension_numbers = #tpu.dot_dimension_numbers<[1], [0], [0], [1], [0, 0, 1, 1], [], []>} : vector<1x3136xbf16>, vector<3136x512xbf16>, vector<1x512xf32> -> vector<1x512xf32>
    %c0_919 = arith.constant 0 : index
    %c0_920 = arith.constant 0 : index
    %636 = vector.load %arg9[%c0_919, %c0_920] : memref<1x512xf32, #tpu.memory_space<vmem>>, vector<1x512xf32>
    %637 = arith.addf %635, %636 : vector<1x512xf32>
    %cst_921 = arith.constant 0.000000e+00 : f32
    %638 = vector.broadcast %cst_921 : f32 to vector<1x512xf32>
    %639 = arith.maximumf %637, %638 : vector<1x512xf32>
    %c0_922 = arith.constant 0 : index
    %c0_923 = arith.constant 0 : index
    %640 = vector.load %arg10[%c0_922, %c0_923] : memref<1x512xf32, #tpu.memory_space<vmem>>, vector<1x512xf32>
    %641 = arith.mulf %639, %640 : vector<1x512xf32>
    %cst_924 = arith.constant dense<0.000000e+00> : vector<1xf32>
    %642 = vector.multi_reduction <add>, %641, %cst_924 [1] : vector<1x512xf32> to vector<1xf32>
    %643 = vector.shape_cast %642 : vector<1xf32> to vector<1x1xf32>
    %c0_925 = arith.constant 0 : index
    %c0_926 = arith.constant 0 : index
    %644 = vector.load %arg11[%c0_925, %c0_926] : memref<1x1xf32, #tpu.memory_space<vmem>>, vector<1x1xf32>
    %645 = arith.addf %643, %644 : vector<1x1xf32>
    %646 = vector.shape_cast %645 : vector<1x1xf32> to vector<1x1x1xf32>
    %647 = vector.shape_cast %646 : vector<1x1x1xf32> to vector<1x1x1xf32>
    %648 = vector.broadcast %647 : vector<1x1x1xf32> to vector<1x1x128xf32>
    %c0_927 = arith.constant 0 : index
    %c0_928 = arith.constant 0 : index
    %c0_929 = arith.constant 0 : index
    %649 = vector.load %arg12[%c0_927, %c0_928, %c0_929] : memref<1x1x128xf32, #tpu.memory_space<vmem>>, vector<1x1x128xf32>
    tpu.vector_store %arg12[%c0_927, %c0_928, %c0_929], %648 {strides = array<i32>} : memref<1x1x128xf32, #tpu.memory_space<vmem>>, vector<1x1x128xf32>,
    return
  }
  func.func @transform_0(%arg0: i32) -> (i32, i32, i32, i32, i32) {
    %c0_i32 = arith.constant 0 : i32
    %c0_i32_0 = arith.constant 0 : i32
    %c0_i32_1 = arith.constant 0 : i32
    %c0_i32_2 = arith.constant 0 : i32
    %c0_i32_3 = arith.constant 0 : i32
    return %arg0, %c0_i32, %c0_i32_0, %c0_i32_1, %c0_i32_2 : i32, i32, i32, i32, i32
  }
  func.func @transform_1(%arg0: i32) -> (i32, i32) {
    %c0_i32 = arith.constant 0 : i32
    %c0_i32_0 = arith.constant 0 : i32
    %c0_i32_1 = arith.constant 0 : i32
    return %c0_i32, %c0_i32_0 : i32, i32
  }
  func.func @transform_2(%arg0: i32) -> (i32, i32) {
    %c0_i32 = arith.constant 0 : i32
    %c0_i32_0 = arith.constant 0 : i32
    %c0_i32_1 = arith.constant 0 : i32
    return %c0_i32, %c0_i32_0 : i32, i32
  }
  func.func @transform_3(%arg0: i32) -> (i32, i32) {
    %c0_i32 = arith.constant 0 : i32
    %c0_i32_0 = arith.constant 0 : i32
    %c0_i32_1 = arith.constant 0 : i32
    return %c0_i32, %c0_i32_0 : i32, i32
  }
  func.func @transform_4(%arg0: i32) -> (i32, i32) {
    %c0_i32 = arith.constant 0 : i32
    %c0_i32_0 = arith.constant 0 : i32
    %c0_i32_1 = arith.constant 0 : i32
    return %c0_i32, %c0_i32_0 : i32, i32
  }
  func.func @transform_5(%arg0: i32) -> (i32, i32) {
    %c0_i32 = arith.constant 0 : i32
    %c0_i32_0 = arith.constant 0 : i32
    %c0_i32_1 = arith.constant 0 : i32
    return %c0_i32, %c0_i32_0 : i32, i32
  }
  func.func @transform_6(%arg0: i32) -> (i32, i32) {
    %c0_i32 = arith.constant 0 : i32
    %c0_i32_0 = arith.constant 0 : i32
    %c0_i32_1 = arith.constant 0 : i32
    return %c0_i32, %c0_i32_0 : i32, i32
  }
  func.func @transform_7(%arg0: i32) -> (i32, i32) {
    %c0_i32 = arith.constant 0 : i32
    %c0_i32_0 = arith.constant 0 : i32
    %c0_i32_1 = arith.constant 0 : i32
    return %c0_i32, %c0_i32_0 : i32, i32
  }
  func.func @transform_8(%arg0: i32) -> (i32, i32) {
    %c0_i32 = arith.constant 0 : i32
    %c0_i32_0 = arith.constant 0 : i32
    %c0_i32_1 = arith.constant 0 : i32
    return %c0_i32, %c0_i32_0 : i32, i32
  }
  func.func @transform_9(%arg0: i32) -> (i32, i32) {
    %c0_i32 = arith.constant 0 : i32
    %c0_i32_0 = arith.constant 0 : i32
    %c0_i32_1 = arith.constant 0 : i32
    return %c0_i32, %c0_i32_0 : i32, i32
  }
  func.func @transform_10(%arg0: i32) -> (i32, i32) {
    %c0_i32 = arith.constant 0 : i32
    %c0_i32_0 = arith.constant 0 : i32
    %c0_i32_1 = arith.constant 0 : i32
    return %c0_i32, %c0_i32_0 : i32, i32
  }
  func.func @transform_11(%arg0: i32) -> (i32, i32, i32) {
    %c0_i32 = arith.constant 0 : i32
    %c0_i32_0 = arith.constant 0 : i32
    %c0_i32_1 = arith.constant 0 : i32
    return %arg0, %c0_i32, %c0_i32_0 : i32, i32, i32
  }
}

</mosaic_0001>

<bundles_post_ra>
// kernel: critic_forward.1
= control target key start
LH: loop header
LB: loop body
LE: loop exit
PB: predicated region body
PF: predicated region fallthrough
CT: control target
= control target key end

     0   :  { %s14938_s19 = smov 0   ;;  %s19297_s0 = inlined_call_operand.vmem [shape: bf16[2,21,2,11,64], index: 0, kind: input, shape index: {}]   ;;  %s19298_s1 = inlined_call_operand.vmem [shape: bf16[256,32], index: 1, kind: input, shape index: {}]   ;;  %s19299_s2 = inlined_call_operand.vmem [shape: f32[1,32], index: 2, kind: input, shape index: {}]   ;;  %s19300_s3 = inlined_call_operand.vmem [shape: bf16[512,64], index: 3, kind: input, shape index: {}]   ;;  %s19301_s4 = inlined_call_operand.vmem [shape: f32[1,64], index: 4, kind: input, shape index: {}]   ;;  %s19302_s5 = inlined_call_operand.vmem [shape: bf16[576,64], index: 5, kind: input, shape index: {}]   ;;  %s19303_s6 = inlined_call_operand.vmem [shape: f32[1,64], index: 6, kind: input, shape index: {}]   ;;  %s19304_s7 = inlined_call_operand.vmem [shape: bf16[3136,512], index: 7, kind: input, shape index: {}]   ;;  %s19305_s8 = inlined_call_operand.vmem [shape: f32[1,512], index: 8, kind: input, shape index: {}]   ;;  %s19306_s9 = inlined_call_operand.vmem [shape: f32[1,512], index: 9, kind: input, shape index: {}]   ;;  %s19307_s10 = inlined_call_operand.<no memory space> [shape: f32[1,1], index: 10, kind: input, shape index: {}]   ;;  %s19308_s11 = inlined_call_operand.vmem [shape: f32[2,1,128], index: 11, kind: output, shape index: {}]  }
   0x1   :  { %v16_v0 = vstv %s19307_s10 }
   0x2   :  { %17 = vst [vmem:[#allocation5] sm:$0x1] %v16_v0 }
   0x3 LB: > { %s11579_s20 = sadd.s32 4294967295, %s14869_s19   ;;  %p11583_p0 = scmp.ge.s32.totalorder %s14869_s19, 1  ;;  %s14869_s19 = sphi %s14938_s19, %s23_s19  }
   0x4   : > { %p339_p1 = scmp.lt.s32.totalorder %s14869_s19, 3 }
   0x6   : > { %p340_p2 = pnand %p11583_p0, %p339_p1 }
   0x7   : > { %p377_p3 = scmp.lt.s32.totalorder (!%p340_p2), %s11579_s20, 1  ;;  %v13406_v1 = vld [vmem:[%s19298_s1 + $0x40] sm:$0xff] (!%p340_p2)   ;;  %v13409_v3 = vld [vmem:[%s19298_s1 + $0x48] sm:$0xff] (!%p340_p2)   ;;  %s14871_s17 = smov (!%p340_p2), 64   ;;  %v13414_v26 = vld [vmem:[%s19298_s1 + $0x50] sm:$0xff] (!%p340_p2)   ;;  %vm556_vm0 = vcmask (!%p340_p2), 523264  }
   0x8   : > { %343 = sbr.rel (%p340_p2) target bundleno = 2681 (0xa79), region = 64  ;;  %v13407_v2 = vld [vmem:[%s19298_s1] sm:$0xff] (!%p340_p2)   ;;  %12867 = vmatprep.subr.bf16.mxu0 (!%p340_p2), %v13406_v1  ;;  %v13410_v4 = vld [vmem:[%s19298_s1 + $0x8] sm:$0xff] (!%p340_p2)   ;;  %v13415_v32 = vld [vmem:[%s19298_s1 + $0x10] sm:$0xff] (!%p340_p2)   ;;  %vm892_vm1 = vcmask (!%p340_p2), 1044480   ;;  %vm899_vm2 = vcmask (!%p340_p2), 1041408  }
   0x9   : > { %12868 = vmatpush3.bf16.msra.mxu0 (!%p340_p2), %v13407_v2  ;;  %v13411_v5 = vld [vmem:[%s19298_s1 + $0x40] sm:$0xff] (!%p340_p2)   ;;  %v13416_v40 = vld [vmem:[%s19298_s1 + $0x48] sm:$0xff] (!%p340_p2)   ;;  %v13418_v53 = vld [vmem:[%s19298_s1 + $0x58] sm:$0xff] (!%p340_p2)   ;;  %vm904_vm3 = vcmask (!%p340_p2), 1046528   ;;  %vm911_vm4 = vcmask (!%p340_p2), 1043456   ;;  %vm918_vm5 = vcmask (!%p340_p2), 1040384  }
   0xa   : > { %12869 = vmatprep.subr.bf16.mxu0 (!%p340_p2), %v13409_v3  ;;  %v13412_v6 = vld [vmem:[%s19298_s1] sm:$0xff] (!%p340_p2)   ;;  %12961 = vmatprep.subr.bf16.mxu1 (!%p340_p2), %v13411_v5  ;;  %v13417_v43 = vld [vmem:[%s19298_s1 + $0x8] sm:$0xff] (!%p340_p2)   ;;  %v13419_v59 = vld [vmem:[%s19298_s1 + $0x18] sm:$0xff] (!%p340_p2)   ;;  %vm923_vm6 = vcmask (!%p340_p2), 1045504   ;;  %vm930_vm7 = vcmask (!%p340_p2), 1042432   ;;  %vm1400_vm8 = vcmask (!%p340_p2), 257024  }
   0xb   : > { %12962 = vmatpush3.bf16.msra.mxu1 (!%p340_p2), %v13412_v6  ;;  %v13420_v63 = vld [vmem:[%s19298_s1 + $0x50] sm:$0xff] (!%p340_p2)   ;;  %s14872_s24 = smov (!%p340_p2), 32   ;;  %s14873_s27 = smov (!%p340_p2), 96   ;;  %vm2460_vm9 = vcmask (!%p340_p2), 261120   ;;  %vm2465_vm10 = vcmask (!%p340_p2), 785408  }
   0xc   : > { %12963 = vmatprep.subr.bf16.mxu1 (!%p340_p2), %v13416_v40  ;;  %v13421_v3 = vld [vmem:[%s19298_s1 + $0x10] sm:$0xff] (!%p340_p2)   ;;  %vm3666_vm11 = vsmask.f32 (!%p340_p2), 4352  ;;  %vm3689_vm13 = vsmask.f32 (!%p340_p2), 5376 }
   0xd   : > { %12870 = vmatpush3.bf16.msra.mxu0 (!%p340_p2), %v13410_v4  ;;  %vm15990_vm12 = vmand (!%p340_p2), %vm892_vm1, %vm3666_vm11  ;;  %vm3712_vm15 = vsmask.f32 (!%p340_p2), 6400  ;;  %vm3734_vm11 = vcmask (!%p340_p2), 1047552  }
   0xe   : > { %12871 = vmatprep.subr.bf16.mxu0 (!%p340_p2), %v13414_v26  ;;  %vm16162_vm14 = vmand (!%p340_p2), %vm923_vm6, %vm3689_vm13 }
   0xf   : > { %s19326_s20 = smov (!%p377_p3, %s11579_s20), 1  ;;  %12964 = vmatpush3.bf16.msra.mxu1 %v13417_v43 }
  0x10   : > { %s13361_s26 = smul.u32 336, %s19326_s20  ;;  %12965 = vmatprep.subr.bf16.mxu1 %v13420_v63  ;;  %s384_s21 = scalar_lea.vmem %s19308_s11, %s19326_s20 }
  0x11   : > { %12872 = vmatpush3.bf16.msra.mxu0 %v13415_v32 }
  0x12   : > { %s14967_s14 = scalar_lea.vmem %s19297_s0, %s13361_s26  ;;  %12873 = vmatprep.subr.bf16.mxu0 %v13418_v53  ;;  %v13431_v53 = vld [vmem:[%s19298_s1 + $0x20] sm:$0xff]  }
  0x13   : > { %v13376_v7 = vld [vmem:[%s14967_s14 + $0x28] sm:$0x1f]   ;;  %v13377_v8 = vld [vmem:[%s14967_s14 + $0x18] sm:$0x1f]   ;;  %v14976_v9 = vld [vmem:[%s14967_s14 + $0x20] sm:$0xf]  ;;  %12966 = vmatpush3.bf16.msra.mxu1 %v13421_v3 }
  0x14   : > { %573 = vrot.lane.b32.xlu0 %v13376_v7, %s14871_s17  ;;  %v11668_v10 = vld [vmem:[%s14967_s14 + $0x24] sm:$0x3]  ;;  %v14981_v12 = vld [vmem:[%s14967_s14 + $0x10] sm:$0xf]  ;;  %v11667_v13 = vld [vmem:[%s14967_s14 + $0x14] sm:$0x3] }
  0x15   : > { %v11773_v11 = vcombine.low %v14976_v9, %v11668_v10  ;;  %v13379_v16 = vld [vmem:[%s14967_s14 + $0x8] sm:$0x1f]   ;;  %v11772_v17 = vcombine.low %v14981_v12, %v11667_v13  ;;  %v14987_v18 = vld [vmem:[%s14967_s14] sm:$0xf]  ;;  %v511_v19 = vld [vmem:[%s14967_s14 + $0x4] sm:$0x3]  ;;  %12874 = vmatpush3.bf16.msra.mxu0 %v13419_v59 }
  0x16   : > { %v14992_v20 = vld [vmem:[%s14967_s14 + $0x30] sm:$0xf]  ;;  %v11669_v21 = vld [vmem:[%s14967_s14 + $0x34] sm:$0x3]  ;;  %v11771_v25 = vcombine.low %v14987_v18, %v511_v19  ;;  %v13381_v27 = vld [vmem:[%s14967_s14 + $0x38] sm:$0x1f]  }
  0x17   : > { %v1460_v14 = vshrl.u32 %v11773_v11, 16  ;;  %v1462_v15 = vshll.u32 %v11773_v11, 16  ;;  %v1442_v23 = vshrl.u32 %v11772_v17, 16  ;;  %v1444_v24 = vshll.u32 %v11772_v17, 16  ;;  %v11591_v36 = vld [vmem:[%s14967_s14 + $0x40] sm:$0xf] }
  0x18   : > { %554 = vrot.lane.b32.xlu0 %v13377_v8, %s14871_s17  ;;  %v11774_v28 = vcombine.low %v14992_v20, %v11669_v21  ;;  %v1432_v31 = vshll.u32 %v11771_v25, 16  ;;  %v1430_v33 = vshrl.u32 %v11771_v25, 16  ;;  %v11670_v39 = vld [vmem:[%s14967_s14 + $0x44] sm:$0x3]  ;;  %v11593_v44 = vld [vmem:[%s14967_s14 + $0x50] sm:$0xf] }
  0x19   : > { %v1464_v22 = vrot.slane %v1462_v15, 1  ;;  %v1446_v30 = vrot.slane %v1444_v24, 1  ;;  %v11775_v42 = vcombine.low %v11591_v36, %v11670_v39  ;;  %v11671_v45 = vld [vmem:[%s14967_s14 + $0x54] sm:$0x3]  ;;  %v11595_v46 = vld [vmem:[%s14967_s14 + $0x60] sm:$0xf] }
  0x1a   : > { %v1475_v34 = vshrl.u32 %v11774_v28, 16  ;;  %v1477_v35 = vshll.u32 %v11774_v28, 16  ;;  %v1434_v38 = vrot.slane %v1432_v31, 1  ;;  %v11776_v48 = vcombine.low %v11593_v44, %v11671_v45  ;;  %v11672_v49 = vld [vmem:[%s14967_s14 + $0x64] sm:$0x3]  ;;  %v13425_v25 = vld [vmem:[%s19298_s1 + $0x58] sm:$0xff]  }
  0x1b   : > { %v1465_v29 = vor.u32 %v1464_v22, %v1460_v14  ;;  %v1447_v37 = vor.u32 %v1446_v30, %v1442_v23  ;;  %v1492_v51 = vshll.u32 %v11775_v42, 16  ;;  %v11777_v52 = vcombine.low %v11595_v46, %v11672_v49  ;;  %v13384_v54 = vld [vmem:[%s14967_s14 + $0x48] sm:$0x1f]   ;;  %v13385_v55 = vld [vmem:[%s14967_s14 + $0x58] sm:$0x1f]   ;;  %v13423_v15 = vld [vmem:[%s19298_s1 + $0x60] sm:$0xff]   ;;  %12967 = vmatprep.subr.bf16.mxu1 %v13425_v25 }
  0x1c   : > { %542 = vrot.lane.b32.xlu0 %v13379_v16, %s14871_s17  ;;  %v1479_v41 = vrot.slane %v1477_v35, 1  ;;  %v1435_v50 = vor.u32 %v1434_v38, %v1430_v33  ;;  %v1490_v56 = vshrl.u32 %v11775_v42, 16  ;;  %v1507_v57 = vshll.u32 %v11776_v48, 16  ;;  %v11597_v61 = vld [vmem:[%s14967_s14 + $0x70] sm:$0xf]  ;;  %12875 = vmatprep.subr.bf16.mxu0 %v13423_v15  ;;  %v13424_v23 = vld [vmem:[%s19298_s1 + $0x20] sm:$0xff]  }
  0x1d   : > { %1466 = vrot.lane.b32.xlu1 %v1465_v29, %s14871_s17  ;;  %v1522_v58 = vshll.u32 %v11777_v52, 16  ;;  %v1494_v60 = vrot.slane %v1492_v51, 1  ;;  %v11673_v62 = vld [vmem:[%s14967_s14 + $0x74] sm:$0x3]  ;;  %v13387_v0 = vld [vmem:[%s14967_s14 + $0x68] sm:$0x1f]   ;;  %12876 = vmatpush3.bf16.msra.mxu0 %v13424_v23 }
  0x1e   : > { %v1480_v47 = vor.u32 %v1479_v41, %v1475_v34  ;;  %v1505_v1 = vshrl.u32 %v11776_v48, 16  ;;  %v1520_v2 = vshrl.u32 %v11777_v52, 16  ;;  %v1509_v4 = vrot.slane %v1507_v57, 1  ;;  %v11599_v7 = vld [vmem:[%s14967_s14 + $0x80] sm:$0xf]  ;;  %v13426_v29 = vld [vmem:[%s19298_s1 + $0x18] sm:$0xff]  }
  0x1f   : > { %v1524_v5 = vrot.slane %v1522_v58, 1  ;;  %v11778_v6 = vcombine.low %v11597_v61, %v11673_v62  ;;  %v11674_v8 = vld [vmem:[%s14967_s14 + $0x84] sm:$0x3]  ;;  %v1495_v10 = vor.u32 %v1494_v60, %v1490_v56  ;;  %v11603_v11 = vld [vmem:[%s14967_s14 + $0xa0] sm:$0xf]  ;;  %v13427_v31 = vld [vmem:[%s19298_s1 + $0x68] sm:$0xff]   ;;  %12968 = vmatpush3.bf16.msra.mxu1 %v13426_v29 }
  0x20   : > { %588 = vrot.lane.b32.xlu0 %v13381_v27, %s14871_s17  ;;  %v11676_v13 = vld [vmem:[%s14967_s14 + $0xa4] sm:$0x3]  ;;  %v11601_v14 = vld [vmem:[%s14967_s14 + $0x90] sm:$0xf]  ;;  %v11675_v16 = vld [vmem:[%s14967_s14 + $0x94] sm:$0x3]  ;;  %v11779_v21 = vcombine.low %v11599_v7, %v11674_v8  ;;  %v1510_v24 = vor.u32 %v1509_v4, %v1505_v1  ;;  %12877 = vmatprep.subr.bf16.mxu0 %v13427_v31 }
  0x21   : > { %1448 = vrot.lane.b32.xlu1 %v1447_v37, %s14871_s17  ;;  %v1525_v17 = vor.u32 %v1524_v5, %v1520_v2  ;;  %v1537_v19 = vshll.u32 %v11778_v6, 16  ;;  %v11781_v22 = vcombine.low %v11603_v11, %v11676_v13  ;;  %v11780_v26 = vcombine.low %v11601_v14, %v11675_v16  ;;  %v11605_v27 = vld [vmem:[%s14967_s14 + $0xb0] sm:$0xf]  ;;  %v11677_v28 = vld [vmem:[%s14967_s14 + $0xb4] sm:$0x3]  ;;  %v13428_v41 = vld [vmem:[%s19298_s1 + $0x28] sm:$0xff]  }
  0x22   : > { %v13390_v30 = vld [vmem:[%s14967_s14 + $0x78] sm:$0x1f]   ;;  %v1535_v32 = vshrl.u32 %v11778_v6, 16  ;;  %v13392_v34 = vld [vmem:[%s14967_s14 + $0x88] sm:$0x1f]   ;;  %v1552_v35 = vshll.u32 %v11779_v21, 16  ;;  %v11782_v40 = vcombine.low %v11605_v27, %v11677_v28  ;;  %12878 = vmatpush3.bf16.msra.mxu0 %v13428_v41 }
  0x23   : > { %v1539_v33 = vrot.slane %v1537_v19, 1  ;;  %v1582_v36 = vshll.u32 %v11781_v22, 16  ;;  %v11607_v37 = vld [vmem:[%s14967_s14 + $0xc0] sm:$0xf]  ;;  %v11678_v38 = vld [vmem:[%s14967_s14 + $0xc4] sm:$0x3] }
  0x24   : > { %1481 = vrot.lane.b32.xlu0 %v1480_v47, %s14871_s17  ;;  %v1567_v39 = vshll.u32 %v11780_v26, 16  ;;  %v13430_v42 = vld [vmem:[%s19298_s1 + $0x60] sm:$0xff]   ;;  %v13394_v43 = vld [vmem:[%s14967_s14 + $0xa8] sm:$0x1f]   ;;  %v1580_v44 = vshrl.u32 %v11781_v22, 16  ;;  %v11783_v46 = vcombine.low %v11607_v37, %v11678_v38  ;;  %v1550_v48 = vshrl.u32 %v11779_v21, 16 }
  0x25   : > { %1436 = vrot.lane.b32.xlu1 %v1435_v50, %s14871_s17  ;;  %v1584_v45 = vrot.slane %v1582_v36, 1  ;;  %v1540_v47 = vor.u32 %v1539_v33, %v1535_v32  ;;  %v1554_v49 = vrot.slane %v1552_v35, 1  ;;  %12969 = vmatprep.subr.bf16.mxu1 %v13430_v42  ;;  %v1565_v50 = vshrl.u32 %v11780_v26, 16  ;;  %v13398_v58 = vld [vmem:[%s14967_s14 + $0xb8] sm:$0x1f]   ;;  %v13433_v62 = vld [vmem:[%s19298_s1 + $0x70] sm:$0xff]  }
  0x26   : > { %v1569_v51 = vrot.slane %v1567_v39, 1  ;;  %v1597_v52 = vshll.u32 %v11782_v40, 16  ;;  %v1612_v56 = vshll.u32 %v11783_v46, 16  ;;  %12970 = vmatpush3.bf16.msra.mxu1 %v13431_v53  ;;  %v11609_v60 = vld [vmem:[%s14967_s14 + $0xd0] sm:$0xf]  ;;  %12879 = vmatprep.subr.bf16.mxu0 %v13433_v62  ;;  %v1610_v6 = vshrl.u32 %v11783_v46, 16 }
  0x27   : > { %v1555_v57 = vor.u32 %v1554_v49, %v1550_v48  ;;  %v11679_v61 = vld [vmem:[%s14967_s14 + $0xd4] sm:$0x3]  ;;  %v13395_v63 = vld [vmem:[%s14967_s14 + $0x98] sm:$0x1f]   ;;  %v11680_v1 = vld [vmem:[%s14967_s14 + $0xe4] sm:$0x3] }
  0x28   : > { %618 = vrot.lane.b32.xlu0 %v13385_v55, %s14871_s17  ;;  %v1595_v55 = vshrl.u32 %v11782_v40, 16  ;;  %v1599_v59 = vrot.slane %v1597_v52, 1  ;;  %v11784_v2 = vcombine.low %v11609_v60, %v11679_v61  ;;  %v1570_v5 = vor.u32 %v1569_v51, %v1565_v50  ;;  %v13434_v8 = vld [vmem:[%s19298_s1 + $0x30] sm:$0xff]   ;;  %v13399_v11 = vld [vmem:[%s14967_s14 + $0xc8] sm:$0x1f]   ;;  %v13438_v27 = vld [vmem:[%s19298_s1 + $0x78] sm:$0xff]  }
  0x29   : > { %603 = vrot.lane.b32.xlu1 %v13384_v54, %s14871_s17  ;;  %v1585_v54 = vor.u32 %v1584_v45, %v1580_v44  ;;  %v1614_v7 = vrot.slane %v1612_v56, 1  ;;  %v11613_v15 = vld [vmem:[%s14967_s14 + $0xf0] sm:$0xf]  ;;  %12880 = vmatpush3.bf16.msra.mxu0 %v13434_v8  ;;  %v11681_v16 = vld [vmem:[%s14967_s14 + $0xf4] sm:$0x3]  ;;  %v13436_v22 = vld [vmem:[%s19298_s1 + $0x68] sm:$0xff]  }
  0x2a   : > { %v1600_v4 = vor.u32 %v1599_v59, %v1595_v55  ;;  %v1627_v13 = vshll.u32 %v11784_v2, 16  ;;  %v13404_v19 = vld [vmem:[%s14967_s14 + $0xe8] sm:$0x1f]   ;;  %v11786_v25 = vcombine.low %v11613_v15, %v11681_v16  ;;  %v11615_v26 = vld [vmem:[%s14967_s14 + $0x100] sm:$0xf]  ;;  %12971 = vmatprep.subr.bf16.mxu1 %v13436_v22  ;;  %v13439_v31 = vld [vmem:[%s19298_s1 + $0x38] sm:$0xff]   ;;  %12881 = vmatprep.subr.bf16.mxu0 %v13438_v27 }
  0x2b   : > { %v13437_v23 = vld [vmem:[%s19298_s1 + $0x28] sm:$0xff]   ;;  %v1615_v28 = vor.u32 %v1614_v7, %v1610_v6  ;;  %v13441_v32 = vld [vmem:[%s19298_s1 + $0x70] sm:$0xff]   ;;  %v13444_v36 = vld [vmem:[%s19298_s1 + $0x78] sm:$0xff]  }
  0x2c   : > { %633 = vrot.lane.b32.xlu0 %v13387_v0, %s14871_s17  ;;  %v11611_v0 = vld [vmem:[%s14967_s14 + $0xe0] sm:$0xf]  ;;  %v1629_v29 = vrot.slane %v1627_v13, 1  ;;  %12972 = vmatpush3.bf16.msra.mxu1 %v13437_v23  ;;  %v13442_v33 = vld [vmem:[%s19298_s1 + $0x30] sm:$0xff]   ;;  %v1657_v35 = vshll.u32 %v11786_v25, 16  ;;  %v13445_v39 = vld [vmem:[%s19298_s1 + $0x38] sm:$0xff]  }
  0x2d   : > { %1496 = vrot.lane.b32.xlu1 %v1495_v10, %s14871_s17  ;;  %v11785_v3 = vcombine.low %v11611_v0, %v11680_v1  ;;  %v13402_v10 = vld [vmem:[%s14967_s14 + $0xd8] sm:$0x1f]   ;;  %12882 = vmatpush3.bf16.msra.mxu0 %v13439_v31  ;;  %v13413_v40 = vld [vmem:[%s14967_s14 + $0x108] sm:$0x1f]   ;;  %v1655_v41 = vshrl.u32 %v11786_v25, 16 }
  0x2e   : > { %12973 = vmatprep.subr.bf16.mxu1 %v13441_v32  ;;  %v1659_v42 = vrot.slane %v1657_v35, 1  ;;  %v11619_v45 = vld [vmem:[%s14967_s14 + $0x120] sm:$0xf]  ;;  %v11684_v46 = vld [vmem:[%s14967_s14 + $0x124] sm:$0x3] }
  0x2f   : > { %v1642_v14 = vshll.u32 %v11785_v3, 16  ;;  %v1640_v21 = vshrl.u32 %v11785_v3, 16  ;;  %v11683_v48 = vld [vmem:[%s14967_s14 + $0x114] sm:$0x3]  ;;  %v11789_v50 = vcombine.low %v11619_v45, %v11684_v46  ;;  %v13450_v53 = vld [vmem:[%s14967_s14 + $0x128] sm:$0x1f]  }
  0x30   : > { %1526 = vrot.lane.b32.xlu0 %v1525_v17, %s14871_s17  ;;  %v1625_v17 = vshrl.u32 %v11784_v2, 16  ;;  %12974 = vmatpush3.bf16.msra.mxu1 %v13442_v33  ;;  %v1660_v52 = vor.u32 %v1659_v42, %v1655_v41  ;;  %v11685_v59 = vld [vmem:[%s14967_s14 + $0x134] sm:$0x3]  ;;  %v11623_v60 = vld [vmem:[%s14967_s14 + $0x140] sm:$0xf] }
  0x31   : > { %1511 = vrot.lane.b32.xlu1 %v1510_v24, %s14871_s17  ;;  %v1644_v24 = vrot.slane %v1642_v14, 1  ;;  %12975 = vmatprep.subr.bf16.mxu1 %v13444_v36  ;;  %v1700_v55 = vshrl.u32 %v11789_v50, 16  ;;  %v1702_v56 = vshll.u32 %v11789_v50, 16  ;;  %v11686_v61 = vld [vmem:[%s14967_s14 + $0x144] sm:$0x3] }
  0x32   : > { %v1630_v37 = vor.u32 %v1629_v29, %v1625_v17  ;;  %v11791_v0 = vcombine.low %v11623_v60, %v11686_v61  ;;  %v13455_v6 = vld [vmem:[%s14967_s14 + $0x138] sm:$0x1f]   ;;  %v13456_v15 = vld [vmem:[%s14967_s14 + $0x148] sm:$0x1f]   ;;  %v11586_v22 = vld [vmem:[%s14967_s14 + $0x14] sm:$0x1] }
  0x33   : > { %v1704_v62 = vrot.slane %v1702_v56, 1  ;;  %v13451_v8 = vld [vmem:[%s14967_s14 + $0x118] sm:$0x1f]   ;;  %v387_v25 = vld [vmem:[%s14967_s14 + $0x4] sm:$0x1]  ;;  %v11689_v27 = vcombine.low %v14981_v12, %v11586_v22 }
  0x34   : > { %663 = vrot.lane.b32.xlu0 %v13392_v34, %s14871_s17  ;;  %v1645_v34 = vor.u32 %v1644_v24, %v1640_v21  ;;  %12976 = vmatpush3.bf16.msra.mxu1 %v13445_v39  ;;  %v1730_v16 = vshrl.u32 %v11791_v0, 16  ;;  %v11588_v21 = vld [vmem:[%s14967_s14 + $0x24] sm:$0x1]  ;;  %v11590_v31 = vld [vmem:[%s14967_s14 + $0x34] sm:$0x1]  ;;  %v11687_v33 = vcombine.low %v14987_v18, %v387_v25 }
  0x35   : > { %648 = vrot.lane.b32.xlu1 %v13390_v30, %s14871_s17  ;;  %v11682_v30 = vld [vmem:[%s14967_s14 + $0x104] sm:$0x3]  ;;  %v1705_v2 = vor.u32 %v1704_v62, %v1700_v55  ;;  %v11691_v23 = vcombine.low %v14976_v9, %v11588_v21  ;;  %v14797_v39 = vld [vmem:[%s14967_s14 + $0x28] sm:$0x1f]   ;;  %v11594_v42 = vld [vmem:[%s14967_s14 + $0x54] sm:$0x1] }
  0x36   : > { %v11787_v38 = vcombine.low %v11615_v26, %v11682_v30  ;;  %v11592_v46 = vld [vmem:[%s14967_s14 + $0x44] sm:$0x1]  ;;  %v14801_v61 = vld [vmem:[%s14967_s14 + $0x40] sm:$0xf]  ;;  %v11598_v25 = vld [vmem:[%s14967_s14 + $0x74] sm:$0x1] }
  0x37   : > { %v11695_v62 = vcombine.low %v14801_v61, %v11592_v46 }
  0x38   : > { %693 = vrot.lane.b32.xlu0 %v13394_v43, %s14871_s17  ;;  %v13405_v43 = vld [vmem:[%s14967_s14 + $0xf8] sm:$0x1f]   ;;  %v1672_v44 = vshll.u32 %v11787_v38, 16  ;;  %v1670_v49 = vshrl.u32 %v11787_v38, 16  ;;  %v11693_v38 = vcombine.low %v14992_v20, %v11590_v31 }
  0x39   : > { %1541 = vrot.lane.b32.xlu1 %v1540_v47, %s14871_s17  ;;  %v11617_v47 = vld [vmem:[%s14967_s14 + $0x110] sm:$0xf]  ;;  %v14798_v20 = vld [vmem:[%s14967_s14 + $0x18] sm:$0x1f]  }
  0x3a   : > { %v11788_v51 = vcombine.low %v11617_v47, %v11683_v48 }
  0x3c   : > { %1586 = vrot.lane.b32.xlu0 %v1585_v54, %s14871_s17  ;;  %v1674_v54 = vrot.slane %v1672_v44, 1 }
  0x3d   : > { %1556 = vrot.lane.b32.xlu1 %v1555_v57, %s14871_s17  ;;  %v1687_v57 = vshll.u32 %v11788_v51, 16 }
  0x3e   : > { %v1675_v1 = vor.u32 %v1674_v54, %v1670_v49 }
  0x40   : > { %708 = vrot.lane.b32.xlu0 %v13398_v58, %s14871_s17  ;;  %v11621_v58 = vld [vmem:[%s14967_s14 + $0x130] sm:$0xf] }
  0x41   : > { %678 = vrot.lane.b32.xlu1 %v13395_v63, %s14871_s17  ;;  %v11790_v63 = vcombine.low %v11621_v58, %v11685_v59  ;;  %v14800_v59 = vld [vmem:[%s14967_s14 + $0x8] sm:$0x1f]  }
  0x43   : > { %v1717_v3 = vshll.u32 %v11790_v63, 16  ;;  %v1715_v7 = vshrl.u32 %v11790_v63, 16 }
  0x44   : > { %1601 = vrot.lane.b32.xlu0 %v1600_v4, %s14871_s17  ;;  %v1685_v4 = vshrl.u32 %v11788_v51, 16 }
  0x45   : > { %1571 = vrot.lane.b32.xlu1 %v1570_v5, %s14871_s17  ;;  %v1689_v5 = vrot.slane %v1687_v57, 1  ;;  %v14799_v57 = vld [vmem:[%s14967_s14 + $0x50] sm:$0xf] }
  0x46   : > { %v11697_v58 = vcombine.low %v14799_v57, %v11594_v42  ;;  %v14807_v42 = vld [vmem:[%s14967_s14 + $0x70] sm:$0xf]  ;;  %v14809_v57 = vld [vmem:[%s14967_s14 + $0xa0] sm:$0xf] }
  0x47   : > { %v1690_v14 = vor.u32 %v1689_v5, %v1685_v4  ;;  %v14803_v5 = vld [vmem:[%s14967_s14 + $0x60] sm:$0xf] }
  0x48   : > { %738 = vrot.lane.b32.xlu0 %v13402_v10, %s14871_s17  ;;  %v1732_v10 = vshll.u32 %v11791_v0, 16 }
  0x49   : > { %723 = vrot.lane.b32.xlu1 %v13399_v11, %s14871_s17  ;;  %v1719_v11 = vrot.slane %v1717_v3, 1 }
  0x4a   : > { %v1734_v17 = vrot.slane %v1732_v10, 1 }
  0x4b   : > { %v1720_v13 = vor.u32 %v1719_v11, %v1715_v7 }
  0x4c   : > { %753 = vrot.lane.b32.xlu0 %v13404_v19, %s14871_s17  ;;  %v1735_v19 = vor.u32 %v1734_v17, %v1730_v16  ;;  %v11600_v17 = vld [vmem:[%s14967_s14 + $0x84] sm:$0x1] }
  0x4d   : > { %1616 = vrot.lane.b32.xlu1 %v1615_v28, %s14871_s17 }
  0x50   : > { %1646 = vrot.lane.b32.xlu0 %v1645_v34, %s14871_s17 }
  0x51   : > { %1631 = vrot.lane.b32.xlu1 %v1630_v37, %s14871_s17 }
  0x54   : > { %783 = vrot.lane.b32.xlu0 %v13413_v40, %s14871_s17 }
  0x55   : > { %768 = vrot.lane.b32.xlu1 %v13405_v43, %s14871_s17 }
  0x58   : > { %813 = vrot.lane.b32.xlu0 %v13450_v53, %s14871_s17  ;;  %v11596_v53 = vld [vmem:[%s14967_s14 + $0x64] sm:$0x1] }
  0x59   : > { %1661 = vrot.lane.b32.xlu1 %v1660_v52, %s14871_s17 }
  0x5c   : > { %1706 = vrot.lane.b32.xlu0 %v1705_v2, %s14871_s17 }
  0x5d   : > { %1676 = vrot.lane.b32.xlu1 %v1675_v1, %s14871_s17  ;;  %v14802_v1 = vld [vmem:[%s14967_s14 + $0x38] sm:$0x1f]  }
  0x60   : > { %828 = vrot.lane.b32.xlu0 %v13455_v6, %s14871_s17  ;;  %v11699_v6 = vcombine.low %v14803_v5, %v11596_v53  ;;  %v14810_v5 = vld [vmem:[%s14967_s14 + $0x78] sm:$0x1f]  }
  0x61   : > { %798 = vrot.lane.b32.xlu1 %v13451_v8, %s14871_s17 }
  0x64   : > { %1721 = vrot.lane.b32.xlu0 %v1720_v13, %s14871_s17 }
  0x65   : > { %1691 = vrot.lane.b32.xlu1 %v1690_v14, %s14871_s17 }
  0x69   : > { %843 = vrot.lane.b32.xlu1 %v13456_v15, %s14871_s17 }
  0x6d   : > { %1736 = vrot.lane.b32.xlu1 %v1735_v19, %s14871_s17 }
  0x86   : > { %v574_v24 = vpop.permute.xlu0 %573 }
  0x87   : > { %v577_v26 = vsel %vm556_vm0, %v11691_v23, %v574_v24 }
  0x88   : > { %v851_v28 = vrot.slane %v577_v26, 3  ;;  %v853_v29 = vrot.slane %v577_v26, 6  ;;  %v14804_v26 = vld [vmem:[%s14967_s14 + $0x48] sm:$0x1f]  }
  0x8a   : > { %v555_v30 = vpop.permute.xlu0 %554 }
  0x8b   : > { %v562_v32 = vsel %vm556_vm0, %v11689_v27, %v555_v30 }
  0x8c   : > { %v850_v34 = vrot.slane %v562_v32, 3  ;;  %v897_v9 = vsel %vm892_vm1, %v562_v32, %v851_v28 }
  0x8d   : > { %1170 = vmatprep.mubr.bf16.mxu0 %v897_v9 }
  0x8e   : > { %v543_v35 = vpop.permute.xlu0 %542  ;;  %v901_v12 = vsel %vm899_vm2, %v850_v34, %v853_v29 }
  0x8f   : > { %v1467_v36 = vpop.permute.xlu1 %1466  ;;  %v559_v37 = vsel %vm556_vm0, %v11687_v33, %v543_v35 }
  0x90   : > { %v15182_v40 = vsel %vm556_vm0, %v14797_v39, %v1467_v36  ;;  %v894_v18 = vsel %vm892_vm1, %v559_v37, %v850_v34 }
  0x91   : > { %1171 = vmatmul.mubr.bf16.vlgmr.msra.gmra.mrb[0].mxu0 %v894_v18  ;;  %v1744_v43 = vrot.slane %v15182_v40, 3  ;;  %v1746_v31 = vrot.slane %v15182_v40, 6  ;;  %v14806_v40 = vld [vmem:[%s14967_s14 + $0x58] sm:$0x1f]  }
  0x92   : > { %v589_v41 = vpop.permute.xlu0 %588 }
  0x93   : > { %v1449_v44 = vpop.permute.xlu1 %1448  ;;  %v592_v45 = vsel %vm556_vm0, %v11693_v38, %v589_v41  ;;  %v14805_v38 = vld [vmem:[%s14967_s14 + $0x80] sm:$0xf] }
  0x94   : > { %v1455_v47 = vsel %vm556_vm0, %v14798_v20, %v1449_v44  ;;  %v854_v48 = vrot.slane %v592_v45, 6  ;;  %v856_v49 = vrot.slane %v592_v45, 1  ;;  %v11703_v39 = vcombine.low %v14805_v38, %v11600_v17  ;;  %v11604_v45 = vld [vmem:[%s14967_s14 + $0xa4] sm:$0x1]  ;;  %v14808_v20 = vld [vmem:[%s14967_s14 + $0x68] sm:$0x1f]  }
  0x95   : > { %v1789_v50 = vsel %vm892_vm1, %v1455_v47, %v1744_v43  ;;  %v1743_v55 = vrot.slane %v1455_v47, 3 }
  0x96   : > { %2056 = vmatprep.mubr.bf16.mxu1 %v1789_v50  ;;  %v1482_v51 = vpop.permute.xlu0 %1481  ;;  %v903_v52 = vsel %vm899_vm2, %v851_v28, %v854_v48  ;;  %v906_v54 = vsel %vm904_vm3, %v901_v12, %v856_v49 }
  0x97   : > { %v1437_v56 = vpop.permute.xlu1 %1436  ;;  %v15202_v2 = vsel %vm556_vm0, %v14802_v1, %v1482_v51  ;;  %v1792_v37 = vsel %vm899_vm2, %v1743_v55, %v1746_v31  ;;  %v11602_v1 = vld [vmem:[%s14967_s14 + $0x94] sm:$0x1] }
  0x98   : > { %v1452_v60 = vsel %vm556_vm0, %v14800_v59, %v1437_v56  ;;  %v1747_v14 = vrot.slane %v15202_v2, 6  ;;  %v1749_v15 = vrot.slane %v15202_v2, 1 }
  0x99   : > { %v1786_v63 = vsel %vm892_vm1, %v1452_v60, %v1743_v55  ;;  %v11606_v60 = vld [vmem:[%s14967_s14 + $0xb4] sm:$0x1] }
  0x9a   : > { %2057 = vmatmul.mubr.bf16.vlgmr.msra.gmra.mrb[0].mxu1 %v1786_v63  ;;  %v619_v0 = vpop.permute.xlu0 %618  ;;  %v1794_v33 = vsel %vm899_vm2, %v1744_v43, %v1747_v14  ;;  %v1796_v41 = vsel %vm904_vm3, %v1792_v37, %v1749_v15  ;;  %v11701_v43 = vcombine.low %v14807_v42, %v11598_v25 }
  0x9b   : > { %v604_v3 = vpop.permute.xlu1 %603  ;;  %v622_v4 = vsel %vm556_vm0, %v11697_v58, %v619_v0  ;;  %v11707_v58 = vcombine.low %v14809_v57, %v11604_v45 }
  0x9c   : > { %v607_v7 = vsel %vm556_vm0, %v11695_v62, %v604_v3  ;;  %v860_v8 = vrot.slane %v622_v4, 4  ;;  %v862_v10 = vrot.slane %v622_v4, 7 }
  0x9d   : > { %v857_v11 = vrot.slane %v607_v7, 1  ;;  %v859_v13 = vrot.slane %v607_v7, 4 }
  0x9e   : > { %v634_v16 = vpop.permute.xlu0 %633 }
  0x9f   : > { %v1497_v19 = vpop.permute.xlu1 %1496  ;;  %v909_v21 = vsel %vm904_vm3, %v903_v52, %v857_v11  ;;  %v637_v22 = vsel %vm556_vm0, %v11699_v6, %v634_v16  ;;  %v916_v23 = vsel %vm911_vm4, %v857_v11, %v860_v8  ;;  %v913_v24 = vsel %vm911_vm4, %v856_v49, %v859_v13 }
  0xa0   : > { %v15217_v27 = vsel %vm556_vm0, %v14804_v26, %v1497_v19  ;;  %1178 = vmatprep.mubr.bf16.mxu0 %v909_v21  ;;  %v863_v28 = vrot.slane %v637_v22, 7  ;;  %v865_v29 = vrot.slane %v637_v22, 2  ;;  %v920_v30 = vsel %vm918_vm5, %v859_v13, %v862_v10  ;;  %v14812_v19 = vld [vmem:[%s14967_s14 + $0x88] sm:$0x1f]   ;;  %v14813_v22 = vld [vmem:[%s14967_s14 + $0x90] sm:$0xf] }
  0xa1   : > { %v1750_v32 = vrot.slane %v15217_v27, 1  ;;  %1179 = vmatmul.mubr.bf16.gmra.mrb[4].mxu0 %v906_v54  ;;  %v1752_v51 = vrot.slane %v15217_v27, 4  ;;  %v11610_v26 = vld [vmem:[%s14967_s14 + $0xd4] sm:$0x1] }
  0xa2   : > { %1186 = vmatprep.mubr.bf16.mxu0 %v916_v23  ;;  %v1527_v34 = vpop.permute.xlu0 %1526  ;;  %v922_v9 = vsel %vm918_vm5, %v860_v8, %v863_v28  ;;  %v925_v35 = vsel %vm923_vm6, %v920_v30, %v865_v29  ;;  %v11705_v23 = vcombine.low %v14813_v22, %v11602_v1 }
  0xa3   : > { %v1512_v12 = vpop.permute.xlu1 %1511  ;;  %v1799_v36 = vsel %vm904_vm3, %v1794_v33, %v1750_v32  ;;  %v15237_v47 = vsel %vm556_vm0, %v14808_v20, %v1527_v34  ;;  %v1802_v4 = vsel %vm911_vm4, %v1749_v15, %v1752_v51  ;;  %v14811_v15 = vld [vmem:[%s14967_s14 + $0xb0] sm:$0xf]  ;;  %v11608_v33 = vld [vmem:[%s14967_s14 + $0xc4] sm:$0x1]  ;;  %v14816_v20 = vld [vmem:[%s14967_s14 + $0xb8] sm:$0x1f]  }
  0xa4   : > { %v1515_v18 = vsel %vm556_vm0, %v14806_v40, %v1512_v12  ;;  %2064 = vmatprep.mubr.bf16.mxu1 %v1799_v36  ;;  %v1756_v52 = vrot.slane %v15237_v47, 7  ;;  %v1758_v13 = vrot.slane %v15237_v47, 2  ;;  %v11709_v16 = vcombine.low %v14811_v15, %v11606_v60  ;;  %v14819_v60 = vld [vmem:[%s14967_s14 + $0xe0] sm:$0xf]  ;;  %v14820_v15 = vld [vmem:[%s14967_s14 + $0xc8] sm:$0x1f]  }
  0xa5   : > { %v1753_v44 = vrot.slane %v1515_v18, 4  ;;  %2065 = vmatmul.mubr.bf16.gmra.mrb[4].mxu1 %v1796_v41  ;;  %v1755_v3 = vrot.slane %v1515_v18, 7  ;;  %v14815_v41 = vld [vmem:[%s14967_s14 + $0xd0] sm:$0xf] }
  0xa6   : > { %v664_v46 = vpop.permute.xlu0 %663  ;;  %v11713_v42 = vcombine.low %v14815_v41, %v11610_v26 }
  0xa7   : > { %v1805_v48 = vsel %vm911_vm4, %v1750_v32, %v1753_v44  ;;  %v649_v49 = vpop.permute.xlu1 %648  ;;  %v15241_v50 = vsel %vm556_vm0, %v11703_v39, %v664_v46  ;;  %v1810_v7 = vsel %vm918_vm5, %v1753_v44, %v1756_v52  ;;  %v1808_v17 = vsel %vm918_vm5, %v1752_v51, %v1755_v3  ;;  %v14818_v52 = vld [vmem:[%s14967_s14 + $0xc0] sm:$0xf] }
  0xa8   : > { %2072 = vmatprep.mubr.bf16.mxu1 %v1805_v48  ;;  %v652_v53 = vsel %vm556_vm0, %v11701_v43, %v649_v49  ;;  %v869_v54 = vrot.slane %v15241_v50, 5  ;;  %v1812_v28 = vsel %vm923_vm6, %v1808_v17, %v1758_v13  ;;  %v11612_v43 = vld [vmem:[%s14967_s14 + $0xe4] sm:$0x1]  ;;  %v14817_v49 = vld [vmem:[%s14967_s14 + $0x98] sm:$0x1f]  }
  0xa9   : > { %1187 = vmatmul.mubr.bf16.gmra.mrb[8].mxu0 %v913_v24  ;;  %v866_v55 = vrot.slane %v652_v53, 2  ;;  %v868_v56 = vrot.slane %v652_v53, 5  ;;  %v11711_v53 = vcombine.low %v14818_v52, %v11608_v33  ;;  %v14822_v33 = vld [vmem:[%s14967_s14 + $0xd8] sm:$0x1f]  }
  0xaa   : > { %v694_v59 = vpop.permute.xlu0 %693 }
  0xab   : > { %v1542_v61 = vpop.permute.xlu1 %1541  ;;  %v928_v62 = vsel %vm923_vm6, %v922_v9, %v866_v55  ;;  %v935_v63 = vsel %vm930_vm7, %v866_v55, %v869_v54  ;;  %v932_v0 = vsel %vm930_vm7, %v865_v29, %v868_v56  ;;  %v697_v10 = vsel %vm556_vm0, %v11707_v58, %v694_v59  ;;  %v14814_v9 = vld [vmem:[%s14967_s14 + $0xa8] sm:$0x1f]  }
  0xac   : > { %v1545_v6 = vsel %vm556_vm0, %v14810_v5, %v1542_v61  ;;  %1194 = vmatprep.mubr.bf16.mxu0 %v928_v62  ;;  %v873_v25 = vrot.slane %v697_v10, 3  ;;  %v875_v30 = vrot.slane %v697_v10, 6  ;;  %v11715_v61 = vcombine.low %v14819_v60, %v11612_v43 }
  0xad   : > { %2073 = vmatmul.mubr.bf16.gmra.mrb[8].mxu1 %v1802_v4  ;;  %v1759_v8 = vrot.slane %v1545_v6, 2  ;;  %v1761_v39 = vrot.slane %v1545_v6, 5 }
  0xae   : > { %v1587_v11 = vpop.permute.xlu0 %1586 }
  0xaf   : > { %v1815_v2 = vsel %vm923_vm6, %v1810_v7, %v1759_v8  ;;  %v1557_v14 = vpop.permute.xlu1 %1556  ;;  %v1818_v55 = vsel %vm930_vm7, %v1758_v13, %v1761_v39  ;;  %v11616_v7 = vld [vmem:[%s14967_s14 + $0x104] sm:$0x1] }
  0xb0   : > { %2080 = vmatprep.mubr.bf16.mxu1 %v1815_v2  ;;  %v15266_v21 = vsel %vm556_vm0, %v14812_v19, %v1557_v14  ;;  %v11614_v14 = vld [vmem:[%s14967_s14 + $0xf4] sm:$0x1] }
  0xb1   : > { %1195 = vmatmul.mubr.bf16.gmra.mrb[12].mxu0 %v925_v35  ;;  %v1762_v24 = vrot.slane %v15266_v21, 5  ;;  %v15278_v35 = vsel %vm556_vm0, %v14814_v9, %v1587_v11  ;;  %v14823_v9 = vld [vmem:[%s14967_s14 + $0xf0] sm:$0xf] }
  0xb2   : > { %1202 = vmatprep.mubr.bf16.mxu0 %v935_v63  ;;  %v709_v27 = vpop.permute.xlu0 %708  ;;  %v1766_v44 = vrot.slane %v15278_v35, 3 }
  0xb3   : > { %v1821_v29 = vsel %vm930_vm7, %v1759_v8, %v1762_v24  ;;  %v679_v31 = vpop.permute.xlu1 %678  ;;  %v712_v32 = vsel %vm556_vm0, %v11709_v16, %v709_v27 }
  0xb4   : > { %v682_v34 = vsel %vm556_vm0, %v11705_v23, %v679_v31  ;;  %v876_v12 = vrot.slane %v712_v32, 6  ;;  %v878_v36 = vrot.slane %v712_v32, 1  ;;  %v14821_v31 = vld [vmem:[%s14967_s14 + $0x100] sm:$0xf] }
  0xb5   : > { %2081 = vmatmul.mubr.bf16.gmra.mrb[12].mxu1 %v1812_v28  ;;  %v872_v37 = vrot.slane %v682_v34, 3  ;;  %v941_v38 = vsel %vm892_vm1, %v682_v34, %v873_v25  ;;  %v1768_v28 = vrot.slane %v15278_v35, 6  ;;  %v11719_v32 = vcombine.low %v14821_v31, %v11616_v7 }
  0xb6   : > { %2088 = vmatprep.mubr.bf16.mxu1 %v1821_v29  ;;  %v1602_v40 = vpop.permute.xlu0 %1601  ;;  %v946_v18 = vsel %vm899_vm2, %v873_v25, %v876_v12  ;;  %v11620_v12 = vld [vmem:[%s14967_s14 + $0x124] sm:$0x1] }
  0xb7   : > { %v1572_v45 = vpop.permute.xlu1 %1571  ;;  %v938_v46 = vsel %vm892_vm1, %v15241_v50, %v872_v37  ;;  %v15289_v47 = vsel %vm556_vm0, %v14816_v20, %v1602_v40  ;;  %v944_v48 = vsel %vm899_vm2, %v872_v37, %v875_v30  ;;  %v14825_v20 = vld [vmem:[%s14967_s14 + $0x120] sm:$0xf] }
  0xb8   : > { %v1575_v51 = vsel %vm556_vm0, %v14817_v49, %v1572_v45  ;;  %v948_v54 = vsel %vm904_vm3, %v944_v48, %v878_v36  ;;  %v1769_v50 = vrot.slane %v15289_v47, 6  ;;  %v11622_v49 = vld [vmem:[%s14967_s14 + $0x134] sm:$0x1] }
  0xb9   : > { %1203 = vmatmul.mubr.bf16.gmra.mrb[16].mxu0 %v932_v0  ;;  %v1827_v58 = vsel %vm892_vm1, %v1575_v51, %v1766_v44  ;;  %v1765_v4 = vrot.slane %v1575_v51, 3 }
  0xba   : > { %1210 = vmatprep.mubr.bf16.mxu0 %v941_v38  ;;  %v739_v56 = vpop.permute.xlu0 %738  ;;  %v1832_v5 = vsel %vm899_vm2, %v1766_v44, %v1769_v50  ;;  %v14824_v44 = vld [vmem:[%s14967_s14 + $0xe8] sm:$0x1f]   ;;  %v11618_v50 = vld [vmem:[%s14967_s14 + $0x114] sm:$0x1] }
  0xbb   : > { %v724_v57 = vpop.permute.xlu1 %723  ;;  %v742_v59 = vsel %vm556_vm0, %v11713_v42, %v739_v56  ;;  %v1824_v24 = vsel %vm892_vm1, %v15266_v21, %v1765_v4  ;;  %v11717_v21 = vcombine.low %v14823_v9, %v11614_v14  ;;  %v1830_v35 = vsel %vm899_vm2, %v1765_v4, %v1768_v28  ;;  %v14828_v4 = vld [vmem:[%s14967_s14 + $0x110] sm:$0xf] }
  0xbc   : > { %v727_v62 = vsel %vm556_vm0, %v11711_v53, %v724_v57  ;;  %v882_v63 = vrot.slane %v742_v59, 4  ;;  %v884_v0 = vrot.slane %v742_v59, 7  ;;  %v14826_v57 = vld [vmem:[%s14967_s14 + $0xf8] sm:$0x1f]  }
  0xbd   : > { %2089 = vmatmul.mubr.bf16.gmra.mrb[16].mxu1 %v1818_v55  ;;  %v879_v1 = vrot.slane %v727_v62, 1  ;;  %v881_v3 = vrot.slane %v727_v62, 4 }
  0xbe   : > { %2096 = vmatprep.mubr.bf16.mxu1 %v1827_v58  ;;  %v754_v6 = vpop.permute.xlu0 %753 }
  0xbf   : > { %v1617_v8 = vpop.permute.xlu1 %1616  ;;  %v951_v10 = vsel %vm904_vm3, %v946_v18, %v879_v1  ;;  %v957_v11 = vsel %vm911_vm4, %v879_v1, %v882_v63  ;;  %v15307_v13 = vsel %vm911_vm4, %v878_v36, %v881_v3  ;;  %v757_v2 = vsel %vm556_vm0, %v11715_v61, %v754_v6 }
  0xc0   : > { %v15313_v16 = vsel %vm556_vm0, %v14820_v15, %v1617_v8  ;;  %v885_v17 = vrot.slane %v757_v2, 7  ;;  %v887_v19 = vrot.slane %v757_v2, 2  ;;  %v960_v22 = vsel %vm918_vm5, %v881_v3, %v884_v0  ;;  %v14827_v0 = vld [vmem:[%s14967_s14 + $0x130] sm:$0xf] }
  0xc1   : > { %1211 = vmatmul.mubr.bf16.gmra.mrb[20].mxu0 %v938_v46  ;;  %v1772_v23 = vrot.slane %v15313_v16, 1  ;;  %v1771_v36 = vrot.slane %v15289_v47, 1  ;;  %v11723_v47 = vcombine.low %v14825_v20, %v11620_v12  ;;  %v1774_v59 = vrot.slane %v15313_v16, 4  ;;  %v11624_v16 = vld [vmem:[%s14967_s14 + $0x144] sm:$0x1] }
  0xc2   : > { %1218 = vmatprep.mubr.bf16.mxu0 %v951_v10  ;;  %v1647_v25 = vpop.permute.xlu0 %1646  ;;  %v962_v26 = vsel %vm918_vm5, %v882_v63, %v885_v17  ;;  %v15321_v27 = vsel %vm923_vm6, %v960_v22, %v887_v19  ;;  %v11725_v1 = vcombine.low %v14827_v0, %v11622_v49  ;;  %v14829_v17 = vld [vmem:[%s14967_s14 + $0x108] sm:$0x1f]  }
  0xc3   : > { %v1837_v29 = vsel %vm904_vm3, %v1832_v5, %v1772_v23  ;;  %v1632_v30 = vpop.permute.xlu1 %1631  ;;  %v15339_v45 = vsel %vm556_vm0, %v14824_v44, %v1647_v25  ;;  %v1834_v46 = vsel %vm904_vm3, %v1830_v35, %v1771_v36  ;;  %v11721_v5 = vcombine.low %v14828_v4, %v11618_v50  ;;  %v14831_v35 = vld [vmem:[%s14967_s14 + $0x128] sm:$0x1f]  }
  0xc4   : > { %v15328_v34 = vsel %vm556_vm0, %v14822_v33, %v1632_v30  ;;  %v1778_v56 = vrot.slane %v15339_v45, 7  ;;  %v1840_v7 = vsel %vm911_vm4, %v1771_v36, %v1774_v59 }
  0xc5   : > { %2097 = vmatmul.mubr.bf16.gmra.mrb[20].mxu1 %v1824_v24  ;;  %v1775_v38 = vrot.slane %v15328_v34, 4  ;;  %v1777_v10 = vrot.slane %v15328_v34, 7  ;;  %v14830_v34 = vld [vmem:[%s14967_s14 + $0x140] sm:$0xf] }
  0xc6   : > { %2104 = vmatprep.mubr.bf16.mxu1 %v1837_v29  ;;  %v784_v37 = vpop.permute.xlu0 %783  ;;  %v11727_v9 = vcombine.low %v14830_v34, %v11624_v16 }
  0xc7   : > { %v769_v39 = vpop.permute.xlu1 %768  ;;  %v787_v40 = vsel %vm556_vm0, %v11719_v32, %v784_v37  ;;  %v1843_v52 = vsel %vm911_vm4, %v1772_v23, %v1775_v38  ;;  %v1848_v3 = vsel %vm918_vm5, %v1775_v38, %v1778_v56  ;;  %v1846_v29 = vsel %vm918_vm5, %v1774_v59, %v1777_v10 }
  0xc8   : > { %v772_v18 = vsel %vm556_vm0, %v11717_v21, %v769_v39  ;;  %v891_v41 = vrot.slane %v787_v40, 5 }
  0xc9   : > { %1219 = vmatmul.mubr.bf16.gmra.mrb[24].mxu0 %v948_v54  ;;  %v888_v42 = vrot.slane %v772_v18, 2  ;;  %v890_v43 = vrot.slane %v772_v18, 5 }
  0xca   : > { %1226 = vmatprep.mubr.bf16.mxu0 %v957_v11  ;;  %v814_v48 = vpop.permute.xlu0 %813 }
  0xcb   : > { %v967_v51 = vsel %vm923_vm6, %v962_v26, %v888_v42  ;;  %v973_v53 = vsel %vm930_vm7, %v888_v42, %v891_v41  ;;  %v15348_v54 = vsel %vm930_vm7, %v887_v19, %v890_v43  ;;  %v1662_v55 = vpop.permute.xlu1 %1661  ;;  %v817_v60 = vsel %vm556_vm0, %v11723_v47, %v814_v48  ;;  %v14832_v43 = vld [vmem:[%s14967_s14 + $0x118] sm:$0x1f]  }
  0xcc   : > { %v15354_v58 = vsel %vm556_vm0, %v14826_v57, %v1662_v55  ;;  %v978_v6 = vrot.slane %v817_v60, 3  ;;  %v980_v2 = vrot.slane %v817_v60, 6  ;;  %v1780_v26 = vrot.slane %v15339_v45, 2  ;;  %v14833_v45 = vld [vmem:[%s14967_s14 + $0x138] sm:$0x1f]  }
  0xcd   : > { %2105 = vmatmul.mubr.bf16.gmra.mrb[24].mxu1 %v1834_v46  ;;  %v1781_v62 = vrot.slane %v15354_v58, 2  ;;  %v1783_v18 = vrot.slane %v15354_v58, 5 }
  0xce   : > { %2112 = vmatprep.mubr.bf16.mxu1 %v1843_v52  ;;  %v1707_v61 = vpop.permute.xlu0 %1706  ;;  %v1850_v12 = vsel %vm923_vm6, %v1846_v29, %v1780_v26 }
  0xcf   : > { %v1677_v63 = vpop.permute.xlu1 %1676  ;;  %v1853_v11 = vsel %vm923_vm6, %v1848_v3, %v1781_v62  ;;  %v1710_v38 = vsel %vm556_vm0, %v14831_v35, %v1707_v61  ;;  %v1856_v47 = vsel %vm930_vm7, %v1780_v26, %v1783_v18  ;;  %v15408_v61 = vld [vmem:[%s19299_s2] ss:$0 sm:$0xff] }
  0xd0   : > { %v1680_v19 = vsel %vm556_vm0, %v14829_v17, %v1677_v63  ;;  %v1866_v56 = vrot.slane %v1710_v38, 6 }
  0xd1   : > { %1227 = vmatmul.mubr.bf16.gmra.mrb[28].mxu0 %v15307_v13  ;;  %v1784_v30 = vrot.slane %v1680_v19, 5 }
  0xd2   : > { %1234 = vmatprep.mubr.bf16.mxu0 %v967_v51  ;;  %v829_v8 = vpop.permute.xlu0 %828  ;;  %v14834_v51 = vld [vmem:[%s14967_s14 + $0x148] sm:$0x1f]  }
  0xd3   : > { %v799_v14 = vpop.permute.xlu1 %798  ;;  %v15367_v15 = vsel %vm556_vm0, %v11725_v1, %v829_v8  ;;  %v1859_v36 = vsel %vm930_vm7, %v1781_v62, %v1784_v30 }
  0xd4   : > { %v802_v13 = vsel %vm556_vm0, %v11721_v5, %v799_v14  ;;  %v981_v22 = vrot.slane %v15367_v15, 6  ;;  %v983_v23 = vrot.slane %v15367_v15, 1 }
  0xd5   : > { %2113 = vmatmul.mubr.bf16.gmra.mrb[28].mxu1 %v1840_v7  ;;  %v977_v24 = vrot.slane %v802_v13, 3  ;;  %v991_v25 = vsel %vm892_vm1, %v802_v13, %v978_v6 }
  0xd6   : > { %2120 = vmatprep.mubr.bf16.mxu1 %v1853_v11  ;;  %v996_v28 = vsel %vm899_vm2, %v978_v6, %v981_v22  ;;  %v1722_v41 = vpop.permute.xlu0 %1721 }
  0xd7   : > { %v1692_v31 = vpop.permute.xlu1 %1691  ;;  %v988_v32 = vsel %vm892_vm1, %v787_v40, %v977_v24  ;;  %v994_v33 = vsel %vm899_vm2, %v977_v24, %v980_v2  ;;  %v1725_v46 = vsel %vm556_vm0, %v14833_v45, %v1722_v41 }
  0xd8   : > { %v998_v21 = vsel %vm904_vm3, %v994_v33, %v983_v23  ;;  %v1695_v44 = vsel %vm556_vm0, %v14832_v43, %v1692_v31  ;;  %v1867_v49 = vrot.slane %v1725_v46, 6  ;;  %v1869_v58 = vrot.slane %v1725_v46, 1 }
  0xd9   : > { %1235 = vmatmul.mubr.bf16.gmra.mrb[32].mxu0 %v15321_v27  ;;  %v1864_v27 = vrot.slane %v1710_v38, 3 }
  0xda   : > { %1242 = vmatprep.mubr.bf16.mxu0 %v973_v53  ;;  %v1863_v53 = vrot.slane %v1695_v44, 3 }
  0xdb   : > { %v844_v37 = vpop.permute.xlu1 %843  ;;  %v1877_v48 = vsel %vm892_vm1, %v1695_v44, %v1864_v27  ;;  %v1882_v50 = vsel %vm899_vm2, %v1864_v27, %v1867_v49 }
  0xdc   : > { %v847_v39 = vsel %vm556_vm0, %v11727_v9, %v844_v37  ;;  %v1880_v59 = vsel %vm899_vm2, %v1863_v53, %v1866_v56 }
  0xdd   : > { %2121 = vmatmul.mubr.bf16.gmra.mrb[32].mxu1 %v1850_v12  ;;  %v984_v40 = vrot.slane %v847_v39, 1  ;;  %v1884_v60 = vsel %vm904_vm3, %v1880_v59, %v1869_v58 }
  0xde   : > { %2128 = vmatprep.mubr.bf16.mxu1 %v1859_v36 }
  0xdf   : > { %v1001_v42 = vsel %vm904_vm3, %v996_v28, %v984_v40  ;;  %v1737_v20 = vpop.permute.xlu1 %1736 }
  0xe0   : > { %v1740_v52 = vsel %vm556_vm0, %v14834_v51, %v1737_v20 }
  0xe1   : > { %1243 = vmatmul.mubr.bf16.gmra.mrb[36].mxu0 %v15348_v54  ;;  %v1870_v55 = vrot.slane %v1740_v52, 1  ;;  %v1874_v54 = vsel %vm892_vm1, %v1680_v19, %v1863_v53 }
  0xe2   : > { %1250 = vmatprep.mubr.bf16.mxu0 %v991_v25 }
  0xe3   : > { %v1887_v57 = vsel %vm904_vm3, %v1882_v50, %v1870_v55 }
  0xe5   : > { %2129 = vmatmul.mubr.bf16.gmra.mrb[36].mxu1 %v1856_v47 }
  0xe6   : > { %2136 = vmatprep.mubr.bf16.mxu1 %v1877_v48 }
  0xe9   : > { %1251 = vmatmul.mubr.bf16.gmra.mrb[40].mxu0 %v988_v32 }
  0xea   : > { %1258 = vmatprep.mubr.bf16.mxu0 %v1001_v42 }
  0xed   : > { %2137 = vmatmul.mubr.bf16.gmra.mrb[40].mxu1 %v1874_v54 }
  0xee   : > { %2144 = vmatprep.mubr.bf16.mxu1 %v1887_v57 }
  0xf1   : > { %1259 = vmatmul.mubr.bf16.gmra.mrb[44].mxu0 %v998_v21 }
  0xf2   : > { %1266 = vmatprep.mubr.bf16.mxu0 %v984_v40 }
  0xf5   : > { %2145 = vmatmul.mubr.bf16.gmra.mrb[44].mxu1 %v1884_v60 }
  0xf6   : > { %2152 = vmatprep.mubr.bf16.mxu1 %v1870_v55 }
  0xf9   : > { %1267 = vmatmul.mubr.bf16.gmra.mrb[48].mxu0 %v983_v23 }
  0xfd   : > { %2153 = vmatmul.mubr.bf16.gmra.mrb[48].mxu1 %v1869_v58 }
 0x164   : > { %v12883_v62 = vpop.f32.mrb[0].mxu0 }
 0x165   : > { %v12884_v63 = vpop.f32.mrb[1].mxu0 }
 0x166   : > { %v12885_v0 = vadd.f32 %v12884_v63, %v12883_v62  ;;  %v12886_v1 = vpop.f32.mrb[2].mxu0 }
 0x167   : > { %v12887_v3 = vpop.f32.mrb[3].mxu0 }
 0x168   : > { %v1173_v4 = vadd.f32 %v12885_v0, %v15408_v61  ;;  %v12888_v5 = vadd.f32 %v12887_v3, %v12886_v1 }
 0x16a   : > { %v1274_v6 = vmax.f32 %v1173_v4, 0.0  ;;  %v1176_v7 = vadd.f32 %v12888_v5, %v15408_v61 }
 0x16c   : > { %v12799_v8 = vpack.c.bf16 %v1274_v6, %v1274_v6  ;;  %v1275_v10 = vmax.f32 %v1176_v7, 0.0 }
 0x16d   : > { %v12977_v11 = vpop.f32.mrb[0].mxu1 }
 0x16e   : > { %1401 = vst.msk [vmem:[#allocation2] sm:$0xf] %vm1400_vm8, %v12799_v8  ;;  %v12800_v2 = vpack.c.bf16 %v1275_v10, %v1275_v10  ;;  %v12978_v14 = vpop.f32.mrb[1].mxu1 }
 0x16f   : > { %v12979_v15 = vadd.f32 %v12978_v14, %v12977_v11  ;;  %v12980_v16 = vpop.f32.mrb[2].mxu1 }
 0x170   : > { %1402 = vst.msk [vmem:[#allocation2 + $0x4] sm:$0xf] %vm1400_vm8, %v12800_v2  ;;  %v12981_v17 = vpop.f32.mrb[3].mxu1 }
 0x171   : > { %v2059_v19 = vadd.f32 %v12979_v15, %v15408_v61  ;;  %v12982_v13 = vadd.f32 %v12981_v17, %v12980_v16 }
 0x173   : > { %v2160_v22 = vmax.f32 %v2059_v19, 0.0  ;;  %v2062_v23 = vadd.f32 %v12982_v13, %v15408_v61 }
 0x174   : > { %v12889_v24 = vpop.f32.mrb[4].mxu0 }
 0x175   : > { %v12824_v25 = vpack.c.bf16 %v2160_v22, %v2160_v22  ;;  %v2161_v26 = vmax.f32 %v2062_v23, 0.0  ;;  %v12890_v28 = vpop.f32.mrb[5].mxu0 }
 0x176   : > { %v12891_v29 = vadd.f32 %v12890_v28, %v12889_v24  ;;  %v12892_v30 = vpop.f32.mrb[6].mxu0 }
 0x177   : > { %2287 = vst.msk [vmem:[#allocation2 + $0x64] sm:$0xf] %vm1400_vm8, %v12824_v25  ;;  %v12825_v31 = vpack.c.bf16 %v2161_v26, %v2161_v26  ;;  %v12893_v32 = vpop.f32.mrb[7].mxu0  ;;  %v13472_v33 = vld [vmem:[#allocation2] sm:$0x1f]  }
 0x178   : > { %v1181_v34 = vadd.f32 %v12891_v29, %v15408_v61  ;;  %v12894_v9 = vadd.f32 %v12893_v32, %v12892_v30  ;;  %v12983_v21 = vpop.f32.mrb[4].mxu1  ;;  %v2343_v40 = vshll.u32 %v13472_v33, 16  ;;  %v2341_v51 = vshrl.u32 %v13472_v33, 16 }
 0x179   : > { %2288 = vst.msk [vmem:[#allocation2 + $0x68] sm:$0xf] %vm1400_vm8, %v12825_v31  ;;  %v12984_v12 = vpop.f32.mrb[5].mxu1 }
 0x17a   : > { %v1276_v36 = vmax.f32 %v1181_v34, 0.0  ;;  %v1184_v37 = vadd.f32 %v12894_v9, %v15408_v61  ;;  %v12985_v35 = vadd.f32 %v12984_v12, %v12983_v21  ;;  %v12986_v38 = vpop.f32.mrb[6].mxu1  ;;  %v2345_v52 = vrot.slane %v2343_v40, 1  ;;  %v13497_v12 = vld [vmem:[%s19300_s3 + $0x40] sm:$0xff]  }
 0x17b   : > { %v12987_v39 = vpop.f32.mrb[7].mxu1  ;;  %13055 = vmatprep.subr.bf16.mxu0 %v13497_v12 }
 0x17c   : > { %v12801_v18 = vpack.c.bf16 %v1276_v36, %v1276_v36  ;;  %v1277_v41 = vmax.f32 %v1184_v37, 0.0  ;;  %v2067_v27 = vadd.f32 %v12985_v35, %v15408_v61  ;;  %v12988_v42 = vadd.f32 %v12987_v39, %v12986_v38  ;;  %v12895_v43 = vpop.f32.mrb[8].mxu0 }
 0x17d   : > { %v12896_v44 = vpop.f32.mrb[9].mxu0  ;;  %v2346_v3 = vor.u32 %v2345_v52, %v2341_v51 }
 0x17e   : > { %1403 = vst.msk [vmem:[#allocation2 + $0x8] sm:$0xf] %vm1400_vm8, %v12801_v18  ;;  %v12802_v45 = vpack.c.bf16 %v1277_v41, %v1277_v41  ;;  %v2162_v46 = vmax.f32 %v2067_v27, 0.0  ;;  %v2070_v20 = vadd.f32 %v12988_v42, %v15408_v61  ;;  %v12897_v47 = vadd.f32 %v12896_v44, %v12895_v43  ;;  %v12898_v48 = vpop.f32.mrb[10].mxu0 }
 0x17f   : > { %v12899_v49 = vpop.f32.mrb[11].mxu0 }
 0x180   : > { %1404 = vst.msk [vmem:[#allocation2 + $0xc] sm:$0xf] %vm1400_vm8, %v12802_v45  ;;  %v12826_v53 = vpack.c.bf16 %v2162_v46, %v2162_v46  ;;  %v2163_v55 = vmax.f32 %v2070_v20, 0.0  ;;  %v1189_v50 = vadd.f32 %v12897_v47, %v15408_v61  ;;  %v12900_v54 = vadd.f32 %v12899_v49, %v12898_v48  ;;  %v12989_v56 = vpop.f32.mrb[8].mxu1  ;;  %v13471_v57 = vld [vmem:[#allocation2 + $0x64] sm:$0x1f]  }
 0x181   : > { %v12990_v58 = vpop.f32.mrb[9].mxu1  ;;  %2338 = vrot.lane.b32.xlu1 %v13471_v57, %s14872_s24  ;;  %v2350_v4 = vshrl.u32 %v13471_v57, 16  ;;  %v2352_v5 = vshll.u32 %v13471_v57, 16  ;;  %v13498_v47 = vld [vmem:[%s19300_s3] sm:$0xff]   ;;  %v13499_v57 = vld [vmem:[%s19300_s3 + $0x48] sm:$0xff]  }
 0x182   : > { %2289 = vst.msk [vmem:[#allocation2 + $0x6c] sm:$0xf] %vm1400_vm8, %v12826_v53  ;;  %v12827_v59 = vpack.c.bf16 %v2163_v55, %v2163_v55  ;;  %v1278_v60 = vmax.f32 %v1189_v50, 0.0  ;;  %v1192_v62 = vadd.f32 %v12900_v54, %v15408_v61  ;;  %v12991_v63 = vadd.f32 %v12990_v58, %v12989_v56  ;;  %v12992_v0 = vpop.f32.mrb[10].mxu1  ;;  %13056 = vmatpush3.bf16.msra.mxu0 %v13498_v47  ;;  %v13500_v58 = vld [vmem:[%s19300_s3 + $0x8] sm:$0xff]  }
 0x183   : > { %v12993_v1 = vpop.f32.mrb[11].mxu1  ;;  %v2354_v14 = vrot.slane %v2352_v5, 1  ;;  %13057 = vmatprep.subr.bf16.mxu0 %v13499_v57 }
 0x184   : > { %2290 = vst.msk [vmem:[#allocation2 + $0x70] sm:$0xf] %vm1400_vm8, %v12827_v59  ;;  %v12803_v6 = vpack.c.bf16 %v1278_v60, %v1278_v60  ;;  %v1279_v7 = vmax.f32 %v1192_v62, 0.0  ;;  %v2075_v8 = vadd.f32 %v12991_v63, %v15408_v61  ;;  %v12994_v10 = vadd.f32 %v12993_v1, %v12992_v0  ;;  %v12901_v11 = vpop.f32.mrb[12].mxu0 }
 0x185   : > { %v12902_v2 = vpop.f32.mrb[13].mxu0  ;;  %v13473_v15 = vld [vmem:[#allocation2 + $0x4] sm:$0x3e]   ;;  %2347 = vrot.lane.b32.xlu1 %v2346_v3, %s14871_s17  ;;  %v2355_v24 = vor.u32 %v2354_v14, %v2350_v4 }
 0x186   : > { %1405 = vst.msk [vmem:[#allocation2 + $0x10] sm:$0xf] %vm1400_vm8, %v12803_v6  ;;  %v12804_v16 = vpack.c.bf16 %v1279_v7, %v1279_v7  ;;  %v2164_v17 = vmax.f32 %v2075_v8, 0.0  ;;  %v2078_v19 = vadd.f32 %v12994_v10, %v15408_v61  ;;  %v12903_v13 = vadd.f32 %v12902_v2, %v12901_v11  ;;  %v12904_v22 = vpop.f32.mrb[14].mxu0  ;;  %13058 = vmatpush3.bf16.msra.mxu0 %v13500_v58 }
 0x187   : > { %v12905_v23 = vpop.f32.mrb[15].mxu0  ;;  %v2373_v25 = vshrl.u32 %v13473_v15, 16  ;;  %v2376_v26 = vshll.u32 %v13473_v15, 16  ;;  %v13476_v33 = vld [vmem:[#allocation2 + $0x8] sm:$0x7c]  }
 0x188   : > { %1406 = vst.msk [vmem:[#allocation2 + $0x14] sm:$0xf] %vm1400_vm8, %v12804_v16  ;;  %v12828_v28 = vpack.c.bf16 %v2164_v17, %v2164_v17  ;;  %v2165_v29 = vmax.f32 %v2078_v19, 0.0  ;;  %v1197_v30 = vadd.f32 %v12903_v13, %v15408_v61  ;;  %v12906_v31 = vadd.f32 %v12905_v23, %v12904_v22  ;;  %v12995_v32 = vpop.f32.mrb[12].mxu1  ;;  %v13502_v13 = vld [vmem:[%s19300_s3 + $0x50] sm:$0xff]  }
 0x189   : > { %v12996_v34 = vpop.f32.mrb[13].mxu1  ;;  %v2375_v9 = vrot.slane %v2373_v25, 1  ;;  %v2378_v21 = vrot.slane %v2376_v26, 2  ;;  %2356 = vrot.lane.b32.xlu1 %v2355_v24, %s14873_s27  ;;  %v15441_v40 = vld [vmem:[#allocation2 + $0x68] sm:$0x3e]   ;;  %v2407_v42 = vshrl.u32 %v13476_v33, 16  ;;  %13059 = vmatprep.subr.bf16.mxu0 %v13502_v13 }
 0x18a   : > { %2291 = vst.msk [vmem:[#allocation2 + $0x74] sm:$0xf] %vm1400_vm8, %v12828_v28  ;;  %v12829_v36 = vpack.c.bf16 %v2165_v29, %v2165_v29  ;;  %v1280_v37 = vmax.f32 %v1197_v30, 0.0  ;;  %v1200_v35 = vadd.f32 %v12906_v31, %v15408_v61  ;;  %v12997_v38 = vadd.f32 %v12996_v34, %v12995_v32  ;;  %v12998_v39 = vpop.f32.mrb[14].mxu1  ;;  %v13503_v22 = vld [vmem:[%s19300_s3 + $0x10] sm:$0xff]  }
 0x18b   : > { %v12999_v18 = vpop.f32.mrb[15].mxu1  ;;  %v2379_v41 = vor.u32 %v2378_v21, %v2375_v9  ;;  %v15443_v27 = vld [vmem:[#allocation2 + $0x6c] sm:$0x7c]   ;;  %v2410_v49 = vshll.u32 %v13476_v33, 16  ;;  %v2409_v51 = vrot.slane %v2407_v42, 2  ;;  %v2369_v59 = vrot.slane %v15441_v40, 1  ;;  %13060 = vmatpush3.bf16.msra.mxu0 %v13503_v22 }
 0x18c   : > { %2292 = vst.msk [vmem:[#allocation2 + $0x78] sm:$0xf] %vm1400_vm8, %v12829_v36  ;;  %v12805_v43 = vpack.c.bf16 %v1280_v37, %v1280_v37  ;;  %v1281_v44 = vmax.f32 %v1200_v35, 0.0  ;;  %v2083_v45 = vadd.f32 %v12997_v38, %v15408_v61  ;;  %v13000_v46 = vadd.f32 %v12999_v18, %v12998_v39  ;;  %v12907_v20 = vpop.f32.mrb[16].mxu0 }
 0x18d   : > { %v12908_v48 = vpop.f32.mrb[17].mxu0  ;;  %2380 = vrot.lane.b32.xlu0 %v2379_v41, %s14871_s17  ;;  %2501 = vrot.lane.b32.xlu1 %v15443_v27, %s14872_s24  ;;  %v15455_v56 = vld [vmem:[#allocation2 + $0xc] sm:$0xf8]   ;;  %v2503_v60 = vrot.slane %v2410_v49, 1  ;;  %v2412_v62 = vrot.slane %v2410_v49, 3  ;;  %v2417_v0 = vshrl.u32 %v15443_v27, 16 }
 0x18e   : > { %1407 = vst.msk [vmem:[#allocation2 + $0x18] sm:$0xf] %vm1400_vm8, %v12805_v43  ;;  %v12806_v52 = vpack.c.bf16 %v1281_v44, %v1281_v44  ;;  %v2166_v53 = vmax.f32 %v2083_v45, 0.0  ;;  %v2086_v55 = vadd.f32 %v13000_v46, %v15408_v61  ;;  %v12909_v50 = vadd.f32 %v12908_v48, %v12907_v20  ;;  %v12910_v54 = vpop.f32.mrb[18].mxu0 }
 0x18f   : > { %v12911_v63 = vpop.f32.mrb[19].mxu0  ;;  %v2504_v8 = vor.u32 %v2503_v60, %v2407_v42  ;;  %v2413_v10 = vor.u32 %v2412_v62, %v2409_v51  ;;  %v2441_v11 = vshrl.u32 %v15455_v56, 16  ;;  %v2444_v2 = vshll.u32 %v15455_v56, 16  ;;  %v13504_v42 = vld [vmem:[%s19300_s3 + $0x58] sm:$0xff]  }
 0x190   : > { %1408 = vst.msk [vmem:[#allocation2 + $0x1c] sm:$0xf] %vm1400_vm8, %v12806_v52  ;;  %v12830_v1 = vpack.c.bf16 %v2166_v53, %v2166_v53  ;;  %v2167_v3 = vmax.f32 %v2086_v55, 0.0  ;;  %v1205_v4 = vadd.f32 %v12909_v50, %v15408_v61  ;;  %v13001_v5 = vpop.f32.mrb[16].mxu1  ;;  %v12912_v6 = vadd.f32 %v12911_v63, %v12910_v54  ;;  %13061 = vmatprep.subr.bf16.mxu0 %v13504_v42  ;;  %v13505_v56 = vld [vmem:[%s19300_s3 + $0x18] sm:$0xff]  }
 0x191   : > { %v13002_v7 = vpop.f32.mrb[17].mxu1  ;;  %2370 = vrot.lane.b32.xlu0 %v2369_v59, %s14872_s24  ;;  %2505 = vrot.lane.b32.xlu1 %v2504_v8, %s14871_s17  ;;  %v2443_v23 = vrot.slane %v2441_v11, 3  ;;  %v2446_v24 = vrot.slane %v2444_v2, 4  ;;  %v2419_v25 = vrot.slane %v2417_v0, 2  ;;  %v2420_v26 = vshll.u32 %v15443_v27, 16 }
 0x192   : > { %2293 = vst.msk [vmem:[#allocation2 + $0x7c] sm:$0xf] %vm1400_vm8, %v12830_v1  ;;  %v12831_v14 = vpack.c.bf16 %v2167_v3, %v2167_v3  ;;  %v1282_v15 = vmax.f32 %v1205_v4, 0.0  ;;  %v13003_v16 = vadd.f32 %v13002_v7, %v13001_v5  ;;  %v1208_v17 = vadd.f32 %v12912_v6, %v15408_v61  ;;  %v13004_v19 = vpop.f32.mrb[18].mxu1  ;;  %v15482_v29 = vld [vmem:[#allocation2 + $0x70] sm:$0xf8]   ;;  %13062 = vmatpush3.bf16.msra.mxu0 %v13505_v56 }
 0x193   : > { %v13005_v28 = vpop.f32.mrb[19].mxu1  ;;  %v2447_v9 = vor.u32 %v2446_v24, %v2443_v23  ;;  %v2422_v21 = vrot.slane %v2420_v26, 3  ;;  %v2383_v12 = vshrl.u32 %v15441_v40, 16  ;;  %v2386_v36 = vshll.u32 %v15441_v40, 16  ;;  %v13507_v24 = vld [vmem:[%s19300_s3 + $0x60] sm:$0xff]  }
 0x194   : > { %2294 = vst.msk [vmem:[#allocation2 + $0x80] sm:$0xf] %vm1400_vm8, %v12831_v14  ;;  %v12807_v30 = vpack.c.bf16 %v1282_v15, %v1282_v15  ;;  %v2091_v31 = vadd.f32 %v13003_v16, %v15408_v61  ;;  %v1283_v32 = vmax.f32 %v1208_v17, 0.0  ;;  %v13006_v33 = vadd.f32 %v13005_v28, %v13004_v19  ;;  %v12913_v34 = vpop.f32.mrb[20].mxu0  ;;  %13063 = vmatprep.subr.bf16.mxu0 %v13507_v24  ;;  %v13512_v56 = vld [vmem:[%s19300_s3 + $0xc0] sm:$0xff]  }
 0x195   : > { %2414 = vrot.lane.b32.xlu0 %v2413_v10, %s14871_s17  ;;  %v12914_v37 = vpop.f32.mrb[21].mxu0  ;;  %v15493_v18 = vld [vmem:[#allocation2 + $0x14] sm:$0x1f]   ;;  %2448 = vrot.lane.b32.xlu1 %v2447_v9, %s14871_s17  ;;  %v2403_v43 = vrot.slane %v15443_v27, 2  ;;  %v2385_v40 = vrot.slane %v2383_v12, 1  ;;  %v2388_v44 = vrot.slane %v2386_v36, 2  ;;  %v2423_v48 = vor.u32 %v2422_v21, %v2419_v25 }
 0x196   : > { %1409 = vst.msk [vmem:[#allocation2 + $0x20] sm:$0xf] %vm1400_vm8, %v12807_v30  ;;  %v2168_v35 = vmax.f32 %v2091_v31, 0.0  ;;  %v12808_v38 = vpack.c.bf16 %v1283_v32, %v1283_v32  ;;  %v2094_v39 = vadd.f32 %v13006_v33, %v15408_v61  ;;  %v12916_v41 = vpop.f32.mrb[22].mxu0  ;;  %v2451_v49 = vshrl.u32 %v15482_v29, 16  ;;  %v13508_v31 = vld [vmem:[%s19300_s3 + $0x20] sm:$0xff]   ;;  %13107 = vmatprep.subr.bf16.mxu1 %v13512_v56 }
 0x197   : > { %v12917_v45 = vpop.f32.mrb[23].mxu0  ;;  %v2454_v51 = vshll.u32 %v15482_v29, 16  ;;  %v2515_v55 = vrot.slane %v2441_v11, 1  ;;  %v2516_v50 = vrot.slane %v2444_v2, 2  ;;  %v2389_v57 = vor.u32 %v2388_v44, %v2385_v40  ;;  %v15526_v22 = vld [vmem:[#allocation2 + $0x18] sm:$0x3e]   ;;  %13064 = vmatpush3.bf16.msra.mxu0 %v13508_v31 }
 0x198   : > { %v12832_v46 = vpack.c.bf16 %v2168_v35, %v2168_v35  ;;  %1410 = vst.msk [vmem:[#allocation2 + $0x24] sm:$0xf] %vm1400_vm8, %v12808_v38  ;;  %v2169_v20 = vmax.f32 %v2094_v39, 0.0  ;;  %v13007_v47 = vpop.f32.mrb[20].mxu1  ;;  %v2540_v58 = vshrl.u32 %v15493_v18, 16  ;;  %v12915_v59 = vadd.f32 %v12914_v37, %v12913_v34  ;;  %v13509_v12 = vld [vmem:[%s19300_s3 + $0x68] sm:$0xff]  }
 0x199   : > { %2404 = vrot.lane.b32.xlu0 %v2403_v43, %s14872_s24  ;;  %v13008_v52 = vpop.f32.mrb[21].mxu1  ;;  %2424 = vrot.lane.b32.xlu1 %v2423_v48, %s14873_s27  ;;  %v2437_v62 = vrot.slane %v15482_v29, 3  ;;  %v2543_v63 = vshll.u32 %v15493_v18, 16  ;;  %v12918_v1 = vadd.f32 %v12917_v45, %v12916_v41  ;;  %v2453_v4 = vrot.slane %v2451_v49, 3  ;;  %v13510_v39 = vld [vmem:[%s19300_s3 + $0x28] sm:$0xff]  }
 0x19a   : > { %2295 = vst.msk [vmem:[#allocation2 + $0x84] sm:$0xf] %vm1400_vm8, %v12832_v46  ;;  %v12833_v53 = vpack.c.bf16 %v2169_v20, %v2169_v20  ;;  %v13010_v54 = vpop.f32.mrb[22].mxu1  ;;  %v2456_v5 = vrot.slane %v2454_v51, 4  ;;  %v1213_v6 = vadd.f32 %v12915_v59, %v15408_v61  ;;  %v13009_v8 = vadd.f32 %v13008_v52, %v13007_v47  ;;  %13065 = vmatprep.subr.bf16.mxu0 %v13509_v12  ;;  %v15550_v44 = vld [vmem:[#allocation2 + $0x78] sm:$0x1f]  }
 0x19b   : > { %v13011_v60 = vpop.f32.mrb[23].mxu1  ;;  %v2517_v10 = vor.u32 %v2516_v50, %v2515_v55  ;;  %v2507_v11 = vrot.slane %v2420_v26, 1  ;;  %v1216_v2 = vadd.f32 %v12918_v1, %v15408_v61  ;;  %v2542_v16 = vrot.slane %v2540_v58, 6  ;;  %13066 = vmatpush3.bf16.msra.mxu0 %v13510_v39  ;;  %v13514_v1 = vld [vmem:[%s19300_s3 + $0x30] sm:$0xff]  }
 0x19c   : > { %2296 = vst.msk [vmem:[#allocation2 + $0x88] sm:$0xf] %vm1400_vm8, %v12833_v53  ;;  %v12919_v3 = vpop.f32.mrb[24].mxu0  ;;  %v1284_v17 = vmax.f32 %v1213_v6, 0.0  ;;  %v2099_v19 = vadd.f32 %v13009_v8, %v15408_v61  ;;  %v13012_v13 = vadd.f32 %v13011_v60, %v13010_v54  ;;  %v2545_v25 = vrot.slane %v2543_v63, 7  ;;  %v13511_v53 = vld [vmem:[%s19300_s3 + $0x70] sm:$0xff]  }
 0x19d   : > { %2390 = vrot.lane.b32.xlu0 %v2389_v57, %s14873_s27  ;;  %v12920_v7 = vpop.f32.mrb[25].mxu0  ;;  %2438 = vrot.lane.b32.xlu1 %v2437_v62, %s14872_s24  ;;  %v1285_v26 = vmax.f32 %v1216_v2, 0.0  ;;  %v2457_v32 = vor.u32 %v2456_v5, %v2453_v4  ;;  %v2508_v41 = vor.u32 %v2507_v11, %v2417_v0  ;;  %v2574_v0 = vshrl.u32 %v15526_v22, 16  ;;  %v13518_v11 = vld [vmem:[%s19300_s3 + $0xc8] sm:$0xff]  }
 0x19e   : > { %v12921_v14 = vadd.f32 %v12920_v7, %v12919_v3  ;;  %v12922_v15 = vpop.f32.mrb[26].mxu0  ;;  %v12809_v33 = vpack.c.bf16 %v1284_v17, %v1284_v17  ;;  %v2170_v34 = vmax.f32 %v2099_v19, 0.0  ;;  %v2102_v9 = vadd.f32 %v13012_v13, %v15408_v61  ;;  %13067 = vmatprep.subr.bf16.mxu0 %v13511_v53  ;;  %v13520_v17 = vld [vmem:[%s19300_s3 + $0x38] sm:$0xff]  }
 0x19f   : > { %v12923_v23 = vpop.f32.mrb[27].mxu0  ;;  %v12810_v36 = vpack.c.bf16 %v1285_v26, %v1285_v26  ;;  %v2546_v47 = vor.u32 %v2545_v25, %v2542_v16  ;;  %v2577_v48 = vshll.u32 %v15526_v22, 16  ;;  %v2512_v55 = vrot.slane %v15482_v29, 1  ;;  %13068 = vmatpush3.bf16.msra.mxu0 %v13514_v1  ;;  %v15598_v13 = vld [vmem:[#allocation2 + $0x7c] sm:$0x3e]   ;;  %v13521_v25 = vld [vmem:[%s19300_s3 + $0x88] sm:$0xff]  }
 0x1a0   : > { %v1221_v28 = vadd.f32 %v12921_v14, %v15408_v61  ;;  %v13013_v30 = vpop.f32.mrb[24].mxu1  ;;  %1411 = vst.msk [vmem:[#allocation2 + $0x28] sm:$0xf] %vm1400_vm8, %v12809_v33  ;;  %v12834_v42 = vpack.c.bf16 %v2170_v34, %v2170_v34  ;;  %v2171_v43 = vmax.f32 %v2102_v9, 0.0  ;;  %v2520_v57 = vrot.slane %v2451_v49, 1  ;;  %v13515_v49 = vld [vmem:[%s19300_s3 + $0x80] sm:$0xff]  }
 0x1a1   : > { %2518 = vrot.lane.b32.xlu0 %v2517_v10, %s14871_s17  ;;  %v13014_v21 = vpop.f32.mrb[25].mxu1  ;;  %2458 = vrot.lane.b32.xlu1 %v2457_v32, %s14873_s27  ;;  %1412 = vst.msk [vmem:[#allocation2 + $0x2c] sm:$0xf] %vm1400_vm8, %v12810_v36  ;;  %v2521_v59 = vrot.slane %v2454_v51, 2  ;;  %v12924_v60 = vadd.f32 %v12923_v23, %v12922_v15  ;;  %v2536_v29 = vrot.slane %v15550_v44, 6  ;;  %v2640_v51 = vrot.slane %v2574_v0, 1 }
 0x1a2   : > { %v1286_v37 = vmax.f32 %v1221_v28, 0.0  ;;  %v13015_v35 = vadd.f32 %v13014_v21, %v13013_v30  ;;  %v13016_v38 = vpop.f32.mrb[26].mxu1  ;;  %2297 = vst.msk [vmem:[#allocation2 + $0x8c] sm:$0xf] %vm1400_vm8, %v12834_v42  ;;  %v12835_v27 = vpack.c.bf16 %v2171_v43, %v2171_v43  ;;  %v2641_v6 = vrot.slane %v2577_v48, 2  ;;  %v13517_v10 = vld [vmem:[%s19300_s3 + $0x78] sm:$0xff]   ;;  %13108 = vmatpush3.bf16.msra.mxu1 %v13515_v49 }
 0x1a3   : > { %v13017_v40 = vpop.f32.mrb[27].mxu1  ;;  %v1224_v7 = vadd.f32 %v12924_v60, %v15408_v61  ;;  %v2522_v19 = vor.u32 %v2521_v59, %v2520_v57  ;;  %v2628_v26 = vrot.slane %v2543_v63, 1  ;;  %13069 = vmatprep.subr.bf16.mxu0 %v13517_v10  ;;  %13109 = vmatprep.subr.bf16.mxu1 %v13518_v11  ;;  %v2550_v34 = vshrl.u32 %v15550_v44, 16 }
 0x1a4   : > { %v12811_v45 = vpack.c.bf16 %v1286_v37, %v1286_v37  ;;  %v2107_v46 = vadd.f32 %v13015_v35, %v15408_v61  ;;  %v12925_v20 = vpop.f32.mrb[28].mxu0  ;;  %2298 = vst.msk [vmem:[#allocation2 + $0x90] sm:$0xf] %vm1400_vm8, %v12835_v27  ;;  %v13018_v15 = vadd.f32 %v13017_v40, %v13016_v38  ;;  %v2642_v33 = vor.u32 %v2641_v6, %v2640_v51  ;;  %v15615_v40 = vld [vmem:[#allocation2 + $0x1c] sm:$0x7c]  }
 0x1a5   : > { %2509 = vrot.lane.b32.xlu0 %v2508_v41, %s14873_s27  ;;  %v12926_v52 = vpop.f32.mrb[29].mxu0  ;;  %2547 = vrot.lane.b32.xlu1 %v2546_v47, %s14871_s17  ;;  %v1287_v23 = vmax.f32 %v1224_v7, 0.0  ;;  %v2553_v9 = vshll.u32 %v15550_v44, 16  ;;  %v2583_v39 = vshrl.u32 %v15598_v13, 16  ;;  %v2586_v41 = vshll.u32 %v15598_v13, 16 }
 0x1a6   : > { %1413 = vst.msk [vmem:[#allocation2 + $0x30] sm:$0xf] %vm1400_vm8, %v12811_v45  ;;  %v2172_v50 = vmax.f32 %v2107_v46, 0.0  ;;  %v12928_v54 = vpop.f32.mrb[30].mxu0  ;;  %v12927_v4 = vadd.f32 %v12926_v52, %v12925_v20  ;;  %v2110_v32 = vadd.f32 %v13018_v15, %v15408_v61  ;;  %13070 = vmatpush3.bf16.msra.mxu0 %v13520_v17  ;;  %13110 = vmatpush3.bf16.msra.mxu1 %v13521_v25  ;;  %v13522_v52 = vld [vmem:[%s19300_s3 + $0xd0] sm:$0xff]   ;;  %v2570_v53 = vrot.slane %v15598_v13, 7 }
 0x1a7   : > { %v12929_v62 = vpop.f32.mrb[31].mxu0  ;;  %v12812_v21 = vpack.c.bf16 %v1287_v23, %v1287_v23  ;;  %v2629_v57 = vor.u32 %v2628_v26, %v2540_v58  ;;  %v2576_v59 = vrot.slane %v2574_v0, 7  ;;  %13111 = vmatprep.subr.bf16.mxu1 %v13522_v52  ;;  %v2646_v18 = vrot.slane %v2586_v41, 2  ;;  %v13525_v15 = vld [vmem:[%s19300_s3 + $0xd8] sm:$0xff]  }
 0x1a8   : > { %v12836_v3 = vpack.c.bf16 %v2172_v50, %v2172_v50  ;;  %v13019_v5 = vpop.f32.mrb[28].mxu1  ;;  %v1229_v2 = vadd.f32 %v12927_v4, %v15408_v61  ;;  %v12930_v14 = vadd.f32 %v12929_v62, %v12928_v54  ;;  %v2173_v63 = vmax.f32 %v2110_v32, 0.0 }
 0x1a9   : > { %2513 = vrot.lane.b32.xlu0 %v2512_v55, %s14872_s24  ;;  %v13020_v8 = vpop.f32.mrb[29].mxu1  ;;  %2537 = vrot.lane.b32.xlu1 %v2536_v29, %s14872_s24  ;;  %1414 = vst.msk [vmem:[#allocation2 + $0x34] sm:$0xf] %vm1400_vm8, %v12812_v21  ;;  %v2552_v55 = vrot.slane %v2550_v34, 6  ;;  %v2555_v50 = vrot.slane %v2553_v9, 7  ;;  %v2668_v49 = vshll.u32 %v15615_v40, 16  ;;  %v2579_v23 = vor.u32 %v2577_v48, %v2576_v59 }
 0x1aa   : > { %2299 = vst.msk [vmem:[#allocation2 + $0x94] sm:$0xf] %vm1400_vm8, %v12836_v3  ;;  %v15592_v16 = vpop.f32.mrb[30].mxu1  ;;  %v1288_v28 = vmax.f32 %v1229_v2, 0.0  ;;  %v1232_v30 = vadd.f32 %v12930_v14, %v15408_v61  ;;  %v13021_v42 = vadd.f32 %v13020_v8, %v13019_v5  ;;  %v12837_v46 = vpack.c.bf16 %v2173_v63, %v2173_v63  ;;  %v15650_v8 = vld [vmem:[#allocation2 + $0x20] sm:$0xf8]  }
 0x1ab   : > { %v13023_v24 = vpop.f32.mrb[31].mxu1  ;;  %v2645_v3 = vrot.slane %v2583_v39, 1  ;;  %v2665_v5 = vshrl.u32 %v15615_v40, 16  ;;  %v2556_v7 = vor.u32 %v2555_v50, %v2552_v55  ;;  %v13523_v14 = vld [vmem:[%s19300_s3 + $0x90] sm:$0xff]   ;;  %v2670_v32 = vrot.slane %v2668_v49, 3  ;;  %v13529_v55 = vld [vmem:[%s19300_s3 + $0xe8] sm:$0xff]  }
 0x1ac   : > { %v12931_v31 = vpop.f32.mrb[32].mxu0  ;;  %v12813_v36 = vpack.c.bf16 %v1288_v28, %v1288_v28  ;;  %v1289_v37 = vmax.f32 %v1232_v30, 0.0  ;;  %2300 = vst.msk [vmem:[#allocation2 + $0x98] sm:$0xf] %vm1400_vm8, %v12837_v46  ;;  %v13024_v0 = vadd.f32 %v13023_v24, %v15592_v16  ;;  %13112 = vmatpush3.bf16.msra.mxu1 %v13523_v14  ;;  %v13526_v30 = vld [vmem:[%s19300_s3 + $0x98] sm:$0xff]   ;;  %v2699_v21 = vshrl.u32 %v15650_v8, 16 }
 0x1ad   : > { %2523 = vrot.lane.b32.xlu0 %v2522_v19, %s14873_s27  ;;  %v12932_v12 = vpop.f32.mrb[33].mxu0  ;;  %2643 = vrot.lane.b32.xlu1 %v2642_v33, %s14871_s17  ;;  %v2647_v24 = vor.u32 %v2646_v18, %v2645_v3  ;;  %v2637_v46 = vrot.slane %v15598_v13, 1  ;;  %v13531_v14 = vld [vmem:[%s19300_s3 + $0xf0] sm:$0xff]  }
 0x1ae   : > { %v12933_v35 = vadd.f32 %v12932_v12, %v12931_v31  ;;  %v12934_v38 = vpop.f32.mrb[34].mxu0  ;;  %1415 = vst.msk [vmem:[#allocation2 + $0x38] sm:$0xf] %vm1400_vm8, %v12813_v36  ;;  %v12814_v45 = vpack.c.bf16 %v1289_v37, %v1289_v37  ;;  %v2667_v31 = vrot.slane %v2665_v5, 2  ;;  %13113 = vmatprep.subr.bf16.mxu1 %v13525_v15  ;;  %v2702_v12 = vshll.u32 %v15650_v8, 16 }
 0x1af   : > { %v12935_v43 = vpop.f32.mrb[35].mxu0  ;;  %v2767_v59 = vrot.slane %v2699_v21, 1 }
 0x1b0   : > { %v1237_v20 = vadd.f32 %v12933_v35, %v15408_v61  ;;  %v12936_v47 = vadd.f32 %v12935_v43, %v12934_v38  ;;  %v13025_v27 = vpop.f32.mrb[32].mxu1  ;;  %v15631_v61 = vld [vmem:[%s19299_s2] ss:$0 sm:$0xff]  ;;  %1416 = vst.msk [vmem:[#allocation2 + $0x3c] sm:$0xf] %vm1400_vm8, %v12814_v45  ;;  %13114 = vmatpush3.bf16.msra.mxu1 %v13526_v30  ;;  %v2755_v30 = vrot.slane %v2668_v49, 1 }
 0x1b1   : > { %2626 = vrot.lane.b32.xlu0 %v15550_v44, %s14872_s24  ;;  %v2115_v54 = vadd.f32 %v15631_v61, %v13021_v42  ;;  %v13026_v56 = vpop.f32.mrb[33].mxu1  ;;  %2571 = vrot.lane.b32.xlu1 %v2570_v53, %s14872_s24  ;;  %v2118_v2 = vadd.f32 %v15631_v61, %v13024_v0  ;;  %v13527_v35 = vld [vmem:[%s19300_s3 + $0xe0] sm:$0xff]  }
 0x1b2   : > { %v1290_v60 = vmax.f32 %v1237_v20, 0.0  ;;  %v1240_v62 = vadd.f32 %v15631_v61, %v12936_v47  ;;  %v13028_v1 = vpop.f32.mrb[34].mxu1  ;;  %v13027_v26 = vadd.f32 %v13026_v56, %v13025_v27  ;;  %v2632_v20 = vrot.slane %v2553_v9, 1  ;;  %v15691_v47 = vld [vmem:[#allocation2 + $0x80] sm:$0x7c]   ;;  %13115 = vmatprep.subr.bf16.mxu1 %v13527_v35 }
 0x1b3   : > { %v2174_v58 = vmax.f32 %v2115_v54, 0.0  ;;  %v13029_v4 = vpop.f32.mrb[35].mxu1  ;;  %v2175_v25 = vmax.f32 %v2118_v2, 0.0  ;;  %v13528_v53 = vld [vmem:[%s19300_s3 + $0xa0] sm:$0xff]   ;;  %v2661_v15 = vrot.slane %v15691_v47, 2  ;;  %v2701_v35 = vrot.slane %v2699_v21, 3 }
 0x1b4   : > { %v12815_v29 = vpack.c.bf16 %v1290_v60, %v1290_v60  ;;  %v1291_v51 = vmax.f32 %v1240_v62, 0.0  ;;  %v12937_v6 = vpop.f32.mrb[36].mxu0  ;;  %v13030_v48 = vadd.f32 %v13029_v4, %v13028_v1  ;;  %v2123_v37 = vadd.f32 %v15631_v61, %v13027_v26  ;;  %13116 = vmatpush3.bf16.msra.mxu1 %v13528_v53 }
 0x1b5   : > { %2630 = vrot.lane.b32.xlu0 %v2629_v57, %s14871_s17  ;;  %v12838_v10 = vpack.c.bf16 %v2174_v58, %v2174_v58  ;;  %v12938_v11 = vpop.f32.mrb[37].mxu0  ;;  %2557 = vrot.lane.b32.xlu1 %v2556_v7, %s14873_s27  ;;  %v12839_v36 = vpack.c.bf16 %v2175_v25, %v2175_v25  ;;  %v2671_v57 = vor.u32 %v2670_v32, %v2667_v31  ;;  %v2768_v60 = vrot.slane %v2702_v12, 2  ;;  %v13530_v7 = vld [vmem:[%s19300_s3 + $0xa8] sm:$0xff]  }
 0x1b6   : > { %1417 = vst.msk [vmem:[#allocation2 + $0x40] sm:$0xf] %vm1400_vm8, %v12815_v29  ;;  %v12816_v16 = vpack.c.bf16 %v1291_v51, %v1291_v51  ;;  %v12939_v17 = vadd.f32 %v12938_v11, %v12937_v6  ;;  %v15660_v19 = vpop.f32.mrb[38].mxu0  ;;  %v2126_v42 = vadd.f32 %v15631_v61, %v13030_v48  ;;  %v2176_v27 = vmax.f32 %v2123_v37, 0.0  ;;  %13117 = vmatprep.subr.bf16.mxu1 %v13529_v55  ;;  %v15751_v31 = vld [vmem:[#allocation2 + $0x2c] sm:$0x3e]  }
 0x1b7   : > { %2301 = vst.msk [vmem:[#allocation2 + $0x9c] sm:$0xf] %vm1400_vm8, %v12838_v10  ;;  %v15666_v28 = vpop.f32.mrb[39].mxu0  ;;  %2302 = vst.msk [vmem:[#allocation2 + $0xa0] sm:$0xf] %vm1400_vm8, %v12839_v36  ;;  %v2633_v0 = vor.u32 %v2632_v20, %v2550_v34  ;;  %v2585_v4 = vrot.slane %v2583_v39, 7  ;;  %v2769_v44 = vor.u32 %v2768_v60, %v2767_v59 }
 0x1b8   : > { %1418 = vst.msk [vmem:[#allocation2 + $0x44] sm:$0xf] %vm1400_vm8, %v12816_v16  ;;  %v1245_v22 = vadd.f32 %v15631_v61, %v12939_v17  ;;  %v13031_v33 = vpop.f32.mrb[36].mxu1  ;;  %v2177_v54 = vmax.f32 %v2126_v42, 0.0  ;;  %v12840_v62 = vpack.c.bf16 %v2176_v27, %v2176_v27  ;;  %v2678_v34 = vshll.u32 %v15691_v47, 16  ;;  %13118 = vmatpush3.bf16.msra.mxu1 %v13530_v7 }
 0x1b9   : > { %2580 = vrot.lane.b32.xlu0 %v2579_v23, %s14871_s17  ;;  %v13032_v63 = vpop.f32.mrb[37].mxu1  ;;  %2648 = vrot.lane.b32.xlu1 %v2647_v24, %s14873_s27  ;;  %v2588_v11 = vor.u32 %v2586_v41, %v2585_v4  ;;  %v2675_v16 = vshrl.u32 %v15691_v47, 16  ;;  %v15740_v17 = vld [vmem:[#allocation2 + $0x84] sm:$0xf8]   ;;  %v12942_v23 = vadd.f32 %v15666_v28, %v15660_v19  ;;  %v2826_v20 = vshrl.u32 %v15751_v31, 16 }
 0x1ba   : > { %v1292_v38 = vmax.f32 %v1245_v22, 0.0  ;;  %v13033_v43 = vadd.f32 %v13032_v63, %v13031_v33  ;;  %v15685_v45 = vpop.f32.mrb[38].mxu1  ;;  %v12841_v3 = vpack.c.bf16 %v2177_v54, %v2177_v54  ;;  %2303 = vst.msk [vmem:[#allocation2 + $0xa4] sm:$0xf] %vm1400_vm8, %v12840_v62  ;;  %v2759_v13 = vrot.slane %v2678_v34, 1  ;;  %13119 = vmatprep.subr.bf16.mxu1 %v13531_v14 }
 0x1bb   : > { %v15694_v52 = vpop.f32.mrb[39].mxu1  ;;  %v1248_v25 = vadd.f32 %v15631_v61, %v12942_v23  ;;  %v2677_v32 = vrot.slane %v2675_v16, 2  ;;  %v2680_v22 = vrot.slane %v2678_v34, 3  ;;  %v2709_v33 = vshrl.u32 %v15740_v17, 16  ;;  %v15787_v55 = vld [vmem:[#allocation2 + $0x8c] sm:$0x1f]  }
 0x1bc   : > { %v12817_v50 = vpack.c.bf16 %v1292_v38, %v1292_v38  ;;  %v2131_v9 = vadd.f32 %v15631_v61, %v13033_v43  ;;  %v15703_v56 = vpop.f32.mrb[40].mxu0  ;;  %2304 = vst.msk [vmem:[#allocation2 + $0xa8] sm:$0xf] %vm1400_vm8, %v12841_v3  ;;  %v2760_v48 = vor.u32 %v2759_v13, %v2675_v16  ;;  %v2712_v36 = vshll.u32 %v15740_v17, 16 }
 0x1bd   : > { %2638 = vrot.lane.b32.xlu0 %v2637_v46, %s14872_s24  ;;  %v12944_v1 = vpop.f32.mrb[41].mxu0  ;;  %2672 = vrot.lane.b32.xlu1 %v2671_v57, %s14871_s17  ;;  %v1293_v19 = vmax.f32 %v1248_v25, 0.0  ;;  %v13036_v37 = vadd.f32 %v15694_v52, %v15685_v45  ;;  %v2704_v38 = vrot.slane %v2702_v12, 4  ;;  %v2756_v46 = vor.u32 %v2755_v30, %v2665_v5  ;;  %v13532_v57 = vld [vmem:[%s19300_s3 + $0xb0] sm:$0xff]   ;;  %v15818_v30 = vld [vmem:[#allocation2 + $0x28] sm:$0x1f]  }
 0x1be   : > { %1419 = vst.msk [vmem:[#allocation2 + $0x48] sm:$0xf] %vm1400_vm8, %v12817_v50  ;;  %v2178_v18 = vmax.f32 %v2131_v9, 0.0  ;;  %v15711_v58 = vpop.f32.mrb[42].mxu0  ;;  %v12945_v21 = vadd.f32 %v12944_v1, %v15703_v56  ;;  %v2681_v12 = vor.u32 %v2680_v22, %v2677_v32  ;;  %v2772_v27 = vrot.slane %v2709_v33, 1  ;;  %13120 = vmatpush3.bf16.msra.mxu1 %v13532_v57 }
 0x1bf   : > { %v15719_v29 = vpop.f32.mrb[43].mxu0  ;;  %v12818_v42 = vpack.c.bf16 %v1293_v19, %v1293_v19  ;;  %v2134_v45 = vadd.f32 %v15631_v61, %v13036_v37  ;;  %v2773_v40 = vrot.slane %v2712_v36, 2  ;;  %v2705_v53 = vor.u32 %v2704_v38, %v2701_v35 }
 0x1c0   : > { %v12842_v51 = vpack.c.bf16 %v2178_v18, %v2178_v18  ;;  %v13037_v6 = vpop.f32.mrb[40].mxu1  ;;  %v1253_v50 = vadd.f32 %v15631_v61, %v12945_v21  ;;  %v12948_v54 = vadd.f32 %v15719_v29, %v15711_v58  ;;  %v2828_v59 = vrot.slane %v2826_v20, 7  ;;  %v13534_v18 = vld [vmem:[%s19300_s3 + $0xf8] sm:$0xff]  }
 0x1c1   : > { %2634 = vrot.lane.b32.xlu0 %v2633_v0, %s14873_s27  ;;  %v13038_v39 = vpop.f32.mrb[41].mxu1  ;;  %2770 = vrot.lane.b32.xlu1 %v2769_v44, %s14871_s17  ;;  %1420 = vst.msk [vmem:[#allocation2 + $0x4c] sm:$0xf] %vm1400_vm8, %v12818_v42  ;;  %v2179_v5 = vmax.f32 %v2134_v45, 0.0  ;;  %v2829_v60 = vshll.u32 %v15751_v31, 16  ;;  %v13536_v58 = vld [vmem:[%s19300_s3 + $0xb8] sm:$0xff]   ;;  %v2774_v7 = vor.u32 %v2773_v40, %v2772_v27 }
 0x1c2   : > { %2305 = vst.msk [vmem:[#allocation2 + $0xac] sm:$0xf] %vm1400_vm8, %v12842_v51  ;;  %v15728_v10 = vpop.f32.mrb[42].mxu1  ;;  %v13039_v9 = vadd.f32 %v13038_v39, %v13037_v6  ;;  %v1294_v0 = vmax.f32 %v1253_v50, 0.0  ;;  %v1256_v4 = vadd.f32 %v15631_v61, %v12948_v54  ;;  %v2802_v44 = vshrl.u32 %v15787_v55, 16  ;;  %13121 = vmatprep.subr.bf16.mxu1 %v13534_v18 }
 0x1c3   : > { %v15733_v2 = vpop.f32.mrb[43].mxu1  ;;  %v12843_v62 = vpack.c.bf16 %v2179_v5, %v2179_v5  ;;  %v2831_v25 = vor.u32 %v2829_v60, %v2828_v59  ;;  %13122 = vmatpush3.bf16.msra.mxu1 %v13536_v58  ;;  %v2711_v38 = vrot.slane %v2709_v33, 3  ;;  %v2792_v45 = vshrl.u32 %v15818_v30, 16  ;;  %v15842_v5 = vld [vmem:[#allocation2 + $0x30] sm:$0x7c]  }
 0x1c4   : > { %v12949_v24 = vpop.f32.mrb[44].mxu0  ;;  %v2139_v29 = vadd.f32 %v15631_v61, %v13039_v9  ;;  %v13042_v51 = vadd.f32 %v15733_v2, %v15728_v10  ;;  %v1295_v14 = vmax.f32 %v1256_v4, 0.0  ;;  %v2764_v10 = vrot.slane %v15740_v17, 1 }
 0x1c5   : > { %2589 = vrot.lane.b32.xlu0 %v2588_v11, %s14873_s27  ;;  %v12950_v41 = vpop.f32.mrb[45].mxu0  ;;  %2662 = vrot.lane.b32.xlu1 %v2661_v15, %s14872_s24  ;;  %2306 = vst.msk [vmem:[#allocation2 + $0xb0] sm:$0xf] %vm1400_vm8, %v12843_v62  ;;  %v12819_v11 = vpack.c.bf16 %v1294_v0, %v1294_v0  ;;  %v2805_v2 = vshll.u32 %v15787_v55, 16  ;;  %v2893_v27 = vrot.slane %v2829_v60, 2  ;;  %v2795_v40 = vshll.u32 %v15818_v30, 16 }
 0x1c6   : > { %v15746_v26 = vpop.f32.mrb[46].mxu0  ;;  %v12951_v1 = vadd.f32 %v12950_v41, %v12949_v24  ;;  %v2180_v15 = vmax.f32 %v2139_v29, 0.0  ;;  %v2142_v16 = vadd.f32 %v15631_v61, %v13042_v51  ;;  %v12820_v32 = vpack.c.bf16 %v1295_v14, %v1295_v14 }
 0x1c7   : > { %v15761_v49 = vpop.f32.mrb[47].mxu0  ;;  %1421 = vst.msk [vmem:[#allocation2 + $0x50] sm:$0xf] %vm1400_vm8, %v12819_v11  ;;  %v2807_v37 = vrot.slane %v2805_v2, 7  ;;  %v2797_v50 = vrot.slane %v2795_v40, 7  ;;  %v2920_v54 = vshll.u32 %v15842_v5, 16 }
 0x1c8   : > { %v15753_v28 = vpop.f32.mrb[44].mxu1  ;;  %v1261_v34 = vadd.f32 %v15631_v61, %v12951_v1  ;;  %v12844_v22 = vpack.c.bf16 %v2180_v15, %v2180_v15  ;;  %v2181_v19 = vmax.f32 %v2142_v16, 0.0  ;;  %1422 = vst.msk [vmem:[#allocation2 + $0x54] sm:$0xf] %vm1400_vm8, %v12820_v32  ;;  %v12954_v31 = vadd.f32 %v15761_v49, %v15746_v26  ;;  %v13490_v49 = vld [vmem:[#allocation2 + $0x94] sm:$0x7c]  }
 0x1c9   : > { %2753 = vrot.lane.b32.xlu0 %v15691_v47, %s14872_s24  ;;  %v13044_v63 = vpop.f32.mrb[45].mxu1  ;;  %2761 = vrot.lane.b32.xlu1 %v2760_v48, %s14873_s27  ;;  %v2804_v48 = vrot.slane %v2802_v44, 6  ;;  %v2917_v1 = vshrl.u32 %v15842_v5, 16  ;;  %v2880_v0 = vrot.slane %v2795_v40, 1  ;;  %v2788_v15 = vrot.slane %v15787_v55, 6 }
 0x1ca   : > { %v15767_v43 = vpop.f32.mrb[46].mxu1  ;;  %v1296_v24 = vmax.f32 %v1261_v34, 0.0  ;;  %v13045_v13 = vadd.f32 %v13044_v63, %v15753_v28  ;;  %v2695_v63 = vrot.slane %v15740_v17, 3  ;;  %2307 = vst.msk [vmem:[#allocation2 + $0xb4] sm:$0xf] %vm1400_vm8, %v12844_v22  ;;  %v12845_v42 = vpack.c.bf16 %v2181_v19, %v2181_v19 }
 0x1cb   : > { %v15774_v47 = vpop.f32.mrb[47].mxu1  ;;  %v2808_v33 = vor.u32 %v2807_v37, %v2804_v48  ;;  %v1264_v9 = vadd.f32 %v15631_v61, %v12954_v31  ;;  %v13492_v34 = vld [vmem:[#allocation2 + $0x90] sm:$0x3e]   ;;  %v2884_v16 = vrot.slane %v2805_v2, 1  ;;  %v2930_v19 = vshll.u32 %v13490_v49, 16 }
 0x1cc   : > { %v15778_v8 = vpop.f32.mrb[48].mxu0  ;;  %v12821_v35 = vpack.c.bf16 %v1296_v24, %v1296_v24  ;;  %v2147_v28 = vadd.f32 %v15631_v61, %v13045_v13  ;;  %2308 = vst.msk [vmem:[#allocation2 + $0xb8] sm:$0xf] %vm1400_vm8, %v12845_v42  ;;  %v13048_v57 = vadd.f32 %v15774_v47, %v15767_v43  ;;  %v2835_v14 = vshrl.u32 %v13492_v34, 16  ;;  %v15894_v40 = vld [vmem:[#allocation2 + $0x40] sm:$0x3e]  }
 0x1cd   : > { %2757 = vrot.lane.b32.xlu0 %v2756_v46, %s14871_s17  ;;  %v15785_v52 = vpop.f32.mrb[49].mxu0  ;;  %2682 = vrot.lane.b32.xlu1 %v2681_v12, %s14873_s27  ;;  %v2714_v46 = vrot.slane %v2712_v36, 4  ;;  %v2892_v12 = vrot.slane %v2826_v20, 1  ;;  %v1297_v62 = vmax.f32 %v1264_v9, 0.0  ;;  %v2838_v24 = vshll.u32 %v13492_v34, 16 }
 0x1ce   : > { %v12958_v56 = vpop.f32.mrb[50].mxu0  ;;  %1423 = vst.msk [vmem:[#allocation2 + $0x58] sm:$0xf] %vm1400_vm8, %v12821_v35  ;;  %v2182_v21 = vmax.f32 %v2147_v28, 0.0  ;;  %v2885_v13 = vor.u32 %v2884_v16, %v2802_v44  ;;  %v2897_v32 = vrot.slane %v2835_v14, 1  ;;  %v2822_v2 = vrot.slane %v13492_v34, 7 }
 0x1cf   : > { %v12959_v3 = vpop.f32.mrb[51].mxu0  ;;  %v2715_v36 = vor.u32 %v2714_v46, %v2711_v38  ;;  %v2894_v20 = vor.u32 %v2893_v27, %v2892_v12  ;;  %v12957_v56 = vadd.f32 %v15785_v52, %v15778_v8  ;;  %v3007_v8 = vrot.slane %v2920_v54, 1 }
 0x1d0   : > { %v13049_v6 = vpop.f32.mrb[48].mxu1  ;;  %v12846_v17 = vpack.c.bf16 %v2182_v21, %v2182_v21  ;;  %v2150_v3 = vadd.f32 %v15631_v61, %v13048_v57  ;;  %v12822_v52 = vpack.c.bf16 %v1297_v62, %v1297_v62  ;;  %v2898_v22 = vrot.slane %v2838_v24, 2 }
 0x1d1   : > { %2706 = vrot.lane.b32.xlu0 %v2705_v53, %s14871_s17  ;;  %v13050_v39 = vpop.f32.mrb[49].mxu1  ;;  %2775 = vrot.lane.b32.xlu1 %v2774_v7, %s14873_s27  ;;  %v2794_v53 = vrot.slane %v2792_v45, 6  ;;  %v1269_v26 = vadd.f32 %v15631_v61, %v12957_v56  ;;  %v2922_v7 = vrot.slane %v2920_v54, 3  ;;  %v2927_v44 = vshrl.u32 %v13490_v49, 16 }
 0x1d2   : > { %v13052_v23 = vpop.f32.mrb[50].mxu1  ;;  %2309 = vst.msk [vmem:[#allocation2 + $0xbc] sm:$0xf] %vm1400_vm8, %v12846_v17  ;;  %v13051_v59 = vadd.f32 %v13050_v39, %v13049_v6  ;;  %v2183_v43 = vmax.f32 %v2150_v3, 0.0  ;;  %1424 = vst.msk [vmem:[#allocation2 + $0x5c] sm:$0xf] %vm1400_vm8, %v12822_v52  ;;  %v3008_v6 = vor.u32 %v3007_v8, %v2917_v1  ;;  %v2881_v39 = vor.u32 %v2880_v0, %v2792_v45 }
 0x1d3   : > { %v13053_v41 = vpop.f32.mrb[51].mxu1  ;;  %v2798_v60 = vor.u32 %v2797_v50, %v2794_v53  ;;  %v1298_v58 = vmax.f32 %v1269_v26, 0.0  ;;  %v2913_v23 = vrot.slane %v13490_v49, 2  ;;  %v3011_v28 = vrot.slane %v2930_v19, 1 }
 0x1d4   : > { %v2155_v18 = vadd.f32 %v15631_v61, %v13051_v59  ;;  %v12847_v29 = vpack.c.bf16 %v2183_v43, %v2183_v43  ;;  %v2919_v61 = vrot.slane %v2917_v1, 2  ;;  %v15878_v41 = vld [vmem:[#allocation2 + $0x34] sm:$0xf8]   ;;  %v2889_v38 = vrot.slane %v13492_v34, 1 }
 0x1d5   : > { %2765 = vrot.lane.b32.xlu0 %v2764_v10, %s14872_s24  ;;  %2832 = vrot.lane.b32.xlu1 %v2831_v25, %s14871_s17  ;;  %v12823_v4 = vpack.c.bf16 %v1298_v58, %v1298_v58  ;;  %v2837_v10 = vrot.slane %v2835_v14, 7  ;;  %v2951_v48 = vshrl.u32 %v15878_v41, 16  ;;  %v2954_v37 = vshll.u32 %v15878_v41, 16  ;;  %v13495_v59 = vld [vmem:[#allocation2 + $0x98] sm:$0xf8]  }
 0x1d6   : > { %v2184_v47 = vmax.f32 %v2155_v18, 0.0  ;;  %2310 = vst.msk [vmem:[#allocation2 + $0xc0] sm:$0xf] %vm1400_vm8, %v12847_v29  ;;  %v2923_v11 = vor.u32 %v2922_v7, %v2919_v61  ;;  %v3012_v21 = vor.u32 %v3011_v28, %v2927_v44  ;;  %v2929_v12 = vrot.slane %v2927_v44, 2 }
 0x1d7   : > { %1425 = vst.msk [vmem:[#allocation2 + $0x60] sm:$0xf] %vm1400_vm8, %v12823_v4  ;;  %v2840_v25 = vor.u32 %v2838_v24, %v2837_v10  ;;  %v3019_v42 = vrot.slane %v2951_v48, 1  ;;  %v3020_v46 = vrot.slane %v2954_v37, 2  ;;  %v2956_v53 = vrot.slane %v2954_v37, 4 }
 0x1d8   : > { %v12848_v51 = vpack.c.bf16 %v2184_v47, %v2184_v47  ;;  %v3078_v9 = vshrl.u32 %v15894_v40, 16  ;;  %v3016_v3 = vrot.slane %v13495_v59, 1  ;;  %v2961_v18 = vshrl.u32 %v13495_v59, 16 }
 0x1d9   : > { %2696 = vrot.lane.b32.xlu0 %v2695_v63, %s14872_s24  ;;  %2809 = vrot.lane.b32.xlu1 %v2808_v33, %s14873_s27  ;;  %v15887_v63 = vld [vmem:[#allocation2 + $0x3c] sm:$0x1f]   ;;  %v2932_v33 = vrot.slane %v2930_v19, 3  ;;  %v3021_v17 = vor.u32 %v3020_v46, %v3019_v42  ;;  %v2964_v8 = vshll.u32 %v13495_v59, 16  ;;  %v2947_v4 = vrot.slane %v13495_v59, 3 }
 0x1da   : > { %2311 = vst.msk [vmem:[#allocation2 + $0xc4] sm:$0xf] %vm1400_vm8, %v12848_v51  ;;  %v3047_v27 = vshll.u32 %v15887_v63, 16  ;;  %v3080_v26 = vrot.slane %v3078_v9, 7  ;;  %v3144_v43 = vrot.slane %v3078_v9, 1  ;;  %v3024_v29 = vrot.slane %v2961_v18, 1  ;;  %vm16266_vm8 = vmand %vm904_vm3, %vm3712_vm15 }
 0x1db   : > { %v2933_v31 = vor.u32 %v2932_v33, %v2929_v12  ;;  %v3025_v51 = vrot.slane %v2964_v8, 2  ;;  %v2966_v14 = vrot.slane %v2964_v8, 4  ;;  %v15940_v12 = vld [vmem:[#allocation2 + $0x8] sm:$0x7c]   ;;  %vm4247_vm15 = vcmask 516096  }
 0x1dc   : > { %v3132_v54 = vrot.slane %v3047_v27, 1 }
 0x1dd   : > { %2716 = vrot.lane.b32.xlu0 %v2715_v36, %s14873_s27  ;;  %2895 = vrot.lane.b32.xlu1 %v2894_v20, %s14871_s17  ;;  %v2953_v36 = vrot.slane %v2951_v48, 3  ;;  %v3044_v20 = vshrl.u32 %v15887_v63, 16  ;;  %v3026_v34 = vor.u32 %v3025_v51, %v3024_v29  ;;  %v14838_v29 = vld [vmem:[#allocation2 + $0x4] sm:$0x3e]  }
 0x1de   : > { %v2363_v51 = vrot.slane %v14838_v29, 1 }
 0x1df   : > { %v2957_v57 = vor.u32 %v2956_v53, %v2953_v36  ;;  %v3133_v62 = vor.u32 %v3132_v54, %v3044_v20 }
 0x1e1   : > { %2799 = vrot.lane.b32.xlu0 %v2798_v60, %s14871_s17  ;;  %3005 = vrot.lane.b32.xlu1 %v13490_v49, %s14872_s24  ;;  %v3081_v49 = vshll.u32 %v15894_v40, 16 }
 0x1e3   : > { %v3083_v58 = vor.u32 %v3081_v49, %v3080_v26  ;;  %v3145_v47 = vrot.slane %v3081_v49, 2 }
 0x1e5   : > { %2878 = vrot.lane.b32.xlu0 %v15787_v55, %s14872_s24  ;;  %3009 = vrot.lane.b32.xlu1 %v3008_v6, %s14871_s17  ;;  %v2899_v55 = vor.u32 %v2898_v22, %v2897_v32  ;;  %v3146_v61 = vor.u32 %v3145_v47, %v3144_v43  ;;  %v3049_v32 = vrot.slane %v3047_v27, 7 }
 0x1e9   : > { %2882 = vrot.lane.b32.xlu0 %v2881_v39, %s14871_s17  ;;  %2924 = vrot.lane.b32.xlu1 %v2923_v11, %s14871_s17  ;;  %v15920_v39 = vld [vmem:[#allocation2 + $0xa4] sm:$0x3e]   ;;  %v2963_v11 = vrot.slane %v2961_v18, 3 }
 0x1ea   : > { %v3087_v46 = vshrl.u32 %v15920_v39, 16 }
 0x1ec   : > { %v3089_v9 = vrot.slane %v3087_v46, 7 }
 0x1ed   : > { %2789 = vrot.lane.b32.xlu0 %v2788_v15, %s14872_s24  ;;  %2914 = vrot.lane.b32.xlu1 %v2913_v23, %s14872_s24  ;;  %v13506_v15 = vld [vmem:[#allocation2 + $0xa0] sm:$0x1f]   ;;  %v3074_v23 = vrot.slane %v15920_v39, 7 }
 0x1ee   : > { %v3054_v10 = vshrl.u32 %v13506_v15, 16  ;;  %v3057_v22 = vshll.u32 %v13506_v15, 16  ;;  %v3040_v49 = vrot.slane %v13506_v15, 6 }
 0x1f0   : > { %v3056_v48 = vrot.slane %v3054_v10, 6  ;;  %v3059_v37 = vrot.slane %v3057_v22, 7  ;;  %v3136_v28 = vrot.slane %v3057_v22, 1 }
 0x1f1   : > { %2886 = vrot.lane.b32.xlu0 %v2885_v13, %s14873_s27  ;;  %2841 = vrot.lane.b32.xlu1 %v2840_v25, %s14873_s27  ;;  %v2967_v13 = vor.u32 %v2966_v14, %v2963_v11  ;;  %v3046_v25 = vrot.slane %v3044_v20, 6 }
 0x1f2   : > { %v3060_v42 = vor.u32 %v3059_v37, %v3056_v48  ;;  %v3137_v53 = vor.u32 %v3136_v28, %v3054_v10 }
 0x1f3   : > { %v15884_v35 = vpop.permute.xlu1 %2338  ;;  %v3050_v44 = vor.u32 %v3049_v32, %v3046_v25 }
 0x1f5   : > { %2823 = vrot.lane.b32.xlu0 %v2822_v2, %s14872_s24  ;;  %2900 = vrot.lane.b32.xlu1 %v2899_v55, %s14873_s27  ;;  %v3141_v2 = vrot.slane %v15920_v39, 1 }
 0x1f7   : > { %v15890_v45 = vpop.permute.xlu1 %2347 }
 0x1f9   : > { %2890 = vrot.lane.b32.xlu0 %v2889_v38, %s14872_s24  ;;  %3013 = vrot.lane.b32.xlu1 %v3012_v21, %s14873_s27  ;;  %v15938_v21 = vld [vmem:[#allocation2 + $0x48] sm:$0xf8]  }
 0x1fa   : > { %v3206_v59 = vshll.u32 %v15938_v21, 16 }
 0x1fb   : > { %v15897_v50 = vpop.permute.xlu1 %2356 }
 0x1fc   : > { %v3208_v25 = vrot.slane %v3206_v59, 4 }
 0x1fd   : > { %3022 = vrot.lane.b32.xlu0 %v3021_v17, %s14871_s17  ;;  %2934 = vrot.lane.b32.xlu1 %v2933_v31, %s14873_s27  ;;  %v15945_v17 = vld [vmem:[#allocation2 + $0x44] sm:$0x7c]   ;;  %v3090_v31 = vshll.u32 %v15920_v39, 16 }
 0x1fe   : > { %v15966_v39 = vld [vmem:[#allocation2 + $0xa8] sm:$0x7c]   ;;  %v3169_v11 = vshrl.u32 %v15945_v17, 16 }
 0x1ff   : > { %v15903_v56 = vpop.permute.xlu0 %2380  ;;  %v2502_v60 = vpop.permute.xlu1 %2501  ;;  %v3092_v43 = vor.u32 %v3090_v31, %v3089_v9  ;;  %v14839_v9 = vld [vmem:[#allocation2] sm:$0x1f]  }
 0x200   : > { %v2592_v33 = vsel %vm2460_vm9, %v15940_v12, %v2502_v60  ;;  %v15955_v60 = vld [vmem:[#allocation2 + $0xc] sm:$0xf8]  }
 0x201   : > { %2958 = vrot.lane.b32.xlu0 %v2957_v57, %s14871_s17  ;;  %3134 = vrot.lane.b32.xlu1 %v3133_v62, %s14871_s17  ;;  %v3203_v57 = vshrl.u32 %v15938_v21, 16  ;;  %v2511_v62 = vrot.slane %v15955_v60, 1 }
 0x203   : > { %v15908_v1 = vpop.permute.xlu0 %2370  ;;  %v2506_v52 = vpop.permute.xlu1 %2505  ;;  %v3271_v47 = vrot.slane %v3203_v57, 1 }
 0x204   : > { %v2594_v36 = vsel %vm556_vm0, %v2592_v33, %v2506_v52  ;;  %v2471_v37 = vsel %vm2460_vm9, %v2363_v51, %v15908_v1 }
 0x205   : > { %3017 = vrot.lane.b32.xlu0 %v3016_v3, %s14872_s24  ;;  %3084 = vrot.lane.b32.xlu1 %v3083_v58, %s14871_s17  ;;  %v3172_v3 = vshll.u32 %v15945_v17, 16  ;;  %v2473_v1 = vsel %vm556_vm0, %v2471_v37, %v15903_v56  ;;  %v3171_v56 = vrot.slane %v3169_v11, 2 }
 0x207   : > { %v15912_v0 = vpop.permute.xlu0 %2414  ;;  %v15914_v6 = vpop.permute.xlu1 %2448  ;;  %v3259_v14 = vrot.slane %v3172_v3, 1 }
 0x209   : > { %2948 = vrot.lane.b32.xlu0 %v2947_v4, %s14872_s24  ;;  %3147 = vrot.lane.b32.xlu1 %v3146_v61, %s14871_s17  ;;  %v3272_v4 = vrot.slane %v3206_v59, 2  ;;  %v3260_v33 = vor.u32 %v3259_v14, %v3169_v11 }
 0x20b   : > { %v15918_v7 = vpop.permute.xlu0 %2404  ;;  %v15922_v16 = vpop.permute.xlu1 %2424  ;;  %v3273_v48 = vor.u32 %v3272_v4, %v3271_v47  ;;  %v3182_v47 = vshll.u32 %v15966_v39, 16 }
 0x20d   : > { %3027 = vrot.lane.b32.xlu0 %v3026_v34, %s14873_s27  ;;  %3075 = vrot.lane.b32.xlu1 %v3074_v23, %s14872_s24  ;;  %v3184_v4 = vrot.slane %v3182_v47, 3 }
 0x20f   : > { %v15927_v24 = vpop.permute.xlu0 %2390  ;;  %v15929_v19 = vpop.permute.xlu1 %2438 }
 0x211   : > { %2968 = vrot.lane.b32.xlu0 %v2967_v13, %s14873_s27  ;;  %3142 = vrot.lane.b32.xlu1 %v3141_v2, %s14872_s24 }
 0x213   : > { %v2519_v55 = vpop.permute.xlu0 %2518  ;;  %v15934_v38 = vpop.permute.xlu1 %2458 }
 0x215   : > { %3051 = vrot.lane.b32.xlu0 %v3050_v44, %s14871_s17  ;;  %3061 = vrot.lane.b32.xlu1 %v3060_v42, %s14873_s27 }
 0x217   : > { %v2510_v27 = vpop.permute.xlu0 %2509  ;;  %v15950_v54 = vpop.permute.xlu1 %2547 }
 0x218   : > { %v2596_v20 = vsel %vm2465_vm10, %v2594_v36, %v2510_v27  ;;  %v3150_v27 = vrot.slane %v3090_v31, 2 }
 0x219   : > { %3130 = vrot.lane.b32.xlu0 %v13506_v15, %s14872_s24  ;;  %3138 = vrot.lane.b32.xlu1 %v3137_v53, %s14873_s27  ;;  %v3501_v18 = vshrl.u32 %v2596_v20, 16  ;;  %v3504_v8 = vshll.u32 %v2596_v20, 16  ;;  %v3205_v15 = vrot.slane %v3203_v57, 3  ;;  %v13524_v20 = vld [vmem:[#allocation2 + $0xac] sm:$0xf8]   ;;  %v2462_v57 = vsel %vm2460_vm9, %v14839_v9, %v15884_v35 }
 0x21a   : > { %v2475_v35 = vsel %vm2465_vm10, %v2473_v1, %v15927_v24  ;;  %v3199_v24 = vrot.slane %v13524_v20, 3  ;;  %v3213_v29 = vshrl.u32 %v13524_v20, 16  ;;  %v3216_v51 = vshll.u32 %v13524_v20, 16  ;;  %v16041_v1 = vld [vmem:[#allocation2 + $0x18] sm:$0x3e]  }
 0x21b   : > { %v2514_v26 = vpop.permute.xlu0 %2513  ;;  %v15961_v58 = vpop.permute.xlu1 %2537  ;;  %v3503_v23 = vrot.slane %v3501_v18, 5  ;;  %v3506_v10 = vrot.slane %v3504_v8, 6  ;;  %v3209_v53 = vor.u32 %v3208_v25, %v3205_v15  ;;  %v3268_v9 = vrot.slane %v13524_v20, 1 }
 0x21c   : > { %v2599_v52 = vsel %vm2460_vm9, %v2511_v62, %v2514_v26  ;;  %v3179_v62 = vshrl.u32 %v15966_v39, 16  ;;  %v2464_v26 = vsel %vm556_vm0, %v2462_v57, %v15890_v45  ;;  %v3277_v25 = vrot.slane %v3216_v51, 2 }
 0x21d   : > { %3041 = vrot.lane.b32.xlu0 %v3040_v49, %s14872_s24  ;;  %3093 = vrot.lane.b32.xlu1 %v3092_v43, %s14873_s27  ;;  %v2601_v61 = vsel %vm556_vm0, %v2599_v52, %v2519_v55  ;;  %v3149_v55 = vrot.slane %v3087_v46, 1  ;;  %v15979_v36 = vor.u32 %v3506_v10, %v3503_v23  ;;  %v3174_v49 = vrot.slane %v3172_v3, 3 }
 0x21e   : > { %v2467_v18 = vsel %vm2465_vm10, %v2464_v26, %v15897_v50  ;;  %v3181_v50 = vrot.slane %v3179_v62, 2  ;;  %v3263_v57 = vrot.slane %v3182_v47, 1  ;;  %v2564_v26 = vrot.slane %v16041_v1, 7 }
 0x21f   : > { %v2524_v34 = vpop.permute.xlu0 %2523  ;;  %v15970_v2 = vpop.permute.xlu1 %2643  ;;  %v3151_v43 = vor.u32 %v3150_v27, %v3149_v55  ;;  %v3668_v45 = vsel %vm15990_vm12, %v2467_v18, %v15979_v36  ;;  %v3175_v14 = vor.u32 %v3174_v49, %v3171_v56  ;;  %v16035_v27 = vld [vmem:[#allocation2 + $0x54] sm:$0x3e]  }
 0x220   : > { %v2603_v13 = vsel %vm2465_vm10, %v2601_v61, %v2524_v34  ;;  %v16014_v61 = vld [vmem:[#allocation2 + $0x14] sm:$0x1f]   ;;  %v3185_v10 = vor.u32 %v3184_v4, %v3181_v50  ;;  %v3330_v47 = vshrl.u32 %v16035_v27, 16 }
 0x221   : > { %v3508_v32 = vshrl.u32 %v2603_v13, 16  ;;  %v3511_v22 = vshll.u32 %v2603_v13, 16  ;;  %3257 = vrot.lane.b32.xlu0 %v15966_v39, %s14872_s24  ;;  %3274 = vrot.lane.b32.xlu1 %v3273_v48, %s14871_s17  ;;  %v2530_v34 = vrot.slane %v16014_v61, 6  ;;  %v3276_v13 = vrot.slane %v3213_v29, 1 }
 0x223   : > { %v3510_v44 = vrot.slane %v3508_v32, 5  ;;  %v3513_v28 = vrot.slane %v3511_v22, 6  ;;  %v15977_v42 = vpop.permute.xlu0 %2626  ;;  %v2572_v59 = vpop.permute.xlu1 %2571  ;;  %v2606_v15 = vsel %vm2460_vm9, %v2530_v34, %v15961_v58  ;;  %v3165_v22 = vrot.slane %v15966_v39, 2 }
 0x224   : > { %v2608_v48 = vsel %vm556_vm0, %v2606_v15, %v15950_v54  ;;  %v3278_v58 = vor.u32 %v3277_v25, %v3276_v13  ;;  %v2613_v20 = vsel %vm2460_vm9, %v2564_v26, %v2572_v59  ;;  %v3333_v13 = vshll.u32 %v16035_v27, 16 }
 0x225   : > { %v15985_v46 = vor.u32 %v3513_v28, %v3510_v44  ;;  %3261 = vrot.lane.b32.xlu0 %v3260_v33, %s14871_s17  ;;  %3210 = vrot.lane.b32.xlu1 %v3209_v53, %s14871_s17  ;;  %v3215_v44 = vrot.slane %v3213_v29, 3  ;;  %v3218_v28 = vrot.slane %v3216_v51, 4  ;;  %v16033_v33 = vld [vmem:[#allocation2 + $0x50] sm:$0x1f]   ;;  %v2431_v29 = vrot.slane %v15955_v60, 3 }
 0x226   : > { %v3296_v54 = vshrl.u32 %v16033_v33, 16  ;;  %v3332_v60 = vrot.slane %v3330_v47, 7 }
 0x227   : > { %v16002_v8 = vpop.permute.xlu0 %2630  ;;  %v3669_v52 = vsel %vm15990_vm12, %v2475_v35, %v15985_v46  ;;  %v2558_v3 = vpop.permute.xlu1 %2557  ;;  %v3219_v18 = vor.u32 %v3218_v28, %v3215_v44 }
 0x228   : > { %4052 = vmatprep.mubr.bf16.mxu0 %v3669_v52  ;;  %v2610_v37 = vsel %vm2465_vm10, %v2608_v48, %v2558_v3  ;;  %v3299_v52 = vshll.u32 %v16033_v33, 16  ;;  %v3264_v3 = vor.u32 %v3263_v57, %v3179_v62  ;;  %v3298_v50 = vrot.slane %v3296_v54, 6 }
 0x229   : > { %3152 = vrot.lane.b32.xlu0 %v3151_v43, %s14873_s27  ;;  %4053 = vmatmul.mubr.bf16.vlgmr.msra.gmra.mrb[52].mxu0 %v3668_v45  ;;  %v3515_v35 = vshrl.u32 %v2610_v37, 16  ;;  %v3518_v56 = vshll.u32 %v2610_v37, 16  ;;  %v2397_v43 = vrot.slane %v15940_v12, 2  ;;  %v2487_v62 = vsel %vm2460_vm9, %v2431_v29, %v15929_v19  ;;  %v16107_v29 = vld [vmem:[#allocation2 + $0xbc] sm:$0x7c]  }
 0x22a   : > { %3200 = vrot.lane.b32.xlu1 %v3199_v24, %s14872_s24  ;;  %v3301_v4 = vrot.slane %v3299_v52, 7  ;;  %v3384_v39 = vrot.slane %v3299_v52, 1  ;;  %v2489_v19 = vsel %vm556_vm0, %v2487_v62, %v15914_v6  ;;  %v16088_v52 = vld [vmem:[#allocation2 + $0x1c] sm:$0x7c]  }
 0x22b   : > { %v2581_v11 = vpop.permute.xlu0 %2580  ;;  %v16020_v23 = vpop.permute.xlu1 %2648  ;;  %v3517_v51 = vrot.slane %v3515_v35, 5  ;;  %v3520_v34 = vrot.slane %v3518_v56, 6  ;;  %v2479_v59 = vsel %vm2460_vm9, %v2397_v43, %v15918_v7  ;;  %v16080_v35 = vld [vmem:[#allocation2 + $0xb8] sm:$0x3e]   ;;  %v2491_v56 = vsel %vm2465_vm10, %v2489_v19, %v15934_v38 }
 0x22c   : > { %v2615_v45 = vsel %vm556_vm0, %v2613_v20, %v2581_v11  ;;  %v3302_v37 = vor.u32 %v3301_v4, %v3298_v50  ;;  %v3385_v57 = vor.u32 %v3384_v39, %v3296_v54 }
 0x22d   : > { %3176 = vrot.lane.b32.xlu0 %v3175_v14, %s14871_s17  ;;  %v16057_v14 = vld [vmem:[#allocation2 + $0xb4] sm:$0x1f]   ;;  %v16072_v44 = vor.u32 %v3520_v34, %v3517_v51  ;;  %v3339_v51 = vshrl.u32 %v16080_v35, 16  ;;  %v3396_v34 = vrot.slane %v3330_v47, 1  ;;  %v3417_v47 = vrot.slane %v16107_v29, 2 }
 0x22e   : > { %3186 = vrot.lane.b32.xlu1 %v3185_v10, %s14873_s27  ;;  %v3306_v25 = vshrl.u32 %v16057_v14, 16  ;;  %v3309_v26 = vshll.u32 %v16057_v14, 16  ;;  %v3292_v4 = vrot.slane %v16057_v14, 6 }
 0x22f   : > { %v16024_v32 = vpop.permute.xlu0 %2638  ;;  %v16030_v55 = vpop.permute.xlu1 %2672 }
 0x230   : > { %v3311_v38 = vrot.slane %v3309_v26, 7 }
 0x231   : > { %3166 = vrot.lane.b32.xlu0 %v3165_v22, %s14872_s24 }
 0x232   : > { %3279 = vrot.lane.b32.xlu1 %v3278_v58, %s14873_s27  ;;  %v2481_v58 = vsel %vm556_vm0, %v2479_v59, %v15912_v0  ;;  %v3308_v0 = vrot.slane %v3306_v25, 6 }
 0x233   : > { %v16038_v53 = vpop.permute.xlu0 %2634  ;;  %v16044_v49 = vpop.permute.xlu1 %2770  ;;  %v2483_v6 = vsel %vm2465_vm10, %v2481_v58, %v15922_v16 }
 0x234   : > { %v3670_v16 = vsel %vm15990_vm12, %v2483_v6, %v16072_v44  ;;  %v3312_v59 = vor.u32 %v3311_v38, %v3308_v0 }
 0x235   : > { %3269 = vrot.lane.b32.xlu0 %v3268_v9, %s14872_s24 }
 0x236   : > { %3220 = vrot.lane.b32.xlu1 %v3219_v18, %s14873_s27  ;;  %v3335_v18 = vor.u32 %v3333_v13, %v3332_v60  ;;  %v3342_v60 = vshll.u32 %v16080_v35, 16 }
 0x237   : > { %v2590_v24 = vpop.permute.xlu0 %2589  ;;  %v16061_v10 = vpop.permute.xlu1 %2662 }
 0x238   : > { %v2617_v12 = vsel %vm2465_vm10, %v2615_v45, %v2590_v24  ;;  %v16100_v24 = vld [vmem:[#allocation2 + $0x58] sm:$0x7c]  }
 0x239   : > { %v3522_v11 = vshrl.u32 %v2617_v12, 16  ;;  %v3525_v15 = vshll.u32 %v2617_v12, 16  ;;  %3265 = vrot.lane.b32.xlu0 %v3264_v3, %s14873_s27  ;;  %v2636_v3 = vrot.slane %v16041_v1, 1  ;;  %v3424_v39 = vshll.u32 %v16100_v24, 16 }
 0x23a   : > { %3382 = vrot.lane.b32.xlu1 %v16057_v14, %s14872_s24 }
 0x23b   : > { %v3524_v22 = vrot.slane %v3522_v11, 5  ;;  %v3527_v48 = vrot.slane %v3525_v15, 6  ;;  %v2754_v7 = vpop.permute.xlu0 %2753  ;;  %v2762_v9 = vpop.permute.xlu1 %2761  ;;  %v2726_v31 = vsel %vm2460_vm9, %v2636_v3, %v16024_v32  ;;  %v3397_v11 = vrot.slane %v3333_v13, 2  ;;  %v16125_v13 = vld [vmem:[#allocation2 + $0x20] sm:$0xf8]  }
 0x23c   : > { %v2844_v43 = vsel %vm2460_vm9, %v16088_v52, %v2754_v7  ;;  %v3421_v15 = vshrl.u32 %v16100_v24, 16  ;;  %v3341_v32 = vrot.slane %v3339_v51, 7  ;;  %v3426_v0 = vrot.slane %v3424_v39, 3 }
 0x23d   : > { %v16076_v28 = vor.u32 %v3527_v48, %v3524_v22  ;;  %3303 = vrot.lane.b32.xlu0 %v3302_v37, %s14871_s17  ;;  %v2728_v22 = vsel %vm556_vm0, %v2726_v31, %v15970_v2  ;;  %v2763_v37 = vrot.slane %v16125_v13, 1  ;;  %v3398_v19 = vor.u32 %v3397_v11, %v3396_v34 }
 0x23e   : > { %3386 = vrot.lane.b32.xlu1 %v3385_v57, %s14871_s17  ;;  %v2719_v57 = vsel %vm2460_vm9, %v16014_v61, %v15977_v42  ;;  %v2730_v6 = vsel %vm2465_vm10, %v2728_v22, %v16020_v23  ;;  %v3431_v34 = vshrl.u32 %v16107_v29, 16  ;;  %v3434_v11 = vshll.u32 %v16107_v29, 16 }
 0x23f   : > { %v2758_v54 = vpop.permute.xlu0 %2757  ;;  %v3671_v20 = vsel %vm15990_vm12, %v2491_v56, %v16076_v28  ;;  %v16103_v50 = vpop.permute.xlu1 %2682  ;;  %v2721_v2 = vsel %vm556_vm0, %v2719_v57, %v16002_v8  ;;  %vm3735_vm12 = vsmask.f32 7424 }
 0x240   : > { %v2846_v45 = vsel %vm556_vm0, %v2844_v43, %v2758_v54  ;;  %4132 = vmatprep.mubr.bf16.mxu1 %v3671_v20  ;;  %v2723_v42 = vsel %vm2465_vm10, %v2721_v2, %v16038_v53  ;;  %vm16327_vm13 = vmand %vm3734_vm11, %vm3735_vm12 }
 0x241   : > { %3336 = vrot.lane.b32.xlu0 %v3335_v18, %s14871_s17  ;;  %4133 = vmatmul.mubr.bf16.vlgmr.msra.gmra.mrb[52].mxu1 %v3670_v16  ;;  %v2848_v12 = vsel %vm2465_vm10, %v2846_v45, %v2762_v9  ;;  %v3388_v9 = vrot.slane %v3309_v26, 1  ;;  %v3423_v18 = vrot.slane %v3421_v15, 2  ;;  %v3344_v26 = vor.u32 %v3342_v60, %v3341_v32 }
 0x242   : > { %3293 = vrot.lane.b32.xlu1 %v3292_v4, %s14872_s24  ;;  %v3541_v48 = vshrl.u32 %v2848_v12, 16  ;;  %v3544_v7 = vshll.u32 %v2848_v12, 16  ;;  %v3538_v16 = vrot.slane %v2730_v6, 7  ;;  %v13541_v4 = vld [vmem:[#allocation2 + $0xc0] sm:$0xf8]   ;;  %v3537_v53 = vrot.slane %v2723_v42, 7 }
 0x243   : > { %v16114_v1 = vpop.permute.xlu0 %2706  ;;  %v2776_v62 = vpop.permute.xlu1 %2775  ;;  %v3427_v3 = vor.u32 %v3426_v0, %v3423_v18  ;;  %v3451_v32 = vrot.slane %v13541_v4, 3  ;;  %v3468_v42 = vshll.u32 %v13541_v4, 16 }
 0x244   : > { %v3543_v61 = vrot.slane %v3541_v48, 4  ;;  %v3546_v20 = vrot.slane %v3544_v7, 5  ;;  %v3678_v29 = vsel %vm918_vm5, %v15985_v46, %v3538_v16  ;;  %v3674_v7 = vsel %vm918_vm5, %v15979_v36, %v3537_v53 }
 0x245   : > { %3313 = vrot.lane.b32.xlu0 %v3312_v59, %s14873_s27  ;;  %v3401_v46 = vrot.slane %v3339_v51, 1 }
 0x246   : > { %3418 = vrot.lane.b32.xlu1 %v3417_v47, %s14872_s24  ;;  %v16153_v15 = vor.u32 %v3546_v20, %v3543_v61  ;;  %v16166_v47 = vld [vmem:[#allocation2 + $0x5c] sm:$0xf8]  }
 0x247   : > { %v2766_v58 = vpop.permute.xlu0 %2765  ;;  %v16139_v54 = vpop.permute.xlu1 %2832  ;;  %v3455_v18 = vshrl.u32 %v16166_v47, 16  ;;  %v3458_v36 = vshll.u32 %v16166_v47, 16 }
 0x248   : > { %v2851_v56 = vsel %vm2460_vm9, %v2763_v37, %v2766_v58  ;;  %v3433_v37 = vrot.slane %v3431_v34, 2  ;;  %v3436_v58 = vrot.slane %v3434_v11, 3 }
 0x249   : > { %v2853_v43 = vsel %vm556_vm0, %v2851_v56, %v16044_v49  ;;  %3399 = vrot.lane.b32.xlu0 %v3398_v19, %s14871_s17  ;;  %v3389_v49 = vor.u32 %v3388_v9, %v3306_v25  ;;  %v3326_v25 = vrot.slane %v16080_v35, 7  ;;  %v3691_v19 = vsel %vm16162_vm14, %v3674_v7, %v16153_v15 }
 0x24a   : > { %v2855_v38 = vsel %vm2465_vm10, %v2853_v43, %v2776_v62  ;;  %3345 = vrot.lane.b32.xlu1 %v3344_v26, %s14873_s27  ;;  %v3402_v9 = vrot.slane %v3342_v60, 2  ;;  %v3393_v56 = vrot.slane %v16080_v35, 1  ;;  %v3437_v2 = vor.u32 %v3436_v58, %v3433_v37  ;;  %v14844_v37 = vld [vmem:[#allocation2 + $0x2c] sm:$0x3e]  }
 0x24b   : > { %v3548_v45 = vshrl.u32 %v2855_v38, 16  ;;  %v3551_v8 = vshll.u32 %v2855_v38, 16  ;;  %v16146_v23 = vpop.permute.xlu0 %2696  ;;  %v2810_v59 = vpop.permute.xlu1 %2809  ;;  %v3457_v60 = vrot.slane %v3455_v18, 3  ;;  %v3460_v43 = vrot.slane %v3458_v36, 4 }
 0x24c   : > { %v3403_v6 = vor.u32 %v3402_v9, %v3401_v46  ;;  %v3465_v26 = vshrl.u32 %v13541_v4, 16  ;;  %v2816_v58 = vrot.slane %v14844_v37, 7  ;;  %v3015_v62 = vrot.slane %v15878_v41, 1 }
 0x24d   : > { %v3550_v31 = vrot.slane %v3548_v45, 4  ;;  %v3553_v12 = vrot.slane %v3551_v8, 5  ;;  %3390 = vrot.lane.b32.xlu0 %v3389_v49, %s14873_s27  ;;  %v3461_v20 = vor.u32 %v3460_v43, %v3457_v60  ;;  %v3470_v45 = vrot.slane %v3468_v42, 4 }
 0x24e   : > { %3428 = vrot.lane.b32.xlu1 %v3427_v3, %s14871_s17  ;;  %v3467_v38 = vrot.slane %v3465_v26, 3  ;;  %v2782_v49 = vrot.slane %v15818_v30, 6 }
 0x24f   : > { %v16156_v14 = vpop.permute.xlu0 %2716  ;;  %v16159_v39 = vor.u32 %v3553_v12, %v3550_v31  ;;  %v16170_v22 = vpop.permute.xlu1 %2895  ;;  %v2689_v31 = vrot.slane %v16125_v13, 3 }
 0x250   : > { %v3471_v3 = vor.u32 %v3470_v45, %v3467_v38 }
 0x251   : > { %3327 = vrot.lane.b32.xlu0 %v3326_v25, %s14872_s24  ;;  %v3692_v48 = vsel %vm16162_vm14, %v3678_v29, %v16159_v39  ;;  %v2655_v25 = vrot.slane %v16088_v52, 2  ;;  %v2740_v30 = vsel %vm2460_vm9, %v2689_v31, %v16146_v23 }
 0x252   : > { %4060 = vmatprep.mubr.bf16.mxu0 %v3692_v48  ;;  %3452 = vrot.lane.b32.xlu1 %v3451_v32, %s14872_s24  ;;  %v2742_v13 = vsel %vm556_vm0, %v2740_v30, %v16114_v1 }
 0x253   : > { %v2800_v57 = vpop.permute.xlu0 %2799  ;;  %4061 = vmatmul.mubr.bf16.gmra.mrb[56].mxu0 %v3691_v19  ;;  %v16187_v0 = vpop.permute.xlu1 %3005  ;;  %v2733_v29 = vsel %vm2460_vm9, %v2655_v25, %v16061_v10  ;;  %v2744_v23 = vsel %vm2465_vm10, %v2742_v13, %v16156_v14 }
 0x254   : > { %v2735_v52 = vsel %vm556_vm0, %v2733_v29, %v16030_v55 }
 0x255   : > { %3394 = vrot.lane.b32.xlu0 %v3393_v56, %s14872_s24  ;;  %v2737_v9 = vsel %vm2465_vm10, %v2735_v52, %v16103_v50 }
 0x256   : > { %3438 = vrot.lane.b32.xlu1 %v3437_v2, %s14873_s27  ;;  %v3539_v60 = vrot.slane %v2737_v9, 7 }
 0x257   : > { %v16191_v51 = vpop.permute.xlu0 %2878  ;;  %v3010_v61 = vpop.permute.xlu1 %3009 }
 0x258   : > { %v3682_v45 = vsel %vm918_vm5, %v16072_v44, %v3539_v60 }
 0x259   : > { %3404 = vrot.lane.b32.xlu0 %v3403_v6, %s14873_s27  ;;  %v3540_v6 = vrot.slane %v2744_v23, 7 }
 0x25b   : > { %v16194_v35 = vpop.permute.xlu0 %2882  ;;  %v16196_v8 = vpop.permute.xlu1 %2924 }
 0x25d   : > { %3462 = vrot.lane.b32.xlu0 %v3461_v20, %s14871_s17  ;;  %v3686_v20 = vsel %vm918_vm5, %v16076_v28, %v3540_v6  ;;  %v3096_v28 = vsel %vm2460_vm9, %v15842_v5, %v16187_v0  ;;  %v14845_v5 = vld [vmem:[#allocation2 + $0x28] sm:$0x1f]  }
 0x25e   : > { %v3098_v31 = vsel %vm556_vm0, %v3096_v28, %v3010_v61  ;;  %v2971_v0 = vsel %vm2460_vm9, %v14845_v5, %v16191_v51  ;;  %v14846_v28 = vld [vmem:[#allocation2 + $0x30] sm:$0x7c]  }
 0x25f   : > { %v2790_v16 = vpop.permute.xlu0 %2789  ;;  %v16202_v53 = vpop.permute.xlu1 %2914 }
 0x260   : > { %v2858_v34 = vsel %vm2460_vm9, %v2782_v49, %v2790_v16 }
 0x261   : > { %v2860_v4 = vsel %vm556_vm0, %v2858_v34, %v2800_v57  ;;  %3472 = vrot.lane.b32.xlu0 %v3471_v3, %s14873_s27  ;;  %v2888_v34 = vrot.slane %v14844_v37, 1  ;;  %v2973_v37 = vsel %vm556_vm0, %v2971_v0, %v16194_v35 }
 0x262   : > { %v2862_v12 = vsel %vm2465_vm10, %v2860_v4, %v2810_v59 }
 0x263   : > { %v2887_v11 = vpop.permute.xlu0 %2886  ;;  %v2842_v32 = vpop.permute.xlu1 %2841  ;;  %v3555_v48 = vshrl.u32 %v2862_v12, 16  ;;  %v3558_v7 = vshll.u32 %v2862_v12, 16 }
 0x265   : > { %v3557_v57 = vrot.slane %v3555_v48, 4  ;;  %v3560_v56 = vrot.slane %v3558_v7, 5 }
 0x267   : > { %v2824_v19 = vpop.permute.xlu0 %2823  ;;  %v2901_v10 = vpop.permute.xlu1 %2900  ;;  %v16224_v14 = vor.u32 %v3560_v56, %v3557_v57 }
 0x268   : > { %v2865_v59 = vsel %vm2460_vm9, %v2816_v58, %v2824_v19  ;;  %v2941_v58 = vrot.slane %v15878_v41, 3  ;;  %v2975_v19 = vsel %vm2465_vm10, %v2973_v37, %v2887_v11 }
 0x269   : > { %v2867_v46 = vsel %vm556_vm0, %v2865_v59, %v16139_v54  ;;  %v3693_v49 = vsel %vm16162_vm14, %v3682_v45, %v16224_v14  ;;  %v3577_v35 = vrot.slane %v2975_v19, 6 }
 0x26a   : > { %v2869_v18 = vsel %vm2465_vm10, %v2867_v46, %v2842_v32 }
 0x26b   : > { %v3562_v1 = vshrl.u32 %v2869_v18, 16  ;;  %v3565_v36 = vshll.u32 %v2869_v18, 16  ;;  %v2891_v2 = vpop.permute.xlu0 %2890  ;;  %v3014_v26 = vpop.permute.xlu1 %3013 }
 0x26c   : > { %v2978_v12 = vsel %vm2460_vm9, %v2888_v34, %v2891_v2  ;;  %v3100_v44 = vsel %vm2465_vm10, %v3098_v31, %v3014_v26  ;;  %v2907_v34 = vrot.slane %v14846_v28, 2 }
 0x26d   : > { %v3564_v55 = vrot.slane %v3562_v1, 4  ;;  %v3567_v43 = vrot.slane %v3565_v36, 5  ;;  %v2980_v32 = vsel %vm556_vm0, %v2978_v12, %v16170_v22  ;;  %v3581_v29 = vshrl.u32 %v3100_v44, 16 }
 0x26e   : > { %v3584_v48 = vshll.u32 %v3100_v44, 16  ;;  %v2982_v13 = vsel %vm2465_vm10, %v2980_v32, %v2901_v10  ;;  %v2985_v31 = vsel %vm2460_vm9, %v2907_v34, %v16202_v53 }
 0x26f   : > { %v3023_v42 = vpop.permute.xlu0 %3022  ;;  %v3568_v54 = vor.u32 %v3567_v43, %v3564_v55  ;;  %v16228_v50 = vpop.permute.xlu1 %2934  ;;  %v3583_v52 = vrot.slane %v3581_v29, 3  ;;  %v3578_v18 = vrot.slane %v2982_v13, 6  ;;  %v3193_v43 = vrot.slane %v15938_v21, 3 }
 0x270   : > { %v3586_v23 = vrot.slane %v3584_v48, 4 }
 0x271   : > { %v3694_v38 = vsel %vm16162_vm14, %v3686_v20, %v3568_v54  ;;  %v3701_v26 = vsel %vm899_vm2, %v16159_v39, %v3578_v18  ;;  %v3068_v39 = vrot.slane %v15894_v40, 7 }
 0x272   : > { %4140 = vmatprep.mubr.bf16.mxu1 %v3694_v38  ;;  %v16262_v36 = vor.u32 %v3586_v23, %v3583_v52  ;;  %v3697_v38 = vsel %vm899_vm2, %v16153_v15, %v3577_v35 }
 0x273   : > { %v2959_v16 = vpop.permute.xlu0 %2958  ;;  %4141 = vmatmul.mubr.bf16.gmra.mrb[56].mxu1 %v3693_v49  ;;  %v16237_v3 = vpop.permute.xlu1 %3134 }
 0x274   : > { %v3714_v49 = vsel %vm16266_vm8, %v3697_v38, %v16262_v36 }
 0x277   : > { %v3018_v4 = vpop.permute.xlu0 %3017  ;;  %v3085_v25 = vpop.permute.xlu1 %3084 }
 0x278   : > { %v3103_v7 = vsel %vm2460_vm9, %v3015_v62, %v3018_v4  ;;  %v2987_v62 = vsel %vm556_vm0, %v2985_v31, %v16196_v8 }
 0x279   : > { %v3105_v22 = vsel %vm556_vm0, %v3103_v7, %v3023_v42  ;;  %v2989_v32 = vsel %vm2465_vm10, %v2987_v62, %v16228_v50  ;;  %v3445_v62 = vrot.slane %v16166_v47, 3 }
 0x27a   : > { %v3579_v8 = vrot.slane %v2989_v32, 6 }
 0x27b   : > { %v2949_v30 = vpop.permute.xlu0 %2948  ;;  %v16251_v61 = vpop.permute.xlu1 %3147 }
 0x27c   : > { %v2992_v46 = vsel %vm2460_vm9, %v2941_v58, %v2949_v30 }
 0x27d   : > { %v2994_v11 = vsel %vm556_vm0, %v2992_v46, %v2959_v16  ;;  %v3140_v46 = vrot.slane %v15894_v40, 1 }
 0x27f   : > { %v3028_v59 = vpop.permute.xlu0 %3027  ;;  %v3076_v56 = vpop.permute.xlu1 %3075 }
 0x280   : > { %v3107_v51 = vsel %vm2465_vm10, %v3105_v22, %v3028_v59  ;;  %v3117_v15 = vsel %vm2460_vm9, %v3068_v39, %v3076_v56  ;;  %v3705_v56 = vsel %vm899_vm2, %v16224_v14, %v3579_v8 }
 0x281   : > { %v3588_v9 = vshrl.u32 %v3107_v51, 16  ;;  %v3591_v57 = vshll.u32 %v3107_v51, 16  ;;  %v3119_v48 = vsel %vm556_vm0, %v3117_v15, %v3085_v25 }
 0x283   : > { %v3590_v41 = vrot.slane %v3588_v9, 3  ;;  %v3593_v1 = vrot.slane %v3591_v57, 4  ;;  %v2969_v10 = vpop.permute.xlu0 %2968  ;;  %v3143_v55 = vpop.permute.xlu1 %3142 }
 0x284   : > { %v2996_v2 = vsel %vm2465_vm10, %v2994_v11, %v2969_v10  ;;  %v3230_v57 = vsel %vm2460_vm9, %v3140_v46, %v3143_v55 }
 0x285   : > { %v3594_v6 = vor.u32 %v3593_v1, %v3590_v41  ;;  %v3580_v60 = vrot.slane %v2996_v2, 6  ;;  %v3232_v1 = vsel %vm556_vm0, %v3230_v57, %v16251_v61 }
 0x287   : > { %v3052_v42 = vpop.permute.xlu0 %3051  ;;  %v3715_v20 = vsel %vm16266_vm8, %v3701_v26, %v3594_v6  ;;  %v3709_v45 = vsel %vm899_vm2, %v3568_v54, %v3580_v60  ;;  %v3062_v16 = vpop.permute.xlu1 %3061  ;;  %v3034_v54 = vrot.slane %v15887_v63, 6 }
 0x288   : > { %4068 = vmatprep.mubr.bf16.mxu0 %v3715_v20 }
 0x289   : > { %4069 = vmatmul.mubr.bf16.gmra.mrb[60].mxu0 %v3714_v49 }
 0x28b   : > { %v3131_v4 = vpop.permute.xlu0 %3130  ;;  %v3139_v12 = vpop.permute.xlu1 %3138 }
 0x28c   : > { %v3223_v26 = vsel %vm2460_vm9, %v15887_v63, %v3131_v4 }
 0x28d   : > { %v3225_v38 = vsel %vm556_vm0, %v3223_v26, %v16237_v3  ;;  %v3392_v26 = vrot.slane %v16035_v27, 1 }
 0x28f   : > { %v3042_v44 = vpop.permute.xlu0 %3041  ;;  %v3094_v7 = vpop.permute.xlu1 %3093 }
 0x290   : > { %v3110_v30 = vsel %vm2460_vm9, %v3034_v54, %v3042_v44  ;;  %v3121_v5 = vsel %vm2465_vm10, %v3119_v48, %v3094_v7 }
 0x291   : > { %v3112_v29 = vsel %vm556_vm0, %v3110_v30, %v3052_v42  ;;  %v3602_v58 = vshrl.u32 %v3121_v5, 16  ;;  %v3605_v19 = vshll.u32 %v3121_v5, 16 }
 0x292   : > { %v3114_v53 = vsel %vm2465_vm10, %v3112_v29, %v3062_v16 }
 0x293   : > { %v3595_v0 = vshrl.u32 %v3114_v53, 16  ;;  %v3598_v37 = vshll.u32 %v3114_v53, 16  ;;  %v3258_v13 = vpop.permute.xlu0 %3257  ;;  %v3604_v52 = vrot.slane %v3602_v58, 3  ;;  %v3607_v23 = vrot.slane %v3605_v19, 4  ;;  %v3275_v50 = vpop.permute.xlu1 %3274 }
 0x294   : > { %v3348_v4 = vsel %vm2460_vm9, %v15945_v17, %v3258_v13 }
 0x295   : > { %v3597_v22 = vrot.slane %v3595_v0, 3  ;;  %v3600_v59 = vrot.slane %v3598_v37, 4  ;;  %v3608_v51 = vor.u32 %v3607_v23, %v3604_v52 }
 0x297   : > { %v3262_v25 = vpop.permute.xlu0 %3261  ;;  %v16295_v9 = vor.u32 %v3600_v59, %v3597_v22  ;;  %v3211_v18 = vpop.permute.xlu1 %3210  ;;  %v3717_v35 = vsel %vm16266_vm8, %v3709_v45, %v3608_v51  ;;  %v3267_v45 = vrot.slane %v15938_v21, 1  ;;  %v3286_v22 = vrot.slane %v16033_v33, 6 }
 0x298   : > { %4148 = vmatprep.mubr.bf16.mxu1 %v3717_v35  ;;  %v3350_v21 = vsel %vm556_vm0, %v3348_v4, %v3262_v25  ;;  %v3320_v35 = vrot.slane %v16035_v27, 7 }
 0x299   : > { %v3716_v41 = vsel %vm16266_vm8, %v3705_v56, %v16295_v9  ;;  %vm4748_vm8 = vsmask.f32 2304 }
 0x29a   : > { %4149 = vmatmul.mubr.bf16.gmra.mrb[60].mxu1 %v3716_v41  ;;  %vm16609_vm12 = vmand %vm930_vm7, %vm4748_vm8 }
 0x29b   : > { %v3153_v40 = vpop.permute.xlu0 %3152 }
 0x29c   : > { %v3234_v11 = vsel %vm2465_vm10, %v3232_v1, %v3153_v40  ;;  %v3201_v2 = vpop.permute.xlu1 %3200 }
 0x29d   : > { %v3618_v10 = vrot.slane %v3234_v11, 5  ;;  %v3244_v61 = vsel %vm2460_vm9, %v3193_v43, %v3201_v2 }
 0x29e   : > { %v3246_v63 = vsel %vm556_vm0, %v3244_v61, %v3211_v18 }
 0x29f   : > { %v3177_v60 = vpop.permute.xlu0 %3176  ;;  %v3724_v14 = vsel %vm930_vm7, %v3594_v6, %v3618_v10  ;;  %v3227_v6 = vsel %vm2465_vm10, %v3225_v38, %v3139_v12 }
 0x2a0   : > { %v3187_v55 = vpop.permute.xlu1 %3186  ;;  %v3617_v44 = vrot.slane %v3227_v6, 5 }
 0x2a2   : > { %v3720_v0 = vsel %vm930_vm7, %v16262_v36, %v3617_v44 }
 0x2a3   : > { %v3167_v42 = vpop.permute.xlu0 %3166 }
 0x2a4   : > { %v3280_v20 = vpop.permute.xlu1 %3279 }
 0x2a7   : > { %v3270_v49 = vpop.permute.xlu0 %3269 }
 0x2a8   : > { %v3355_v16 = vsel %vm2460_vm9, %v3267_v45, %v3270_v49  ;;  %v3221_v34 = vpop.permute.xlu1 %3220 }
 0x2a9   : > { %v3357_v28 = vsel %vm556_vm0, %v3355_v16, %v3275_v50  ;;  %v3248_v39 = vsel %vm2465_vm10, %v3246_v63, %v3221_v34  ;;  %v3159_v50 = vrot.slane %v15945_v17, 2 }
 0x2aa   : > { %v3359_v3 = vsel %vm2465_vm10, %v3357_v28, %v3280_v20  ;;  %v3620_v31 = vrot.slane %v3248_v39, 5 }
 0x2ab   : > { %v3266_v15 = vpop.permute.xlu0 %3265  ;;  %v3624_v54 = vshll.u32 %v3359_v3, 16  ;;  %v3237_v36 = vsel %vm2460_vm9, %v3159_v50, %v3167_v42  ;;  %v3637_v17 = vshrl.u32 %v3359_v3, 16 }
 0x2ac   : > { %v3352_v12 = vsel %vm2465_vm10, %v3350_v21, %v3266_v15  ;;  %v3383_v32 = vpop.permute.xlu1 %3382  ;;  %v3732_v48 = vsel %vm930_vm7, %v3608_v51, %v3620_v31  ;;  %v3239_v57 = vsel %vm556_vm0, %v3237_v36, %v3177_v60  ;;  %v3411_v21 = vrot.slane %v16100_v24, 2 }
 0x2ad   : > { %v3621_v30 = vshll.u32 %v3352_v12, 16  ;;  %v16331_v29 = vrot.slane %v3624_v54, 3  ;;  %v3241_v40 = vsel %vm2465_vm10, %v3239_v57, %v3187_v55  ;;  %v3633_v2 = vshrl.u32 %v3352_v12, 16  ;;  %v16387_v57 = vld [vmem:[%s19301_s4] ss:$0 sm:$0xff] }
 0x2ae   : > { %v3619_v60 = vrot.slane %v3241_v40, 5  ;;  %v3475_v42 = vsel %vm2460_vm9, %v16033_v33, %v3383_v32  ;;  %v3639_v49 = vrot.slane %v3637_v17, 2 }
 0x2af   : > { %v16334_v7 = vrot.slane %v3621_v30, 3  ;;  %v3304_v53 = vpop.permute.xlu0 %3303  ;;  %v3738_v5 = vsel %vm16327_vm13, %v3724_v14, %v16331_v29  ;;  %v3635_v28 = vrot.slane %v3633_v2, 2 }
 0x2b0   : > { %4076 = vmatprep.mubr.bf16.mxu0 %v3738_v5  ;;  %v3387_v37 = vpop.permute.xlu1 %3386  ;;  %v3728_v33 = vsel %vm930_vm7, %v16295_v9, %v3619_v60  ;;  %v3640_v54 = vor.u32 %v3639_v49, %v16331_v29  ;;  %vm4775_vm7 = vsmask.f32 1280 }
 0x2b1   : > { %v3737_v58 = vsel %vm16327_vm13, %v3720_v0, %v16334_v7  ;;  %v3477_v38 = vsel %vm556_vm0, %v3475_v42, %v3387_v37  ;;  %v3636_v44 = vor.u32 %v3635_v28, %v16334_v7 }
 0x2b2   : > { %4077 = vmatmul.mubr.bf16.gmra.mrb[64].mxu0 %v3737_v58 }
 0x2b3   : > { %v3337_v19 = vpop.permute.xlu0 %3336 }
 0x2b4   : > { %v3294_v13 = vpop.permute.xlu1 %3293 }
 0x2b5   : > { %v3362_v52 = vsel %vm2460_vm9, %v3286_v22, %v3294_v13 }
 0x2b6   : > { %v3364_v51 = vsel %vm556_vm0, %v3362_v52, %v3304_v53 }
 0x2b7   : > { %v3314_v8 = vpop.permute.xlu0 %3313 }
 0x2b8   : > { %v3419_v59 = vpop.permute.xlu1 %3418  ;;  %v3366_v56 = vsel %vm2465_vm10, %v3364_v51, %v3314_v8 }
 0x2b9   : > { %v3627_v1 = vshll.u32 %v3366_v56, 16  ;;  %v3641_v12 = vshrl.u32 %v3366_v56, 16  ;;  %v3489_v9 = vsel %vm2460_vm9, %v3411_v21, %v3419_v59 }
 0x2bb   : > { %v3400_v23 = vpop.permute.xlu0 %3399  ;;  %v3629_v55 = vrot.slane %v3627_v1, 3  ;;  %v3643_v29 = vrot.slane %v3641_v12, 2 }
 0x2bc   : > { %v3346_v46 = vpop.permute.xlu1 %3345 }
 0x2bd   : > { %v3739_v39 = vsel %vm16327_vm13, %v3728_v33, %v3629_v55  ;;  %v3644_v47 = vor.u32 %v3643_v29, %v3629_v55 }
 0x2bf   : > { %v3391_v25 = vpop.permute.xlu0 %3390 }
 0x2c0   : > { %v3429_v18 = vpop.permute.xlu1 %3428  ;;  %v3479_v16 = vsel %vm2465_vm10, %v3477_v38, %v3391_v25 }
 0x2c1   : > { %v3657_v4 = vrot.slane %v3479_v16, 4  ;;  %v3491_v53 = vsel %vm556_vm0, %v3489_v9, %v3429_v18 }
 0x2c3   : > { %v3328_v41 = vpop.permute.xlu0 %3327  ;;  %v3743_v24 = vsel %vm911_vm4, %v3636_v44, %v3657_v4 }
 0x2c4   : > { %v3369_v11 = vsel %vm2460_vm9, %v3320_v35, %v3328_v41  ;;  %v3453_v61 = vpop.permute.xlu1 %3452 }
 0x2c5   : > { %v3371_v10 = vsel %vm556_vm0, %v3369_v11, %v3337_v19  ;;  %v3496_v7 = vsel %vm2460_vm9, %v3445_v62, %v3453_v61 }
 0x2c6   : > { %v3373_v14 = vsel %vm2465_vm10, %v3371_v10, %v3346_v46 }
 0x2c7   : > { %v3395_v43 = vpop.permute.xlu0 %3394  ;;  %v3630_v20 = vshll.u32 %v3373_v14, 16  ;;  %v3645_v31 = vshrl.u32 %v3373_v14, 16 }
 0x2c8   : > { %v3482_v45 = vsel %vm2460_vm9, %v3392_v26, %v3395_v43  ;;  %v3439_v30 = vpop.permute.xlu1 %3438  ;;  %vm4236_vm9 = vcmask 519168  }
 0x2c9   : > { %v3632_v6 = vrot.slane %v3630_v20, 3  ;;  %v3484_v63 = vsel %vm556_vm0, %v3482_v45, %v3400_v23  ;;  %v3647_v5 = vrot.slane %v3645_v31, 2  ;;  %v3493_v0 = vsel %vm2465_vm10, %v3491_v53, %v3439_v30 }
 0x2ca   : > { %v3659_v19 = vrot.slane %v3493_v0, 4 }
 0x2cb   : > { %v3405_v27 = vpop.permute.xlu0 %3404  ;;  %v3740_v34 = vsel %vm16327_vm13, %v3732_v48, %v3632_v6  ;;  %v3648_v22 = vor.u32 %v3647_v5, %v3632_v6  ;;  %vm16644_vm13 = vmand %vm899_vm2, %vm4775_vm7 }
 0x2cc   : > { %v3486_v3 = vsel %vm2465_vm10, %v3484_v63, %v3405_v27  ;;  %4156 = vmatprep.mubr.bf16.mxu1 %v3740_v34  ;;  %v3751_v52 = vsel %vm911_vm4, %v3644_v47, %v3659_v19 }
 0x2cd   : > { %v3658_v15 = vrot.slane %v3486_v3, 4  ;;  %4157 = vmatmul.mubr.bf16.gmra.mrb[64].mxu1 %v3739_v39 }
 0x2cf   : > { %v3463_v32 = vpop.permute.xlu0 %3462  ;;  %v3747_v48 = vsel %vm911_vm4, %v3640_v54, %v3658_v15 }
 0x2d0   : > { %4084 = vmatprep.mubr.bf16.mxu0 %v3747_v48  ;;  %v3498_v37 = vsel %vm556_vm0, %v3496_v7, %v3463_v32 }
 0x2d1   : > { %4085 = vmatmul.mubr.bf16.gmra.mrb[68].mxu0 %v3743_v24 }
 0x2d2   : > { %4092 = vmatprep.mubr.bf16.mxu0 %v3658_v15 }
 0x2d3   : > { %v3473_v58 = vpop.permute.xlu0 %3472 }
 0x2d4   : > { %v3500_v13 = vsel %vm2465_vm10, %v3498_v37, %v3473_v58  ;;  %vm4721_vm10 = vsmask.f32 3328 }
 0x2d5   : > { %v3660_v8 = vrot.slane %v3500_v13, 4  ;;  %v13561_v13 = vld [vmem:[%s19302_s5] sm:$0xff]   ;;  %vm16517_vm14 = vmand %vm911_vm4, %vm4721_vm10 }
 0x2d7   : > { %v3755_v59 = vsel %vm911_vm4, %v3648_v22, %v3660_v8  ;;  %vm4248_vm4 = vsmask.f32 256 }
 0x2d8   : > { %4164 = vmatprep.mubr.bf16.mxu1 %v3755_v59  ;;  %vm16599_vm11 = vmand %vm4247_vm15, %vm4248_vm4 }
 0x2d9   : > { %4093 = vmatmul.mubr.bf16.gmra.mrb[72].mxu0 %v3657_v4  ;;  %4165 = vmatmul.mubr.bf16.gmra.mrb[68].mxu1 %v3751_v52 }
 0x2da   : > { %4172 = vmatprep.mubr.bf16.mxu1 %v3660_v8  ;;  %v13562_v8 = vld [vmem:[%s19302_s5 + $0x48] sm:$0xff]  }
 0x2e1   : > { %4173 = vmatmul.mubr.bf16.gmra.mrb[72].mxu1 %v3659_v19  ;;  %v13560_v19 = vld [vmem:[%s19302_s5 + $0x40] sm:$0xff]  }
 0x2e2   : > { %13159 = vmatprep.subr.bf16.mxu0 %v13560_v19 }
 0x2e3   : > { %13160 = vmatpush3.bf16.msra.mxu0 %v13561_v13  ;;  %v13576_v13 = vld [vmem:[%s19302_s5 + $0xc0] sm:$0xff]  }
 0x2e4   : > { %13161 = vmatprep.subr.bf16.mxu0 %v13562_v8  ;;  %v13577_v8 = vld [vmem:[%s19302_s5 + $0x80] sm:$0xff]   ;;  %13199 = vmatprep.subr.bf16.mxu1 %v13576_v13 }
 0x2e5   : > { %13200 = vmatpush3.bf16.msra.mxu1 %v13577_v8 }
 0x2fc   : > { %v13071_v23 = vpop.f32.mrb[52].mxu0 }
 0x2fd   : > { %v13072_v50 = vpop.f32.mrb[53].mxu0 }
 0x2fe   : > { %v13073_v46 = vadd.f32 %v13072_v50, %v13071_v23  ;;  %v13074_v36 = vpop.f32.mrb[54].mxu0 }
 0x2ff   : > { %v13075_v51 = vpop.f32.mrb[55].mxu0 }
 0x300   : > { %v13076_v25 = vadd.f32 %v13075_v51, %v13074_v36  ;;  %v4055_v35 = vadd.f32 %v13073_v46, %v16387_v57 }
 0x302   : > { %v4058_v11 = vadd.f32 %v13076_v25, %v16387_v57 }
 0x314   : > { %v13123_v56 = vpop.f32.mrb[52].mxu1 }
 0x315   : > { %v13124_v18 = vpop.f32.mrb[53].mxu1 }
 0x316   : > { %v13125_v41 = vadd.f32 %v13124_v18, %v13123_v56  ;;  %v13126_v40 = vpop.f32.mrb[54].mxu1  ;;  %v13563_v56 = vld [vmem:[%s19302_s5 + $0x8] sm:$0xff]  }
 0x317   : > { %v13127_v1 = vpop.f32.mrb[55].mxu1  ;;  %13162 = vmatpush3.bf16.msra.mxu0 %v13563_v56 }
 0x318   : > { %v4135_v17 = vadd.f32 %v13125_v41, %v4055_v35  ;;  %v13128_v10 = vadd.f32 %v13127_v1, %v13126_v40  ;;  %v13564_v41 = vld [vmem:[%s19302_s5 + $0x50] sm:$0xff]   ;;  %v13566_v1 = vld [vmem:[%s19302_s5 + $0x58] sm:$0xff]  }
 0x319   : > { %v13565_v40 = vld [vmem:[%s19302_s5 + $0x10] sm:$0xff]   ;;  %13163 = vmatprep.subr.bf16.mxu0 %v13564_v41 }
 0x31a   : > { %v4180_v2 = vmax.f32 %v4135_v17, 0.0  ;;  %v4138_v14 = vadd.f32 %v13128_v10, %v4058_v11  ;;  %v13567_v11 = vld [vmem:[%s19302_s5 + $0x18] sm:$0xff]   ;;  %v13568_v17 = vld [vmem:[%s19302_s5 + $0x60] sm:$0xff]  }
 0x31b   : > { %13164 = vmatpush3.bf16.msra.mxu0 %v13565_v40  ;;  %v13569_v10 = vld [vmem:[%s19302_s5 + $0x20] sm:$0xff]  }
 0x31c   : > { %v12849_v26 = vpack.c.bf16 %v4180_v2, %v4180_v2  ;;  %v4181_v60 = vmax.f32 %v4138_v14, 0.0  ;;  %13165 = vmatprep.subr.bf16.mxu0 %v13566_v1  ;;  %v13570_v2 = vld [vmem:[%s19302_s5 + $0x68] sm:$0xff]  }
 0x31e   : > { %4237 = vst.msk [vmem:[#allocation3] sm:$0xf] %vm4236_vm9, %v12849_v26  ;;  %v12850_v42 = vpack.c.bf16 %v4181_v60, %v4181_v60  ;;  %v13571_v60 = vld [vmem:[%s19302_s5 + $0x28] sm:$0xff]  }
 0x31f   : > { %13166 = vmatpush3.bf16.msra.mxu0 %v13567_v11 }
 0x320   : > { %4238 = vst.msk [vmem:[#allocation3 + $0x4] sm:$0xf] %vm4236_vm9, %v12850_v42  ;;  %13167 = vmatprep.subr.bf16.mxu0 %v13568_v17  ;;  %v13580_v17 = vld [vmem:[%s19302_s5 + $0xd0] sm:$0xff]  }
 0x323   : > { %13168 = vmatpush3.bf16.msra.mxu0 %v13569_v10 }
 0x324   : > { %13169 = vmatprep.subr.bf16.mxu0 %v13570_v2 }
 0x326   : > { %v13077_v43 = vpop.f32.mrb[56].mxu0 }
 0x327   : > { %v13078_v20 = vpop.f32.mrb[57].mxu0  ;;  %v16393_v38 = vld [vmem:[#allocation3 + $0x4] sm:$0xf]  ;;  %13170 = vmatpush3.bf16.msra.mxu0 %v13571_v60 }
 0x328   : > { %v13079_v55 = vadd.f32 %v13078_v20, %v13077_v43  ;;  %v13080_v61 = vpop.f32.mrb[58].mxu0  ;;  %v11920_v45 = vcombine.low %v16393_v38, %v16393_v38 }
 0x329   : > { %v13081_v49 = vpop.f32.mrb[59].mxu0 }
 0x32a   : > { %v13082_v16 = vadd.f32 %v13081_v49, %v13080_v61  ;;  %v4287_v6 = vshll.u32 %v11920_v45, 16  ;;  %v4285_v28 = vshrl.u32 %v11920_v45, 16  ;;  %v4063_v4 = vadd.f32 %v13079_v55, %v16387_v57  ;;  %v13572_v55 = vld [vmem:[%s19302_s5 + $0x70] sm:$0xff]  }
 0x32b   : > { %13171 = vmatprep.subr.bf16.mxu0 %v13572_v55  ;;  %v13582_v55 = vld [vmem:[%s19302_s5 + $0xd8] sm:$0xff]  }
 0x32c   : > { %v4289_v63 = vrot.slane %v4287_v6, 1  ;;  %v4066_v31 = vadd.f32 %v13082_v16, %v16387_v57 }
 0x32e   : > { %v4290_v27 = vor.u32 %v4289_v63, %v4285_v28 }
 0x330   : > { %4291 = vrot.lane.b32.xlu1 %v4290_v27, %s14871_s17 }
 0x346   : > { %v13129_v34 = vpop.f32.mrb[56].mxu1 }
 0x347   : > { %v13130_v33 = vpop.f32.mrb[57].mxu1 }
 0x348   : > { %v13131_v3 = vadd.f32 %v13130_v33, %v13129_v34  ;;  %v13132_v39 = vpop.f32.mrb[58].mxu1  ;;  %v16465_v34 = vld [vmem:[#allocation3] sm:$0xf] }
 0x349   : > { %v13133_v21 = vpop.f32.mrb[59].mxu1 }
 0x34a   : > { %v4143_v15 = vadd.f32 %v13131_v3, %v4063_v4  ;;  %v13134_v54 = vadd.f32 %v13133_v21, %v13132_v39  ;;  %v11918_v4 = vcombine.low %v16465_v34, %v16465_v34  ;;  %v13573_v3 = vld [vmem:[%s19302_s5 + $0x30] sm:$0xff]   ;;  %v13574_v39 = vld [vmem:[%s19302_s5 + $0x78] sm:$0xff]  }
 0x34b   : > { %13172 = vmatpush3.bf16.msra.mxu0 %v13573_v3 }
 0x34c   : > { %v4182_v44 = vmax.f32 %v4143_v15, 0.0  ;;  %v4146_v12 = vadd.f32 %v13134_v54, %v4066_v31  ;;  %v4269_v21 = vshll.u32 %v11918_v4, 16  ;;  %13173 = vmatprep.subr.bf16.mxu0 %v13574_v39 }
 0x34e   : > { %v12851_v30 = vpack.c.bf16 %v4182_v44, %v4182_v44  ;;  %v4183_v9 = vmax.f32 %v4146_v12, 0.0 }
 0x350   : > { %4239 = vst.msk [vmem:[#allocation3 + $0x8] sm:$0xf] %vm4236_vm9, %v12851_v30  ;;  %v12852_v32 = vpack.c.bf16 %v4183_v9, %v4183_v9 }
 0x352   : > { %4240 = vst.msk [vmem:[#allocation3 + $0xc] sm:$0xf] %vm4236_vm9, %v12852_v32 }
 0x357   : > { %v16402_v48 = vld [vmem:[#allocation3 + $0x4] sm:$0x1e]  }
 0x358   : > { %v4300_v53 = vshrl.u32 %v16402_v48, 16  ;;  %v4303_v62 = vshll.u32 %v16402_v48, 16 }
 0x359   : > { %v16406_v24 = vld [vmem:[#allocation3 + $0x8] sm:$0x1e]  }
 0x35a   : > { %v4352_v5 = vrot.slane %v4303_v62, 1  ;;  %v4316_v0 = vshrl.u32 %v16406_v24, 16  ;;  %v4319_v29 = vshll.u32 %v16406_v24, 16  ;;  %v16410_v7 = vrot.slane %v4300_v53, 1 }
 0x35b   : > { %v16412_v58 = vrot.slane %v4303_v62, 2 }
 0x35c   : > { %v13083_v37 = vpop.f32.mrb[60].mxu0  ;;  %v4353_v47 = vor.u32 %v4352_v5, %v4300_v53  ;;  %v4356_v59 = vrot.slane %v4319_v29, 1  ;;  %v16425_v46 = vrot.slane %v4316_v0, 1  ;;  %v16427_v36 = vrot.slane %v4319_v29, 2  ;;  %v13575_v5 = vld [vmem:[%s19302_s5 + $0x38] sm:$0xff]  }
 0x35d   : > { %v13084_v22 = vpop.f32.mrb[61].mxu0  ;;  %v4306_v50 = vor.u32 %v16412_v58, %v16410_v7  ;;  %v4271_v53 = vrot.slane %v4269_v21, 1  ;;  %13174 = vmatpush3.bf16.msra.mxu0 %v13575_v5 }
 0x35e   : > { %v13085_v52 = vadd.f32 %v13084_v22, %v13083_v37  ;;  %v13086_v23 = vpop.f32.mrb[62].mxu0  ;;  %4354 = vrot.lane.b32.xlu1 %v4353_v47, %s14871_s17  ;;  %v4357_v25 = vor.u32 %v4356_v59, %v4316_v0  ;;  %v4322_v35 = vor.u32 %v16427_v36, %v16425_v46  ;;  %v16501_v47 = vld [vmem:[#allocation3 + $0x8] sm:$0x3c]   ;;  %v13578_v59 = vld [vmem:[%s19302_s5 + $0xc8] sm:$0xff]  }
 0x35f   : > { %v13087_v51 = vpop.f32.mrb[63].mxu0  ;;  %13201 = vmatprep.subr.bf16.mxu1 %v13578_v59  ;;  %v4330_v2 = vrot.slane %v16501_v47, 2 }
 0x360   : > { %v13088_v18 = vadd.f32 %v13087_v51, %v13086_v23  ;;  %4358 = vrot.lane.b32.xlu0 %v4357_v25, %s14871_s17  ;;  %v4071_v42 = vadd.f32 %v13085_v52, %v16387_v57  ;;  %v4267_v25 = vshrl.u32 %v11918_v4, 16 }
 0x362   : > { %v4074_v45 = vadd.f32 %v13088_v18, %v16387_v57  ;;  %v13579_v18 = vld [vmem:[%s19302_s5 + $0x88] sm:$0xff]   ;;  %v4272_v40 = vor.u32 %v4271_v53, %v4267_v25 }
 0x363   : > { %13202 = vmatpush3.bf16.msra.mxu1 %v13579_v18 }
 0x364   : > { %13203 = vmatprep.subr.bf16.mxu1 %v13580_v17 }
 0x36d   : > { %v13135_v14 = vpop.f32.mrb[60].mxu1 }
 0x36e   : > { %v13136_v26 = vpop.f32.mrb[61].mxu1 }
 0x36f   : > { %v13137_v43 = vadd.f32 %v13136_v26, %v13135_v14  ;;  %v13138_v20 = vpop.f32.mrb[62].mxu1 }
 0x370   : > { %v13139_v61 = vpop.f32.mrb[63].mxu1 }
 0x371   : > { %v4151_v49 = vadd.f32 %v13137_v43, %v4071_v42  ;;  %v13140_v16 = vadd.f32 %v13139_v61, %v13138_v20  ;;  %v13581_v42 = vld [vmem:[%s19302_s5 + $0x90] sm:$0xff]  }
 0x372   : > { %13204 = vmatpush3.bf16.msra.mxu1 %v13581_v42 }
 0x373   : > { %v4184_v6 = vmax.f32 %v4151_v49, 0.0  ;;  %v4154_v28 = vadd.f32 %v13140_v16, %v4074_v45  ;;  %v13583_v45 = vld [vmem:[%s19302_s5 + $0x98] sm:$0xff]   ;;  %13205 = vmatprep.subr.bf16.mxu1 %v13582_v55  ;;  %v13585_v55 = vld [vmem:[%s19302_s5 + $0xe0] sm:$0xff]  }
 0x375   : > { %v12853_v63 = vpack.c.bf16 %v4184_v6, %v4184_v6  ;;  %v4185_v27 = vmax.f32 %v4154_v28, 0.0 }
 0x376   : > { %13206 = vmatpush3.bf16.msra.mxu1 %v13583_v45 }
 0x377   : > { %4241 = vst.msk [vmem:[#allocation3 + $0x10] sm:$0xf] %vm4236_vm9, %v12853_v63  ;;  %v12854_v33 = vpack.c.bf16 %v4185_v27, %v4185_v27  ;;  %13207 = vmatprep.subr.bf16.mxu1 %v13585_v55 }
 0x379   : > { %4242 = vst.msk [vmem:[#allocation3 + $0x14] sm:$0xf] %vm4236_vm9, %v12854_v33 }
 0x37e   : > { %v16477_v31 = vld [vmem:[#allocation3 + $0xc] sm:$0x1e]  }
 0x37f   : > { %v16479_v15 = vld [vmem:[#allocation3 + $0xc] sm:$0x3c]   ;;  %v4410_v54 = vshll.u32 %v16477_v31, 16  ;;  %v4408_v12 = vshrl.u32 %v16477_v31, 16 }
 0x380   : > { %v16482_v44 = vld [vmem:[#allocation3 + $0x10] sm:$0x3c]   ;;  %v4385_v62 = vshll.u32 %v16479_v15, 16  ;;  %v11936_v14 = vrot.slane %v16479_v15, 7  ;;  %v4382_v26 = vshrl.u32 %v16479_v15, 16 }
 0x381   : > { %v4412_v30 = vrot.slane %v4410_v54, 1  ;;  %v4427_v9 = vshll.u32 %v16482_v44, 16  ;;  %v4424_v32 = vshrl.u32 %v16482_v44, 16  ;;  %v16493_v19 = vld [vmem:[#allocation3 + $0x10] sm:$0x78]  }
 0x382   : > { %v4452_v1 = vrot.slane %v4385_v62, 1  ;;  %v4438_v10 = vrot.slane %v16493_v19, 2  ;;  %v4727_v43 = vsel %vm16517_vm14, %v4330_v2, %v11936_v14 }
 0x383   : > { %v4413_v29 = vor.u32 %v4412_v30, %v4408_v12  ;;  %v4456_v37 = vrot.slane %v4427_v9, 1 }
 0x384   : > { %v16529_v60 = vrot.slane %v4438_v10, 2  ;;  %v4453_v20 = vor.u32 %v4452_v1, %v4382_v26 }
 0x385   : > { %v13089_v0 = vpop.f32.mrb[64].mxu0  ;;  %4414 = vrot.lane.b32.xlu0 %v4413_v29, %s14871_s17  ;;  %v4457_v51 = vor.u32 %v4456_v37, %v4424_v32 }
 0x386   : > { %v13090_v22 = vpop.f32.mrb[65].mxu0  ;;  %v16543_v61 = vsel %vm904_vm3, %v4727_v43, %v16529_v60 }
 0x387   : > { %v13091_v52 = vadd.f32 %v13090_v22, %v13089_v0  ;;  %v13092_v23 = vpop.f32.mrb[66].mxu0  ;;  %4458 = vrot.lane.b32.xlu1 %v4457_v51, %s14871_s17 }
 0x388   : > { %v13093_v56 = vpop.f32.mrb[67].mxu0 }
 0x389   : > { %v13094_v41 = vadd.f32 %v13093_v56, %v13092_v23  ;;  %4273 = vrot.lane.b32.xlu0 %v4272_v40, %s14871_s17  ;;  %v4079_v6 = vadd.f32 %v13091_v52, %v16387_v57  ;;  %v16556_v23 = vld [vmem:[%s19302_s5 + $0x100] sm:$0xff]  }
 0x38a   : > { %13247 = vmatprep.subr.bf16.mxu0 %v16556_v23 }
 0x38b   : > { %v4082_v33 = vadd.f32 %v13094_v41, %v16387_v57 }
 0x38d   : > { %4454 = vrot.lane.b32.xlu0 %v4453_v20, %s14871_s17 }
 0x3a0   : > { %v13141_v49 = vpop.f32.mrb[64].mxu1 }
 0x3a1   : > { %v13142_v16 = vpop.f32.mrb[65].mxu1 }
 0x3a2   : > { %v13143_v28 = vadd.f32 %v13142_v16, %v13141_v49  ;;  %v13144_v63 = vpop.f32.mrb[66].mxu1 }
 0x3a3   : > { %v13145_v27 = vpop.f32.mrb[67].mxu1 }
 0x3a4   : > { %v4159_v4 = vadd.f32 %v13143_v28, %v4079_v6  ;;  %v13146_v3 = vadd.f32 %v13145_v27, %v13144_v63  ;;  %v13095_v39 = vpop.f32.mrb[68].mxu0 }
 0x3a5   : > { %v13096_v21 = vpop.f32.mrb[69].mxu0 }
 0x3a6   : > { %v4186_v54 = vmax.f32 %v4159_v4, 0.0  ;;  %v4162_v12 = vadd.f32 %v13146_v3, %v4082_v33  ;;  %v13097_v30 = vadd.f32 %v13096_v21, %v13095_v39  ;;  %v13098_v53 = vpop.f32.mrb[70].mxu0 }
 0x3a7   : > { %v13099_v5 = vpop.f32.mrb[71].mxu0 }
 0x3a8   : > { %v12855_v0 = vpack.c.bf16 %v4186_v54, %v4186_v54  ;;  %v4187_v29 = vmax.f32 %v4162_v12, 0.0  ;;  %v13100_v37 = vadd.f32 %v13099_v5, %v13098_v53  ;;  %v4087_v51 = vadd.f32 %v13097_v30, %v16387_v57  ;;  %v13586_v53 = vld [vmem:[%s19302_s5 + $0xa0] sm:$0xff]  }
 0x3a9   : > { %13208 = vmatpush3.bf16.msra.mxu1 %v13586_v53  ;;  %v4464_v53 = vshll.u32 %v16493_v19, 16 }
 0x3aa   : > { %4243 = vst.msk [vmem:[#allocation3 + $0x18] sm:$0xf] %vm4236_vm9, %v12855_v0  ;;  %v12856_v13 = vpack.c.bf16 %v4187_v29, %v4187_v29  ;;  %v4090_v17 = vadd.f32 %v13100_v37, %v16387_v57 }
 0x3ac   : > { %4244 = vst.msk [vmem:[#allocation3 + $0x1c] sm:$0xf] %vm4236_vm9, %v12856_v13  ;;  %v13101_v8 = vpop.f32.mrb[72].mxu0  ;;  %v13147_v22 = vpop.f32.mrb[68].mxu1  ;;  %v13588_v13 = vld [vmem:[%s19302_s5 + $0xe8] sm:$0xff]  }
 0x3ad   : > { %v13102_v59 = vpop.f32.mrb[73].mxu0  ;;  %v13148_v52 = vpop.f32.mrb[69].mxu1  ;;  %13209 = vmatprep.subr.bf16.mxu1 %v13588_v13 }
 0x3ae   : > { %v13103_v25 = vadd.f32 %v13102_v59, %v13101_v8  ;;  %v13149_v56 = vadd.f32 %v13148_v52, %v13147_v22  ;;  %v13104_v18 = vpop.f32.mrb[74].mxu0  ;;  %v13150_v41 = vpop.f32.mrb[70].mxu1  ;;  %v13589_v22 = vld [vmem:[%s19302_s5 + $0xa8] sm:$0xff]  }
 0x3af   : > { %v13105_v40 = vpop.f32.mrb[75].mxu0  ;;  %v13151_v1 = vpop.f32.mrb[71].mxu1  ;;  %13210 = vmatpush3.bf16.msra.mxu1 %v13589_v22 }
 0x3b0   : > { %v4167_v10 = vadd.f32 %v13149_v56, %v4087_v51  ;;  %v13152_v2 = vadd.f32 %v13151_v1, %v13150_v41  ;;  %v4095_v39 = vadd.f32 %v13103_v25, %v16387_v57  ;;  %v4250_v56 = vld [vmem:[#allocation3 + $0x28] sm:$0x1]  ;;  %v4384_v41 = vrot.slane %v4382_v26, 1 }
 0x3b1   : > { %v16561_v14 = vld [vmem:[#allocation3 + $0x14] sm:$0x3c]   ;;  %v4387_v40 = vrot.slane %v4385_v62, 2 }
 0x3b2   : > { %v4188_v42 = vmax.f32 %v4167_v10, 0.0  ;;  %v4170_v43 = vadd.f32 %v13152_v2, %v4090_v17  ;;  %v16563_v20 = vld [vmem:[#allocation3 + $0x14] sm:$0x78]   ;;  %v4508_v45 = vshll.u32 %v16561_v14, 16  ;;  %v4506_v33 = vshrl.u32 %v16561_v14, 16 }
 0x3b3   : > { %v16569_v49 = vld [vmem:[#allocation3 + $0x18] sm:$0x78]   ;;  %v4485_v63 = vshll.u32 %v16563_v20, 16  ;;  %v4482_v52 = vshrl.u32 %v16563_v20, 16  ;;  %v4361_v2 = vshrl.u32 %v16501_v47, 16 }
 0x3b4   : > { %v12857_v16 = vpack.c.bf16 %v4188_v42, %v4188_v42  ;;  %v4189_v6 = vmax.f32 %v4170_v43, 0.0  ;;  %v13153_v28 = vpop.f32.mrb[72].mxu1  ;;  %v4510_v4 = vrot.slane %v4508_v45, 1  ;;  %v4525_v3 = vshll.u32 %v16569_v49, 16  ;;  %v16584_v57 = vld [vmem:[#allocation3 + $0x1c] ss:$0 sps:$4 sm:$0xff]  }
 0x3b5   : > { %v13154_v27 = vpop.f32.mrb[73].mxu1  ;;  %v4522_v30 = vshrl.u32 %v16569_v49, 16  ;;  %v4547_v37 = vrot.slane %v4485_v63, 1  ;;  %v4534_v17 = vrot.slane %v16584_v57, 6  ;;  %v4364_v42 = vshll.u32 %v16501_v47, 16 }
 0x3b6   : > { %4245 = vst.msk [vmem:[#allocation3 + $0x20] sm:$0xf] %vm4236_vm9, %v12857_v16  ;;  %v12858_v21 = vpack.c.bf16 %v4189_v6, %v4189_v6  ;;  %v13155_v54 = vadd.f32 %v13154_v27, %v13153_v28  ;;  %v13156_v12 = vpop.f32.mrb[74].mxu1  ;;  %v4511_v0 = vor.u32 %v4510_v4, %v4506_v33  ;;  %v4551_v29 = vrot.slane %v4525_v3, 1  ;;  %v13590_v4 = vld [vmem:[%s19302_s5 + $0xf0] sm:$0xff]  }
 0x3b7   : > { %v13157_v5 = vpop.f32.mrb[75].mxu1  ;;  %v4548_v18 = vor.u32 %v4547_v37, %v4482_v52  ;;  %v11937_v43 = vrot.slane %v16563_v20, 9  ;;  %v4687_v45 = vrot.slane %v4534_v17, 4  ;;  %v4388_v6 = vor.u32 %v4387_v40, %v4384_v41  ;;  %13211 = vmatprep.subr.bf16.mxu1 %v13590_v4 }
 0x3b8   : > { %4246 = vst.msk [vmem:[#allocation3 + $0x24] sm:$0xf] %vm4236_vm9, %v12858_v21  ;;  %v4175_v8 = vadd.f32 %v13155_v54, %v4095_v39  ;;  %4512 = vrot.lane.b32.xlu1 %v4511_v0, %s14871_s17  ;;  %v4552_v59 = vor.u32 %v4551_v29, %v4522_v30  ;;  %v4426_v28 = vrot.slane %v4424_v32, 1  ;;  %v4429_v27 = vrot.slane %v4427_v9, 2  ;;  %v13592_v39 = vld [vmem:[%s19302_s5 + $0xb0] sm:$0xff]   ;;  %v13593_v54 = vld [vmem:[%s19302_s5 + $0xf8] sm:$0xff]  }
 0x3b9   : > { %v4754_v16 = vsel %vm16609_vm12, %v16529_v60, %v11937_v43  ;;  %v4461_v12 = vshrl.u32 %v16493_v19, 16  ;;  %v4363_v37 = vrot.slane %v4361_v2, 1  ;;  %v4366_v13 = vrot.slane %v4364_v42, 2  ;;  %13212 = vmatpush3.bf16.msra.mxu1 %v13592_v39  ;;  %v13550_v39 = vld [vmem:[#allocation3] sm:$0x1e]  }
 0x3ba   : > { %v4190_v51 = vmax.f32 %v4175_v8, 0.0  ;;  %4553 = vrot.lane.b32.xlu0 %v4552_v59, %s14871_s17  ;;  %v16639_v60 = vsel %vm923_vm6, %v4754_v16, %v4687_v45  ;;  %v4430_v0 = vor.u32 %v4429_v27, %v4426_v28  ;;  %v13594_v8 = vld [vmem:[%s19302_s5 + $0xb8] sm:$0xff]   ;;  %13213 = vmatprep.subr.bf16.mxu1 %v13593_v54  ;;  %v4487_v2 = vrot.slane %v4485_v63, 2  ;;  %v13621_v9 = vld [vmem:[%s19304_s7] ss:$16 sps:$4 sm:$0xff]  }
 0x3bb   : > { %v4463_v59 = vrot.slane %v4461_v12, 1  ;;  %v4524_v58 = vrot.slane %v4522_v30, 1  ;;  %v4556_v63 = vshrl.u32 %v16584_v57, 16  ;;  %v4559_v28 = vshll.u32 %v16584_v57, 16 }
 0x3bc   : > { %v12859_v10 = vpack.c.bf16 %v4190_v51, %v4190_v51  ;;  %4549 = vrot.lane.b32.xlu1 %v4548_v18, %s14871_s17  ;;  %v4466_v51 = vrot.slane %v4464_v53, 2  ;;  %v4298_v4 = vrot.slane %v16402_v48, 1  ;;  %v4406_v12 = vrot.slane %v16501_v47, 1 }
 0x3bd   : > { %v16618_v26 = vld [vmem:[#allocation3 + $0x1c] sm:$0x78]   ;;  %13214 = vmatpush3.bf16.msra.mxu1 %v13594_v8  ;;  %v4561_v27 = vrot.slane %v4559_v28, 6  ;;  %v4280_v53 = vrot.slane %v13550_v39, 1  ;;  %v4475_v48 = vrot.slane %v16561_v14, 1 }
 0x3be   : > { %v4251_v62 = vsel %vm16599_vm11, %v12859_v10, %v4250_v56  ;;  %v16622_v55 = vld [vmem:[#allocation3 + $0x20] ss:$0 sps:$4 sm:$0xff]   ;;  %v4601_v33 = vshll.u32 %v16618_v26, 16  ;;  %v4599_v32 = vshrl.u32 %v16618_v26, 16  ;;  %v4367_v56 = vor.u32 %v4366_v13, %v4363_v37 }
 0x3bf   : > { %4252 = vst [vmem:[#allocation3 + $0x28] sm:$0x1] %v4251_v62  ;;  %v11938_v5 = vrot.slane %v16622_v55, 7  ;;  %v4575_v18 = vshrl.u32 %v16622_v55, 16  ;;  %v4578_v41 = vshll.u32 %v16622_v55, 16  ;;  %v4467_v17 = vor.u32 %v4466_v51, %v4463_v59 }
 0x3c0   : > { %4389 = vrot.lane.b32.xlu1 %v4388_v6, %s14871_s17  ;;  %v4603_v21 = vrot.slane %v4601_v33, 1  ;;  %v16665_v40 = vld [vmem:[#allocation3 + $0x24] ss:$0 sps:$4 sm:$0xff]   ;;  %v4484_v10 = vrot.slane %v4482_v52, 1  ;;  %v4292_v33 = vpop.permute.xlu1 %4291 }
 0x3c1   : > { %v16659_v22 = vsel %vm16644_vm13, %v4687_v45, %v11938_v5  ;;  %v4577_v42 = vrot.slane %v4575_v18, 5  ;;  %v4580_v43 = vrot.slane %v4578_v41, 6  ;;  %v4613_v62 = vshrl.u32 %v16665_v40, 16 }
 0x3c2   : > { %v4604_v29 = vor.u32 %v4603_v21, %v4599_v32  ;;  %v4616_v45 = vshll.u32 %v16665_v40, 16  ;;  %v4488_v7 = vor.u32 %v4487_v2, %v4484_v10  ;;  %v4338_v37 = vsel %vm556_vm0, %v4280_v53, %v4292_v33  ;;  %v13591_v2 = vld [vmem:[%s19302_s5 + $0x110] sm:$0xff]  }
 0x3c3   : > { %v4581_v52 = vor.u32 %v4580_v43, %v4577_v42  ;;  %v4615_v16 = vrot.slane %v4613_v62, 5  ;;  %v4416_v62 = vrot.slane %v16479_v15, 1 }
 0x3c4   : > { %4431 = vrot.lane.b32.xlu1 %v4430_v0, %s14871_s17  ;;  %4605 = vrot.lane.b32.xlu0 %v4604_v29, %s14871_s17  ;;  %v4618_v6 = vrot.slane %v4616_v45, 6 }
 0x3c6   : > { %v4619_v46 = vor.u32 %v4618_v6, %v4615_v16  ;;  %v4514_v6 = vrot.slane %v16563_v20, 1 }
 0x3c8   : > { %4307 = vrot.lane.b32.xlu1 %v4306_v50, %s14871_s17  ;;  %4368 = vrot.lane.b32.xlu0 %v4367_v56, %s14871_s17  ;;  %v4527_v50 = vrot.slane %v4525_v3, 2 }
 0x3ca   : > { %v4528_v36 = vor.u32 %v4527_v50, %v4524_v58  ;;  %v4504_v50 = vrot.slane %v16493_v19, 1 }
 0x3cc   : > { %4468 = vrot.lane.b32.xlu1 %v4467_v17, %s14871_s17  ;;  %4323 = vrot.lane.b32.xlu0 %v4322_v35, %s14871_s17  ;;  %v4558_v35 = vrot.slane %v4556_v63, 5  ;;  %v13587_v17 = vld [vmem:[%s19302_s5 + $0x108] sm:$0xff]  }
 0x3ce   : > { %v4562_v3 = vor.u32 %v4561_v27, %v4558_v35 }
 0x3d0   : > { %4582 = vrot.lane.b32.xlu1 %v4581_v52, %s14871_s17  ;;  %4489 = vrot.lane.b32.xlu0 %v4488_v7, %s14871_s17  ;;  %v4355_v21 = vpop.permute.xlu1 %4354 }
 0x3d1   : > { %v4394_v0 = vsel %vm556_vm0, %v16393_v38, %v4355_v21 }
 0x3d2   : > { %v4359_v30 = vpop.permute.xlu0 %4358  ;;  %v4641_v51 = vrot.slane %v4394_v0, 5 }
 0x3d3   : > { %v4396_v32 = vsel %vm556_vm0, %v4298_v4, %v4359_v30  ;;  %v4439_v13 = vsel %vm556_vm0, %v16406_v24, %v4359_v30 }
 0x3d4   : > { %4620 = vrot.lane.b32.xlu1 %v4619_v46, %s14871_s17  ;;  %4529 = vrot.lane.b32.xlu0 %v4528_v36, %s14871_s17  ;;  %v4642_v54 = vrot.slane %v4396_v32, 5  ;;  %v4655_v18 = vrot.slane %v4439_v13, 2 }
 0x3d6   : > { %v4724_v59 = vsel %vm16517_vm14, %v4338_v37, %v4642_v54  ;;  %v4597_v54 = vrot.slane %v16584_v57, 5 }
 0x3d8   : > { %4563 = vrot.lane.b32.xlu0 %v4562_v3, %s14871_s17 }
 0x3f7   : > { %v4415_v5 = vpop.permute.xlu0 %4414 }
 0x3f8   : > { %v4442_v29 = vsel %vm556_vm0, %v4406_v12, %v4415_v5 }
 0x3f9   : > { %v4656_v8 = vrot.slane %v4442_v29, 2  ;;  %v4459_v43 = vpop.permute.xlu1 %4458 }
 0x3fa   : > { %v4495_v45 = vsel %vm556_vm0, %v4416_v62, %v4459_v43  ;;  %v4535_v63 = vsel %vm556_vm0, %v16482_v44, %v4459_v43 }
 0x3fb   : > { %v4274_v56 = vpop.permute.xlu0 %4273  ;;  %v4734_v47 = vsel %vm904_vm3, %v4724_v59, %v4656_v8  ;;  %v4670_v58 = vrot.slane %v4495_v45, 7  ;;  %v4683_v36 = vrot.slane %v4535_v63, 4  ;;  %v4314_v59 = vrot.slane %v16406_v24, 1 }
 0x3fc   : > { %v4334_v41 = vsel %vm556_vm0, %v16465_v34, %v4274_v56  ;;  %5136 = vmatprep.mubr.bf16.mxu0 %v4734_v47  ;;  %v13595_v34 = vld [vmem:[%s19302_s5 + $0x118] sm:$0xff]  }
 0x3fd   : > { %v4723_v38 = vsel %vm16517_vm14, %v4334_v41, %v4641_v51  ;;  %v4751_v27 = vsel %vm16609_vm12, %v4656_v8, %v4670_v58  ;;  %v4375_v8 = vrot.slane %v16477_v31, 1  ;;  %v4422_v51 = vrot.slane %v16482_v44, 1  ;;  %v13596_v58 = vld [vmem:[#allocation3 + $0x24] sm:$0x1e]  }
 0x3fe   : > { %v4730_v10 = vsel %vm904_vm3, %v4723_v38, %v4655_v18 }
 0x3ff   : > { %5137 = vmatmul.mubr.bf16.vlgmr.msra.gmra.mrb[76].mxu0 %v4730_v10  ;;  %v4455_v42 = vpop.permute.xlu0 %4454 }
 0x400   : > { %13248 = vmatpush3.bf16.msra.mxu0 %v16556_v23  ;;  %v4493_v23 = vsel %vm556_vm0, %v16477_v31, %v4455_v42 }
 0x401   : > { %13249 = vmatprep.subr.bf16.mxu0 %v13587_v17  ;;  %v4669_v7 = vrot.slane %v4493_v23, 7 }
 0x403   : > { %v4750_v15 = vsel %vm16609_vm12, %v4655_v18, %v4669_v7 }
 0x404   : > { %13250 = vmatpush3.bf16.msra.mxu0 %v13587_v17  ;;  %v4757_v33 = vsel %vm923_vm6, %v4750_v15, %v4683_v36  ;;  %v4570_v15 = vrot.slane %v16618_v26, 1 }
 0x405   : > { %13251 = vmatprep.subr.bf16.mxu0 %v13591_v2 }
 0x408   : > { %13252 = vmatpush3.bf16.msra.mxu0 %v13591_v2 }
 0x409   : > { %13253 = vmatprep.subr.bf16.mxu0 %v13595_v34 }
 0x40c   : > { %13254 = vmatpush3.bf16.msra.mxu0 %v13595_v34 }
 0x42a   : > { %v4513_v52 = vpop.permute.xlu1 %4512 }
 0x42b   : > { %v4538_v16 = vsel %vm556_vm0, %v4504_v50, %v4513_v52 }
 0x42c   : > { %v4684_v28 = vrot.slane %v4538_v16, 4  ;;  %v4554_v46 = vpop.permute.xlu0 %4553 }
 0x42d   : > { %v4588_v35 = vsel %vm556_vm0, %v4514_v6, %v4554_v46  ;;  %v4628_v12 = vsel %vm556_vm0, %v16569_v49, %v4554_v46 }
 0x42e   : > { %v4698_v19 = vrot.slane %v4588_v35, 1  ;;  %v4550_v3 = vpop.permute.xlu1 %4549  ;;  %v4761_v30 = vsel %vm923_vm6, %v4751_v27, %v4684_v28  ;;  %v4711_v13 = vrot.slane %v4628_v12, 6  ;;  %v4627_v35 = vrot.slane %v13596_v58, 6  ;;  %v13645_v58 = vld [vmem:[%s19304_s7 + $0x80] ss:$16 sps:$4 sm:$0xff]  }
 0x42f   : > { %5144 = vmatprep.mubr.bf16.mxu0 %v4761_v30  ;;  %v4586_v39 = vsel %vm556_vm0, %v16561_v14, %v4550_v3 }
 0x430   : > { %5145 = vmatmul.mubr.bf16.gmra.mrb[80].mxu0 %v4757_v33  ;;  %v4778_v20 = vsel %vm16644_vm13, %v4684_v28, %v4698_v19  ;;  %v4697_v21 = vrot.slane %v4586_v39, 1  ;;  %v4611_v19 = vrot.slane %v16665_v40, 5  ;;  %v4607_v33 = vrot.slane %v16622_v55, 5 }
 0x432   : > { %v4390_v32 = vpop.permute.xlu1 %4389  ;;  %v4777_v37 = vsel %vm16644_vm13, %v4683_v36, %v4697_v21  ;;  %v4520_v36 = vrot.slane %v16569_v49, 1 }
 0x433   : > { %v4401_v18 = vsel %vm556_vm0, %v4375_v8, %v4390_v32  ;;  %v4784_v38 = vsel %vm892_vm1, %v4777_v37, %v4711_v13  ;;  %v4444_v31 = vsel %vm556_vm0, %v4416_v62, %v4390_v32 }
 0x434   : > { %v4644_v24 = vrot.slane %v4401_v18, 5  ;;  %v4657_v7 = vrot.slane %v4444_v31, 2  ;;  %v13624_v18 = vld [vmem:[%s19304_s7 + $0x8] ss:$16 sps:$4 sm:$0xff]  }
 0x435   : > { %v13630_v31 = vld [vmem:[%s19304_s7 + $0x28] ss:$16 sps:$4 sm:$0xff]  }
 0x436   : > { %v4606_v53 = vpop.permute.xlu0 %4605  ;;  %v4432_v5 = vpop.permute.xlu1 %4431 }
 0x437   : > { %v4631_v0 = vsel %vm556_vm0, %v4597_v54, %v4606_v53  ;;  %v4447_v17 = vsel %vm556_vm0, %v4422_v51, %v4432_v5  ;;  %v4715_v54 = vrot.slane %v4627_v35, 6  ;;  %v13663_v35 = vld [vmem:[%s19304_s7 + $0xe0] ss:$16 sps:$4 sm:$0xff]  }
 0x438   : > { %v4712_v29 = vrot.slane %v4631_v0, 6  ;;  %v4658_v42 = vrot.slane %v4447_v17, 2  ;;  %v13632_v17 = vld [vmem:[%s19304_s7 + $0x2c] ss:$16 sps:$4 sm:$0xff]  }
 0x439   : > { %v4800_v1 = vsel %vm892_vm1, %v16659_v22, %v4715_v54 }
 0x43a   : > { %v4369_v56 = vpop.permute.xlu0 %4368  ;;  %v4308_v57 = vpop.permute.xlu1 %4307  ;;  %v4788_v47 = vsel %vm892_vm1, %v4778_v20, %v4712_v29 }
 0x43b   : > { %v4398_v41 = vsel %vm556_vm0, %v4314_v59, %v4369_v56  ;;  %5152 = vmatprep.mubr.bf16.mxu0 %v4788_v47  ;;  %v4342_v44 = vsel %vm556_vm0, %v4298_v4, %v4308_v57  ;;  %v13623_v47 = vld [vmem:[%s19304_s7 + $0x4] ss:$16 sps:$4 sm:$0xff]  }
 0x43c   : > { %v4643_v10 = vrot.slane %v4398_v41, 5  ;;  %5153 = vmatmul.mubr.bf16.gmra.mrb[84].mxu0 %v4784_v38  ;;  %v13626_v41 = vld [vmem:[%s19304_s7 + $0xc] ss:$16 sps:$4 sm:$0xff]   ;;  %v13629_v38 = vld [vmem:[%s19304_s7 + $0x24] ss:$16 sps:$4 sm:$0xff]   ;;  %10419 = vmatprep.subr.bf16.mxu1 %v13623_v47 }
 0x43d   : > { %5160 = vmatprep.mubr.bf16.mxu0 %v4712_v29  ;;  %10952 = vmatprep.subr.bf16.mxu0 %v13626_v41  ;;  %v13696_v47 = vld [vmem:[%s19304_s7 + $0x188] ss:$16 sps:$4 sm:$0xff]  }
 0x43e   : > { %v4324_v2 = vpop.permute.xlu0 %4323  ;;  %v4469_v34 = vpop.permute.xlu1 %4468  ;;  %v4725_v43 = vsel %vm16517_vm14, %v4342_v44, %v4643_v10  ;;  %v13627_v10 = vld [vmem:[%s19304_s7 + $0x20] ss:$16 sps:$4 sm:$0xff]   ;;  %v13638_v44 = vld [vmem:[%s19304_s7 + $0x4c] ss:$16 sps:$4 sm:$0xff]  }
 0x43f   : > { %v4346_v23 = vsel %vm556_vm0, %v4314_v59, %v4324_v2  ;;  %v4497_v45 = vsel %vm556_vm0, %v4422_v51, %v4469_v34  ;;  %v4738_v16 = vsel %vm904_vm3, %v4725_v43, %v4657_v7  ;;  %v13633_v2 = vld [vmem:[%s19304_s7 + $0x40] ss:$16 sps:$4 sm:$0xff]   ;;  %v13636_v34 = vld [vmem:[%s19304_s7 + $0x48] ss:$16 sps:$4 sm:$0xff]   ;;  %v13644_v43 = vld [vmem:[%s19304_s7 + $0x6c] ss:$16 sps:$4 sm:$0xff]  }
 0x440   : > { %v4726_v62 = vsel %vm16517_vm14, %v4346_v23, %v4644_v24  ;;  %v4671_v50 = vrot.slane %v4497_v45, 7  ;;  %v13635_v24 = vld [vmem:[%s19304_s7 + $0x44] ss:$16 sps:$4 sm:$0xff]   ;;  %v13639_v23 = vld [vmem:[%s19304_s7 + $0x60] ss:$16 sps:$4 sm:$0xff]  }
 0x441   : > { %v4742_v4 = vsel %vm904_vm3, %v4726_v62, %v4658_v42  ;;  %v13642_v45 = vld [vmem:[%s19304_s7 + $0x68] ss:$16 sps:$4 sm:$0xff]   ;;  %v13650_v62 = vld [vmem:[%s19304_s7 + $0x8c] ss:$16 sps:$4 sm:$0xff]  }
 0x442   : > { %v4490_v63 = vpop.permute.xlu0 %4489  ;;  %5200 = vmatprep.mubr.bf16.mxu1 %v4742_v4  ;;  %v4583_v52 = vpop.permute.xlu1 %4582  ;;  %v4752_v3 = vsel %vm16609_vm12, %v4657_v7, %v4671_v50  ;;  %v13647_v7 = vld [vmem:[%s19304_s7 + $0x84] ss:$16 sps:$4 sm:$0xff]   ;;  %v13648_v50 = vld [vmem:[%s19304_s7 + $0x88] ss:$16 sps:$4 sm:$0xff]   ;;  %v13656_v4 = vld [vmem:[%s19304_s7 + $0xac] ss:$16 sps:$4 sm:$0xff]  }
 0x443   : > { %v4500_v28 = vsel %vm556_vm0, %v4475_v48, %v4490_v63  ;;  %v4540_v46 = vsel %vm556_vm0, %v4514_v6, %v4490_v63  ;;  %5201 = vmatmul.mubr.bf16.vlgmr.msra.gmra.mrb[76].mxu1 %v4738_v16  ;;  %v4593_v27 = vsel %vm556_vm0, %v4570_v15, %v4583_v52  ;;  %v4633_v40 = vsel %vm556_vm0, %v4607_v33, %v4583_v52  ;;  %v13653_v48 = vld [vmem:[%s19304_s7 + $0xa4] ss:$16 sps:$4 sm:$0xff]   ;;  %v13651_v63 = vld [vmem:[%s19304_s7 + $0xa0] ss:$16 sps:$4 sm:$0xff]   ;;  %v13654_v52 = vld [vmem:[%s19304_s7 + $0xa8] ss:$16 sps:$4 sm:$0xff]  }
 0x444   : > { %v4685_v11 = vrot.slane %v4540_v46, 4  ;;  %5161 = vmatmul.mubr.bf16.gmra.mrb[88].mxu0 %v4711_v13  ;;  %v4672_v14 = vrot.slane %v4500_v28, 7  ;;  %v4700_v39 = vrot.slane %v4593_v27, 1  ;;  %v4713_v37 = vrot.slane %v4633_v40, 6  ;;  %10420 = vmatpush1.bf16.msra.mxu1 %v13621_v9  ;;  %v13659_v16 = vld [vmem:[%s19304_s7 + $0xc4] ss:$16 sps:$4 sm:$0xff]  }
 0x445   : > { %13255 = vmatprep.mubr.msk.bf16.mxu0 %vm556_vm0, %v16543_v61  ;;  %10421 = vmatprep.subr.bf16.mxu1 %v13629_v38  ;;  %v13662_v28 = vld [vmem:[%s19304_s7 + $0xcc] ss:$16 sps:$4 sm:$0xff]   ;;  %v13657_v46 = vld [vmem:[%s19304_s7 + $0xc0] ss:$16 sps:$4 sm:$0xff]   ;;  %v13660_v15 = vld [vmem:[%s19304_s7 + $0xc8] ss:$16 sps:$4 sm:$0xff]  }
 0x446   : > { %v4530_v6 = vpop.permute.xlu0 %4529  ;;  %v4621_v30 = vpop.permute.xlu1 %4620  ;;  %v4765_v26 = vsel %vm923_vm6, %v4752_v3, %v4685_v11  ;;  %v4753_v61 = vsel %vm16609_vm12, %v4658_v42, %v4672_v14  ;;  %v13641_v42 = vld [vmem:[%s19304_s7 + $0x64] ss:$16 sps:$4 sm:$0xff]   ;;  %v13666_v14 = vld [vmem:[%s19304_s7 + $0xe8] ss:$16 sps:$4 sm:$0xff]   ;;  %v13669_v3 = vld [vmem:[%s19304_s7 + $0x100] ss:$16 sps:$4 sm:$0xff]  }
 0x447   : > { %v4543_v49 = vsel %vm556_vm0, %v4520_v36, %v4530_v6  ;;  %v4636_v20 = vsel %vm556_vm0, %v4611_v19, %v4621_v30  ;;  %v13671_v27 = vld [vmem:[%s19304_s7 + $0x104] ss:$16 sps:$4 sm:$0xff]   ;;  %v13674_v19 = vld [vmem:[%s19304_s7 + $0x10c] ss:$16 sps:$4 sm:$0xff]   ;;  %v13672_v6 = vld [vmem:[%s19304_s7 + $0x108] ss:$16 sps:$4 sm:$0xff]  }
 0x448   : > { %v4686_v32 = vrot.slane %v4543_v49, 4  ;;  %v4714_v21 = vrot.slane %v4636_v20, 6  ;;  %10422 = vmatpush1.bf16.msra.mxu1 %v13627_v10  ;;  %v13677_v30 = vld [vmem:[%s19304_s7 + $0x124] ss:$16 sps:$4 sm:$0xff]   ;;  %v13680_v33 = vld [vmem:[%s19304_s7 + $0x12c] ss:$16 sps:$4 sm:$0xff]  }
 0x449   : > { %10423 = vmatprep.subr.bf16.mxu1 %v13635_v24  ;;  %v13704_v38 = vld [vmem:[%s19304_s7 + $0x1ac] ss:$16 sps:$4 sm:$0xff]   ;;  %v13699_v10 = vld [vmem:[%s19304_s7 + $0x1a0] ss:$16 sps:$4 sm:$0xff]   ;;  %v13702_v24 = vld [vmem:[%s19304_s7 + $0x1a8] ss:$16 sps:$4 sm:$0xff]  }
 0x44a   : > { %v4564_v12 = vpop.permute.xlu0 %4563  ;;  %v4769_v53 = vsel %vm923_vm6, %v4753_v61, %v4686_v32  ;;  %v4780_v5 = vsel %vm16644_vm13, %v4686_v32, %v4700_v39  ;;  %v13675_v32 = vld [vmem:[%s19304_s7 + $0x120] ss:$16 sps:$4 sm:$0xff]   ;;  %v13683_v61 = vld [vmem:[%s19304_s7 + $0x144] ss:$16 sps:$4 sm:$0xff]  }
 0x44b   : > { %v4590_v55 = vsel %vm556_vm0, %v4520_v36, %v4564_v12  ;;  %5208 = vmatprep.mubr.bf16.mxu1 %v4769_v53  ;;  %v4796_v0 = vsel %vm892_vm1, %v4780_v5, %v4714_v21  ;;  %v13668_v36 = vld [vmem:[%s19304_s7 + $0xec] ss:$16 sps:$4 sm:$0xff]   ;;  %v13681_v53 = vld [vmem:[%s19304_s7 + $0x140] ss:$16 sps:$4 sm:$0xff]   ;;  %v13684_v5 = vld [vmem:[%s19304_s7 + $0x148] ss:$16 sps:$4 sm:$0xff]  }
 0x44c   : > { %v4699_v29 = vrot.slane %v4590_v55, 1  ;;  %5209 = vmatmul.mubr.bf16.gmra.mrb[80].mxu1 %v4765_v26  ;;  %13256 = vmatmul.mubr.msk.bf16.vlgmr.msra.gmra.mrb[92].mxu0 %vm556_vm0, %v16639_v60  ;;  %v13686_v12 = vld [vmem:[%s19304_s7 + $0x14c] ss:$16 sps:$4 sm:$0xff]   ;;  %v13689_v55 = vld [vmem:[%s19304_s7 + $0x164] ss:$16 sps:$4 sm:$0xff]  }
 0x44d   : > { %5216 = vmatprep.mubr.bf16.mxu1 %v4796_v0  ;;  %13259 = vmatprep.mubr.msk.bf16.mxu0 %vm556_vm0, %v4800_v1  ;;  %v13692_v0 = vld [vmem:[%s19304_s7 + $0x16c] ss:$16 sps:$4 sm:$0xff]   ;;  %v13690_v1 = vld [vmem:[%s19304_s7 + $0x168] ss:$16 sps:$4 sm:$0xff]  }
 0x44e   : > { %v4779_v13 = vsel %vm16644_vm13, %v4685_v11, %v4699_v29  ;;  %10953 = vmatpush1.bf16.msra.mxu0 %v13624_v18  ;;  %10424 = vmatpush1.bf16.msra.mxu1 %v13633_v2  ;;  %v13665_v11 = vld [vmem:[%s19304_s7 + $0xe4] ss:$16 sps:$4 sm:$0xff]   ;;  %v13687_v29 = vld [vmem:[%s19304_s7 + $0x160] ss:$16 sps:$4 sm:$0xff]  }
 0x44f   : > { %v4792_v8 = vsel %vm892_vm1, %v4779_v13, %v4713_v37  ;;  %10954 = vmatprep.subr.bf16.mxu0 %v13632_v17  ;;  %10425 = vmatprep.subr.bf16.mxu1 %v13641_v42  ;;  %v13701_v18 = vld [vmem:[%s19304_s7 + $0x1a4] ss:$16 sps:$4 sm:$0xff]   ;;  %v16976_v17 = vld [vmem:[%s19303_s6] ss:$0 sm:$0xff]  ;;  %v13710_v42 = vld [vmem:[%s19304_s7 + $0x1cc] ss:$16 sps:$4 sm:$0xff]  }
 0x452   : > { %10955 = vmatpush1.bf16.msra.mxu0 %v13630_v31  ;;  %10426 = vmatpush1.bf16.msra.mxu1 %v13639_v23 }
 0x453   : > { %10956 = vmatprep.subr.bf16.mxu0 %v13638_v44  ;;  %10427 = vmatprep.subr.bf16.mxu1 %v13647_v7  ;;  %v13707_v44 = vld [vmem:[%s19304_s7 + $0x1c4] ss:$16 sps:$4 sm:$0xff]  }
 0x454   : > { %5217 = vmatmul.mubr.bf16.gmra.mrb[84].mxu1 %v4792_v8  ;;  %13260 = vmatmul.mubr.msk.bf16.gmra.mrb[96].mxu0 %vm556_vm0, %v4715_v54  ;;  %v13678_v54 = vld [vmem:[%s19304_s7 + $0x128] ss:$16 sps:$4 sm:$0xff]   ;;  %v13698_v8 = vld [vmem:[%s19304_s7 + $0x18c] ss:$16 sps:$4 sm:$0xff]  }
 0x455   : > { %5224 = vmatprep.mubr.bf16.mxu1 %v4714_v21 }
 0x456   : > { %10957 = vmatpush1.bf16.msra.mxu0 %v13636_v34  ;;  %10428 = vmatpush1.bf16.msra.mxu1 %v13645_v58 }
 0x457   : > { %10958 = vmatprep.subr.bf16.mxu0 %v13644_v43  ;;  %10429 = vmatprep.subr.bf16.mxu1 %v13653_v48  ;;  %v13705_v48 = vld [vmem:[%s19304_s7 + $0x1c0] ss:$16 sps:$4 sm:$0xff]  }
 0x45a   : > { %10959 = vmatpush1.bf16.msra.mxu0 %v13642_v45  ;;  %10430 = vmatpush1.bf16.msra.mxu1 %v13651_v63 }
 0x45b   : > { %10960 = vmatprep.subr.bf16.mxu0 %v13650_v62  ;;  %10431 = vmatprep.subr.bf16.mxu1 %v13659_v16 }
 0x45c   : > { %5225 = vmatmul.mubr.bf16.gmra.mrb[88].mxu1 %v4713_v37  ;;  %v13695_v37 = vld [vmem:[%s19304_s7 + $0x184] ss:$16 sps:$4 sm:$0xff]  }
 0x45e   : > { %10961 = vmatpush1.bf16.msra.mxu0 %v13648_v50  ;;  %10432 = vmatpush1.bf16.msra.mxu1 %v13657_v46  ;;  %v13716_v46 = vld [vmem:[%s19304_s7 + $0x1ec] ss:$16 sps:$4 sm:$0xff]  }
 0x45f   : > { %10962 = vmatprep.subr.bf16.mxu0 %v13656_v4  ;;  %10433 = vmatprep.subr.bf16.mxu1 %v13665_v11  ;;  %v13714_v11 = vld [vmem:[%s19304_s7 + $0x1e8] ss:$16 sps:$4 sm:$0xff]  }
 0x462   : > { %10963 = vmatpush1.bf16.msra.mxu0 %v13654_v52  ;;  %10434 = vmatpush1.bf16.msra.mxu1 %v13663_v35 }
 0x463   : > { %10964 = vmatprep.subr.bf16.mxu0 %v13662_v28  ;;  %10435 = vmatprep.subr.bf16.mxu1 %v13671_v27  ;;  %v13713_v28 = vld [vmem:[%s19304_s7 + $0x1e4] ss:$16 sps:$4 sm:$0xff]  }
 0x466   : > { %10965 = vmatpush1.bf16.msra.mxu0 %v13660_v15  ;;  %10436 = vmatpush1.bf16.msra.mxu1 %v13669_v3 }
 0x467   : > { %10966 = vmatprep.subr.bf16.mxu0 %v13668_v36  ;;  %10437 = vmatprep.subr.bf16.mxu1 %v13677_v30 }
 0x46a   : > { %10967 = vmatpush1.bf16.msra.mxu0 %v13666_v14  ;;  %10438 = vmatpush1.bf16.msra.mxu1 %v13675_v32 }
 0x46b   : > { %10968 = vmatprep.subr.bf16.mxu0 %v13674_v19  ;;  %10439 = vmatprep.subr.bf16.mxu1 %v13683_v61 }
 0x46e   : > { %10969 = vmatpush1.bf16.msra.mxu0 %v13672_v6  ;;  %10440 = vmatpush1.bf16.msra.mxu1 %v13681_v53 }
 0x46f   : > { %10970 = vmatprep.subr.bf16.mxu0 %v13680_v33  ;;  %10441 = vmatprep.subr.bf16.mxu1 %v13689_v55 }
 0x472   : > { %10971 = vmatpush1.bf16.msra.mxu0 %v13678_v54  ;;  %10442 = vmatpush1.bf16.msra.mxu1 %v13687_v29 }
 0x473   : > { %10972 = vmatprep.subr.bf16.mxu0 %v13686_v12  ;;  %10443 = vmatprep.subr.bf16.mxu1 %v13695_v37 }
 0x476   : > { %10973 = vmatpush1.bf16.msra.mxu0 %v13684_v5 }
 0x477   : > { %10974 = vmatprep.subr.bf16.mxu0 %v13692_v0 }
 0x47a   : > { %10975 = vmatpush1.bf16.msra.mxu0 %v13690_v1 }
 0x47b   : > { %10976 = vmatprep.subr.bf16.mxu0 %v13698_v8 }
 0x47e   : > { %10977 = vmatpush1.bf16.msra.mxu0 %v13696_v47 }
 0x47f   : > { %10978 = vmatprep.subr.bf16.mxu0 %v13704_v38 }
 0x482   : > { %10979 = vmatpush1.bf16.msra.mxu0 %v13702_v24 }
 0x483   : > { %10980 = vmatprep.subr.bf16.mxu0 %v13710_v42 }
 0x4d2   : > { %v13175_v59 = vpop.f32.mrb[76].mxu0 }
 0x4d3   : > { %v13176_v51 = vpop.f32.mrb[77].mxu0 }
 0x4d4   : > { %v16799_v60 = vadd.f32 %v13176_v51, %v13175_v59  ;;  %v13178_v56 = vpop.f32.mrb[78].mxu0 }
 0x4d5   : > { %v13179_v22 = vpop.f32.mrb[79].mxu0 }
 0x4d6   : > { %v16801_v57 = vadd.f32 %v13179_v22, %v13178_v56  ;;  %v13693_v22 = vld [vmem:[%s19304_s7 + $0x180] ss:$16 sps:$4 sm:$0xff]   ;;  %v5139_v43 = vadd.f32 %v16799_v60, %v16976_v17  ;;  %v13708_v60 = vld [vmem:[%s19304_s7 + $0x1c8] ss:$16 sps:$4 sm:$0xff]  }
 0x4d7   : > { %10444 = vmatpush1.bf16.msra.mxu1 %v13693_v22  ;;  %10981 = vmatpush1.bf16.msra.mxu0 %v13708_v60 }
 0x4d8   : > { %10445 = vmatprep.subr.bf16.mxu1 %v13701_v18  ;;  %v5142_v4 = vadd.f32 %v16801_v57, %v16976_v17  ;;  %v13711_v57 = vld [vmem:[%s19304_s7 + $0x1e0] ss:$16 sps:$4 sm:$0xff]   ;;  %10982 = vmatprep.subr.bf16.mxu0 %v13716_v46 }
 0x4db   : > { %10446 = vmatpush1.bf16.msra.mxu1 %v13699_v10  ;;  %10983 = vmatpush1.bf16.msra.mxu0 %v13714_v11  ;;  %v13719_v10 = vld [vmem:[%s19304_s7 + $0x204] ss:$16 sps:$4 sm:$0xff]  }
 0x4dc   : > { %10447 = vmatprep.subr.bf16.mxu1 %v13707_v44 }
 0x4df   : > { %10448 = vmatpush1.bf16.msra.mxu1 %v13705_v48 }
 0x4e0   : > { %10449 = vmatprep.subr.bf16.mxu1 %v13713_v28 }
 0x4e3   : > { %10450 = vmatpush1.bf16.msra.mxu1 %v13711_v57 }
 0x4e4   : > { %10460 = vmatprep.subr.bf16.mxu1 %v13719_v10 }
 0x503   : > { %v13181_v26 = vpop.f32.mrb[80].mxu0 }
 0x504   : > { %v13182_v49 = vpop.f32.mrb[81].mxu0 }
 0x505   : > { %v16917_v20 = vadd.f32 %v13182_v49, %v13181_v26  ;;  %v13184_v39 = vpop.f32.mrb[82].mxu0 }
 0x506   : > { %v13185_v21 = vpop.f32.mrb[83].mxu0 }
 0x507   : > { %v16928_v40 = vadd.f32 %v13185_v21, %v13184_v39  ;;  %v5147_v19 = vadd.f32 %v16917_v20, %v16976_v17 }
 0x509   : > { %v5150_v33 = vadd.f32 %v16928_v40, %v16976_v17 }
 0x50f   : > { %v13187_v13 = vpop.f32.mrb[84].mxu0 }
 0x510   : > { %v13188_v59 = vpop.f32.mrb[85].mxu0 }
 0x511   : > { %v16957_v51 = vadd.f32 %v13188_v59, %v13187_v13  ;;  %v13190_v56 = vpop.f32.mrb[86].mxu0 }
 0x512   : > { %v13191_v9 = vpop.f32.mrb[87].mxu0 }
 0x513   : > { %v16968_v41 = vadd.f32 %v13191_v9, %v13190_v56  ;;  %v5155_v8 = vadd.f32 %v16957_v51, %v16976_v17 }
 0x516   : > { %v13215_v31 = vpop.f32.mrb[76].mxu1 }
 0x517   : > { %v13193_v2 = vpop.f32.mrb[88].mxu0  ;;  %v13216_v34 = vpop.f32.mrb[77].mxu1 }
 0x518   : > { %v13217_v23 = vadd.f32 %v13216_v34, %v13215_v31  ;;  %v13194_v45 = vpop.f32.mrb[89].mxu0  ;;  %v13218_v7 = vpop.f32.mrb[78].mxu1  ;;  %v5158_v31 = vadd.f32 %v16968_v41, %v16976_v17 }
 0x519   : > { %v16992_v62 = vadd.f32 %v13194_v45, %v13193_v2  ;;  %v13196_v58 = vpop.f32.mrb[90].mxu0  ;;  %v13219_v50 = vpop.f32.mrb[79].mxu1  ;;  %v13722_v2 = vld [vmem:[%s19304_s7 + $0x20c] ss:$16 sps:$4 sm:$0xff]  }
 0x51a   : > { %v13220_v63 = vadd.f32 %v13219_v50, %v13218_v7  ;;  %v13197_v52 = vpop.f32.mrb[91].mxu0  ;;  %v5203_v16 = vadd.f32 %v13217_v23, %v5139_v43  ;;  %10993 = vmatprep.subr.bf16.mxu0 %v13722_v2 }
 0x51b   : > { %v5163_v50 = vadd.f32 %v16992_v62, %v16976_v17 }
 0x51c   : > { %v5206_v15 = vadd.f32 %v13220_v63, %v5142_v4 }
 0x51f   : > { %v13221_v36 = vpop.f32.mrb[80].mxu1  ;;  %v13257_v35 = vpop.f32.mrb[92].mxu0 }
 0x520   : > { %v13222_v14 = vpop.f32.mrb[81].mxu1  ;;  %v5266_v27 = vpop.f32.mrb[93].mxu0 }
 0x521   : > { %v13223_v3 = vadd.f32 %v13222_v14, %v13221_v36  ;;  %v5267_v6 = vadd.f32 %v5266_v27, %v5203_v16  ;;  %v13224_v30 = vpop.f32.mrb[82].mxu1  ;;  %v13258_v26 = vpop.f32.mrb[94].mxu0 }
 0x522   : > { %v13225_v49 = vpop.f32.mrb[83].mxu1  ;;  %v5269_v39 = vpop.f32.mrb[95].mxu0 }
 0x523   : > { %v5211_v32 = vadd.f32 %v13223_v3, %v5147_v19  ;;  %v5296_v21 = vmax.f32 %v5267_v6, 0.0  ;;  %v13226_v54 = vadd.f32 %v13225_v49, %v13224_v30  ;;  %v5270_v61 = vadd.f32 %v5269_v39, %v5206_v15 }
 0x525   : > { %v5275_v12 = vadd.f32 %v13257_v35, %v5211_v32  ;;  %v12860_v53 = vpack.c.bf16 %v5296_v21, %v5296_v21  ;;  %v5214_v5 = vadd.f32 %v13226_v54, %v5150_v33  ;;  %v5297_v55 = vmax.f32 %v5270_v61, 0.0  ;;  %v5338_v33 = vld [vmem:[#allocation4 + $0x18] sm:$0x1] }
 0x527   : > { %v5298_v20 = vmax.f32 %v5275_v12, 0.0  ;;  %5332 = vst.msk [vmem:[#allocation4] sm:$0xf] %vm4236_vm9, %v12860_v53  ;;  %v5278_v0 = vadd.f32 %v13258_v26, %v5214_v5  ;;  %v12861_v29 = vpack.c.bf16 %v5297_v55, %v5297_v55  ;;  %v13227_v1 = vpop.f32.mrb[84].mxu1  ;;  %v13261_v37 = vpop.f32.mrb[96].mxu0 }
 0x528   : > { %v13228_v13 = vpop.f32.mrb[85].mxu1  ;;  %v5282_v40 = vpop.f32.mrb[97].mxu0 }
 0x529   : > { %v12862_v59 = vpack.c.bf16 %v5298_v20, %v5298_v20  ;;  %v5299_v56 = vmax.f32 %v5278_v0, 0.0  ;;  %5333 = vst.msk [vmem:[#allocation4 + $0x4] sm:$0xf] %vm4236_vm9, %v12861_v29  ;;  %v13229_v22 = vadd.f32 %v13228_v13, %v13227_v1  ;;  %v13230_v9 = vpop.f32.mrb[86].mxu1  ;;  %v13262_v47 = vpop.f32.mrb[98].mxu0 }
 0x52a   : > { %v13231_v18 = vpop.f32.mrb[87].mxu1  ;;  %v5285_v38 = vpop.f32.mrb[99].mxu0 }
 0x52b   : > { %5334 = vst.msk [vmem:[#allocation4 + $0x8] sm:$0xf] %vm4236_vm9, %v12862_v59  ;;  %v12863_v24 = vpack.c.bf16 %v5299_v56, %v5299_v56  ;;  %v5219_v51 = vadd.f32 %v13229_v22, %v5155_v8  ;;  %v13232_v44 = vadd.f32 %v13231_v18, %v13230_v9 }
 0x52d   : > { %5335 = vst.msk [vmem:[#allocation4 + $0xc] sm:$0xf] %vm4236_vm9, %v12863_v24  ;;  %v5283_v34 = vadd.f32 %v5282_v40, %v5219_v51  ;;  %v5222_v42 = vadd.f32 %v13232_v44, %v5158_v31 }
 0x52e   : > { %v17032_v43 = vld [vmem:[#allocation4] sm:$0x1] }
 0x52f   : > { %v5300_v23 = vmax.f32 %v5283_v34, 0.0  ;;  %v5286_v45 = vadd.f32 %v5285_v38, %v5222_v42  ;;  %v13233_v41 = vpop.f32.mrb[88].mxu1  ;;  %v11987_v7 = vcombine.low %v17032_v43, %v17032_v43  ;;  %v17036_v58 = vld [vmem:[#allocation4] ss:$0 sps:$4 sm:$0x22]  }
 0x530   : > { %v13234_v48 = vpop.f32.mrb[89].mxu1  ;;  %v17040_v4 = vld [vmem:[#allocation4] ss:$0 sps:$4 sm:$0x44]   ;;  %v5379_v57 = vshrl.u32 %v17036_v58, 16 }
 0x531   : > { %v12864_v63 = vpack.c.bf16 %v5300_v23, %v5300_v23  ;;  %v5301_v52 = vmax.f32 %v5286_v45, 0.0  ;;  %v13235_v16 = vadd.f32 %v13234_v48, %v13233_v41  ;;  %v13236_v60 = vpop.f32.mrb[90].mxu1  ;;  %v5370_v28 = vshrl.u32 %v11987_v7, 16  ;;  %v17042_v46 = vld [vmem:[#allocation4] ss:$0 sps:$4 sm:$0x88]  }
 0x532   : > { %v13237_v15 = vpop.f32.mrb[91].mxu1  ;;  %v5389_v11 = vshrl.u32 %v17040_v4, 16  ;;  %v17046_v36 = vld [vmem:[#allocation4 + $0x4] sm:$0x1]  ;;  %v5399_v35 = vshrl.u32 %v17042_v46, 16  ;;  %v5381_v27 = vrot.slane %v5379_v57, 1 }
 0x533   : > { %5336 = vst.msk [vmem:[#allocation4 + $0x10] sm:$0xf] %vm4236_vm9, %v12864_v63  ;;  %v12865_v17 = vpack.c.bf16 %v5301_v52, %v5301_v52  ;;  %v5227_v62 = vadd.f32 %v13235_v16, %v5163_v50  ;;  %5372 = vrot.lane.b32.xlu1 %v5370_v28, %s14871_s17  ;;  %v17051_v14 = vld [vmem:[#allocation4 + $0x4] ss:$0 sps:$4 sm:$0x22]   ;;  %v11991_v6 = vcombine.low %v17046_v36, %v17046_v36 }
 0x534   : > { %v5391_v3 = vrot.slane %v5389_v11, 2  ;;  %v13603_v30 = vld [vmem:[#allocation4 + $0x4] ss:$0 sps:$4 sm:$0x44]   ;;  %5382 = vrot.lane.b32.xlu0 %v5381_v27, %s14871_s17  ;;  %v5401_v49 = vrot.slane %v5399_v35, 3  ;;  %v5417_v39 = vshrl.u32 %v17051_v14, 16 }
 0x535   : > { %5337 = vst.msk [vmem:[#allocation4 + $0x14] sm:$0xf] %vm4236_vm9, %v12865_v17  ;;  %v5291_v19 = vadd.f32 %v13261_v37, %v5227_v62  ;;  %v17059_v32 = vld [vmem:[#allocation4 + $0x4] ss:$0 sps:$4 sm:$0x88]   ;;  %v5408_v54 = vshrl.u32 %v11991_v6, 16 }
 0x536   : > { %v5427_v61 = vshrl.u32 %v13603_v30, 16  ;;  %v5349_v12 = vld [vmem:[#allocation4 + $0x8] sm:$0x1]  ;;  %v5419_v55 = vrot.slane %v5417_v39, 1  ;;  %v5437_v20 = vshrl.u32 %v17059_v32, 16 }
 0x537   : > { %v5302_v26 = vmax.f32 %v5291_v19, 0.0  ;;  %5392 = vrot.lane.b32.xlu1 %v5391_v3, %s14871_s17  ;;  %v17065_v5 = vld [vmem:[#allocation4 + $0x8] ss:$0 sps:$4 sm:$0x22]   ;;  %v11995_v29 = vcombine.low %v5349_v12, %v5349_v12  ;;  %v5353_v59 = vld [vmem:[#allocation4 + $0xc] sm:$0x1] }
 0x538   : > { %5402 = vrot.lane.b32.xlu0 %v5401_v49, %s14871_s17  ;;  %v5429_v0 = vrot.slane %v5427_v61, 2  ;;  %v13607_v1 = vld [vmem:[#allocation4 + $0x8] ss:$0 sps:$4 sm:$0x44]   ;;  %v5487_v37 = vshrl.u32 %v17065_v5, 16  ;;  %v5439_v13 = vrot.slane %v5437_v20, 3  ;;  %v11999_v38 = vcombine.low %v5353_v59, %v5353_v59 }
 0x539   : > { %v12866_v21 = vpack.c.bf16 %v5302_v26, %v5302_v26  ;;  %v13608_v25 = vld [vmem:[#allocation4 + $0x8] ss:$0 sps:$4 sm:$0x88]   ;;  %v5478_v40 = vshrl.u32 %v11995_v29, 16  ;;  %v5497_v8 = vshrl.u32 %v13607_v1, 16 }
 0x53a   : > { %v5489_v56 = vrot.slane %v5487_v37, 1  ;;  %v13610_v22 = vld [vmem:[#allocation4 + $0xc] ss:$0 sps:$4 sm:$0x22]   ;;  %v5507_v9 = vshrl.u32 %v13608_v25, 16  ;;  %v5516_v51 = vshrl.u32 %v11999_v38, 16 }
 0x53b   : > { %v5339_v53 = vsel %vm16599_vm11, %v12866_v21, %v5338_v33  ;;  %5410 = vrot.lane.b32.xlu1 %v5408_v54, %s14871_s17  ;;  %v13611_v47 = vld [vmem:[#allocation4 + $0xc] ss:$0 sps:$4 sm:$0x44]   ;;  %v5499_v18 = vrot.slane %v5497_v8, 2  ;;  %v5525_v31 = vshrl.u32 %v13610_v22, 16  ;;  %v5377_v21 = vrot.slane %v17036_v58, 1 }
 0x53c   : > { %5340 = vst [vmem:[#allocation4 + $0x18] sm:$0x1] %v5339_v53  ;;  %5420 = vrot.lane.b32.xlu0 %v5419_v55, %s14871_s17  ;;  %v5509_v10 = vrot.slane %v5507_v9, 3  ;;  %v13612_v24 = vld [vmem:[#allocation4 + $0xc] ss:$0 sps:$4 sm:$0x88]  }
 0x53d   : > { %v5535_v44 = vshrl.u32 %v13611_v47, 16  ;;  %v5357_v2 = vld [vmem:[#allocation4 + $0x10] sm:$0x1]  ;;  %v5527_v34 = vrot.slane %v5525_v31, 1  ;;  %v5545_v42 = vshrl.u32 %v13612_v24, 16 }
 0x53e   : > { %v13614_v23 = vld [vmem:[#allocation4 + $0x10] ss:$0 sps:$4 sm:$0x22]   ;;  %v12003_v41 = vcombine.low %v5357_v2, %v5357_v2  ;;  %v5361_v60 = vld [vmem:[#allocation4 + $0x14] sm:$0x1] }
 0x53f   : > { %5430 = vrot.lane.b32.xlu1 %v5429_v0, %s14871_s17  ;;  %v5537_v45 = vrot.slane %v5535_v44, 2  ;;  %v13615_v7 = vld [vmem:[#allocation4 + $0x10] ss:$0 sps:$4 sm:$0x44]   ;;  %v5547_v50 = vrot.slane %v5545_v42, 3  ;;  %v5595_v48 = vshrl.u32 %v13614_v23, 16  ;;  %v12007_v17 = vcombine.low %v5361_v60, %v5361_v60 }
 0x540   : > { %5440 = vrot.lane.b32.xlu0 %v5439_v13, %s14871_s17  ;;  %v13616_v63 = vld [vmem:[#allocation4 + $0x10] ss:$0 sps:$4 sm:$0x88]   ;;  %v5586_v52 = vshrl.u32 %v12003_v41, 16  ;;  %v5605_v16 = vshrl.u32 %v13615_v7, 16  ;;  %v5397_v0 = vrot.slane %v17042_v46, 3 }
 0x541   : > { %v5597_v28 = vrot.slane %v5595_v48, 1  ;;  %v5615_v15 = vshrl.u32 %v13616_v63, 16  ;;  %v13618_v57 = vld [vmem:[#allocation4 + $0x14] ss:$0 sps:$4 sm:$0x22]   ;;  %v5624_v3 = vshrl.u32 %v12007_v17, 16 }
 0x542   : > { %v5607_v11 = vrot.slane %v5605_v16, 2  ;;  %v13619_v62 = vld [vmem:[#allocation4 + $0x14] ss:$0 sps:$4 sm:$0x44]   ;;  %v5633_v27 = vshrl.u32 %v13618_v57, 16 }
 0x543   : > { %5480 = vrot.lane.b32.xlu1 %v5478_v40, %s14871_s17  ;;  %v5617_v35 = vrot.slane %v5615_v15, 3  ;;  %v13620_v19 = vld [vmem:[#allocation4 + $0x14] ss:$0 sps:$4 sm:$0x88]   ;;  %v5643_v6 = vshrl.u32 %v13619_v62, 16 }
 0x544   : > { %5490 = vrot.lane.b32.xlu0 %v5489_v56, %s14871_s17  ;;  %v5635_v30 = vrot.slane %v5633_v27, 1  ;;  %v5653_v26 = vshrl.u32 %v13620_v19, 16  ;;  %v13717_v61 = vld [vmem:[%s19304_s7 + $0x200] ss:$16 sps:$4 sm:$0xff]   ;;  %v13720_v12 = vld [vmem:[%s19304_s7 + $0x208] ss:$16 sps:$4 sm:$0xff]  }
 0x545   : > { %v5645_v33 = vrot.slane %v5643_v6, 2  ;;  %v13725_v55 = vld [vmem:[%s19304_s7 + $0x224] ss:$16 sps:$4 sm:$0xff]   ;;  %v13728_v20 = vld [vmem:[%s19304_s7 + $0x22c] ss:$16 sps:$4 sm:$0xff]  }
 0x546   : > { %v5655_v49 = vrot.slane %v5653_v26, 3  ;;  %v13723_v1 = vld [vmem:[%s19304_s7 + $0x220] ss:$16 sps:$4 sm:$0xff]   ;;  %v13726_v37 = vld [vmem:[%s19304_s7 + $0x228] ss:$16 sps:$4 sm:$0xff]  }
 0x547   : > { %5500 = vrot.lane.b32.xlu1 %v5499_v18, %s14871_s17  ;;  %v13731_v13 = vld [vmem:[%s19304_s7 + $0x244] ss:$16 sps:$4 sm:$0xff]   ;;  %v13734_v46 = vld [vmem:[%s19304_s7 + $0x24c] ss:$16 sps:$4 sm:$0xff]   ;;  %v13729_v25 = vld [vmem:[%s19304_s7 + $0x240] ss:$16 sps:$4 sm:$0xff]  }
 0x548   : > { %5510 = vrot.lane.b32.xlu0 %v5509_v10, %s14871_s17  ;;  %v13732_v40 = vld [vmem:[%s19304_s7 + $0x248] ss:$16 sps:$4 sm:$0xff]   ;;  %v13737_v8 = vld [vmem:[%s19304_s7 + $0x264] ss:$16 sps:$4 sm:$0xff]   ;;  %v13740_v59 = vld [vmem:[%s19304_s7 + $0x26c] ss:$16 sps:$4 sm:$0xff]  }
 0x549   : > { %v13735_v56 = vld [vmem:[%s19304_s7 + $0x260] ss:$16 sps:$4 sm:$0xff]   ;;  %v13738_v22 = vld [vmem:[%s19304_s7 + $0x268] ss:$16 sps:$4 sm:$0xff]   ;;  %v13743_v9 = vld [vmem:[%s19304_s7 + $0x284] ss:$16 sps:$4 sm:$0xff]  }
 0x54a   : > { %v13746_v47 = vld [vmem:[%s19304_s7 + $0x28c] ss:$16 sps:$4 sm:$0xff]   ;;  %v13741_v18 = vld [vmem:[%s19304_s7 + $0x280] ss:$16 sps:$4 sm:$0xff]   ;;  %v13744_v38 = vld [vmem:[%s19304_s7 + $0x288] ss:$16 sps:$4 sm:$0xff]  }
 0x54b   : > { %5518 = vrot.lane.b32.xlu1 %v5516_v51, %s14871_s17  ;;  %v13749_v10 = vld [vmem:[%s19304_s7 + $0x2a4] ss:$16 sps:$4 sm:$0xff]   ;;  %v13752_v31 = vld [vmem:[%s19304_s7 + $0x2ac] ss:$16 sps:$4 sm:$0xff]   ;;  %v13747_v24 = vld [vmem:[%s19304_s7 + $0x2a0] ss:$16 sps:$4 sm:$0xff]  }
 0x54c   : > { %5528 = vrot.lane.b32.xlu0 %v5527_v34, %s14871_s17  ;;  %v13750_v51 = vld [vmem:[%s19304_s7 + $0x2a8] ss:$16 sps:$4 sm:$0xff]   ;;  %v13755_v44 = vld [vmem:[%s19304_s7 + $0x2c4] ss:$16 sps:$4 sm:$0xff]   ;;  %v13758_v2 = vld [vmem:[%s19304_s7 + $0x2cc] ss:$16 sps:$4 sm:$0xff]  }
 0x54d   : > { %v13753_v34 = vld [vmem:[%s19304_s7 + $0x2c0] ss:$16 sps:$4 sm:$0xff]   ;;  %v13756_v42 = vld [vmem:[%s19304_s7 + $0x2c8] ss:$16 sps:$4 sm:$0xff]   ;;  %v13761_v23 = vld [vmem:[%s19304_s7 + $0x2e4] ss:$16 sps:$4 sm:$0xff]  }
 0x54e   : > { %v13759_v41 = vld [vmem:[%s19304_s7 + $0x2e0] ss:$16 sps:$4 sm:$0xff]   ;;  %v13762_v7 = vld [vmem:[%s19304_s7 + $0x2e8] ss:$16 sps:$4 sm:$0xff]   ;;  %v13770_v48 = vld [vmem:[%s19304_s7 + $0x30c] ss:$16 sps:$4 sm:$0xff]  }
 0x54f   : > { %5538 = vrot.lane.b32.xlu1 %v5537_v45, %s14871_s17  ;;  %v13764_v45 = vld [vmem:[%s19304_s7 + $0x2ec] ss:$16 sps:$4 sm:$0xff]   ;;  %v13765_v63 = vld [vmem:[%s19304_s7 + $0x300] ss:$16 sps:$4 sm:$0xff]   ;;  %v13773_v16 = vld [vmem:[%s19304_s7 + $0x324] ss:$16 sps:$4 sm:$0xff]  }
 0x550   : > { %5548 = vrot.lane.b32.xlu0 %v5547_v50, %s14871_s17  ;;  %v13767_v50 = vld [vmem:[%s19304_s7 + $0x304] ss:$16 sps:$4 sm:$0xff]   ;;  %v13776_v60 = vld [vmem:[%s19304_s7 + $0x32c] ss:$16 sps:$4 sm:$0xff]   ;;  %v13774_v15 = vld [vmem:[%s19304_s7 + $0x328] ss:$16 sps:$4 sm:$0xff]  }
 0x551   : > { %v13779_v57 = vld [vmem:[%s19304_s7 + $0x344] ss:$16 sps:$4 sm:$0xff]   ;;  %v13777_v17 = vld [vmem:[%s19304_s7 + $0x340] ss:$16 sps:$4 sm:$0xff]   ;;  %v13780_v62 = vld [vmem:[%s19304_s7 + $0x348] ss:$16 sps:$4 sm:$0xff]  }
 0x552   : > { %v13788_v27 = vld [vmem:[%s19304_s7 + $0x36c] ss:$16 sps:$4 sm:$0xff]   ;;  %v13783_v19 = vld [vmem:[%s19304_s7 + $0x360] ss:$16 sps:$4 sm:$0xff]   ;;  %v13791_v6 = vld [vmem:[%s19304_s7 + $0x384] ss:$16 sps:$4 sm:$0xff]  }
 0x553   : > { %5588 = vrot.lane.b32.xlu1 %v5586_v52, %s14871_s17  ;;  %v13768_v52 = vld [vmem:[%s19304_s7 + $0x308] ss:$16 sps:$4 sm:$0xff]   ;;  %v13789_v26 = vld [vmem:[%s19304_s7 + $0x380] ss:$16 sps:$4 sm:$0xff]  }
 0x554   : > { %5598 = vrot.lane.b32.xlu0 %v5597_v28, %s14871_s17  ;;  %v13771_v28 = vld [vmem:[%s19304_s7 + $0x320] ss:$16 sps:$4 sm:$0xff]  }
 0x557   : > { %5608 = vrot.lane.b32.xlu1 %v5607_v11, %s14871_s17  ;;  %v13782_v11 = vld [vmem:[%s19304_s7 + $0x34c] ss:$16 sps:$4 sm:$0xff]  }
 0x558   : > { %5618 = vrot.lane.b32.xlu0 %v5617_v35, %s14871_s17  ;;  %v13785_v35 = vld [vmem:[%s19304_s7 + $0x364] ss:$16 sps:$4 sm:$0xff]  }
 0x55b   : > { %5626 = vrot.lane.b32.xlu1 %v5624_v3, %s14871_s17  ;;  %v13786_v3 = vld [vmem:[%s19304_s7 + $0x368] ss:$16 sps:$4 sm:$0xff]  }
 0x55c   : > { %5636 = vrot.lane.b32.xlu0 %v5635_v30, %s14871_s17  ;;  %v13794_v30 = vld [vmem:[%s19304_s7 + $0x38c] ss:$16 sps:$4 sm:$0xff]  }
 0x55f   : > { %5646 = vrot.lane.b32.xlu1 %v5645_v33, %s14871_s17  ;;  %v13792_v33 = vld [vmem:[%s19304_s7 + $0x388] ss:$16 sps:$4 sm:$0xff]  }
 0x560   : > { %5656 = vrot.lane.b32.xlu0 %v5655_v49, %s14871_s17  ;;  %v13797_v49 = vld [vmem:[%s19304_s7 + $0x3a4] ss:$16 sps:$4 sm:$0xff]  }
 0x5a5   : > { %v5373_v39 = vpop.permute.xlu1 %5372 }
 0x5a6   : > { %v5383_v54 = vpop.permute.xlu0 %5382  ;;  %v5444_v58 = vsel %vm556_vm0, %v17032_v43, %v5373_v39  ;;  %v13800_v39 = vld [vmem:[%s19304_s7 + $0x3ac] ss:$16 sps:$4 sm:$0xff]  }
 0x5a7   : > { %v5448_v53 = vsel %vm556_vm0, %v5377_v21, %v5383_v54  ;;  %v13795_v21 = vld [vmem:[%s19304_s7 + $0x3a0] ss:$16 sps:$4 sm:$0xff]   ;;  %v13798_v54 = vld [vmem:[%s19304_s7 + $0x3a8] ss:$16 sps:$4 sm:$0xff]  }
 0x5a8   : > { %10451 = vmatprep.mubr.bf16.mxu1 %v5448_v53  ;;  %10984 = vmatprep.mubr.bf16.mxu0 %v5448_v53  ;;  %v13801_v53 = vld [vmem:[%s19304_s7 + $0x3c0] ss:$16 sps:$4 sm:$0xff]  }
 0x5a9   : > { %10452 = vmatmul.mubr.bf16.vlgmr.msra.gmra.mrb[92].mxu1 %v5444_v58  ;;  %10985 = vmatmul.mubr.bf16.vlgmr.msra.gmra.mrb[100].mxu0 %v5444_v58  ;;  %v13812_v58 = vld [vmem:[%s19304_s7 + $0x3ec] ss:$16 sps:$4 sm:$0xff]  }
 0x5aa   : > { %10461 = vmatpush1.bf16.msra.mxu1 %v13717_v61  ;;  %10994 = vmatpush1.bf16.msra.mxu0 %v13720_v12  ;;  %v5403_v29 = vpop.permute.xlu0 %5402  ;;  %v13803_v61 = vld [vmem:[%s19304_s7 + $0x3c4] ss:$16 sps:$4 sm:$0xff]   ;;  %v13806_v12 = vld [vmem:[%s19304_s7 + $0x3cc] ss:$16 sps:$4 sm:$0xff]  }
 0x5ab   : > { %10462 = vmatprep.subr.bf16.mxu1 %v13725_v55  ;;  %v5456_v43 = vsel %vm556_vm0, %v5397_v0, %v5403_v29  ;;  %10995 = vmatprep.subr.bf16.mxu0 %v13728_v20  ;;  %v13804_v55 = vld [vmem:[%s19304_s7 + $0x3c8] ss:$16 sps:$4 sm:$0xff]   ;;  %v13809_v20 = vld [vmem:[%s19304_s7 + $0x3e4] ss:$16 sps:$4 sm:$0xff]   ;;  %v13807_v0 = vld [vmem:[%s19304_s7 + $0x3e0] ss:$16 sps:$4 sm:$0xff]  }
 0x5ac   : > { %10492 = vmatprep.mubr.bf16.mxu1 %v5456_v43  ;;  %11025 = vmatprep.mubr.bf16.mxu0 %v5456_v43  ;;  %v13810_v29 = vld [vmem:[%s19304_s7 + $0x3e8] ss:$16 sps:$4 sm:$0xff]   ;;  %v5393_v43 = vpop.permute.xlu1 %5392 }
 0x5ae   : > { %10463 = vmatpush1.bf16.msra.mxu1 %v13723_v1  ;;  %10996 = vmatpush1.bf16.msra.mxu0 %v13726_v37  ;;  %v13815_v1 = vld [vmem:[%s19304_s7 + $0x404] ss:$16 sps:$4 sm:$0xff]   ;;  %v13818_v37 = vld [vmem:[%s19304_s7 + $0x40c] ss:$16 sps:$4 sm:$0xff]  }
 0x5af   : > { %10464 = vmatprep.subr.bf16.mxu1 %v13731_v13  ;;  %10997 = vmatprep.subr.bf16.mxu0 %v13734_v46  ;;  %v5387_v13 = vrot.slane %v17040_v4, 2  ;;  %v5421_v46 = vpop.permute.xlu0 %5420  ;;  %v13821_v4 = vld [vmem:[%s19304_s7 + $0x424] ss:$16 sps:$4 sm:$0xff]  }
 0x5b2   : > { %10465 = vmatpush1.bf16.msra.mxu1 %v13729_v25  ;;  %10998 = vmatpush1.bf16.msra.mxu0 %v13732_v40  ;;  %v13813_v25 = vld [vmem:[%s19304_s7 + $0x400] ss:$16 sps:$4 sm:$0xff]   ;;  %v13816_v40 = vld [vmem:[%s19304_s7 + $0x408] ss:$16 sps:$4 sm:$0xff]  }
 0x5b3   : > { %10466 = vmatprep.subr.bf16.mxu1 %v13737_v8  ;;  %10999 = vmatprep.subr.bf16.mxu0 %v13740_v59  ;;  %v5415_v8 = vrot.slane %v17051_v14, 1  ;;  %v5452_v59 = vsel %vm556_vm0, %v5387_v13, %v5393_v43  ;;  %v13819_v14 = vld [vmem:[%s19304_s7 + $0x420] ss:$16 sps:$4 sm:$0xff]   ;;  %v13902_v43 = vld [vmem:[%s19304_s7 + $0x5cc] ss:$16 sps:$4 sm:$0xff]  }
 0x5b4   : > { %v13897_v13 = vld [vmem:[%s19304_s7 + $0x5c0] ss:$16 sps:$4 sm:$0xff]  }
 0x5b6   : > { %10467 = vmatpush1.bf16.msra.mxu1 %v13735_v56  ;;  %11000 = vmatpush1.bf16.msra.mxu0 %v13738_v22  ;;  %v13824_v56 = vld [vmem:[%s19304_s7 + $0x42c] ss:$16 sps:$4 sm:$0xff]   ;;  %v5464_v22 = vsel %vm556_vm0, %v5415_v8, %v5421_v46  ;;  %v13900_v46 = vld [vmem:[%s19304_s7 + $0x5c8] ss:$16 sps:$4 sm:$0xff]   ;;  %v13903_v8 = vld [vmem:[%s19304_s7 + $0x5e0] ss:$16 sps:$4 sm:$0xff]  }
 0x5b7   : > { %10468 = vmatprep.subr.bf16.mxu1 %v13743_v9  ;;  %11001 = vmatprep.subr.bf16.mxu0 %v13746_v47  ;;  %v13822_v9 = vld [vmem:[%s19304_s7 + $0x428] ss:$16 sps:$4 sm:$0xff]   ;;  %v13827_v47 = vld [vmem:[%s19304_s7 + $0x444] ss:$16 sps:$4 sm:$0xff]  }
 0x5ba   : > { %10469 = vmatpush1.bf16.msra.mxu1 %v13741_v18  ;;  %11002 = vmatpush1.bf16.msra.mxu0 %v13744_v38  ;;  %v13830_v18 = vld [vmem:[%s19304_s7 + $0x44c] ss:$16 sps:$4 sm:$0xff]   ;;  %v13825_v38 = vld [vmem:[%s19304_s7 + $0x440] ss:$16 sps:$4 sm:$0xff]  }
 0x5bb   : > { %10470 = vmatprep.subr.bf16.mxu1 %v13749_v10  ;;  %11003 = vmatprep.subr.bf16.mxu0 %v13752_v31  ;;  %v13828_v10 = vld [vmem:[%s19304_s7 + $0x448] ss:$16 sps:$4 sm:$0xff]   ;;  %v13833_v31 = vld [vmem:[%s19304_s7 + $0x464] ss:$16 sps:$4 sm:$0xff]  }
 0x5be   : > { %10471 = vmatpush1.bf16.msra.mxu1 %v13747_v24  ;;  %11004 = vmatpush1.bf16.msra.mxu0 %v13750_v51  ;;  %v13836_v24 = vld [vmem:[%s19304_s7 + $0x46c] ss:$16 sps:$4 sm:$0xff]   ;;  %v13831_v51 = vld [vmem:[%s19304_s7 + $0x460] ss:$16 sps:$4 sm:$0xff]  }
 0x5bf   : > { %10472 = vmatprep.subr.bf16.mxu1 %v13755_v44  ;;  %11005 = vmatprep.subr.bf16.mxu0 %v13758_v2  ;;  %v13834_v44 = vld [vmem:[%s19304_s7 + $0x468] ss:$16 sps:$4 sm:$0xff]   ;;  %v13839_v2 = vld [vmem:[%s19304_s7 + $0x484] ss:$16 sps:$4 sm:$0xff]  }
 0x5c2   : > { %10473 = vmatpush1.bf16.msra.mxu1 %v13753_v34  ;;  %11006 = vmatpush1.bf16.msra.mxu0 %v13756_v42  ;;  %v13842_v34 = vld [vmem:[%s19304_s7 + $0x48c] ss:$16 sps:$4 sm:$0xff]   ;;  %v13837_v42 = vld [vmem:[%s19304_s7 + $0x480] ss:$16 sps:$4 sm:$0xff]  }
 0x5c3   : > { %10474 = vmatprep.subr.bf16.mxu1 %v13761_v23  ;;  %11007 = vmatprep.subr.bf16.mxu0 %v13764_v45  ;;  %v13840_v23 = vld [vmem:[%s19304_s7 + $0x488] ss:$16 sps:$4 sm:$0xff]   ;;  %v13845_v45 = vld [vmem:[%s19304_s7 + $0x4a4] ss:$16 sps:$4 sm:$0xff]  }
 0x5c6   : > { %10475 = vmatpush1.bf16.msra.mxu1 %v13759_v41  ;;  %11008 = vmatpush1.bf16.msra.mxu0 %v13762_v7  ;;  %v13848_v41 = vld [vmem:[%s19304_s7 + $0x4ac] ss:$16 sps:$4 sm:$0xff]   ;;  %v13843_v7 = vld [vmem:[%s19304_s7 + $0x4a0] ss:$16 sps:$4 sm:$0xff]  }
 0x5c7   : > { %10476 = vmatprep.subr.bf16.mxu1 %v13767_v50  ;;  %11009 = vmatprep.subr.bf16.mxu0 %v13770_v48  ;;  %v13846_v50 = vld [vmem:[%s19304_s7 + $0x4a8] ss:$16 sps:$4 sm:$0xff]   ;;  %v13851_v48 = vld [vmem:[%s19304_s7 + $0x4c4] ss:$16 sps:$4 sm:$0xff]  }
 0x5ca   : > { %10477 = vmatpush1.bf16.msra.mxu1 %v13765_v63  ;;  %11010 = vmatpush1.bf16.msra.mxu0 %v13768_v52  ;;  %v13854_v63 = vld [vmem:[%s19304_s7 + $0x4cc] ss:$16 sps:$4 sm:$0xff]   ;;  %v13849_v52 = vld [vmem:[%s19304_s7 + $0x4c0] ss:$16 sps:$4 sm:$0xff]  }
 0x5cb   : > { %10478 = vmatprep.subr.bf16.mxu1 %v13773_v16  ;;  %11011 = vmatprep.subr.bf16.mxu0 %v13776_v60  ;;  %v13852_v16 = vld [vmem:[%s19304_s7 + $0x4c8] ss:$16 sps:$4 sm:$0xff]   ;;  %v13857_v60 = vld [vmem:[%s19304_s7 + $0x4e4] ss:$16 sps:$4 sm:$0xff]  }
 0x5ce   : > { %10479 = vmatpush1.bf16.msra.mxu1 %v13771_v28  ;;  %11012 = vmatpush1.bf16.msra.mxu0 %v13774_v15  ;;  %v13860_v28 = vld [vmem:[%s19304_s7 + $0x4ec] ss:$16 sps:$4 sm:$0xff]   ;;  %v13855_v15 = vld [vmem:[%s19304_s7 + $0x4e0] ss:$16 sps:$4 sm:$0xff]  }
 0x5cf   : > { %10480 = vmatprep.subr.bf16.mxu1 %v13779_v57  ;;  %11013 = vmatprep.subr.bf16.mxu0 %v13782_v11  ;;  %v13858_v57 = vld [vmem:[%s19304_s7 + $0x4e8] ss:$16 sps:$4 sm:$0xff]   ;;  %v13863_v11 = vld [vmem:[%s19304_s7 + $0x504] ss:$16 sps:$4 sm:$0xff]  }
 0x5d2   : > { %10481 = vmatpush1.bf16.msra.mxu1 %v13777_v17  ;;  %11014 = vmatpush1.bf16.msra.mxu0 %v13780_v62  ;;  %v13866_v17 = vld [vmem:[%s19304_s7 + $0x50c] ss:$16 sps:$4 sm:$0xff]   ;;  %v13861_v62 = vld [vmem:[%s19304_s7 + $0x500] ss:$16 sps:$4 sm:$0xff]  }
 0x5d3   : > { %10482 = vmatprep.subr.bf16.mxu1 %v13785_v35  ;;  %11015 = vmatprep.subr.bf16.mxu0 %v13788_v27  ;;  %v13864_v35 = vld [vmem:[%s19304_s7 + $0x508] ss:$16 sps:$4 sm:$0xff]   ;;  %v13869_v27 = vld [vmem:[%s19304_s7 + $0x524] ss:$16 sps:$4 sm:$0xff]  }
 0x5d6   : > { %10483 = vmatpush1.bf16.msra.mxu1 %v13783_v19  ;;  %11016 = vmatpush1.bf16.msra.mxu0 %v13786_v3  ;;  %v13872_v19 = vld [vmem:[%s19304_s7 + $0x52c] ss:$16 sps:$4 sm:$0xff]   ;;  %v13867_v3 = vld [vmem:[%s19304_s7 + $0x520] ss:$16 sps:$4 sm:$0xff]  }
 0x5d7   : > { %10484 = vmatprep.subr.bf16.mxu1 %v13791_v6  ;;  %11017 = vmatprep.subr.bf16.mxu0 %v13794_v30  ;;  %v13870_v6 = vld [vmem:[%s19304_s7 + $0x528] ss:$16 sps:$4 sm:$0xff]   ;;  %v13875_v30 = vld [vmem:[%s19304_s7 + $0x544] ss:$16 sps:$4 sm:$0xff]  }
 0x5da   : > { %10485 = vmatpush1.bf16.msra.mxu1 %v13789_v26  ;;  %11018 = vmatpush1.bf16.msra.mxu0 %v13792_v33  ;;  %v13878_v26 = vld [vmem:[%s19304_s7 + $0x54c] ss:$16 sps:$4 sm:$0xff]   ;;  %v13873_v33 = vld [vmem:[%s19304_s7 + $0x540] ss:$16 sps:$4 sm:$0xff]  }
 0x5db   : > { %10486 = vmatprep.subr.bf16.mxu1 %v13797_v49  ;;  %11019 = vmatprep.subr.bf16.mxu0 %v13800_v39  ;;  %v13876_v49 = vld [vmem:[%s19304_s7 + $0x548] ss:$16 sps:$4 sm:$0xff]   ;;  %v13881_v39 = vld [vmem:[%s19304_s7 + $0x564] ss:$16 sps:$4 sm:$0xff]  }
 0x5de   : > { %10487 = vmatpush1.bf16.msra.mxu1 %v13795_v21  ;;  %11020 = vmatpush1.bf16.msra.mxu0 %v13798_v54  ;;  %v13884_v21 = vld [vmem:[%s19304_s7 + $0x56c] ss:$16 sps:$4 sm:$0xff]   ;;  %v13879_v54 = vld [vmem:[%s19304_s7 + $0x560] ss:$16 sps:$4 sm:$0xff]  }
 0x5df   : > { %10488 = vmatprep.subr.bf16.mxu1 %v13803_v61  ;;  %11021 = vmatprep.subr.bf16.mxu0 %v13806_v12  ;;  %v13882_v61 = vld [vmem:[%s19304_s7 + $0x568] ss:$16 sps:$4 sm:$0xff]   ;;  %v13887_v12 = vld [vmem:[%s19304_s7 + $0x584] ss:$16 sps:$4 sm:$0xff]  }
 0x5e2   : > { %10489 = vmatpush1.bf16.msra.mxu1 %v13801_v53  ;;  %11022 = vmatpush1.bf16.msra.mxu0 %v13804_v55  ;;  %v13890_v53 = vld [vmem:[%s19304_s7 + $0x58c] ss:$16 sps:$4 sm:$0xff]   ;;  %v13885_v55 = vld [vmem:[%s19304_s7 + $0x580] ss:$16 sps:$4 sm:$0xff]  }
 0x5e3   : > { %10490 = vmatprep.subr.bf16.mxu1 %v13809_v20  ;;  %11023 = vmatprep.subr.bf16.mxu0 %v13812_v58  ;;  %v13888_v20 = vld [vmem:[%s19304_s7 + $0x588] ss:$16 sps:$4 sm:$0xff]   ;;  %v13893_v58 = vld [vmem:[%s19304_s7 + $0x5a4] ss:$16 sps:$4 sm:$0xff]  }
 0x5e6   : > { %10491 = vmatpush1.bf16.msra.mxu1 %v13807_v0  ;;  %11024 = vmatpush1.bf16.msra.mxu0 %v13810_v29  ;;  %v13896_v0 = vld [vmem:[%s19304_s7 + $0x5ac] ss:$16 sps:$4 sm:$0xff]   ;;  %v13891_v29 = vld [vmem:[%s19304_s7 + $0x5a0] ss:$16 sps:$4 sm:$0xff]  }
 0x5e7   : > { %10501 = vmatprep.subr.bf16.mxu1 %v13815_v1  ;;  %11034 = vmatprep.subr.bf16.mxu0 %v13818_v37  ;;  %v13894_v1 = vld [vmem:[%s19304_s7 + $0x5a8] ss:$16 sps:$4 sm:$0xff]   ;;  %v13899_v37 = vld [vmem:[%s19304_s7 + $0x5c4] ss:$16 sps:$4 sm:$0xff]  }
 0x5e9   : > { %10493 = vmatmul.mubr.bf16.vlgmr.msra.gmra.mrb[92].mxu1 %v5452_v59  ;;  %11026 = vmatmul.mubr.bf16.vlgmr.msra.gmra.mrb[100].mxu0 %v5452_v59  ;;  %v13906_v59 = vld [vmem:[%s19304_s7 + $0x5e8] ss:$16 sps:$4 sm:$0xff]  }
 0x5ea   : > { %10502 = vmatpush1.bf16.msra.mxu1 %v13813_v25  ;;  %10533 = vmatprep.mubr.bf16.mxu1 %v5464_v22  ;;  %v13905_v25 = vld [vmem:[%s19304_s7 + $0x5e4] ss:$16 sps:$4 sm:$0xff]  }
 0x5eb   : > { %11035 = vmatpush1.bf16.msra.mxu0 %v13816_v40  ;;  %11066 = vmatprep.mubr.bf16.mxu0 %v5464_v22  ;;  %v13908_v40 = vld [vmem:[%s19304_s7 + $0x5ec] ss:$16 sps:$4 sm:$0xff]   ;;  %v5411_v22 = vpop.permute.xlu1 %5410 }
 0x5ec   : > { %10503 = vmatprep.subr.bf16.mxu1 %v13821_v4  ;;  %11036 = vmatprep.subr.bf16.mxu0 %v13824_v56  ;;  %v13911_v4 = vld [vmem:[%s19304_s7 + $0x604] ss:$16 sps:$4 sm:$0xff]   ;;  %v13914_v56 = vld [vmem:[%s19304_s7 + $0x60c] ss:$16 sps:$4 sm:$0xff]  }
 0x5ee   : > { %10504 = vmatpush1.bf16.msra.mxu1 %v13819_v14  ;;  %v13909_v14 = vld [vmem:[%s19304_s7 + $0x600] ss:$16 sps:$4 sm:$0xff]  }
 0x5ef   : > { %11037 = vmatpush1.bf16.msra.mxu0 %v13822_v9  ;;  %10505 = vmatprep.subr.bf16.mxu1 %v13827_v47  ;;  %v5441_v9 = vpop.permute.xlu0 %5440  ;;  %v13912_v47 = vld [vmem:[%s19304_s7 + $0x608] ss:$16 sps:$4 sm:$0xff]  }
 0x5f0   : > { %11038 = vmatprep.subr.bf16.mxu0 %v13830_v18  ;;  %v5460_v18 = vsel %vm556_vm0, %v17046_v36, %v5411_v22  ;;  %v13915_v36 = vld [vmem:[%s19304_s7 + $0x620] ss:$16 sps:$4 sm:$0xff]   ;;  %v14001_v22 = vld [vmem:[%s19304_s7 + $0x7e4] ss:$16 sps:$4 sm:$0xff]  }
 0x5f2   : > { %10506 = vmatpush1.bf16.msra.mxu1 %v13825_v38  ;;  %v5435_v38 = vrot.slane %v17059_v32, 3  ;;  %v13918_v32 = vld [vmem:[%s19304_s7 + $0x628] ss:$16 sps:$4 sm:$0xff]  }
 0x5f3   : > { %11039 = vmatpush1.bf16.msra.mxu0 %v13828_v10  ;;  %10507 = vmatprep.subr.bf16.mxu1 %v13833_v31  ;;  %v13917_v10 = vld [vmem:[%s19304_s7 + $0x624] ss:$16 sps:$4 sm:$0xff]   ;;  %v13920_v31 = vld [vmem:[%s19304_s7 + $0x62c] ss:$16 sps:$4 sm:$0xff]  }
 0x5f4   : > { %11040 = vmatprep.subr.bf16.mxu0 %v13836_v24  ;;  %v5472_v24 = vsel %vm556_vm0, %v5435_v38, %v5441_v9  ;;  %v13999_v9 = vld [vmem:[%s19304_s7 + $0x7e0] ss:$16 sps:$4 sm:$0xff]   ;;  %v14010_v38 = vld [vmem:[%s19304_s7 + $0x80c] ss:$16 sps:$4 sm:$0xff]  }
 0x5f6   : > { %10508 = vmatpush1.bf16.msra.mxu1 %v13831_v51  ;;  %v13923_v51 = vld [vmem:[%s19304_s7 + $0x644] ss:$16 sps:$4 sm:$0xff]  }
 0x5f7   : > { %11041 = vmatpush1.bf16.msra.mxu0 %v13834_v44  ;;  %10509 = vmatprep.subr.bf16.mxu1 %v13839_v2  ;;  %v13926_v44 = vld [vmem:[%s19304_s7 + $0x64c] ss:$16 sps:$4 sm:$0xff]   ;;  %v13921_v2 = vld [vmem:[%s19304_s7 + $0x640] ss:$16 sps:$4 sm:$0xff]  }
 0x5f8   : > { %11042 = vmatprep.subr.bf16.mxu0 %v13842_v34  ;;  %v13924_v34 = vld [vmem:[%s19304_s7 + $0x648] ss:$16 sps:$4 sm:$0xff]  }
 0x5fa   : > { %10510 = vmatpush1.bf16.msra.mxu1 %v13837_v42  ;;  %v13929_v42 = vld [vmem:[%s19304_s7 + $0x664] ss:$16 sps:$4 sm:$0xff]  }
 0x5fb   : > { %11043 = vmatpush1.bf16.msra.mxu0 %v13840_v23  ;;  %10511 = vmatprep.subr.bf16.mxu1 %v13845_v45  ;;  %v13932_v23 = vld [vmem:[%s19304_s7 + $0x66c] ss:$16 sps:$4 sm:$0xff]   ;;  %v13927_v45 = vld [vmem:[%s19304_s7 + $0x660] ss:$16 sps:$4 sm:$0xff]  }
 0x5fc   : > { %11044 = vmatprep.subr.bf16.mxu0 %v13848_v41  ;;  %v13930_v41 = vld [vmem:[%s19304_s7 + $0x668] ss:$16 sps:$4 sm:$0xff]  }
 0x5fe   : > { %10512 = vmatpush1.bf16.msra.mxu1 %v13843_v7  ;;  %v13935_v7 = vld [vmem:[%s19304_s7 + $0x684] ss:$16 sps:$4 sm:$0xff]  }
 0x5ff   : > { %11045 = vmatpush1.bf16.msra.mxu0 %v13846_v50  ;;  %10513 = vmatprep.subr.bf16.mxu1 %v13851_v48  ;;  %v13938_v50 = vld [vmem:[%s19304_s7 + $0x68c] ss:$16 sps:$4 sm:$0xff]   ;;  %v13933_v48 = vld [vmem:[%s19304_s7 + $0x680] ss:$16 sps:$4 sm:$0xff]  }
 0x600   : > { %11046 = vmatprep.subr.bf16.mxu0 %v13854_v63  ;;  %v13936_v63 = vld [vmem:[%s19304_s7 + $0x688] ss:$16 sps:$4 sm:$0xff]  }
 0x602   : > { %10514 = vmatpush1.bf16.msra.mxu1 %v13849_v52  ;;  %v13941_v52 = vld [vmem:[%s19304_s7 + $0x6a4] ss:$16 sps:$4 sm:$0xff]  }
 0x603   : > { %11047 = vmatpush1.bf16.msra.mxu0 %v13852_v16  ;;  %10515 = vmatprep.subr.bf16.mxu1 %v13857_v60  ;;  %v13944_v16 = vld [vmem:[%s19304_s7 + $0x6ac] ss:$16 sps:$4 sm:$0xff]   ;;  %v13939_v60 = vld [vmem:[%s19304_s7 + $0x6a0] ss:$16 sps:$4 sm:$0xff]  }
 0x604   : > { %11048 = vmatprep.subr.bf16.mxu0 %v13860_v28  ;;  %v13942_v28 = vld [vmem:[%s19304_s7 + $0x6a8] ss:$16 sps:$4 sm:$0xff]  }
 0x606   : > { %10516 = vmatpush1.bf16.msra.mxu1 %v13855_v15  ;;  %v13947_v15 = vld [vmem:[%s19304_s7 + $0x6c4] ss:$16 sps:$4 sm:$0xff]  }
 0x607   : > { %11049 = vmatpush1.bf16.msra.mxu0 %v13858_v57  ;;  %10517 = vmatprep.subr.bf16.mxu1 %v13863_v11  ;;  %v13950_v57 = vld [vmem:[%s19304_s7 + $0x6cc] ss:$16 sps:$4 sm:$0xff]   ;;  %v13945_v11 = vld [vmem:[%s19304_s7 + $0x6c0] ss:$16 sps:$4 sm:$0xff]  }
 0x608   : > { %11050 = vmatprep.subr.bf16.mxu0 %v13866_v17  ;;  %v13948_v17 = vld [vmem:[%s19304_s7 + $0x6c8] ss:$16 sps:$4 sm:$0xff]  }
 0x60a   : > { %10518 = vmatpush1.bf16.msra.mxu1 %v13861_v62  ;;  %v13953_v62 = vld [vmem:[%s19304_s7 + $0x6e4] ss:$16 sps:$4 sm:$0xff]  }
 0x60b   : > { %11051 = vmatpush1.bf16.msra.mxu0 %v13864_v35  ;;  %10519 = vmatprep.subr.bf16.mxu1 %v13869_v27  ;;  %v13956_v35 = vld [vmem:[%s19304_s7 + $0x6ec] ss:$16 sps:$4 sm:$0xff]   ;;  %v13951_v27 = vld [vmem:[%s19304_s7 + $0x6e0] ss:$16 sps:$4 sm:$0xff]  }
 0x60c   : > { %11052 = vmatprep.subr.bf16.mxu0 %v13872_v19  ;;  %v13954_v19 = vld [vmem:[%s19304_s7 + $0x6e8] ss:$16 sps:$4 sm:$0xff]  }
 0x60e   : > { %10520 = vmatpush1.bf16.msra.mxu1 %v13867_v3  ;;  %v13959_v3 = vld [vmem:[%s19304_s7 + $0x704] ss:$16 sps:$4 sm:$0xff]  }
 0x60f   : > { %11053 = vmatpush1.bf16.msra.mxu0 %v13870_v6  ;;  %10521 = vmatprep.subr.bf16.mxu1 %v13875_v30  ;;  %v13962_v6 = vld [vmem:[%s19304_s7 + $0x70c] ss:$16 sps:$4 sm:$0xff]   ;;  %v13957_v30 = vld [vmem:[%s19304_s7 + $0x700] ss:$16 sps:$4 sm:$0xff]  }
 0x610   : > { %11054 = vmatprep.subr.bf16.mxu0 %v13878_v26  ;;  %v13960_v26 = vld [vmem:[%s19304_s7 + $0x708] ss:$16 sps:$4 sm:$0xff]  }
 0x612   : > { %10522 = vmatpush1.bf16.msra.mxu1 %v13873_v33  ;;  %v13965_v33 = vld [vmem:[%s19304_s7 + $0x724] ss:$16 sps:$4 sm:$0xff]  }
 0x613   : > { %11055 = vmatpush1.bf16.msra.mxu0 %v13876_v49  ;;  %10523 = vmatprep.subr.bf16.mxu1 %v13881_v39  ;;  %v13968_v49 = vld [vmem:[%s19304_s7 + $0x72c] ss:$16 sps:$4 sm:$0xff]   ;;  %v13963_v39 = vld [vmem:[%s19304_s7 + $0x720] ss:$16 sps:$4 sm:$0xff]  }
 0x614   : > { %11056 = vmatprep.subr.bf16.mxu0 %v13884_v21  ;;  %v13966_v21 = vld [vmem:[%s19304_s7 + $0x728] ss:$16 sps:$4 sm:$0xff]  }
 0x616   : > { %10524 = vmatpush1.bf16.msra.mxu1 %v13879_v54  ;;  %v13971_v54 = vld [vmem:[%s19304_s7 + $0x744] ss:$16 sps:$4 sm:$0xff]  }
 0x617   : > { %11057 = vmatpush1.bf16.msra.mxu0 %v13882_v61  ;;  %10525 = vmatprep.subr.bf16.mxu1 %v13887_v12  ;;  %v13974_v61 = vld [vmem:[%s19304_s7 + $0x74c] ss:$16 sps:$4 sm:$0xff]   ;;  %v13969_v12 = vld [vmem:[%s19304_s7 + $0x740] ss:$16 sps:$4 sm:$0xff]  }
 0x618   : > { %11058 = vmatprep.subr.bf16.mxu0 %v13890_v53  ;;  %v13972_v53 = vld [vmem:[%s19304_s7 + $0x748] ss:$16 sps:$4 sm:$0xff]  }
 0x61a   : > { %10526 = vmatpush1.bf16.msra.mxu1 %v13885_v55  ;;  %v13977_v55 = vld [vmem:[%s19304_s7 + $0x764] ss:$16 sps:$4 sm:$0xff]  }
 0x61b   : > { %11059 = vmatpush1.bf16.msra.mxu0 %v13888_v20  ;;  %10527 = vmatprep.subr.bf16.mxu1 %v13893_v58  ;;  %v13980_v20 = vld [vmem:[%s19304_s7 + $0x76c] ss:$16 sps:$4 sm:$0xff]   ;;  %v13975_v58 = vld [vmem:[%s19304_s7 + $0x760] ss:$16 sps:$4 sm:$0xff]  }
 0x61c   : > { %11060 = vmatprep.subr.bf16.mxu0 %v13896_v0  ;;  %v13978_v0 = vld [vmem:[%s19304_s7 + $0x768] ss:$16 sps:$4 sm:$0xff]  }
 0x61e   : > { %10528 = vmatpush1.bf16.msra.mxu1 %v13891_v29  ;;  %v13983_v29 = vld [vmem:[%s19304_s7 + $0x784] ss:$16 sps:$4 sm:$0xff]  }
 0x61f   : > { %11061 = vmatpush1.bf16.msra.mxu0 %v13894_v1  ;;  %10529 = vmatprep.subr.bf16.mxu1 %v13899_v37  ;;  %v13986_v1 = vld [vmem:[%s19304_s7 + $0x78c] ss:$16 sps:$4 sm:$0xff]   ;;  %v13981_v37 = vld [vmem:[%s19304_s7 + $0x780] ss:$16 sps:$4 sm:$0xff]  }
 0x620   : > { %11062 = vmatprep.subr.bf16.mxu0 %v13902_v43  ;;  %v13984_v43 = vld [vmem:[%s19304_s7 + $0x788] ss:$16 sps:$4 sm:$0xff]  }
 0x622   : > { %10530 = vmatpush1.bf16.msra.mxu1 %v13897_v13  ;;  %v13989_v13 = vld [vmem:[%s19304_s7 + $0x7a4] ss:$16 sps:$4 sm:$0xff]  }
 0x623   : > { %11063 = vmatpush1.bf16.msra.mxu0 %v13900_v46  ;;  %10531 = vmatprep.subr.bf16.mxu1 %v13905_v25  ;;  %v13992_v46 = vld [vmem:[%s19304_s7 + $0x7ac] ss:$16 sps:$4 sm:$0xff]   ;;  %v13987_v25 = vld [vmem:[%s19304_s7 + $0x7a0] ss:$16 sps:$4 sm:$0xff]  }
 0x624   : > { %11064 = vmatprep.subr.bf16.mxu0 %v13908_v40  ;;  %v13990_v40 = vld [vmem:[%s19304_s7 + $0x7a8] ss:$16 sps:$4 sm:$0xff]  }
 0x626   : > { %10532 = vmatpush1.bf16.msra.mxu1 %v13903_v8  ;;  %v13995_v8 = vld [vmem:[%s19304_s7 + $0x7c4] ss:$16 sps:$4 sm:$0xff]  }
 0x627   : > { %11065 = vmatpush1.bf16.msra.mxu0 %v13906_v59  ;;  %10542 = vmatprep.subr.bf16.mxu1 %v13911_v4  ;;  %v13998_v59 = vld [vmem:[%s19304_s7 + $0x7cc] ss:$16 sps:$4 sm:$0xff]   ;;  %v13993_v4 = vld [vmem:[%s19304_s7 + $0x7c0] ss:$16 sps:$4 sm:$0xff]  }
 0x628   : > { %11075 = vmatprep.subr.bf16.mxu0 %v13914_v56  ;;  %v13996_v56 = vld [vmem:[%s19304_s7 + $0x7c8] ss:$16 sps:$4 sm:$0xff]  }
 0x629   : > { %10534 = vmatmul.mubr.bf16.vlgmr.msra.gmra.mrb[92].mxu1 %v5460_v18 }
 0x62a   : > { %11067 = vmatmul.mubr.bf16.vlgmr.msra.gmra.mrb[100].mxu0 %v5460_v18  ;;  %10543 = vmatpush1.bf16.msra.mxu1 %v13909_v14  ;;  %v14004_v14 = vld [vmem:[%s19304_s7 + $0x7ec] ss:$16 sps:$4 sm:$0xff]   ;;  %v14007_v18 = vld [vmem:[%s19304_s7 + $0x804] ss:$16 sps:$4 sm:$0xff]  }
 0x62b   : > { %10574 = vmatprep.mubr.bf16.mxu1 %v5472_v24  ;;  %11076 = vmatpush1.bf16.msra.mxu0 %v13912_v47  ;;  %v14002_v47 = vld [vmem:[%s19304_s7 + $0x7e8] ss:$16 sps:$4 sm:$0xff]  }
 0x62c   : > { %11107 = vmatprep.mubr.bf16.mxu0 %v5472_v24  ;;  %10544 = vmatprep.subr.bf16.mxu1 %v13917_v10  ;;  %v5431_v10 = vpop.permute.xlu1 %5430 }
 0x62d   : > { %11077 = vmatprep.subr.bf16.mxu0 %v13920_v31  ;;  %v14847_v31 = vld [vmem:[#allocation4 + $0x4] ss:$0 sps:$4 sm:$0x44]  }
 0x62e   : > { %10545 = vmatpush1.bf16.msra.mxu1 %v13915_v36  ;;  %v5425_v24 = vrot.slane %v14847_v31, 2  ;;  %v14005_v36 = vld [vmem:[%s19304_s7 + $0x800] ss:$16 sps:$4 sm:$0xff]   ;;  %v14097_v31 = vld [vmem:[%s19304_s7 + $0x9e4] ss:$16 sps:$4 sm:$0xff]  }
 0x62f   : > { %11078 = vmatpush1.bf16.msra.mxu0 %v13918_v32  ;;  %10546 = vmatprep.subr.bf16.mxu1 %v13923_v51  ;;  %v5491_v32 = vpop.permute.xlu0 %5490  ;;  %v14008_v51 = vld [vmem:[%s19304_s7 + $0x808] ss:$16 sps:$4 sm:$0xff]  }
 0x630   : > { %11079 = vmatprep.subr.bf16.mxu0 %v13926_v44  ;;  %v5468_v44 = vsel %vm556_vm0, %v5425_v24, %v5431_v10  ;;  %v14092_v10 = vld [vmem:[%s19304_s7 + $0x9c8] ss:$16 sps:$4 sm:$0xff]   ;;  %v14100_v24 = vld [vmem:[%s19304_s7 + $0x9ec] ss:$16 sps:$4 sm:$0xff]  }
 0x632   : > { %10547 = vmatpush1.bf16.msra.mxu1 %v13921_v2  ;;  %v5485_v2 = vrot.slane %v17065_v5, 1  ;;  %v14014_v5 = vld [vmem:[%s19304_s7 + $0x828] ss:$16 sps:$4 sm:$0xff]  }
 0x633   : > { %11080 = vmatpush1.bf16.msra.mxu0 %v13924_v34  ;;  %10548 = vmatprep.subr.bf16.mxu1 %v13929_v42  ;;  %v14013_v34 = vld [vmem:[%s19304_s7 + $0x824] ss:$16 sps:$4 sm:$0xff]   ;;  %v14016_v42 = vld [vmem:[%s19304_s7 + $0x82c] ss:$16 sps:$4 sm:$0xff]  }
 0x634   : > { %11081 = vmatprep.subr.bf16.mxu0 %v13932_v23  ;;  %v5556_v23 = vsel %vm556_vm0, %v5485_v2, %v5491_v32  ;;  %v14098_v32 = vld [vmem:[%s19304_s7 + $0x9e8] ss:$16 sps:$4 sm:$0xff]   ;;  %v5481_v2 = vpop.permute.xlu1 %5480 }
 0x636   : > { %10549 = vmatpush1.bf16.msra.mxu1 %v13927_v45  ;;  %v14011_v45 = vld [vmem:[%s19304_s7 + $0x820] ss:$16 sps:$4 sm:$0xff]  }
 0x637   : > { %11082 = vmatpush1.bf16.msra.mxu0 %v13930_v41  ;;  %10550 = vmatprep.subr.bf16.mxu1 %v13935_v7  ;;  %v14019_v41 = vld [vmem:[%s19304_s7 + $0x844] ss:$16 sps:$4 sm:$0xff]   ;;  %v14022_v7 = vld [vmem:[%s19304_s7 + $0x84c] ss:$16 sps:$4 sm:$0xff]  }
 0x638   : > { %11083 = vmatprep.subr.bf16.mxu0 %v13938_v50  ;;  %v14017_v50 = vld [vmem:[%s19304_s7 + $0x840] ss:$16 sps:$4 sm:$0xff]  }
 0x63a   : > { %10551 = vmatpush1.bf16.msra.mxu1 %v13933_v48  ;;  %v14020_v48 = vld [vmem:[%s19304_s7 + $0x848] ss:$16 sps:$4 sm:$0xff]  }
 0x63b   : > { %11084 = vmatpush1.bf16.msra.mxu0 %v13936_v63  ;;  %10552 = vmatprep.subr.bf16.mxu1 %v13941_v52  ;;  %v14025_v63 = vld [vmem:[%s19304_s7 + $0x864] ss:$16 sps:$4 sm:$0xff]   ;;  %v14028_v52 = vld [vmem:[%s19304_s7 + $0x86c] ss:$16 sps:$4 sm:$0xff]  }
 0x63c   : > { %11085 = vmatprep.subr.bf16.mxu0 %v13944_v16  ;;  %v14023_v16 = vld [vmem:[%s19304_s7 + $0x860] ss:$16 sps:$4 sm:$0xff]  }
 0x63e   : > { %10553 = vmatpush1.bf16.msra.mxu1 %v13939_v60  ;;  %v14026_v60 = vld [vmem:[%s19304_s7 + $0x868] ss:$16 sps:$4 sm:$0xff]  }
 0x63f   : > { %11086 = vmatpush1.bf16.msra.mxu0 %v13942_v28  ;;  %10554 = vmatprep.subr.bf16.mxu1 %v13947_v15  ;;  %v14031_v28 = vld [vmem:[%s19304_s7 + $0x884] ss:$16 sps:$4 sm:$0xff]   ;;  %v14034_v15 = vld [vmem:[%s19304_s7 + $0x88c] ss:$16 sps:$4 sm:$0xff]  }
 0x640   : > { %11087 = vmatprep.subr.bf16.mxu0 %v13950_v57  ;;  %v14029_v57 = vld [vmem:[%s19304_s7 + $0x880] ss:$16 sps:$4 sm:$0xff]  }
 0x642   : > { %10555 = vmatpush1.bf16.msra.mxu1 %v13945_v11  ;;  %v14032_v11 = vld [vmem:[%s19304_s7 + $0x888] ss:$16 sps:$4 sm:$0xff]  }
 0x643   : > { %11088 = vmatpush1.bf16.msra.mxu0 %v13948_v17  ;;  %10556 = vmatprep.subr.bf16.mxu1 %v13953_v62  ;;  %v14037_v17 = vld [vmem:[%s19304_s7 + $0x8a4] ss:$16 sps:$4 sm:$0xff]   ;;  %v14040_v62 = vld [vmem:[%s19304_s7 + $0x8ac] ss:$16 sps:$4 sm:$0xff]  }
 0x644   : > { %11089 = vmatprep.subr.bf16.mxu0 %v13956_v35  ;;  %v14035_v35 = vld [vmem:[%s19304_s7 + $0x8a0] ss:$16 sps:$4 sm:$0xff]  }
 0x646   : > { %10557 = vmatpush1.bf16.msra.mxu1 %v13951_v27  ;;  %v14038_v27 = vld [vmem:[%s19304_s7 + $0x8a8] ss:$16 sps:$4 sm:$0xff]  }
 0x647   : > { %11090 = vmatpush1.bf16.msra.mxu0 %v13954_v19  ;;  %10558 = vmatprep.subr.bf16.mxu1 %v13959_v3  ;;  %v14043_v19 = vld [vmem:[%s19304_s7 + $0x8c4] ss:$16 sps:$4 sm:$0xff]   ;;  %v14046_v3 = vld [vmem:[%s19304_s7 + $0x8cc] ss:$16 sps:$4 sm:$0xff]  }
 0x648   : > { %11091 = vmatprep.subr.bf16.mxu0 %v13962_v6  ;;  %v14041_v6 = vld [vmem:[%s19304_s7 + $0x8c0] ss:$16 sps:$4 sm:$0xff]  }
 0x64a   : > { %10559 = vmatpush1.bf16.msra.mxu1 %v13957_v30  ;;  %v14044_v30 = vld [vmem:[%s19304_s7 + $0x8c8] ss:$16 sps:$4 sm:$0xff]  }
 0x64b   : > { %11092 = vmatpush1.bf16.msra.mxu0 %v13960_v26  ;;  %10560 = vmatprep.subr.bf16.mxu1 %v13965_v33  ;;  %v14049_v26 = vld [vmem:[%s19304_s7 + $0x8e4] ss:$16 sps:$4 sm:$0xff]   ;;  %v14052_v33 = vld [vmem:[%s19304_s7 + $0x8ec] ss:$16 sps:$4 sm:$0xff]  }
 0x64c   : > { %11093 = vmatprep.subr.bf16.mxu0 %v13968_v49  ;;  %v14047_v49 = vld [vmem:[%s19304_s7 + $0x8e0] ss:$16 sps:$4 sm:$0xff]  }
 0x64e   : > { %10561 = vmatpush1.bf16.msra.mxu1 %v13963_v39  ;;  %v14050_v39 = vld [vmem:[%s19304_s7 + $0x8e8] ss:$16 sps:$4 sm:$0xff]  }
 0x64f   : > { %11094 = vmatpush1.bf16.msra.mxu0 %v13966_v21  ;;  %10562 = vmatprep.subr.bf16.mxu1 %v13971_v54  ;;  %v14055_v21 = vld [vmem:[%s19304_s7 + $0x904] ss:$16 sps:$4 sm:$0xff]   ;;  %v14058_v54 = vld [vmem:[%s19304_s7 + $0x90c] ss:$16 sps:$4 sm:$0xff]  }
 0x650   : > { %11095 = vmatprep.subr.bf16.mxu0 %v13974_v61  ;;  %v14053_v61 = vld [vmem:[%s19304_s7 + $0x900] ss:$16 sps:$4 sm:$0xff]  }
 0x652   : > { %10563 = vmatpush1.bf16.msra.mxu1 %v13969_v12  ;;  %v14056_v12 = vld [vmem:[%s19304_s7 + $0x908] ss:$16 sps:$4 sm:$0xff]  }
 0x653   : > { %11096 = vmatpush1.bf16.msra.mxu0 %v13972_v53  ;;  %10564 = vmatprep.subr.bf16.mxu1 %v13977_v55  ;;  %v14061_v53 = vld [vmem:[%s19304_s7 + $0x924] ss:$16 sps:$4 sm:$0xff]   ;;  %v14064_v55 = vld [vmem:[%s19304_s7 + $0x92c] ss:$16 sps:$4 sm:$0xff]  }
 0x654   : > { %11097 = vmatprep.subr.bf16.mxu0 %v13980_v20  ;;  %v14059_v20 = vld [vmem:[%s19304_s7 + $0x920] ss:$16 sps:$4 sm:$0xff]  }
 0x656   : > { %10565 = vmatpush1.bf16.msra.mxu1 %v13975_v58  ;;  %v14062_v58 = vld [vmem:[%s19304_s7 + $0x928] ss:$16 sps:$4 sm:$0xff]  }
 0x657   : > { %11098 = vmatpush1.bf16.msra.mxu0 %v13978_v0  ;;  %10566 = vmatprep.subr.bf16.mxu1 %v13983_v29  ;;  %v14067_v0 = vld [vmem:[%s19304_s7 + $0x944] ss:$16 sps:$4 sm:$0xff]   ;;  %v14070_v29 = vld [vmem:[%s19304_s7 + $0x94c] ss:$16 sps:$4 sm:$0xff]  }
 0x658   : > { %11099 = vmatprep.subr.bf16.mxu0 %v13986_v1  ;;  %v14065_v1 = vld [vmem:[%s19304_s7 + $0x940] ss:$16 sps:$4 sm:$0xff]  }
 0x65a   : > { %10567 = vmatpush1.bf16.msra.mxu1 %v13981_v37  ;;  %v14068_v37 = vld [vmem:[%s19304_s7 + $0x948] ss:$16 sps:$4 sm:$0xff]  }
 0x65b   : > { %11100 = vmatpush1.bf16.msra.mxu0 %v13984_v43  ;;  %10568 = vmatprep.subr.bf16.mxu1 %v13989_v13  ;;  %v14073_v43 = vld [vmem:[%s19304_s7 + $0x964] ss:$16 sps:$4 sm:$0xff]   ;;  %v14076_v13 = vld [vmem:[%s19304_s7 + $0x96c] ss:$16 sps:$4 sm:$0xff]  }
 0x65c   : > { %11101 = vmatprep.subr.bf16.mxu0 %v13992_v46  ;;  %v14071_v46 = vld [vmem:[%s19304_s7 + $0x960] ss:$16 sps:$4 sm:$0xff]  }
 0x65e   : > { %10569 = vmatpush1.bf16.msra.mxu1 %v13987_v25  ;;  %v14074_v25 = vld [vmem:[%s19304_s7 + $0x968] ss:$16 sps:$4 sm:$0xff]  }
 0x65f   : > { %11102 = vmatpush1.bf16.msra.mxu0 %v13990_v40  ;;  %10570 = vmatprep.subr.bf16.mxu1 %v13995_v8  ;;  %v14079_v40 = vld [vmem:[%s19304_s7 + $0x984] ss:$16 sps:$4 sm:$0xff]   ;;  %v14082_v8 = vld [vmem:[%s19304_s7 + $0x98c] ss:$16 sps:$4 sm:$0xff]  }
 0x660   : > { %11103 = vmatprep.subr.bf16.mxu0 %v13998_v59  ;;  %v14077_v59 = vld [vmem:[%s19304_s7 + $0x980] ss:$16 sps:$4 sm:$0xff]  }
 0x662   : > { %10571 = vmatpush1.bf16.msra.mxu1 %v13993_v4  ;;  %v14080_v4 = vld [vmem:[%s19304_s7 + $0x988] ss:$16 sps:$4 sm:$0xff]  }
 0x663   : > { %11104 = vmatpush1.bf16.msra.mxu0 %v13996_v56  ;;  %10572 = vmatprep.subr.bf16.mxu1 %v14001_v22  ;;  %v14085_v56 = vld [vmem:[%s19304_s7 + $0x9a4] ss:$16 sps:$4 sm:$0xff]   ;;  %v14088_v22 = vld [vmem:[%s19304_s7 + $0x9ac] ss:$16 sps:$4 sm:$0xff]  }
 0x664   : > { %11105 = vmatprep.subr.bf16.mxu0 %v14004_v14  ;;  %v14083_v14 = vld [vmem:[%s19304_s7 + $0x9a0] ss:$16 sps:$4 sm:$0xff]  }
 0x666   : > { %10573 = vmatpush1.bf16.msra.mxu1 %v13999_v9  ;;  %v14086_v9 = vld [vmem:[%s19304_s7 + $0x9a8] ss:$16 sps:$4 sm:$0xff]  }
 0x667   : > { %11106 = vmatpush1.bf16.msra.mxu0 %v14002_v47  ;;  %10583 = vmatprep.subr.bf16.mxu1 %v14007_v18  ;;  %v14091_v47 = vld [vmem:[%s19304_s7 + $0x9c4] ss:$16 sps:$4 sm:$0xff]   ;;  %v14094_v18 = vld [vmem:[%s19304_s7 + $0x9cc] ss:$16 sps:$4 sm:$0xff]  }
 0x668   : > { %11116 = vmatprep.subr.bf16.mxu0 %v14010_v38  ;;  %v14089_v38 = vld [vmem:[%s19304_s7 + $0x9c0] ss:$16 sps:$4 sm:$0xff]  }
 0x669   : > { %10575 = vmatmul.mubr.bf16.vlgmr.msra.gmra.mrb[92].mxu1 %v5468_v44 }
 0x66a   : > { %11108 = vmatmul.mubr.bf16.vlgmr.msra.gmra.mrb[100].mxu0 %v5468_v44  ;;  %10584 = vmatpush1.bf16.msra.mxu1 %v14005_v36  ;;  %v14095_v36 = vld [vmem:[%s19304_s7 + $0x9e0] ss:$16 sps:$4 sm:$0xff]   ;;  %v14106_v44 = vld [vmem:[%s19304_s7 + $0xa0c] ss:$16 sps:$4 sm:$0xff]  }
 0x66b   : > { %10615 = vmatprep.mubr.bf16.mxu1 %v5556_v23  ;;  %11117 = vmatpush1.bf16.msra.mxu0 %v14008_v51  ;;  %v14103_v51 = vld [vmem:[%s19304_s7 + $0xa04] ss:$16 sps:$4 sm:$0xff]  }
 0x66c   : > { %11148 = vmatprep.mubr.bf16.mxu0 %v5556_v23  ;;  %10585 = vmatprep.subr.bf16.mxu1 %v14013_v34  ;;  %v14101_v34 = vld [vmem:[%s19304_s7 + $0xa00] ss:$16 sps:$4 sm:$0xff]   ;;  %v14104_v23 = vld [vmem:[%s19304_s7 + $0xa08] ss:$16 sps:$4 sm:$0xff]  }
 0x66d   : > { %11118 = vmatprep.subr.bf16.mxu0 %v14016_v42  ;;  %v5511_v42 = vpop.permute.xlu0 %5510 }
 0x66e   : > { %10586 = vmatpush1.bf16.msra.mxu1 %v14011_v45  ;;  %v14848_v45 = vld [vmem:[#allocation4 + $0x8] sm:$0x1] }
 0x66f   : > { %11119 = vmatpush1.bf16.msra.mxu0 %v14014_v5  ;;  %10587 = vmatprep.subr.bf16.mxu1 %v14019_v41  ;;  %v5552_v5 = vsel %vm556_vm0, %v14848_v45, %v5481_v2  ;;  %v14849_v41 = vld [vmem:[#allocation4 + $0x8] ss:$0 sps:$4 sm:$0x88]   ;;  %v14188_v2 = vld [vmem:[%s19304_s7 + $0xbc8] ss:$16 sps:$4 sm:$0xff]  }
 0x670   : > { %11120 = vmatprep.subr.bf16.mxu0 %v14022_v7  ;;  %v5505_v7 = vrot.slane %v14849_v41, 3  ;;  %v14194_v45 = vld [vmem:[%s19304_s7 + $0xbe8] ss:$16 sps:$4 sm:$0xff]   ;;  %v14202_v41 = vld [vmem:[%s19304_s7 + $0xc0c] ss:$16 sps:$4 sm:$0xff]  }
 0x672   : > { %10588 = vmatpush1.bf16.msra.mxu1 %v14017_v50  ;;  %v14109_v50 = vld [vmem:[%s19304_s7 + $0xa24] ss:$16 sps:$4 sm:$0xff]  }
 0x673   : > { %11121 = vmatpush1.bf16.msra.mxu0 %v14020_v48  ;;  %10589 = vmatprep.subr.bf16.mxu1 %v14025_v63  ;;  %v14112_v48 = vld [vmem:[%s19304_s7 + $0xa2c] ss:$16 sps:$4 sm:$0xff]   ;;  %v5564_v63 = vsel %vm556_vm0, %v5505_v7, %v5511_v42  ;;  %v5501_v7 = vpop.permute.xlu1 %5500 }
 0x674   : > { %11122 = vmatprep.subr.bf16.mxu0 %v14028_v52  ;;  %v14107_v52 = vld [vmem:[%s19304_s7 + $0xa20] ss:$16 sps:$4 sm:$0xff]   ;;  %v14196_v42 = vld [vmem:[%s19304_s7 + $0xbec] ss:$16 sps:$4 sm:$0xff]  }
 0x676   : > { %10590 = vmatpush1.bf16.msra.mxu1 %v14023_v16  ;;  %v14110_v16 = vld [vmem:[%s19304_s7 + $0xa28] ss:$16 sps:$4 sm:$0xff]  }
 0x677   : > { %11123 = vmatpush1.bf16.msra.mxu0 %v14026_v60  ;;  %10591 = vmatprep.subr.bf16.mxu1 %v14031_v28  ;;  %v14115_v60 = vld [vmem:[%s19304_s7 + $0xa44] ss:$16 sps:$4 sm:$0xff]   ;;  %v14118_v28 = vld [vmem:[%s19304_s7 + $0xa4c] ss:$16 sps:$4 sm:$0xff]  }
 0x678   : > { %11124 = vmatprep.subr.bf16.mxu0 %v14034_v15  ;;  %v14113_v15 = vld [vmem:[%s19304_s7 + $0xa40] ss:$16 sps:$4 sm:$0xff]  }
 0x67a   : > { %10592 = vmatpush1.bf16.msra.mxu1 %v14029_v57  ;;  %v14116_v57 = vld [vmem:[%s19304_s7 + $0xa48] ss:$16 sps:$4 sm:$0xff]  }
 0x67b   : > { %11125 = vmatpush1.bf16.msra.mxu0 %v14032_v11  ;;  %10593 = vmatprep.subr.bf16.mxu1 %v14037_v17  ;;  %v14121_v11 = vld [vmem:[%s19304_s7 + $0xa64] ss:$16 sps:$4 sm:$0xff]   ;;  %v14124_v17 = vld [vmem:[%s19304_s7 + $0xa6c] ss:$16 sps:$4 sm:$0xff]  }
 0x67c   : > { %11126 = vmatprep.subr.bf16.mxu0 %v14040_v62  ;;  %v14119_v62 = vld [vmem:[%s19304_s7 + $0xa60] ss:$16 sps:$4 sm:$0xff]  }
 0x67e   : > { %10594 = vmatpush1.bf16.msra.mxu1 %v14035_v35  ;;  %v14122_v35 = vld [vmem:[%s19304_s7 + $0xa68] ss:$16 sps:$4 sm:$0xff]  }
 0x67f   : > { %11127 = vmatpush1.bf16.msra.mxu0 %v14038_v27  ;;  %10595 = vmatprep.subr.bf16.mxu1 %v14043_v19  ;;  %v14127_v27 = vld [vmem:[%s19304_s7 + $0xa84] ss:$16 sps:$4 sm:$0xff]   ;;  %v14130_v19 = vld [vmem:[%s19304_s7 + $0xa8c] ss:$16 sps:$4 sm:$0xff]  }
 0x680   : > { %11128 = vmatprep.subr.bf16.mxu0 %v14046_v3  ;;  %v14125_v3 = vld [vmem:[%s19304_s7 + $0xa80] ss:$16 sps:$4 sm:$0xff]  }
 0x682   : > { %10596 = vmatpush1.bf16.msra.mxu1 %v14041_v6  ;;  %v14128_v6 = vld [vmem:[%s19304_s7 + $0xa88] ss:$16 sps:$4 sm:$0xff]  }
 0x683   : > { %11129 = vmatpush1.bf16.msra.mxu0 %v14044_v30  ;;  %10597 = vmatprep.subr.bf16.mxu1 %v14049_v26  ;;  %v14133_v30 = vld [vmem:[%s19304_s7 + $0xaa4] ss:$16 sps:$4 sm:$0xff]   ;;  %v14136_v26 = vld [vmem:[%s19304_s7 + $0xaac] ss:$16 sps:$4 sm:$0xff]  }
 0x684   : > { %11130 = vmatprep.subr.bf16.mxu0 %v14052_v33  ;;  %v14131_v33 = vld [vmem:[%s19304_s7 + $0xaa0] ss:$16 sps:$4 sm:$0xff]  }
 0x686   : > { %10598 = vmatpush1.bf16.msra.mxu1 %v14047_v49  ;;  %v14134_v49 = vld [vmem:[%s19304_s7 + $0xaa8] ss:$16 sps:$4 sm:$0xff]  }
 0x687   : > { %11131 = vmatpush1.bf16.msra.mxu0 %v14050_v39  ;;  %10599 = vmatprep.subr.bf16.mxu1 %v14055_v21  ;;  %v14139_v39 = vld [vmem:[%s19304_s7 + $0xac4] ss:$16 sps:$4 sm:$0xff]   ;;  %v14142_v21 = vld [vmem:[%s19304_s7 + $0xacc] ss:$16 sps:$4 sm:$0xff]  }
 0x688   : > { %11132 = vmatprep.subr.bf16.mxu0 %v14058_v54  ;;  %v14137_v54 = vld [vmem:[%s19304_s7 + $0xac0] ss:$16 sps:$4 sm:$0xff]  }
 0x68a   : > { %10600 = vmatpush1.bf16.msra.mxu1 %v14053_v61  ;;  %v14140_v61 = vld [vmem:[%s19304_s7 + $0xac8] ss:$16 sps:$4 sm:$0xff]  }
 0x68b   : > { %11133 = vmatpush1.bf16.msra.mxu0 %v14056_v12  ;;  %10601 = vmatprep.subr.bf16.mxu1 %v14061_v53  ;;  %v14145_v12 = vld [vmem:[%s19304_s7 + $0xae4] ss:$16 sps:$4 sm:$0xff]   ;;  %v14148_v53 = vld [vmem:[%s19304_s7 + $0xaec] ss:$16 sps:$4 sm:$0xff]  }
 0x68c   : > { %11134 = vmatprep.subr.bf16.mxu0 %v14064_v55  ;;  %v14143_v55 = vld [vmem:[%s19304_s7 + $0xae0] ss:$16 sps:$4 sm:$0xff]  }
 0x68e   : > { %10602 = vmatpush1.bf16.msra.mxu1 %v14059_v20  ;;  %v14146_v20 = vld [vmem:[%s19304_s7 + $0xae8] ss:$16 sps:$4 sm:$0xff]  }
 0x68f   : > { %11135 = vmatpush1.bf16.msra.mxu0 %v14062_v58  ;;  %10603 = vmatprep.subr.bf16.mxu1 %v14067_v0  ;;  %v14151_v58 = vld [vmem:[%s19304_s7 + $0xb04] ss:$16 sps:$4 sm:$0xff]   ;;  %v14154_v0 = vld [vmem:[%s19304_s7 + $0xb0c] ss:$16 sps:$4 sm:$0xff]  }
 0x690   : > { %11136 = vmatprep.subr.bf16.mxu0 %v14070_v29  ;;  %v14149_v29 = vld [vmem:[%s19304_s7 + $0xb00] ss:$16 sps:$4 sm:$0xff]  }
 0x692   : > { %10604 = vmatpush1.bf16.msra.mxu1 %v14065_v1  ;;  %v14152_v1 = vld [vmem:[%s19304_s7 + $0xb08] ss:$16 sps:$4 sm:$0xff]  }
 0x693   : > { %11137 = vmatpush1.bf16.msra.mxu0 %v14068_v37  ;;  %10605 = vmatprep.subr.bf16.mxu1 %v14073_v43  ;;  %v14157_v37 = vld [vmem:[%s19304_s7 + $0xb24] ss:$16 sps:$4 sm:$0xff]   ;;  %v14160_v43 = vld [vmem:[%s19304_s7 + $0xb2c] ss:$16 sps:$4 sm:$0xff]  }
 0x694   : > { %11138 = vmatprep.subr.bf16.mxu0 %v14076_v13  ;;  %v14155_v13 = vld [vmem:[%s19304_s7 + $0xb20] ss:$16 sps:$4 sm:$0xff]  }
 0x696   : > { %10606 = vmatpush1.bf16.msra.mxu1 %v14071_v46  ;;  %v14158_v46 = vld [vmem:[%s19304_s7 + $0xb28] ss:$16 sps:$4 sm:$0xff]  }
 0x697   : > { %11139 = vmatpush1.bf16.msra.mxu0 %v14074_v25  ;;  %10607 = vmatprep.subr.bf16.mxu1 %v14079_v40  ;;  %v14163_v25 = vld [vmem:[%s19304_s7 + $0xb44] ss:$16 sps:$4 sm:$0xff]   ;;  %v14166_v40 = vld [vmem:[%s19304_s7 + $0xb4c] ss:$16 sps:$4 sm:$0xff]  }
 0x698   : > { %11140 = vmatprep.subr.bf16.mxu0 %v14082_v8  ;;  %v14161_v8 = vld [vmem:[%s19304_s7 + $0xb40] ss:$16 sps:$4 sm:$0xff]  }
 0x69a   : > { %10608 = vmatpush1.bf16.msra.mxu1 %v14077_v59  ;;  %v14164_v59 = vld [vmem:[%s19304_s7 + $0xb48] ss:$16 sps:$4 sm:$0xff]  }
 0x69b   : > { %11141 = vmatpush1.bf16.msra.mxu0 %v14080_v4  ;;  %10609 = vmatprep.subr.bf16.mxu1 %v14085_v56  ;;  %v14169_v4 = vld [vmem:[%s19304_s7 + $0xb64] ss:$16 sps:$4 sm:$0xff]   ;;  %v14172_v56 = vld [vmem:[%s19304_s7 + $0xb6c] ss:$16 sps:$4 sm:$0xff]  }
 0x69c   : > { %11142 = vmatprep.subr.bf16.mxu0 %v14088_v22  ;;  %v14167_v22 = vld [vmem:[%s19304_s7 + $0xb60] ss:$16 sps:$4 sm:$0xff]  }
 0x69e   : > { %10610 = vmatpush1.bf16.msra.mxu1 %v14083_v14  ;;  %v14170_v14 = vld [vmem:[%s19304_s7 + $0xb68] ss:$16 sps:$4 sm:$0xff]  }
 0x69f   : > { %11143 = vmatpush1.bf16.msra.mxu0 %v14086_v9  ;;  %10611 = vmatprep.subr.bf16.mxu1 %v14091_v47  ;;  %v14175_v9 = vld [vmem:[%s19304_s7 + $0xb84] ss:$16 sps:$4 sm:$0xff]   ;;  %v14178_v47 = vld [vmem:[%s19304_s7 + $0xb8c] ss:$16 sps:$4 sm:$0xff]  }
 0x6a0   : > { %11144 = vmatprep.subr.bf16.mxu0 %v14094_v18  ;;  %v14173_v18 = vld [vmem:[%s19304_s7 + $0xb80] ss:$16 sps:$4 sm:$0xff]  }
 0x6a2   : > { %10612 = vmatpush1.bf16.msra.mxu1 %v14089_v38  ;;  %v14176_v38 = vld [vmem:[%s19304_s7 + $0xb88] ss:$16 sps:$4 sm:$0xff]  }
 0x6a3   : > { %11145 = vmatpush1.bf16.msra.mxu0 %v14092_v10  ;;  %10613 = vmatprep.subr.bf16.mxu1 %v14097_v31  ;;  %v14181_v10 = vld [vmem:[%s19304_s7 + $0xba4] ss:$16 sps:$4 sm:$0xff]   ;;  %v14184_v31 = vld [vmem:[%s19304_s7 + $0xbac] ss:$16 sps:$4 sm:$0xff]  }
 0x6a4   : > { %11146 = vmatprep.subr.bf16.mxu0 %v14100_v24  ;;  %v14179_v24 = vld [vmem:[%s19304_s7 + $0xba0] ss:$16 sps:$4 sm:$0xff]  }
 0x6a6   : > { %10614 = vmatpush1.bf16.msra.mxu1 %v14095_v36  ;;  %v14182_v36 = vld [vmem:[%s19304_s7 + $0xba8] ss:$16 sps:$4 sm:$0xff]  }
 0x6a7   : > { %11147 = vmatpush1.bf16.msra.mxu0 %v14098_v32  ;;  %10624 = vmatprep.subr.bf16.mxu1 %v14103_v51  ;;  %v14187_v32 = vld [vmem:[%s19304_s7 + $0xbc4] ss:$16 sps:$4 sm:$0xff]   ;;  %v14190_v51 = vld [vmem:[%s19304_s7 + $0xbcc] ss:$16 sps:$4 sm:$0xff]  }
 0x6a8   : > { %11157 = vmatprep.subr.bf16.mxu0 %v14106_v44  ;;  %v14185_v44 = vld [vmem:[%s19304_s7 + $0xbc0] ss:$16 sps:$4 sm:$0xff]  }
 0x6a9   : > { %10616 = vmatmul.mubr.bf16.vlgmr.msra.gmra.mrb[92].mxu1 %v5552_v5 }
 0x6aa   : > { %11149 = vmatmul.mubr.bf16.vlgmr.msra.gmra.mrb[100].mxu0 %v5552_v5  ;;  %10625 = vmatpush1.bf16.msra.mxu1 %v14101_v34  ;;  %v14193_v34 = vld [vmem:[%s19304_s7 + $0xbe4] ss:$16 sps:$4 sm:$0xff]  }
 0x6ab   : > { %10656 = vmatprep.mubr.bf16.mxu1 %v5564_v63  ;;  %11158 = vmatpush1.bf16.msra.mxu0 %v14104_v23  ;;  %v14191_v23 = vld [vmem:[%s19304_s7 + $0xbe0] ss:$16 sps:$4 sm:$0xff]   ;;  %v14199_v5 = vld [vmem:[%s19304_s7 + $0xc04] ss:$16 sps:$4 sm:$0xff]  }
 0x6ac   : > { %11189 = vmatprep.mubr.bf16.mxu0 %v5564_v63  ;;  %10626 = vmatprep.subr.bf16.mxu1 %v14109_v50  ;;  %v14850_v50 = vld [vmem:[#allocation4 + $0x8] ss:$0 sps:$4 sm:$0x44]   ;;  %v14197_v63 = vld [vmem:[%s19304_s7 + $0xc00] ss:$16 sps:$4 sm:$0xff]  }
 0x6ad   : > { %11159 = vmatprep.subr.bf16.mxu0 %v14112_v48  ;;  %v5495_v48 = vrot.slane %v14850_v50, 2  ;;  %v14284_v50 = vld [vmem:[%s19304_s7 + $0xdc8] ss:$16 sps:$4 sm:$0xff]  }
 0x6ae   : > { %10627 = vmatpush1.bf16.msra.mxu1 %v14107_v52  ;;  %v5529_v52 = vpop.permute.xlu0 %5528 }
 0x6af   : > { %11160 = vmatpush1.bf16.msra.mxu0 %v14110_v16  ;;  %10628 = vmatprep.subr.bf16.mxu1 %v14115_v60  ;;  %v14200_v16 = vld [vmem:[%s19304_s7 + $0xc08] ss:$16 sps:$4 sm:$0xff]   ;;  %v5560_v60 = vsel %vm556_vm0, %v5495_v48, %v5501_v7  ;;  %v14281_v7 = vld [vmem:[%s19304_s7 + $0xdc0] ss:$16 sps:$4 sm:$0xff]   ;;  %v14289_v48 = vld [vmem:[%s19304_s7 + $0xde4] ss:$16 sps:$4 sm:$0xff]  }
 0x6b0   : > { %11161 = vmatprep.subr.bf16.mxu0 %v14118_v28  ;;  %v14851_v28 = vld [vmem:[#allocation4 + $0xc] ss:$0 sps:$4 sm:$0x22]  }
 0x6b2   : > { %10629 = vmatpush1.bf16.msra.mxu1 %v14113_v15  ;;  %v5523_v15 = vrot.slane %v14851_v28, 1  ;;  %v14298_v28 = vld [vmem:[%s19304_s7 + $0xe0c] ss:$16 sps:$4 sm:$0xff]  }
 0x6b3   : > { %11162 = vmatpush1.bf16.msra.mxu0 %v14116_v57  ;;  %10630 = vmatprep.subr.bf16.mxu1 %v14121_v11  ;;  %v14205_v57 = vld [vmem:[%s19304_s7 + $0xc24] ss:$16 sps:$4 sm:$0xff]   ;;  %v14208_v11 = vld [vmem:[%s19304_s7 + $0xc2c] ss:$16 sps:$4 sm:$0xff]  }
 0x6b4   : > { %11163 = vmatprep.subr.bf16.mxu0 %v14124_v17  ;;  %v5572_v17 = vsel %vm556_vm0, %v5523_v15, %v5529_v52  ;;  %v14287_v52 = vld [vmem:[%s19304_s7 + $0xde0] ss:$16 sps:$4 sm:$0xff]   ;;  %v5519_v15 = vpop.permute.xlu1 %5518 }
 0x6b6   : > { %10631 = vmatpush1.bf16.msra.mxu1 %v14119_v62  ;;  %v14203_v62 = vld [vmem:[%s19304_s7 + $0xc20] ss:$16 sps:$4 sm:$0xff]  }
 0x6b7   : > { %11164 = vmatpush1.bf16.msra.mxu0 %v14122_v35  ;;  %10632 = vmatprep.subr.bf16.mxu1 %v14127_v27  ;;  %v14206_v35 = vld [vmem:[%s19304_s7 + $0xc28] ss:$16 sps:$4 sm:$0xff]   ;;  %v14211_v27 = vld [vmem:[%s19304_s7 + $0xc44] ss:$16 sps:$4 sm:$0xff]  }
 0x6b8   : > { %11165 = vmatprep.subr.bf16.mxu0 %v14130_v19  ;;  %v14214_v19 = vld [vmem:[%s19304_s7 + $0xc4c] ss:$16 sps:$4 sm:$0xff]  }
 0x6ba   : > { %10633 = vmatpush1.bf16.msra.mxu1 %v14125_v3  ;;  %v14209_v3 = vld [vmem:[%s19304_s7 + $0xc40] ss:$16 sps:$4 sm:$0xff]  }
 0x6bb   : > { %11166 = vmatpush1.bf16.msra.mxu0 %v14128_v6  ;;  %10634 = vmatprep.subr.bf16.mxu1 %v14133_v30  ;;  %v14212_v6 = vld [vmem:[%s19304_s7 + $0xc48] ss:$16 sps:$4 sm:$0xff]   ;;  %v14217_v30 = vld [vmem:[%s19304_s7 + $0xc64] ss:$16 sps:$4 sm:$0xff]  }
 0x6bc   : > { %11167 = vmatprep.subr.bf16.mxu0 %v14136_v26  ;;  %v14220_v26 = vld [vmem:[%s19304_s7 + $0xc6c] ss:$16 sps:$4 sm:$0xff]  }
 0x6be   : > { %10635 = vmatpush1.bf16.msra.mxu1 %v14131_v33  ;;  %v14215_v33 = vld [vmem:[%s19304_s7 + $0xc60] ss:$16 sps:$4 sm:$0xff]  }
 0x6bf   : > { %11168 = vmatpush1.bf16.msra.mxu0 %v14134_v49  ;;  %10636 = vmatprep.subr.bf16.mxu1 %v14139_v39  ;;  %v14218_v49 = vld [vmem:[%s19304_s7 + $0xc68] ss:$16 sps:$4 sm:$0xff]   ;;  %v14223_v39 = vld [vmem:[%s19304_s7 + $0xc84] ss:$16 sps:$4 sm:$0xff]  }
 0x6c0   : > { %11169 = vmatprep.subr.bf16.mxu0 %v14142_v21  ;;  %v14226_v21 = vld [vmem:[%s19304_s7 + $0xc8c] ss:$16 sps:$4 sm:$0xff]  }
 0x6c2   : > { %10637 = vmatpush1.bf16.msra.mxu1 %v14137_v54  ;;  %v14221_v54 = vld [vmem:[%s19304_s7 + $0xc80] ss:$16 sps:$4 sm:$0xff]  }
 0x6c3   : > { %11170 = vmatpush1.bf16.msra.mxu0 %v14140_v61  ;;  %10638 = vmatprep.subr.bf16.mxu1 %v14145_v12  ;;  %v14224_v61 = vld [vmem:[%s19304_s7 + $0xc88] ss:$16 sps:$4 sm:$0xff]   ;;  %v14229_v12 = vld [vmem:[%s19304_s7 + $0xca4] ss:$16 sps:$4 sm:$0xff]  }
 0x6c4   : > { %11171 = vmatprep.subr.bf16.mxu0 %v14148_v53  ;;  %v14232_v53 = vld [vmem:[%s19304_s7 + $0xcac] ss:$16 sps:$4 sm:$0xff]  }
 0x6c6   : > { %10639 = vmatpush1.bf16.msra.mxu1 %v14143_v55  ;;  %v14227_v55 = vld [vmem:[%s19304_s7 + $0xca0] ss:$16 sps:$4 sm:$0xff]  }
 0x6c7   : > { %11172 = vmatpush1.bf16.msra.mxu0 %v14146_v20  ;;  %10640 = vmatprep.subr.bf16.mxu1 %v14151_v58  ;;  %v14230_v20 = vld [vmem:[%s19304_s7 + $0xca8] ss:$16 sps:$4 sm:$0xff]   ;;  %v14235_v58 = vld [vmem:[%s19304_s7 + $0xcc4] ss:$16 sps:$4 sm:$0xff]  }
 0x6c8   : > { %11173 = vmatprep.subr.bf16.mxu0 %v14154_v0  ;;  %v14238_v0 = vld [vmem:[%s19304_s7 + $0xccc] ss:$16 sps:$4 sm:$0xff]  }
 0x6ca   : > { %10641 = vmatpush1.bf16.msra.mxu1 %v14149_v29  ;;  %v14233_v29 = vld [vmem:[%s19304_s7 + $0xcc0] ss:$16 sps:$4 sm:$0xff]  }
 0x6cb   : > { %11174 = vmatpush1.bf16.msra.mxu0 %v14152_v1  ;;  %10642 = vmatprep.subr.bf16.mxu1 %v14157_v37  ;;  %v14236_v1 = vld [vmem:[%s19304_s7 + $0xcc8] ss:$16 sps:$4 sm:$0xff]   ;;  %v14241_v37 = vld [vmem:[%s19304_s7 + $0xce4] ss:$16 sps:$4 sm:$0xff]  }
 0x6cc   : > { %11175 = vmatprep.subr.bf16.mxu0 %v14160_v43  ;;  %v14244_v43 = vld [vmem:[%s19304_s7 + $0xcec] ss:$16 sps:$4 sm:$0xff]  }
 0x6ce   : > { %10643 = vmatpush1.bf16.msra.mxu1 %v14155_v13  ;;  %v14239_v13 = vld [vmem:[%s19304_s7 + $0xce0] ss:$16 sps:$4 sm:$0xff]  }
 0x6cf   : > { %11176 = vmatpush1.bf16.msra.mxu0 %v14158_v46  ;;  %10644 = vmatprep.subr.bf16.mxu1 %v14163_v25  ;;  %v14242_v46 = vld [vmem:[%s19304_s7 + $0xce8] ss:$16 sps:$4 sm:$0xff]   ;;  %v14247_v25 = vld [vmem:[%s19304_s7 + $0xd04] ss:$16 sps:$4 sm:$0xff]  }
 0x6d0   : > { %11177 = vmatprep.subr.bf16.mxu0 %v14166_v40  ;;  %v14250_v40 = vld [vmem:[%s19304_s7 + $0xd0c] ss:$16 sps:$4 sm:$0xff]  }
 0x6d2   : > { %10645 = vmatpush1.bf16.msra.mxu1 %v14161_v8  ;;  %v14245_v8 = vld [vmem:[%s19304_s7 + $0xd00] ss:$16 sps:$4 sm:$0xff]  }
 0x6d3   : > { %11178 = vmatpush1.bf16.msra.mxu0 %v14164_v59  ;;  %10646 = vmatprep.subr.bf16.mxu1 %v14169_v4  ;;  %v14248_v59 = vld [vmem:[%s19304_s7 + $0xd08] ss:$16 sps:$4 sm:$0xff]   ;;  %v14253_v4 = vld [vmem:[%s19304_s7 + $0xd24] ss:$16 sps:$4 sm:$0xff]  }
 0x6d4   : > { %11179 = vmatprep.subr.bf16.mxu0 %v14172_v56  ;;  %v14256_v56 = vld [vmem:[%s19304_s7 + $0xd2c] ss:$16 sps:$4 sm:$0xff]  }
 0x6d6   : > { %10647 = vmatpush1.bf16.msra.mxu1 %v14167_v22  ;;  %v14251_v22 = vld [vmem:[%s19304_s7 + $0xd20] ss:$16 sps:$4 sm:$0xff]  }
 0x6d7   : > { %11180 = vmatpush1.bf16.msra.mxu0 %v14170_v14  ;;  %10648 = vmatprep.subr.bf16.mxu1 %v14175_v9  ;;  %v14254_v14 = vld [vmem:[%s19304_s7 + $0xd28] ss:$16 sps:$4 sm:$0xff]   ;;  %v14259_v9 = vld [vmem:[%s19304_s7 + $0xd44] ss:$16 sps:$4 sm:$0xff]  }
 0x6d8   : > { %11181 = vmatprep.subr.bf16.mxu0 %v14178_v47  ;;  %v14262_v47 = vld [vmem:[%s19304_s7 + $0xd4c] ss:$16 sps:$4 sm:$0xff]  }
 0x6da   : > { %10649 = vmatpush1.bf16.msra.mxu1 %v14173_v18  ;;  %v14257_v18 = vld [vmem:[%s19304_s7 + $0xd40] ss:$16 sps:$4 sm:$0xff]  }
 0x6db   : > { %11182 = vmatpush1.bf16.msra.mxu0 %v14176_v38  ;;  %10650 = vmatprep.subr.bf16.mxu1 %v14181_v10  ;;  %v14260_v38 = vld [vmem:[%s19304_s7 + $0xd48] ss:$16 sps:$4 sm:$0xff]   ;;  %v14265_v10 = vld [vmem:[%s19304_s7 + $0xd64] ss:$16 sps:$4 sm:$0xff]  }
 0x6dc   : > { %11183 = vmatprep.subr.bf16.mxu0 %v14184_v31  ;;  %v14268_v31 = vld [vmem:[%s19304_s7 + $0xd6c] ss:$16 sps:$4 sm:$0xff]  }
 0x6de   : > { %10651 = vmatpush1.bf16.msra.mxu1 %v14179_v24  ;;  %v14263_v24 = vld [vmem:[%s19304_s7 + $0xd60] ss:$16 sps:$4 sm:$0xff]  }
 0x6df   : > { %11184 = vmatpush1.bf16.msra.mxu0 %v14182_v36  ;;  %10652 = vmatprep.subr.bf16.mxu1 %v14187_v32  ;;  %v14266_v36 = vld [vmem:[%s19304_s7 + $0xd68] ss:$16 sps:$4 sm:$0xff]   ;;  %v14271_v32 = vld [vmem:[%s19304_s7 + $0xd84] ss:$16 sps:$4 sm:$0xff]  }
 0x6e0   : > { %11185 = vmatprep.subr.bf16.mxu0 %v14190_v51  ;;  %v14274_v51 = vld [vmem:[%s19304_s7 + $0xd8c] ss:$16 sps:$4 sm:$0xff]  }
 0x6e2   : > { %10653 = vmatpush1.bf16.msra.mxu1 %v14185_v44  ;;  %v14269_v44 = vld [vmem:[%s19304_s7 + $0xd80] ss:$16 sps:$4 sm:$0xff]  }
 0x6e3   : > { %11186 = vmatpush1.bf16.msra.mxu0 %v14188_v2  ;;  %10654 = vmatprep.subr.bf16.mxu1 %v14193_v34  ;;  %v14272_v2 = vld [vmem:[%s19304_s7 + $0xd88] ss:$16 sps:$4 sm:$0xff]   ;;  %v14277_v34 = vld [vmem:[%s19304_s7 + $0xda4] ss:$16 sps:$4 sm:$0xff]  }
 0x6e4   : > { %11187 = vmatprep.subr.bf16.mxu0 %v14196_v42  ;;  %v14280_v42 = vld [vmem:[%s19304_s7 + $0xdac] ss:$16 sps:$4 sm:$0xff]  }
 0x6e6   : > { %10655 = vmatpush1.bf16.msra.mxu1 %v14191_v23  ;;  %v14275_v23 = vld [vmem:[%s19304_s7 + $0xda0] ss:$16 sps:$4 sm:$0xff]  }
 0x6e7   : > { %11188 = vmatpush1.bf16.msra.mxu0 %v14194_v45  ;;  %10665 = vmatprep.subr.bf16.mxu1 %v14199_v5  ;;  %v14278_v45 = vld [vmem:[%s19304_s7 + $0xda8] ss:$16 sps:$4 sm:$0xff]   ;;  %v14283_v5 = vld [vmem:[%s19304_s7 + $0xdc4] ss:$16 sps:$4 sm:$0xff]  }
 0x6e8   : > { %11198 = vmatprep.subr.bf16.mxu0 %v14202_v41  ;;  %v14286_v41 = vld [vmem:[%s19304_s7 + $0xdcc] ss:$16 sps:$4 sm:$0xff]  }
 0x6e9   : > { %10657 = vmatmul.mubr.bf16.vlgmr.msra.gmra.mrb[92].mxu1 %v5560_v60 }
 0x6ea   : > { %11190 = vmatmul.mubr.bf16.vlgmr.msra.gmra.mrb[100].mxu0 %v5560_v60  ;;  %10666 = vmatpush1.bf16.msra.mxu1 %v14197_v63  ;;  %v14292_v63 = vld [vmem:[%s19304_s7 + $0xdec] ss:$16 sps:$4 sm:$0xff]   ;;  %v14295_v60 = vld [vmem:[%s19304_s7 + $0xe04] ss:$16 sps:$4 sm:$0xff]  }
 0x6eb   : > { %10697 = vmatprep.mubr.bf16.mxu1 %v5572_v17  ;;  %11199 = vmatpush1.bf16.msra.mxu0 %v14200_v16  ;;  %v14290_v16 = vld [vmem:[%s19304_s7 + $0xde8] ss:$16 sps:$4 sm:$0xff]  }
 0x6ec   : > { %11230 = vmatprep.mubr.bf16.mxu0 %v5572_v17  ;;  %10667 = vmatprep.subr.bf16.mxu1 %v14205_v57  ;;  %v14293_v57 = vld [vmem:[%s19304_s7 + $0xe00] ss:$16 sps:$4 sm:$0xff]   ;;  %v14296_v17 = vld [vmem:[%s19304_s7 + $0xe08] ss:$16 sps:$4 sm:$0xff]  }
 0x6ed   : > { %11200 = vmatprep.subr.bf16.mxu0 %v14208_v11  ;;  %v5549_v11 = vpop.permute.xlu0 %5548 }
 0x6ee   : > { %10668 = vmatpush1.bf16.msra.mxu1 %v14203_v62  ;;  %v14852_v62 = vld [vmem:[#allocation4 + $0xc] sm:$0x1] }
 0x6ef   : > { %11201 = vmatpush1.bf16.msra.mxu0 %v14206_v35  ;;  %10669 = vmatprep.subr.bf16.mxu1 %v14211_v27  ;;  %v5568_v35 = vsel %vm556_vm0, %v14852_v62, %v5519_v15  ;;  %v14853_v27 = vld [vmem:[#allocation4 + $0xc] ss:$0 sps:$4 sm:$0x88]   ;;  %v14380_v15 = vld [vmem:[%s19304_s7 + $0xfc8] ss:$16 sps:$4 sm:$0xff]  }
 0x6f0   : > { %11202 = vmatprep.subr.bf16.mxu0 %v14214_v19  ;;  %v5543_v19 = vrot.slane %v14853_v27, 3  ;;  %v14386_v62 = vld [vmem:[%s19304_s7 + $0xfe8] ss:$16 sps:$4 sm:$0xff]   ;;  %v14394_v27 = vld [vmem:[%s19304_s7 + $0x100c] ss:$16 sps:$4 sm:$0xff]  }
 0x6f2   : > { %10670 = vmatpush1.bf16.msra.mxu1 %v14209_v3  ;;  %v14301_v3 = vld [vmem:[%s19304_s7 + $0xe24] ss:$16 sps:$4 sm:$0xff]  }
 0x6f3   : > { %11203 = vmatpush1.bf16.msra.mxu0 %v14212_v6  ;;  %10671 = vmatprep.subr.bf16.mxu1 %v14217_v30  ;;  %v14304_v6 = vld [vmem:[%s19304_s7 + $0xe2c] ss:$16 sps:$4 sm:$0xff]   ;;  %v5580_v30 = vsel %vm556_vm0, %v5543_v19, %v5549_v11  ;;  %v5539_v19 = vpop.permute.xlu1 %5538 }
 0x6f4   : > { %11204 = vmatprep.subr.bf16.mxu0 %v14220_v26  ;;  %v14299_v26 = vld [vmem:[%s19304_s7 + $0xe20] ss:$16 sps:$4 sm:$0xff]   ;;  %v14388_v11 = vld [vmem:[%s19304_s7 + $0xfec] ss:$16 sps:$4 sm:$0xff]  }
 0x6f6   : > { %10672 = vmatpush1.bf16.msra.mxu1 %v14215_v33  ;;  %v14302_v33 = vld [vmem:[%s19304_s7 + $0xe28] ss:$16 sps:$4 sm:$0xff]  }
 0x6f7   : > { %11205 = vmatpush1.bf16.msra.mxu0 %v14218_v49  ;;  %10673 = vmatprep.subr.bf16.mxu1 %v14223_v39  ;;  %v14307_v49 = vld [vmem:[%s19304_s7 + $0xe44] ss:$16 sps:$4 sm:$0xff]   ;;  %v14310_v39 = vld [vmem:[%s19304_s7 + $0xe4c] ss:$16 sps:$4 sm:$0xff]  }
 0x6f8   : > { %11206 = vmatprep.subr.bf16.mxu0 %v14226_v21  ;;  %v14305_v21 = vld [vmem:[%s19304_s7 + $0xe40] ss:$16 sps:$4 sm:$0xff]  }
 0x6fa   : > { %10674 = vmatpush1.bf16.msra.mxu1 %v14221_v54  ;;  %v14308_v54 = vld [vmem:[%s19304_s7 + $0xe48] ss:$16 sps:$4 sm:$0xff]  }
 0x6fb   : > { %11207 = vmatpush1.bf16.msra.mxu0 %v14224_v61  ;;  %10675 = vmatprep.subr.bf16.mxu1 %v14229_v12  ;;  %v14313_v61 = vld [vmem:[%s19304_s7 + $0xe64] ss:$16 sps:$4 sm:$0xff]   ;;  %v14316_v12 = vld [vmem:[%s19304_s7 + $0xe6c] ss:$16 sps:$4 sm:$0xff]  }
 0x6fc   : > { %11208 = vmatprep.subr.bf16.mxu0 %v14232_v53  ;;  %v14311_v53 = vld [vmem:[%s19304_s7 + $0xe60] ss:$16 sps:$4 sm:$0xff]  }
 0x6fe   : > { %10676 = vmatpush1.bf16.msra.mxu1 %v14227_v55  ;;  %v14314_v55 = vld [vmem:[%s19304_s7 + $0xe68] ss:$16 sps:$4 sm:$0xff]  }
 0x6ff   : > { %11209 = vmatpush1.bf16.msra.mxu0 %v14230_v20  ;;  %10677 = vmatprep.subr.bf16.mxu1 %v14235_v58  ;;  %v14319_v20 = vld [vmem:[%s19304_s7 + $0xe84] ss:$16 sps:$4 sm:$0xff]   ;;  %v14322_v58 = vld [vmem:[%s19304_s7 + $0xe8c] ss:$16 sps:$4 sm:$0xff]  }
 0x700   : > { %11210 = vmatprep.subr.bf16.mxu0 %v14238_v0  ;;  %v14317_v0 = vld [vmem:[%s19304_s7 + $0xe80] ss:$16 sps:$4 sm:$0xff]  }
 0x702   : > { %10678 = vmatpush1.bf16.msra.mxu1 %v14233_v29  ;;  %v14320_v29 = vld [vmem:[%s19304_s7 + $0xe88] ss:$16 sps:$4 sm:$0xff]  }
 0x703   : > { %11211 = vmatpush1.bf16.msra.mxu0 %v14236_v1  ;;  %10679 = vmatprep.subr.bf16.mxu1 %v14241_v37  ;;  %v14325_v1 = vld [vmem:[%s19304_s7 + $0xea4] ss:$16 sps:$4 sm:$0xff]   ;;  %v14328_v37 = vld [vmem:[%s19304_s7 + $0xeac] ss:$16 sps:$4 sm:$0xff]  }
 0x704   : > { %11212 = vmatprep.subr.bf16.mxu0 %v14244_v43  ;;  %v14323_v43 = vld [vmem:[%s19304_s7 + $0xea0] ss:$16 sps:$4 sm:$0xff]  }
 0x706   : > { %10680 = vmatpush1.bf16.msra.mxu1 %v14239_v13  ;;  %v14326_v13 = vld [vmem:[%s19304_s7 + $0xea8] ss:$16 sps:$4 sm:$0xff]  }
 0x707   : > { %11213 = vmatpush1.bf16.msra.mxu0 %v14242_v46  ;;  %10681 = vmatprep.subr.bf16.mxu1 %v14247_v25  ;;  %v14331_v46 = vld [vmem:[%s19304_s7 + $0xec4] ss:$16 sps:$4 sm:$0xff]   ;;  %v14334_v25 = vld [vmem:[%s19304_s7 + $0xecc] ss:$16 sps:$4 sm:$0xff]  }
 0x708   : > { %11214 = vmatprep.subr.bf16.mxu0 %v14250_v40  ;;  %v14329_v40 = vld [vmem:[%s19304_s7 + $0xec0] ss:$16 sps:$4 sm:$0xff]  }
 0x70a   : > { %10682 = vmatpush1.bf16.msra.mxu1 %v14245_v8  ;;  %v14332_v8 = vld [vmem:[%s19304_s7 + $0xec8] ss:$16 sps:$4 sm:$0xff]  }
 0x70b   : > { %11215 = vmatpush1.bf16.msra.mxu0 %v14248_v59  ;;  %10683 = vmatprep.subr.bf16.mxu1 %v14253_v4  ;;  %v14337_v59 = vld [vmem:[%s19304_s7 + $0xee4] ss:$16 sps:$4 sm:$0xff]   ;;  %v14340_v4 = vld [vmem:[%s19304_s7 + $0xeec] ss:$16 sps:$4 sm:$0xff]  }
 0x70c   : > { %11216 = vmatprep.subr.bf16.mxu0 %v14256_v56  ;;  %v14335_v56 = vld [vmem:[%s19304_s7 + $0xee0] ss:$16 sps:$4 sm:$0xff]  }
 0x70e   : > { %10684 = vmatpush1.bf16.msra.mxu1 %v14251_v22  ;;  %v14338_v22 = vld [vmem:[%s19304_s7 + $0xee8] ss:$16 sps:$4 sm:$0xff]  }
 0x70f   : > { %11217 = vmatpush1.bf16.msra.mxu0 %v14254_v14  ;;  %10685 = vmatprep.subr.bf16.mxu1 %v14259_v9  ;;  %v14343_v14 = vld [vmem:[%s19304_s7 + $0xf04] ss:$16 sps:$4 sm:$0xff]   ;;  %v14346_v9 = vld [vmem:[%s19304_s7 + $0xf0c] ss:$16 sps:$4 sm:$0xff]  }
 0x710   : > { %11218 = vmatprep.subr.bf16.mxu0 %v14262_v47  ;;  %v14341_v47 = vld [vmem:[%s19304_s7 + $0xf00] ss:$16 sps:$4 sm:$0xff]  }
 0x712   : > { %10686 = vmatpush1.bf16.msra.mxu1 %v14257_v18  ;;  %v14344_v18 = vld [vmem:[%s19304_s7 + $0xf08] ss:$16 sps:$4 sm:$0xff]  }
 0x713   : > { %11219 = vmatpush1.bf16.msra.mxu0 %v14260_v38  ;;  %10687 = vmatprep.subr.bf16.mxu1 %v14265_v10  ;;  %v14349_v38 = vld [vmem:[%s19304_s7 + $0xf24] ss:$16 sps:$4 sm:$0xff]   ;;  %v14352_v10 = vld [vmem:[%s19304_s7 + $0xf2c] ss:$16 sps:$4 sm:$0xff]  }
 0x714   : > { %11220 = vmatprep.subr.bf16.mxu0 %v14268_v31  ;;  %v14347_v31 = vld [vmem:[%s19304_s7 + $0xf20] ss:$16 sps:$4 sm:$0xff]  }
 0x716   : > { %10688 = vmatpush1.bf16.msra.mxu1 %v14263_v24  ;;  %v14350_v24 = vld [vmem:[%s19304_s7 + $0xf28] ss:$16 sps:$4 sm:$0xff]  }
 0x717   : > { %11221 = vmatpush1.bf16.msra.mxu0 %v14266_v36  ;;  %10689 = vmatprep.subr.bf16.mxu1 %v14271_v32  ;;  %v14355_v36 = vld [vmem:[%s19304_s7 + $0xf44] ss:$16 sps:$4 sm:$0xff]   ;;  %v14358_v32 = vld [vmem:[%s19304_s7 + $0xf4c] ss:$16 sps:$4 sm:$0xff]  }
 0x718   : > { %11222 = vmatprep.subr.bf16.mxu0 %v14274_v51  ;;  %v14353_v51 = vld [vmem:[%s19304_s7 + $0xf40] ss:$16 sps:$4 sm:$0xff]  }
 0x71a   : > { %10690 = vmatpush1.bf16.msra.mxu1 %v14269_v44  ;;  %v14356_v44 = vld [vmem:[%s19304_s7 + $0xf48] ss:$16 sps:$4 sm:$0xff]  }
 0x71b   : > { %11223 = vmatpush1.bf16.msra.mxu0 %v14272_v2  ;;  %10691 = vmatprep.subr.bf16.mxu1 %v14277_v34  ;;  %v14361_v2 = vld [vmem:[%s19304_s7 + $0xf64] ss:$16 sps:$4 sm:$0xff]   ;;  %v14364_v34 = vld [vmem:[%s19304_s7 + $0xf6c] ss:$16 sps:$4 sm:$0xff]  }
 0x71c   : > { %11224 = vmatprep.subr.bf16.mxu0 %v14280_v42  ;;  %v14359_v42 = vld [vmem:[%s19304_s7 + $0xf60] ss:$16 sps:$4 sm:$0xff]  }
 0x71e   : > { %10692 = vmatpush1.bf16.msra.mxu1 %v14275_v23  ;;  %v14362_v23 = vld [vmem:[%s19304_s7 + $0xf68] ss:$16 sps:$4 sm:$0xff]  }
 0x71f   : > { %11225 = vmatpush1.bf16.msra.mxu0 %v14278_v45  ;;  %10693 = vmatprep.subr.bf16.mxu1 %v14283_v5  ;;  %v14367_v45 = vld [vmem:[%s19304_s7 + $0xf84] ss:$16 sps:$4 sm:$0xff]   ;;  %v14370_v5 = vld [vmem:[%s19304_s7 + $0xf8c] ss:$16 sps:$4 sm:$0xff]  }
 0x720   : > { %11226 = vmatprep.subr.bf16.mxu0 %v14286_v41  ;;  %v14365_v41 = vld [vmem:[%s19304_s7 + $0xf80] ss:$16 sps:$4 sm:$0xff]  }
 0x722   : > { %10694 = vmatpush1.bf16.msra.mxu1 %v14281_v7  ;;  %v14368_v7 = vld [vmem:[%s19304_s7 + $0xf88] ss:$16 sps:$4 sm:$0xff]  }
 0x723   : > { %11227 = vmatpush1.bf16.msra.mxu0 %v14284_v50  ;;  %10695 = vmatprep.subr.bf16.mxu1 %v14289_v48  ;;  %v14373_v50 = vld [vmem:[%s19304_s7 + $0xfa4] ss:$16 sps:$4 sm:$0xff]   ;;  %v14376_v48 = vld [vmem:[%s19304_s7 + $0xfac] ss:$16 sps:$4 sm:$0xff]  }
 0x724   : > { %11228 = vmatprep.subr.bf16.mxu0 %v14292_v63  ;;  %v14371_v63 = vld [vmem:[%s19304_s7 + $0xfa0] ss:$16 sps:$4 sm:$0xff]  }
 0x726   : > { %10696 = vmatpush1.bf16.msra.mxu1 %v14287_v52  ;;  %v14374_v52 = vld [vmem:[%s19304_s7 + $0xfa8] ss:$16 sps:$4 sm:$0xff]  }
 0x727   : > { %11229 = vmatpush1.bf16.msra.mxu0 %v14290_v16  ;;  %10706 = vmatprep.subr.bf16.mxu1 %v14295_v60  ;;  %v14379_v16 = vld [vmem:[%s19304_s7 + $0xfc4] ss:$16 sps:$4 sm:$0xff]   ;;  %v14382_v60 = vld [vmem:[%s19304_s7 + $0xfcc] ss:$16 sps:$4 sm:$0xff]  }
 0x728   : > { %11239 = vmatprep.subr.bf16.mxu0 %v14298_v28  ;;  %v14377_v28 = vld [vmem:[%s19304_s7 + $0xfc0] ss:$16 sps:$4 sm:$0xff]  }
 0x729   : > { %10698 = vmatmul.mubr.bf16.vlgmr.msra.gmra.mrb[92].mxu1 %v5568_v35 }
 0x72a   : > { %11231 = vmatmul.mubr.bf16.vlgmr.msra.gmra.mrb[100].mxu0 %v5568_v35  ;;  %10707 = vmatpush1.bf16.msra.mxu1 %v14293_v57  ;;  %v14385_v57 = vld [vmem:[%s19304_s7 + $0xfe4] ss:$16 sps:$4 sm:$0xff]  }
 0x72b   : > { %10738 = vmatprep.mubr.bf16.mxu1 %v5580_v30  ;;  %11240 = vmatpush1.bf16.msra.mxu0 %v14296_v17  ;;  %v14383_v17 = vld [vmem:[%s19304_s7 + $0xfe0] ss:$16 sps:$4 sm:$0xff]   ;;  %v14391_v35 = vld [vmem:[%s19304_s7 + $0x1004] ss:$16 sps:$4 sm:$0xff]  }
 0x72c   : > { %11271 = vmatprep.mubr.bf16.mxu0 %v5580_v30  ;;  %10708 = vmatprep.subr.bf16.mxu1 %v14301_v3  ;;  %v14854_v3 = vld [vmem:[#allocation4 + $0xc] ss:$0 sps:$4 sm:$0x44]  }
 0x72d   : > { %11241 = vmatprep.subr.bf16.mxu0 %v14304_v6  ;;  %v5533_v6 = vrot.slane %v14854_v3, 2  ;;  %v14389_v30 = vld [vmem:[%s19304_s7 + $0x1000] ss:$16 sps:$4 sm:$0xff]   ;;  %v14476_v3 = vld [vmem:[%s19304_s7 + $0x11c8] ss:$16 sps:$4 sm:$0xff]  }
 0x72e   : > { %10709 = vmatpush1.bf16.msra.mxu1 %v14299_v26  ;;  %v5599_v26 = vpop.permute.xlu0 %5598 }
 0x72f   : > { %11242 = vmatpush1.bf16.msra.mxu0 %v14302_v33  ;;  %10710 = vmatprep.subr.bf16.mxu1 %v14307_v49  ;;  %v14392_v33 = vld [vmem:[%s19304_s7 + $0x1008] ss:$16 sps:$4 sm:$0xff]   ;;  %v5576_v49 = vsel %vm556_vm0, %v5533_v6, %v5539_v19  ;;  %v14473_v19 = vld [vmem:[%s19304_s7 + $0x11c0] ss:$16 sps:$4 sm:$0xff]   ;;  %v14481_v6 = vld [vmem:[%s19304_s7 + $0x11e4] ss:$16 sps:$4 sm:$0xff]  }
 0x730   : > { %11243 = vmatprep.subr.bf16.mxu0 %v14310_v39  ;;  %v14855_v39 = vld [vmem:[#allocation4 + $0x10] ss:$0 sps:$4 sm:$0x22]  }
 0x732   : > { %10711 = vmatpush1.bf16.msra.mxu1 %v14305_v21  ;;  %v5593_v21 = vrot.slane %v14855_v39, 1  ;;  %v14490_v39 = vld [vmem:[%s19304_s7 + $0x120c] ss:$16 sps:$4 sm:$0xff]  }
 0x733   : > { %11244 = vmatpush1.bf16.msra.mxu0 %v14308_v54  ;;  %10712 = vmatprep.subr.bf16.mxu1 %v14313_v61  ;;  %v14397_v54 = vld [vmem:[%s19304_s7 + $0x1024] ss:$16 sps:$4 sm:$0xff]   ;;  %v14400_v61 = vld [vmem:[%s19304_s7 + $0x102c] ss:$16 sps:$4 sm:$0xff]  }
 0x734   : > { %11245 = vmatprep.subr.bf16.mxu0 %v14316_v12  ;;  %v5664_v12 = vsel %vm556_vm0, %v5593_v21, %v5599_v26  ;;  %v14479_v26 = vld [vmem:[%s19304_s7 + $0x11e0] ss:$16 sps:$4 sm:$0xff]   ;;  %v5589_v21 = vpop.permute.xlu1 %5588 }
 0x736   : > { %10713 = vmatpush1.bf16.msra.mxu1 %v14311_v53  ;;  %v14395_v53 = vld [vmem:[%s19304_s7 + $0x1020] ss:$16 sps:$4 sm:$0xff]  }
 0x737   : > { %11246 = vmatpush1.bf16.msra.mxu0 %v14314_v55  ;;  %10714 = vmatprep.subr.bf16.mxu1 %v14319_v20  ;;  %v14398_v55 = vld [vmem:[%s19304_s7 + $0x1028] ss:$16 sps:$4 sm:$0xff]   ;;  %v14403_v20 = vld [vmem:[%s19304_s7 + $0x1044] ss:$16 sps:$4 sm:$0xff]  }
 0x738   : > { %11247 = vmatprep.subr.bf16.mxu0 %v14322_v58  ;;  %v14406_v58 = vld [vmem:[%s19304_s7 + $0x104c] ss:$16 sps:$4 sm:$0xff]  }
 0x73a   : > { %10715 = vmatpush1.bf16.msra.mxu1 %v14317_v0  ;;  %v14401_v0 = vld [vmem:[%s19304_s7 + $0x1040] ss:$16 sps:$4 sm:$0xff]  }
 0x73b   : > { %11248 = vmatpush1.bf16.msra.mxu0 %v14320_v29  ;;  %10716 = vmatprep.subr.bf16.mxu1 %v14325_v1  ;;  %v14404_v29 = vld [vmem:[%s19304_s7 + $0x1048] ss:$16 sps:$4 sm:$0xff]   ;;  %v14409_v1 = vld [vmem:[%s19304_s7 + $0x1064] ss:$16 sps:$4 sm:$0xff]  }
 0x73c   : > { %11249 = vmatprep.subr.bf16.mxu0 %v14328_v37  ;;  %v14412_v37 = vld [vmem:[%s19304_s7 + $0x106c] ss:$16 sps:$4 sm:$0xff]  }
 0x73e   : > { %10717 = vmatpush1.bf16.msra.mxu1 %v14323_v43  ;;  %v14407_v43 = vld [vmem:[%s19304_s7 + $0x1060] ss:$16 sps:$4 sm:$0xff]  }
 0x73f   : > { %11250 = vmatpush1.bf16.msra.mxu0 %v14326_v13  ;;  %10718 = vmatprep.subr.bf16.mxu1 %v14331_v46  ;;  %v14410_v13 = vld [vmem:[%s19304_s7 + $0x1068] ss:$16 sps:$4 sm:$0xff]   ;;  %v14415_v46 = vld [vmem:[%s19304_s7 + $0x1084] ss:$16 sps:$4 sm:$0xff]  }
 0x740   : > { %11251 = vmatprep.subr.bf16.mxu0 %v14334_v25  ;;  %v14418_v25 = vld [vmem:[%s19304_s7 + $0x108c] ss:$16 sps:$4 sm:$0xff]  }
 0x742   : > { %10719 = vmatpush1.bf16.msra.mxu1 %v14329_v40  ;;  %v14413_v40 = vld [vmem:[%s19304_s7 + $0x1080] ss:$16 sps:$4 sm:$0xff]  }
 0x743   : > { %11252 = vmatpush1.bf16.msra.mxu0 %v14332_v8  ;;  %10720 = vmatprep.subr.bf16.mxu1 %v14337_v59  ;;  %v14416_v8 = vld [vmem:[%s19304_s7 + $0x1088] ss:$16 sps:$4 sm:$0xff]   ;;  %v14421_v59 = vld [vmem:[%s19304_s7 + $0x10a4] ss:$16 sps:$4 sm:$0xff]  }
 0x744   : > { %11253 = vmatprep.subr.bf16.mxu0 %v14340_v4  ;;  %v14424_v4 = vld [vmem:[%s19304_s7 + $0x10ac] ss:$16 sps:$4 sm:$0xff]  }
 0x746   : > { %10721 = vmatpush1.bf16.msra.mxu1 %v14335_v56  ;;  %v14419_v56 = vld [vmem:[%s19304_s7 + $0x10a0] ss:$16 sps:$4 sm:$0xff]  }
 0x747   : > { %11254 = vmatpush1.bf16.msra.mxu0 %v14338_v22  ;;  %10722 = vmatprep.subr.bf16.mxu1 %v14343_v14  ;;  %v14422_v22 = vld [vmem:[%s19304_s7 + $0x10a8] ss:$16 sps:$4 sm:$0xff]   ;;  %v14427_v14 = vld [vmem:[%s19304_s7 + $0x10c4] ss:$16 sps:$4 sm:$0xff]  }
 0x748   : > { %11255 = vmatprep.subr.bf16.mxu0 %v14346_v9  ;;  %v14430_v9 = vld [vmem:[%s19304_s7 + $0x10cc] ss:$16 sps:$4 sm:$0xff]  }
 0x74a   : > { %10723 = vmatpush1.bf16.msra.mxu1 %v14341_v47  ;;  %v14425_v47 = vld [vmem:[%s19304_s7 + $0x10c0] ss:$16 sps:$4 sm:$0xff]  }
 0x74b   : > { %11256 = vmatpush1.bf16.msra.mxu0 %v14344_v18  ;;  %10724 = vmatprep.subr.bf16.mxu1 %v14349_v38  ;;  %v14428_v18 = vld [vmem:[%s19304_s7 + $0x10c8] ss:$16 sps:$4 sm:$0xff]   ;;  %v14433_v38 = vld [vmem:[%s19304_s7 + $0x10e4] ss:$16 sps:$4 sm:$0xff]  }
 0x74c   : > { %11257 = vmatprep.subr.bf16.mxu0 %v14352_v10  ;;  %v14436_v10 = vld [vmem:[%s19304_s7 + $0x10ec] ss:$16 sps:$4 sm:$0xff]  }
 0x74e   : > { %10725 = vmatpush1.bf16.msra.mxu1 %v14347_v31  ;;  %v14431_v31 = vld [vmem:[%s19304_s7 + $0x10e0] ss:$16 sps:$4 sm:$0xff]  }
 0x74f   : > { %11258 = vmatpush1.bf16.msra.mxu0 %v14350_v24  ;;  %10726 = vmatprep.subr.bf16.mxu1 %v14355_v36  ;;  %v14434_v24 = vld [vmem:[%s19304_s7 + $0x10e8] ss:$16 sps:$4 sm:$0xff]   ;;  %v14439_v36 = vld [vmem:[%s19304_s7 + $0x1104] ss:$16 sps:$4 sm:$0xff]  }
 0x750   : > { %11259 = vmatprep.subr.bf16.mxu0 %v14358_v32  ;;  %v14442_v32 = vld [vmem:[%s19304_s7 + $0x110c] ss:$16 sps:$4 sm:$0xff]  }
 0x752   : > { %10727 = vmatpush1.bf16.msra.mxu1 %v14353_v51  ;;  %v14437_v51 = vld [vmem:[%s19304_s7 + $0x1100] ss:$16 sps:$4 sm:$0xff]  }
 0x753   : > { %11260 = vmatpush1.bf16.msra.mxu0 %v14356_v44  ;;  %10728 = vmatprep.subr.bf16.mxu1 %v14361_v2  ;;  %v14440_v44 = vld [vmem:[%s19304_s7 + $0x1108] ss:$16 sps:$4 sm:$0xff]   ;;  %v14445_v2 = vld [vmem:[%s19304_s7 + $0x1124] ss:$16 sps:$4 sm:$0xff]  }
 0x754   : > { %11261 = vmatprep.subr.bf16.mxu0 %v14364_v34  ;;  %v14448_v34 = vld [vmem:[%s19304_s7 + $0x112c] ss:$16 sps:$4 sm:$0xff]  }
 0x756   : > { %10729 = vmatpush1.bf16.msra.mxu1 %v14359_v42  ;;  %v14443_v42 = vld [vmem:[%s19304_s7 + $0x1120] ss:$16 sps:$4 sm:$0xff]  }
 0x757   : > { %11262 = vmatpush1.bf16.msra.mxu0 %v14362_v23  ;;  %10730 = vmatprep.subr.bf16.mxu1 %v14367_v45  ;;  %v14446_v23 = vld [vmem:[%s19304_s7 + $0x1128] ss:$16 sps:$4 sm:$0xff]   ;;  %v14451_v45 = vld [vmem:[%s19304_s7 + $0x1144] ss:$16 sps:$4 sm:$0xff]  }
 0x758   : > { %11263 = vmatprep.subr.bf16.mxu0 %v14370_v5  ;;  %v14454_v5 = vld [vmem:[%s19304_s7 + $0x114c] ss:$16 sps:$4 sm:$0xff]  }
 0x75a   : > { %10731 = vmatpush1.bf16.msra.mxu1 %v14365_v41  ;;  %v14449_v41 = vld [vmem:[%s19304_s7 + $0x1140] ss:$16 sps:$4 sm:$0xff]  }
 0x75b   : > { %11264 = vmatpush1.bf16.msra.mxu0 %v14368_v7  ;;  %10732 = vmatprep.subr.bf16.mxu1 %v14373_v50  ;;  %v14452_v7 = vld [vmem:[%s19304_s7 + $0x1148] ss:$16 sps:$4 sm:$0xff]   ;;  %v14457_v50 = vld [vmem:[%s19304_s7 + $0x1164] ss:$16 sps:$4 sm:$0xff]  }
 0x75c   : > { %11265 = vmatprep.subr.bf16.mxu0 %v14376_v48  ;;  %v14460_v48 = vld [vmem:[%s19304_s7 + $0x116c] ss:$16 sps:$4 sm:$0xff]  }
 0x75e   : > { %10733 = vmatpush1.bf16.msra.mxu1 %v14371_v63  ;;  %v14455_v63 = vld [vmem:[%s19304_s7 + $0x1160] ss:$16 sps:$4 sm:$0xff]  }
 0x75f   : > { %11266 = vmatpush1.bf16.msra.mxu0 %v14374_v52  ;;  %10734 = vmatprep.subr.bf16.mxu1 %v14379_v16  ;;  %v14458_v52 = vld [vmem:[%s19304_s7 + $0x1168] ss:$16 sps:$4 sm:$0xff]   ;;  %v14463_v16 = vld [vmem:[%s19304_s7 + $0x1184] ss:$16 sps:$4 sm:$0xff]  }
 0x760   : > { %11267 = vmatprep.subr.bf16.mxu0 %v14382_v60  ;;  %v14466_v60 = vld [vmem:[%s19304_s7 + $0x118c] ss:$16 sps:$4 sm:$0xff]  }
 0x762   : > { %10735 = vmatpush1.bf16.msra.mxu1 %v14377_v28  ;;  %v14461_v28 = vld [vmem:[%s19304_s7 + $0x1180] ss:$16 sps:$4 sm:$0xff]  }
 0x763   : > { %11268 = vmatpush1.bf16.msra.mxu0 %v14380_v15  ;;  %10736 = vmatprep.subr.bf16.mxu1 %v14385_v57  ;;  %v14464_v15 = vld [vmem:[%s19304_s7 + $0x1188] ss:$16 sps:$4 sm:$0xff]   ;;  %v14469_v57 = vld [vmem:[%s19304_s7 + $0x11a4] ss:$16 sps:$4 sm:$0xff]  }
 0x764   : > { %11269 = vmatprep.subr.bf16.mxu0 %v14388_v11  ;;  %v14472_v11 = vld [vmem:[%s19304_s7 + $0x11ac] ss:$16 sps:$4 sm:$0xff]  }
 0x766   : > { %10737 = vmatpush1.bf16.msra.mxu1 %v14383_v17  ;;  %v14467_v17 = vld [vmem:[%s19304_s7 + $0x11a0] ss:$16 sps:$4 sm:$0xff]  }
 0x767   : > { %11270 = vmatpush1.bf16.msra.mxu0 %v14386_v62  ;;  %10747 = vmatprep.subr.bf16.mxu1 %v14391_v35  ;;  %v14470_v62 = vld [vmem:[%s19304_s7 + $0x11a8] ss:$16 sps:$4 sm:$0xff]   ;;  %v14475_v35 = vld [vmem:[%s19304_s7 + $0x11c4] ss:$16 sps:$4 sm:$0xff]  }
 0x768   : > { %11280 = vmatprep.subr.bf16.mxu0 %v14394_v27  ;;  %v14478_v27 = vld [vmem:[%s19304_s7 + $0x11cc] ss:$16 sps:$4 sm:$0xff]  }
 0x769   : > { %10739 = vmatmul.mubr.bf16.vlgmr.msra.gmra.mrb[92].mxu1 %v5576_v49 }
 0x76a   : > { %11272 = vmatmul.mubr.bf16.vlgmr.msra.gmra.mrb[100].mxu0 %v5576_v49  ;;  %10748 = vmatpush1.bf16.msra.mxu1 %v14389_v30  ;;  %v14484_v30 = vld [vmem:[%s19304_s7 + $0x11ec] ss:$16 sps:$4 sm:$0xff]   ;;  %v14487_v49 = vld [vmem:[%s19304_s7 + $0x1204] ss:$16 sps:$4 sm:$0xff]  }
 0x76b   : > { %10779 = vmatprep.mubr.bf16.mxu1 %v5664_v12  ;;  %11281 = vmatpush1.bf16.msra.mxu0 %v14392_v33  ;;  %v14482_v33 = vld [vmem:[%s19304_s7 + $0x11e8] ss:$16 sps:$4 sm:$0xff]  }
 0x76c   : > { %11312 = vmatprep.mubr.bf16.mxu0 %v5664_v12  ;;  %10749 = vmatprep.subr.bf16.mxu1 %v14397_v54  ;;  %v14485_v54 = vld [vmem:[%s19304_s7 + $0x1200] ss:$16 sps:$4 sm:$0xff]   ;;  %v14488_v12 = vld [vmem:[%s19304_s7 + $0x1208] ss:$16 sps:$4 sm:$0xff]  }
 0x76d   : > { %11282 = vmatprep.subr.bf16.mxu0 %v14400_v61  ;;  %v5619_v61 = vpop.permute.xlu0 %5618 }
 0x76e   : > { %10750 = vmatpush1.bf16.msra.mxu1 %v14395_v53  ;;  %v14856_v53 = vld [vmem:[#allocation4 + $0x10] sm:$0x1] }
 0x76f   : > { %11283 = vmatpush1.bf16.msra.mxu0 %v14398_v55  ;;  %10751 = vmatprep.subr.bf16.mxu1 %v14403_v20  ;;  %v5660_v55 = vsel %vm556_vm0, %v14856_v53, %v5589_v21  ;;  %v14857_v20 = vld [vmem:[#allocation4 + $0x10] ss:$0 sps:$4 sm:$0x88]   ;;  %v14572_v21 = vld [vmem:[%s19304_s7 + $0x13c8] ss:$16 sps:$4 sm:$0xff]  }
 0x770   : > { %11284 = vmatprep.subr.bf16.mxu0 %v14406_v58  ;;  %v5613_v58 = vrot.slane %v14857_v20, 3  ;;  %v14578_v53 = vld [vmem:[%s19304_s7 + $0x13e8] ss:$16 sps:$4 sm:$0xff]   ;;  %v14586_v20 = vld [vmem:[%s19304_s7 + $0x140c] ss:$16 sps:$4 sm:$0xff]  }
 0x772   : > { %10752 = vmatpush1.bf16.msra.mxu1 %v14401_v0  ;;  %v14493_v0 = vld [vmem:[%s19304_s7 + $0x1224] ss:$16 sps:$4 sm:$0xff]  }
 0x773   : > { %11285 = vmatpush1.bf16.msra.mxu0 %v14404_v29  ;;  %10753 = vmatprep.subr.bf16.mxu1 %v14409_v1  ;;  %v14496_v29 = vld [vmem:[%s19304_s7 + $0x122c] ss:$16 sps:$4 sm:$0xff]   ;;  %v5672_v1 = vsel %vm556_vm0, %v5613_v58, %v5619_v61  ;;  %v5609_v58 = vpop.permute.xlu1 %5608 }
 0x774   : > { %11286 = vmatprep.subr.bf16.mxu0 %v14412_v37  ;;  %v14491_v37 = vld [vmem:[%s19304_s7 + $0x1220] ss:$16 sps:$4 sm:$0xff]   ;;  %v14580_v61 = vld [vmem:[%s19304_s7 + $0x13ec] ss:$16 sps:$4 sm:$0xff]  }
 0x776   : > { %10754 = vmatpush1.bf16.msra.mxu1 %v14407_v43  ;;  %v14494_v43 = vld [vmem:[%s19304_s7 + $0x1228] ss:$16 sps:$4 sm:$0xff]  }
 0x777   : > { %11287 = vmatpush1.bf16.msra.mxu0 %v14410_v13  ;;  %10755 = vmatprep.subr.bf16.mxu1 %v14415_v46  ;;  %v14499_v13 = vld [vmem:[%s19304_s7 + $0x1244] ss:$16 sps:$4 sm:$0xff]   ;;  %v14502_v46 = vld [vmem:[%s19304_s7 + $0x124c] ss:$16 sps:$4 sm:$0xff]  }
 0x778   : > { %11288 = vmatprep.subr.bf16.mxu0 %v14418_v25  ;;  %v14497_v25 = vld [vmem:[%s19304_s7 + $0x1240] ss:$16 sps:$4 sm:$0xff]  }
 0x77a   : > { %10756 = vmatpush1.bf16.msra.mxu1 %v14413_v40  ;;  %v14500_v40 = vld [vmem:[%s19304_s7 + $0x1248] ss:$16 sps:$4 sm:$0xff]  }
 0x77b   : > { %11289 = vmatpush1.bf16.msra.mxu0 %v14416_v8  ;;  %10757 = vmatprep.subr.bf16.mxu1 %v14421_v59  ;;  %v14505_v8 = vld [vmem:[%s19304_s7 + $0x1264] ss:$16 sps:$4 sm:$0xff]   ;;  %v14508_v59 = vld [vmem:[%s19304_s7 + $0x126c] ss:$16 sps:$4 sm:$0xff]  }
 0x77c   : > { %11290 = vmatprep.subr.bf16.mxu0 %v14424_v4  ;;  %v14503_v4 = vld [vmem:[%s19304_s7 + $0x1260] ss:$16 sps:$4 sm:$0xff]  }
 0x77e   : > { %10758 = vmatpush1.bf16.msra.mxu1 %v14419_v56  ;;  %v14506_v56 = vld [vmem:[%s19304_s7 + $0x1268] ss:$16 sps:$4 sm:$0xff]  }
 0x77f   : > { %11291 = vmatpush1.bf16.msra.mxu0 %v14422_v22  ;;  %10759 = vmatprep.subr.bf16.mxu1 %v14427_v14  ;;  %v14511_v22 = vld [vmem:[%s19304_s7 + $0x1284] ss:$16 sps:$4 sm:$0xff]   ;;  %v14514_v14 = vld [vmem:[%s19304_s7 + $0x128c] ss:$16 sps:$4 sm:$0xff]  }
 0x780   : > { %11292 = vmatprep.subr.bf16.mxu0 %v14430_v9  ;;  %v14509_v9 = vld [vmem:[%s19304_s7 + $0x1280] ss:$16 sps:$4 sm:$0xff]  }
 0x782   : > { %10760 = vmatpush1.bf16.msra.mxu1 %v14425_v47  ;;  %v14512_v47 = vld [vmem:[%s19304_s7 + $0x1288] ss:$16 sps:$4 sm:$0xff]  }
 0x783   : > { %11293 = vmatpush1.bf16.msra.mxu0 %v14428_v18  ;;  %10761 = vmatprep.subr.bf16.mxu1 %v14433_v38  ;;  %v14517_v18 = vld [vmem:[%s19304_s7 + $0x12a4] ss:$16 sps:$4 sm:$0xff]   ;;  %v14520_v38 = vld [vmem:[%s19304_s7 + $0x12ac] ss:$16 sps:$4 sm:$0xff]  }
 0x784   : > { %11294 = vmatprep.subr.bf16.mxu0 %v14436_v10  ;;  %v14515_v10 = vld [vmem:[%s19304_s7 + $0x12a0] ss:$16 sps:$4 sm:$0xff]  }
 0x786   : > { %10762 = vmatpush1.bf16.msra.mxu1 %v14431_v31  ;;  %v14518_v31 = vld [vmem:[%s19304_s7 + $0x12a8] ss:$16 sps:$4 sm:$0xff]  }
 0x787   : > { %11295 = vmatpush1.bf16.msra.mxu0 %v14434_v24  ;;  %10763 = vmatprep.subr.bf16.mxu1 %v14439_v36  ;;  %v14523_v24 = vld [vmem:[%s19304_s7 + $0x12c4] ss:$16 sps:$4 sm:$0xff]   ;;  %v14526_v36 = vld [vmem:[%s19304_s7 + $0x12cc] ss:$16 sps:$4 sm:$0xff]  }
 0x788   : > { %11296 = vmatprep.subr.bf16.mxu0 %v14442_v32  ;;  %v14521_v32 = vld [vmem:[%s19304_s7 + $0x12c0] ss:$16 sps:$4 sm:$0xff]  }
 0x78a   : > { %10764 = vmatpush1.bf16.msra.mxu1 %v14437_v51  ;;  %v14524_v51 = vld [vmem:[%s19304_s7 + $0x12c8] ss:$16 sps:$4 sm:$0xff]  }
 0x78b   : > { %11297 = vmatpush1.bf16.msra.mxu0 %v14440_v44  ;;  %10765 = vmatprep.subr.bf16.mxu1 %v14445_v2  ;;  %v14529_v44 = vld [vmem:[%s19304_s7 + $0x12e4] ss:$16 sps:$4 sm:$0xff]   ;;  %v14532_v2 = vld [vmem:[%s19304_s7 + $0x12ec] ss:$16 sps:$4 sm:$0xff]  }
 0x78c   : > { %11298 = vmatprep.subr.bf16.mxu0 %v14448_v34  ;;  %v14527_v34 = vld [vmem:[%s19304_s7 + $0x12e0] ss:$16 sps:$4 sm:$0xff]  }
 0x78e   : > { %10766 = vmatpush1.bf16.msra.mxu1 %v14443_v42  ;;  %v14530_v42 = vld [vmem:[%s19304_s7 + $0x12e8] ss:$16 sps:$4 sm:$0xff]  }
 0x78f   : > { %11299 = vmatpush1.bf16.msra.mxu0 %v14446_v23  ;;  %10767 = vmatprep.subr.bf16.mxu1 %v14451_v45  ;;  %v14535_v23 = vld [vmem:[%s19304_s7 + $0x1304] ss:$16 sps:$4 sm:$0xff]   ;;  %v14538_v45 = vld [vmem:[%s19304_s7 + $0x130c] ss:$16 sps:$4 sm:$0xff]  }
 0x790   : > { %11300 = vmatprep.subr.bf16.mxu0 %v14454_v5  ;;  %v14533_v5 = vld [vmem:[%s19304_s7 + $0x1300] ss:$16 sps:$4 sm:$0xff]  }
 0x792   : > { %10768 = vmatpush1.bf16.msra.mxu1 %v14449_v41  ;;  %v14536_v41 = vld [vmem:[%s19304_s7 + $0x1308] ss:$16 sps:$4 sm:$0xff]  }
 0x793   : > { %11301 = vmatpush1.bf16.msra.mxu0 %v14452_v7  ;;  %10769 = vmatprep.subr.bf16.mxu1 %v14457_v50  ;;  %v14541_v7 = vld [vmem:[%s19304_s7 + $0x1324] ss:$16 sps:$4 sm:$0xff]   ;;  %v14544_v50 = vld [vmem:[%s19304_s7 + $0x132c] ss:$16 sps:$4 sm:$0xff]  }
 0x794   : > { %11302 = vmatprep.subr.bf16.mxu0 %v14460_v48  ;;  %v14539_v48 = vld [vmem:[%s19304_s7 + $0x1320] ss:$16 sps:$4 sm:$0xff]  }
 0x796   : > { %10770 = vmatpush1.bf16.msra.mxu1 %v14455_v63  ;;  %v14542_v63 = vld [vmem:[%s19304_s7 + $0x1328] ss:$16 sps:$4 sm:$0xff]  }
 0x797   : > { %11303 = vmatpush1.bf16.msra.mxu0 %v14458_v52  ;;  %10771 = vmatprep.subr.bf16.mxu1 %v14463_v16  ;;  %v14547_v52 = vld [vmem:[%s19304_s7 + $0x1344] ss:$16 sps:$4 sm:$0xff]   ;;  %v14550_v16 = vld [vmem:[%s19304_s7 + $0x134c] ss:$16 sps:$4 sm:$0xff]  }
 0x798   : > { %11304 = vmatprep.subr.bf16.mxu0 %v14466_v60  ;;  %v14545_v60 = vld [vmem:[%s19304_s7 + $0x1340] ss:$16 sps:$4 sm:$0xff]  }
 0x79a   : > { %10772 = vmatpush1.bf16.msra.mxu1 %v14461_v28  ;;  %v14548_v28 = vld [vmem:[%s19304_s7 + $0x1348] ss:$16 sps:$4 sm:$0xff]  }
 0x79b   : > { %11305 = vmatpush1.bf16.msra.mxu0 %v14464_v15  ;;  %10773 = vmatprep.subr.bf16.mxu1 %v14469_v57  ;;  %v14553_v15 = vld [vmem:[%s19304_s7 + $0x1364] ss:$16 sps:$4 sm:$0xff]   ;;  %v14556_v57 = vld [vmem:[%s19304_s7 + $0x136c] ss:$16 sps:$4 sm:$0xff]  }
 0x79c   : > { %11306 = vmatprep.subr.bf16.mxu0 %v14472_v11  ;;  %v14551_v11 = vld [vmem:[%s19304_s7 + $0x1360] ss:$16 sps:$4 sm:$0xff]  }
 0x79e   : > { %10774 = vmatpush1.bf16.msra.mxu1 %v14467_v17  ;;  %v14554_v17 = vld [vmem:[%s19304_s7 + $0x1368] ss:$16 sps:$4 sm:$0xff]  }
 0x79f   : > { %11307 = vmatpush1.bf16.msra.mxu0 %v14470_v62  ;;  %10775 = vmatprep.subr.bf16.mxu1 %v14475_v35  ;;  %v14559_v62 = vld [vmem:[%s19304_s7 + $0x1384] ss:$16 sps:$4 sm:$0xff]   ;;  %v14562_v35 = vld [vmem:[%s19304_s7 + $0x138c] ss:$16 sps:$4 sm:$0xff]  }
 0x7a0   : > { %11308 = vmatprep.subr.bf16.mxu0 %v14478_v27  ;;  %v14557_v27 = vld [vmem:[%s19304_s7 + $0x1380] ss:$16 sps:$4 sm:$0xff]  }
 0x7a2   : > { %10776 = vmatpush1.bf16.msra.mxu1 %v14473_v19  ;;  %v14560_v19 = vld [vmem:[%s19304_s7 + $0x1388] ss:$16 sps:$4 sm:$0xff]  }
 0x7a3   : > { %11309 = vmatpush1.bf16.msra.mxu0 %v14476_v3  ;;  %10777 = vmatprep.subr.bf16.mxu1 %v14481_v6  ;;  %v14565_v3 = vld [vmem:[%s19304_s7 + $0x13a4] ss:$16 sps:$4 sm:$0xff]   ;;  %v14568_v6 = vld [vmem:[%s19304_s7 + $0x13ac] ss:$16 sps:$4 sm:$0xff]  }
 0x7a4   : > { %11310 = vmatprep.subr.bf16.mxu0 %v14484_v30  ;;  %v14563_v30 = vld [vmem:[%s19304_s7 + $0x13a0] ss:$16 sps:$4 sm:$0xff]  }
 0x7a6   : > { %10778 = vmatpush1.bf16.msra.mxu1 %v14479_v26  ;;  %v14566_v26 = vld [vmem:[%s19304_s7 + $0x13a8] ss:$16 sps:$4 sm:$0xff]  }
 0x7a7   : > { %11311 = vmatpush1.bf16.msra.mxu0 %v14482_v33  ;;  %10788 = vmatprep.subr.bf16.mxu1 %v14487_v49  ;;  %v14571_v33 = vld [vmem:[%s19304_s7 + $0x13c4] ss:$16 sps:$4 sm:$0xff]   ;;  %v14574_v49 = vld [vmem:[%s19304_s7 + $0x13cc] ss:$16 sps:$4 sm:$0xff]  }
 0x7a8   : > { %11321 = vmatprep.subr.bf16.mxu0 %v14490_v39  ;;  %v14569_v39 = vld [vmem:[%s19304_s7 + $0x13c0] ss:$16 sps:$4 sm:$0xff]  }
 0x7a9   : > { %10780 = vmatmul.mubr.bf16.vlgmr.msra.gmra.mrb[92].mxu1 %v5660_v55 }
 0x7aa   : > { %11313 = vmatmul.mubr.bf16.vlgmr.msra.gmra.mrb[100].mxu0 %v5660_v55  ;;  %10789 = vmatpush1.bf16.msra.mxu1 %v14485_v54  ;;  %v14577_v54 = vld [vmem:[%s19304_s7 + $0x13e4] ss:$16 sps:$4 sm:$0xff]  }
 0x7ab   : > { %10820 = vmatprep.mubr.bf16.mxu1 %v5672_v1  ;;  %11322 = vmatpush1.bf16.msra.mxu0 %v14488_v12  ;;  %v14575_v12 = vld [vmem:[%s19304_s7 + $0x13e0] ss:$16 sps:$4 sm:$0xff]   ;;  %v14583_v55 = vld [vmem:[%s19304_s7 + $0x1404] ss:$16 sps:$4 sm:$0xff]  }
 0x7ac   : > { %11353 = vmatprep.mubr.bf16.mxu0 %v5672_v1  ;;  %10790 = vmatprep.subr.bf16.mxu1 %v14493_v0  ;;  %v14858_v0 = vld [vmem:[#allocation4 + $0x10] ss:$0 sps:$4 sm:$0x44]   ;;  %v14581_v1 = vld [vmem:[%s19304_s7 + $0x1400] ss:$16 sps:$4 sm:$0xff]  }
 0x7ad   : > { %11323 = vmatprep.subr.bf16.mxu0 %v14496_v29  ;;  %v5603_v29 = vrot.slane %v14858_v0, 2  ;;  %v14665_v0 = vld [vmem:[%s19304_s7 + $0x15c0] ss:$16 sps:$4 sm:$0xff]  }
 0x7ae   : > { %10791 = vmatpush1.bf16.msra.mxu1 %v14491_v37  ;;  %v5637_v37 = vpop.permute.xlu0 %5636 }
 0x7af   : > { %11324 = vmatpush1.bf16.msra.mxu0 %v14494_v43  ;;  %10792 = vmatprep.subr.bf16.mxu1 %v14499_v13  ;;  %v14584_v43 = vld [vmem:[%s19304_s7 + $0x1408] ss:$16 sps:$4 sm:$0xff]   ;;  %v5668_v13 = vsel %vm556_vm0, %v5603_v29, %v5609_v58  ;;  %v14670_v58 = vld [vmem:[%s19304_s7 + $0x15cc] ss:$16 sps:$4 sm:$0xff]  }
 0x7b0   : > { %11325 = vmatprep.subr.bf16.mxu0 %v14502_v46  ;;  %v14859_v46 = vld [vmem:[#allocation4 + $0x14] ss:$0 sps:$4 sm:$0x22]  }
 0x7b1   : > { %v14668_v29 = vld [vmem:[%s19304_s7 + $0x15c8] ss:$16 sps:$4 sm:$0xff]  }
 0x7b2   : > { %10793 = vmatpush1.bf16.msra.mxu1 %v14497_v25  ;;  %v5631_v25 = vrot.slane %v14859_v46, 1  ;;  %v14679_v46 = vld [vmem:[%s19304_s7 + $0x1604] ss:$16 sps:$4 sm:$0xff]  }
 0x7b3   : > { %11326 = vmatpush1.bf16.msra.mxu0 %v14500_v40  ;;  %10794 = vmatprep.subr.bf16.mxu1 %v14505_v8  ;;  %v14589_v40 = vld [vmem:[%s19304_s7 + $0x1424] ss:$16 sps:$4 sm:$0xff]   ;;  %v14592_v8 = vld [vmem:[%s19304_s7 + $0x142c] ss:$16 sps:$4 sm:$0xff]  }
 0x7b4   : > { %11327 = vmatprep.subr.bf16.mxu0 %v14508_v59  ;;  %v5680_v59 = vsel %vm556_vm0, %v5631_v25, %v5637_v37  ;;  %v14676_v37 = vld [vmem:[%s19304_s7 + $0x15ec] ss:$16 sps:$4 sm:$0xff]  }
 0x7b5   : > { %v14682_v25 = vld [vmem:[%s19304_s7 + $0x160c] ss:$16 sps:$4 sm:$0xff]  }
 0x7b6   : > { %10795 = vmatpush1.bf16.msra.mxu1 %v14503_v4  ;;  %v14587_v4 = vld [vmem:[%s19304_s7 + $0x1420] ss:$16 sps:$4 sm:$0xff]  }
 0x7b7   : > { %11328 = vmatpush1.bf16.msra.mxu0 %v14506_v56  ;;  %10796 = vmatprep.subr.bf16.mxu1 %v14511_v22  ;;  %v14590_v56 = vld [vmem:[%s19304_s7 + $0x1428] ss:$16 sps:$4 sm:$0xff]   ;;  %v14595_v22 = vld [vmem:[%s19304_s7 + $0x1444] ss:$16 sps:$4 sm:$0xff]  }
 0x7b8   : > { %11329 = vmatprep.subr.bf16.mxu0 %v14514_v14  ;;  %v14598_v14 = vld [vmem:[%s19304_s7 + $0x144c] ss:$16 sps:$4 sm:$0xff]  }
 0x7ba   : > { %10797 = vmatpush1.bf16.msra.mxu1 %v14509_v9  ;;  %v14593_v9 = vld [vmem:[%s19304_s7 + $0x1440] ss:$16 sps:$4 sm:$0xff]  }
 0x7bb   : > { %11330 = vmatpush1.bf16.msra.mxu0 %v14512_v47  ;;  %10798 = vmatprep.subr.bf16.mxu1 %v14517_v18  ;;  %v14596_v47 = vld [vmem:[%s19304_s7 + $0x1448] ss:$16 sps:$4 sm:$0xff]   ;;  %v14601_v18 = vld [vmem:[%s19304_s7 + $0x1464] ss:$16 sps:$4 sm:$0xff]  }
 0x7bc   : > { %11331 = vmatprep.subr.bf16.mxu0 %v14520_v38  ;;  %v14604_v38 = vld [vmem:[%s19304_s7 + $0x146c] ss:$16 sps:$4 sm:$0xff]  }
 0x7be   : > { %10799 = vmatpush1.bf16.msra.mxu1 %v14515_v10  ;;  %v14599_v10 = vld [vmem:[%s19304_s7 + $0x1460] ss:$16 sps:$4 sm:$0xff]  }
 0x7bf   : > { %11332 = vmatpush1.bf16.msra.mxu0 %v14518_v31  ;;  %10800 = vmatprep.subr.bf16.mxu1 %v14523_v24  ;;  %v14602_v31 = vld [vmem:[%s19304_s7 + $0x1468] ss:$16 sps:$4 sm:$0xff]   ;;  %v14607_v24 = vld [vmem:[%s19304_s7 + $0x1484] ss:$16 sps:$4 sm:$0xff]  }
 0x7c0   : > { %11333 = vmatprep.subr.bf16.mxu0 %v14526_v36  ;;  %v14610_v36 = vld [vmem:[%s19304_s7 + $0x148c] ss:$16 sps:$4 sm:$0xff]  }
 0x7c2   : > { %10801 = vmatpush1.bf16.msra.mxu1 %v14521_v32  ;;  %v14605_v32 = vld [vmem:[%s19304_s7 + $0x1480] ss:$16 sps:$4 sm:$0xff]  }
 0x7c3   : > { %11334 = vmatpush1.bf16.msra.mxu0 %v14524_v51  ;;  %10802 = vmatprep.subr.bf16.mxu1 %v14529_v44  ;;  %v14608_v51 = vld [vmem:[%s19304_s7 + $0x1488] ss:$16 sps:$4 sm:$0xff]   ;;  %v14613_v44 = vld [vmem:[%s19304_s7 + $0x14a4] ss:$16 sps:$4 sm:$0xff]  }
 0x7c4   : > { %11335 = vmatprep.subr.bf16.mxu0 %v14532_v2  ;;  %v14616_v2 = vld [vmem:[%s19304_s7 + $0x14ac] ss:$16 sps:$4 sm:$0xff]  }
 0x7c6   : > { %10803 = vmatpush1.bf16.msra.mxu1 %v14527_v34  ;;  %v14874_v34 = vmov 0  }
 0x7c7   : > { %11336 = vmatpush1.bf16.msra.mxu0 %v14530_v42  ;;  %10804 = vmatprep.subr.bf16.mxu1 %v14535_v23  ;;  %v14611_v42 = vld [vmem:[%s19304_s7 + $0x14a0] ss:$16 sps:$4 sm:$0xff]   ;;  %v14614_v23 = vld [vmem:[%s19304_s7 + $0x14a8] ss:$16 sps:$4 sm:$0xff]  }
 0x7c8   : > { %11337 = vmatprep.subr.bf16.mxu0 %v14538_v45  ;;  %13374 = vset.pattern.permute.xlu1 %v14874_v34  ;;  %v14619_v45 = vld [vmem:[%s19304_s7 + $0x14c4] ss:$16 sps:$4 sm:$0xff]  }
 0x7c9   : > { %13375 = vset.pattern.permute.xlu0 %v14874_v34 }
 0x7ca   : > { %10805 = vmatpush1.bf16.msra.mxu1 %v14533_v5  ;;  %v14622_v5 = vld [vmem:[%s19304_s7 + $0x14cc] ss:$16 sps:$4 sm:$0xff]  }
 0x7cb   : > { %11338 = vmatpush1.bf16.msra.mxu0 %v14536_v41  ;;  %10806 = vmatprep.subr.bf16.mxu1 %v14541_v7  ;;  %v14617_v41 = vld [vmem:[%s19304_s7 + $0x14c0] ss:$16 sps:$4 sm:$0xff]   ;;  %v14620_v7 = vld [vmem:[%s19304_s7 + $0x14c8] ss:$16 sps:$4 sm:$0xff]  }
 0x7cc   : > { %11339 = vmatprep.subr.bf16.mxu0 %v14544_v50  ;;  %v14625_v50 = vld [vmem:[%s19304_s7 + $0x14e4] ss:$16 sps:$4 sm:$0xff]  }
 0x7ce   : > { %10807 = vmatpush1.bf16.msra.mxu1 %v14539_v48  ;;  %v14628_v48 = vld [vmem:[%s19304_s7 + $0x14ec] ss:$16 sps:$4 sm:$0xff]  }
 0x7cf   : > { %11340 = vmatpush1.bf16.msra.mxu0 %v14542_v63  ;;  %10808 = vmatprep.subr.bf16.mxu1 %v14547_v52  ;;  %v14623_v63 = vld [vmem:[%s19304_s7 + $0x14e0] ss:$16 sps:$4 sm:$0xff]   ;;  %v14626_v52 = vld [vmem:[%s19304_s7 + $0x14e8] ss:$16 sps:$4 sm:$0xff]  }
 0x7d0   : > { %11341 = vmatprep.subr.bf16.mxu0 %v14550_v16  ;;  %v14631_v16 = vld [vmem:[%s19304_s7 + $0x1504] ss:$16 sps:$4 sm:$0xff]  }
 0x7d2   : > { %10809 = vmatpush1.bf16.msra.mxu1 %v14545_v60  ;;  %v14634_v60 = vld [vmem:[%s19304_s7 + $0x150c] ss:$16 sps:$4 sm:$0xff]  }
 0x7d3   : > { %11342 = vmatpush1.bf16.msra.mxu0 %v14548_v28  ;;  %10810 = vmatprep.subr.bf16.mxu1 %v14553_v15  ;;  %v14629_v28 = vld [vmem:[%s19304_s7 + $0x1500] ss:$16 sps:$4 sm:$0xff]   ;;  %v14632_v15 = vld [vmem:[%s19304_s7 + $0x1508] ss:$16 sps:$4 sm:$0xff]  }
 0x7d4   : > { %11343 = vmatprep.subr.bf16.mxu0 %v14556_v57  ;;  %v14637_v57 = vld [vmem:[%s19304_s7 + $0x1524] ss:$16 sps:$4 sm:$0xff]  }
 0x7d6   : > { %10811 = vmatpush1.bf16.msra.mxu1 %v14551_v11  ;;  %v14640_v11 = vld [vmem:[%s19304_s7 + $0x152c] ss:$16 sps:$4 sm:$0xff]  }
 0x7d7   : > { %11344 = vmatpush1.bf16.msra.mxu0 %v14554_v17  ;;  %10812 = vmatprep.subr.bf16.mxu1 %v14559_v62  ;;  %v14635_v17 = vld [vmem:[%s19304_s7 + $0x1520] ss:$16 sps:$4 sm:$0xff]   ;;  %v14638_v62 = vld [vmem:[%s19304_s7 + $0x1528] ss:$16 sps:$4 sm:$0xff]  }
 0x7d8   : > { %11345 = vmatprep.subr.bf16.mxu0 %v14562_v35  ;;  %v14643_v35 = vld [vmem:[%s19304_s7 + $0x1544] ss:$16 sps:$4 sm:$0xff]  }
 0x7da   : > { %10813 = vmatpush1.bf16.msra.mxu1 %v14557_v27  ;;  %v14646_v27 = vld [vmem:[%s19304_s7 + $0x154c] ss:$16 sps:$4 sm:$0xff]  }
 0x7db   : > { %11346 = vmatpush1.bf16.msra.mxu0 %v14560_v19  ;;  %10814 = vmatprep.subr.bf16.mxu1 %v14565_v3  ;;  %v14641_v19 = vld [vmem:[%s19304_s7 + $0x1540] ss:$16 sps:$4 sm:$0xff]   ;;  %v14644_v3 = vld [vmem:[%s19304_s7 + $0x1548] ss:$16 sps:$4 sm:$0xff]  }
 0x7dc   : > { %11347 = vmatprep.subr.bf16.mxu0 %v14568_v6  ;;  %v14649_v6 = vld [vmem:[%s19304_s7 + $0x1564] ss:$16 sps:$4 sm:$0xff]  }
 0x7de   : > { %10815 = vmatpush1.bf16.msra.mxu1 %v14563_v30  ;;  %v14652_v30 = vld [vmem:[%s19304_s7 + $0x156c] ss:$16 sps:$4 sm:$0xff]  }
 0x7df   : > { %11348 = vmatpush1.bf16.msra.mxu0 %v14566_v26  ;;  %10816 = vmatprep.subr.bf16.mxu1 %v14571_v33  ;;  %v14647_v26 = vld [vmem:[%s19304_s7 + $0x1560] ss:$16 sps:$4 sm:$0xff]   ;;  %v14650_v33 = vld [vmem:[%s19304_s7 + $0x1568] ss:$16 sps:$4 sm:$0xff]  }
 0x7e0   : > { %11349 = vmatprep.subr.bf16.mxu0 %v14574_v49  ;;  %v14655_v49 = vld [vmem:[%s19304_s7 + $0x1584] ss:$16 sps:$4 sm:$0xff]  }
 0x7e2   : > { %10817 = vmatpush1.bf16.msra.mxu1 %v14569_v39  ;;  %v14658_v39 = vld [vmem:[%s19304_s7 + $0x158c] ss:$16 sps:$4 sm:$0xff]  }
 0x7e3   : > { %11350 = vmatpush1.bf16.msra.mxu0 %v14572_v21  ;;  %10818 = vmatprep.subr.bf16.mxu1 %v14577_v54  ;;  %v14653_v21 = vld [vmem:[%s19304_s7 + $0x1580] ss:$16 sps:$4 sm:$0xff]   ;;  %v14656_v54 = vld [vmem:[%s19304_s7 + $0x1588] ss:$16 sps:$4 sm:$0xff]  }
 0x7e4   : > { %11351 = vmatprep.subr.bf16.mxu0 %v14580_v61  ;;  %v14661_v61 = vld [vmem:[%s19304_s7 + $0x15a4] ss:$16 sps:$4 sm:$0xff]  }
 0x7e6   : > { %10819 = vmatpush1.bf16.msra.mxu1 %v14575_v12  ;;  %v14664_v12 = vld [vmem:[%s19304_s7 + $0x15ac] ss:$16 sps:$4 sm:$0xff]  }
 0x7e7   : > { %11352 = vmatpush1.bf16.msra.mxu0 %v14578_v53  ;;  %10829 = vmatprep.subr.bf16.mxu1 %v14583_v55  ;;  %v14659_v53 = vld [vmem:[%s19304_s7 + $0x15a0] ss:$16 sps:$4 sm:$0xff]   ;;  %v14662_v55 = vld [vmem:[%s19304_s7 + $0x15a8] ss:$16 sps:$4 sm:$0xff]  }
 0x7e8   : > { %11362 = vmatprep.subr.bf16.mxu0 %v14586_v20  ;;  %v14667_v20 = vld [vmem:[%s19304_s7 + $0x15c4] ss:$16 sps:$4 sm:$0xff]  }
 0x7e9   : > { %10821 = vmatmul.mubr.bf16.vlgmr.msra.gmra.mrb[92].mxu1 %v5668_v13 }
 0x7ea   : > { %11354 = vmatmul.mubr.bf16.vlgmr.msra.gmra.mrb[100].mxu0 %v5668_v13  ;;  %10830 = vmatpush1.bf16.msra.mxu1 %v14581_v1  ;;  %v14673_v1 = vld [vmem:[%s19304_s7 + $0x15e4] ss:$16 sps:$4 sm:$0xff]   ;;  %v14674_v13 = vld [vmem:[%s19304_s7 + $0x15e8] ss:$16 sps:$4 sm:$0xff]  }
 0x7eb   : > { %10861 = vmatprep.mubr.bf16.mxu1 %v5680_v59  ;;  %11363 = vmatpush1.bf16.msra.mxu0 %v14584_v43  ;;  %v14671_v43 = vld [vmem:[%s19304_s7 + $0x15e0] ss:$16 sps:$4 sm:$0xff]  }
 0x7ec   : > { %11394 = vmatprep.mubr.bf16.mxu0 %v5680_v59  ;;  %10831 = vmatprep.subr.bf16.mxu1 %v14589_v40  ;;  %v5627_v40 = vpop.permute.xlu1 %5626  ;;  %v5657_v59 = vpop.permute.xlu0 %5656 }
 0x7ed   : > { %11364 = vmatprep.subr.bf16.mxu0 %v14592_v8  ;;  %v14677_v8 = vld [vmem:[%s19304_s7 + $0x1600] ss:$16 sps:$4 sm:$0xff]  }
 0x7ee   : > { %10832 = vmatpush1.bf16.msra.mxu1 %v14587_v4  ;;  %v14680_v4 = vld [vmem:[%s19304_s7 + $0x1608] ss:$16 sps:$4 sm:$0xff]  }
 0x7ef   : > { %11365 = vmatpush1.bf16.msra.mxu0 %v14590_v56  ;;  %10833 = vmatprep.subr.bf16.mxu1 %v14595_v22  ;;  %v14860_v56 = vld [vmem:[#allocation4 + $0x14] sm:$0x1] }
 0x7f0   : > { %11366 = vmatprep.subr.bf16.mxu0 %v14598_v14  ;;  %v5676_v22 = vsel %vm556_vm0, %v14860_v56, %v5627_v40  ;;  %v14861_v14 = vld [vmem:[#allocation4 + $0x14] ss:$0 sps:$4 sm:$0x88]   ;;  %v14761_v40 = vld [vmem:[%s19304_s7 + $0x17c0] ss:$16 sps:$4 sm:$0xff]  }
 0x7f1   : > { %v14767_v56 = vld [vmem:[%s19304_s7 + $0x17e0] ss:$16 sps:$4 sm:$0xff]  }
 0x7f2   : > { %10834 = vmatpush1.bf16.msra.mxu1 %v14593_v9  ;;  %v5651_v9 = vrot.slane %v14861_v14, 3  ;;  %v14775_v14 = vld [vmem:[%s19304_s7 + $0x1804] ss:$16 sps:$4 sm:$0xff]  }
 0x7f3   : > { %11367 = vmatpush1.bf16.msra.mxu0 %v14596_v47  ;;  %10835 = vmatprep.subr.bf16.mxu1 %v14601_v18  ;;  %v14685_v47 = vld [vmem:[%s19304_s7 + $0x1624] ss:$16 sps:$4 sm:$0xff]   ;;  %v14688_v18 = vld [vmem:[%s19304_s7 + $0x162c] ss:$16 sps:$4 sm:$0xff]  }
 0x7f4   : > { %11368 = vmatprep.subr.bf16.mxu0 %v14604_v38  ;;  %v5688_v38 = vsel %vm556_vm0, %v5651_v9, %v5657_v59  ;;  %v14769_v59 = vld [vmem:[%s19304_s7 + $0x17e4] ss:$16 sps:$4 sm:$0xff]   ;;  %v5647_v9 = vpop.permute.xlu1 %5646 }
 0x7f6   : > { %10836 = vmatpush1.bf16.msra.mxu1 %v14599_v10  ;;  %v14683_v10 = vld [vmem:[%s19304_s7 + $0x1620] ss:$16 sps:$4 sm:$0xff]  }
 0x7f7   : > { %11369 = vmatpush1.bf16.msra.mxu0 %v14602_v31  ;;  %10837 = vmatprep.subr.bf16.mxu1 %v14607_v24  ;;  %v14686_v31 = vld [vmem:[%s19304_s7 + $0x1628] ss:$16 sps:$4 sm:$0xff]   ;;  %v14691_v24 = vld [vmem:[%s19304_s7 + $0x1644] ss:$16 sps:$4 sm:$0xff]  }
 0x7f8   : > { %11370 = vmatprep.subr.bf16.mxu0 %v14610_v36  ;;  %v14694_v36 = vld [vmem:[%s19304_s7 + $0x164c] ss:$16 sps:$4 sm:$0xff]  }
 0x7fa   : > { %10838 = vmatpush1.bf16.msra.mxu1 %v14605_v32  ;;  %v14689_v32 = vld [vmem:[%s19304_s7 + $0x1640] ss:$16 sps:$4 sm:$0xff]  }
 0x7fb   : > { %11371 = vmatpush1.bf16.msra.mxu0 %v14608_v51  ;;  %10839 = vmatprep.subr.bf16.mxu1 %v14613_v44  ;;  %v14692_v51 = vld [vmem:[%s19304_s7 + $0x1648] ss:$16 sps:$4 sm:$0xff]   ;;  %v14697_v44 = vld [vmem:[%s19304_s7 + $0x1664] ss:$16 sps:$4 sm:$0xff]  }
 0x7fc   : > { %11372 = vmatprep.subr.bf16.mxu0 %v14616_v2  ;;  %v14700_v2 = vld [vmem:[%s19304_s7 + $0x166c] ss:$16 sps:$4 sm:$0xff]  }
 0x7fe   : > { %10840 = vmatpush1.bf16.msra.mxu1 %v14611_v42  ;;  %v14695_v42 = vld [vmem:[%s19304_s7 + $0x1660] ss:$16 sps:$4 sm:$0xff]  }
 0x7ff   : > { %11373 = vmatpush1.bf16.msra.mxu0 %v14614_v23  ;;  %10841 = vmatprep.subr.bf16.mxu1 %v14619_v45  ;;  %v14698_v23 = vld [vmem:[%s19304_s7 + $0x1668] ss:$16 sps:$4 sm:$0xff]   ;;  %v14703_v45 = vld [vmem:[%s19304_s7 + $0x1684] ss:$16 sps:$4 sm:$0xff]  }
 0x800   : > { %11374 = vmatprep.subr.bf16.mxu0 %v14622_v5  ;;  %v14706_v5 = vld [vmem:[%s19304_s7 + $0x168c] ss:$16 sps:$4 sm:$0xff]  }
 0x802   : > { %10842 = vmatpush1.bf16.msra.mxu1 %v14617_v41  ;;  %v14701_v41 = vld [vmem:[%s19304_s7 + $0x1680] ss:$16 sps:$4 sm:$0xff]  }
 0x803   : > { %11375 = vmatpush1.bf16.msra.mxu0 %v14620_v7  ;;  %10843 = vmatprep.subr.bf16.mxu1 %v14625_v50  ;;  %v14704_v7 = vld [vmem:[%s19304_s7 + $0x1688] ss:$16 sps:$4 sm:$0xff]   ;;  %v14709_v50 = vld [vmem:[%s19304_s7 + $0x16a4] ss:$16 sps:$4 sm:$0xff]  }
 0x804   : > { %11376 = vmatprep.subr.bf16.mxu0 %v14628_v48  ;;  %v14712_v48 = vld [vmem:[%s19304_s7 + $0x16ac] ss:$16 sps:$4 sm:$0xff]  }
 0x806   : > { %10844 = vmatpush1.bf16.msra.mxu1 %v14623_v63  ;;  %v14707_v63 = vld [vmem:[%s19304_s7 + $0x16a0] ss:$16 sps:$4 sm:$0xff]  }
 0x807   : > { %11377 = vmatpush1.bf16.msra.mxu0 %v14626_v52  ;;  %10845 = vmatprep.subr.bf16.mxu1 %v14631_v16  ;;  %v14710_v52 = vld [vmem:[%s19304_s7 + $0x16a8] ss:$16 sps:$4 sm:$0xff]   ;;  %v14715_v16 = vld [vmem:[%s19304_s7 + $0x16c4] ss:$16 sps:$4 sm:$0xff]  }
 0x808   : > { %11378 = vmatprep.subr.bf16.mxu0 %v14634_v60  ;;  %v14718_v60 = vld [vmem:[%s19304_s7 + $0x16cc] ss:$16 sps:$4 sm:$0xff]  }
 0x80a   : > { %10846 = vmatpush1.bf16.msra.mxu1 %v14629_v28  ;;  %v14713_v28 = vld [vmem:[%s19304_s7 + $0x16c0] ss:$16 sps:$4 sm:$0xff]  }
 0x80b   : > { %11379 = vmatpush1.bf16.msra.mxu0 %v14632_v15  ;;  %10847 = vmatprep.subr.bf16.mxu1 %v14637_v57  ;;  %v14716_v15 = vld [vmem:[%s19304_s7 + $0x16c8] ss:$16 sps:$4 sm:$0xff]   ;;  %v14721_v57 = vld [vmem:[%s19304_s7 + $0x16e4] ss:$16 sps:$4 sm:$0xff]  }
 0x80c   : > { %11380 = vmatprep.subr.bf16.mxu0 %v14640_v11  ;;  %v14724_v11 = vld [vmem:[%s19304_s7 + $0x16ec] ss:$16 sps:$4 sm:$0xff]  }
 0x80e   : > { %10848 = vmatpush1.bf16.msra.mxu1 %v14635_v17  ;;  %v14719_v17 = vld [vmem:[%s19304_s7 + $0x16e0] ss:$16 sps:$4 sm:$0xff]  }
 0x80f   : > { %11381 = vmatpush1.bf16.msra.mxu0 %v14638_v62  ;;  %10849 = vmatprep.subr.bf16.mxu1 %v14643_v35  ;;  %v14722_v62 = vld [vmem:[%s19304_s7 + $0x16e8] ss:$16 sps:$4 sm:$0xff]   ;;  %v14727_v35 = vld [vmem:[%s19304_s7 + $0x1704] ss:$16 sps:$4 sm:$0xff]  }
 0x810   : > { %11382 = vmatprep.subr.bf16.mxu0 %v14646_v27  ;;  %v14730_v27 = vld [vmem:[%s19304_s7 + $0x170c] ss:$16 sps:$4 sm:$0xff]  }
 0x812   : > { %10850 = vmatpush1.bf16.msra.mxu1 %v14641_v19  ;;  %v14725_v19 = vld [vmem:[%s19304_s7 + $0x1700] ss:$16 sps:$4 sm:$0xff]  }
 0x813   : > { %11383 = vmatpush1.bf16.msra.mxu0 %v14644_v3  ;;  %10851 = vmatprep.subr.bf16.mxu1 %v14649_v6  ;;  %v14728_v3 = vld [vmem:[%s19304_s7 + $0x1708] ss:$16 sps:$4 sm:$0xff]   ;;  %v14733_v6 = vld [vmem:[%s19304_s7 + $0x1724] ss:$16 sps:$4 sm:$0xff]  }
 0x814   : > { %11384 = vmatprep.subr.bf16.mxu0 %v14652_v30  ;;  %v14736_v30 = vld [vmem:[%s19304_s7 + $0x172c] ss:$16 sps:$4 sm:$0xff]  }
 0x816   : > { %10852 = vmatpush1.bf16.msra.mxu1 %v14647_v26  ;;  %v14731_v26 = vld [vmem:[%s19304_s7 + $0x1720] ss:$16 sps:$4 sm:$0xff]  }
 0x817   : > { %11385 = vmatpush1.bf16.msra.mxu0 %v14650_v33  ;;  %10853 = vmatprep.subr.bf16.mxu1 %v14655_v49  ;;  %v14734_v33 = vld [vmem:[%s19304_s7 + $0x1728] ss:$16 sps:$4 sm:$0xff]   ;;  %v14739_v49 = vld [vmem:[%s19304_s7 + $0x1744] ss:$16 sps:$4 sm:$0xff]  }
 0x818   : > { %11386 = vmatprep.subr.bf16.mxu0 %v14658_v39  ;;  %v14742_v39 = vld [vmem:[%s19304_s7 + $0x174c] ss:$16 sps:$4 sm:$0xff]  }
 0x81a   : > { %10854 = vmatpush1.bf16.msra.mxu1 %v14653_v21  ;;  %v14737_v21 = vld [vmem:[%s19304_s7 + $0x1740] ss:$16 sps:$4 sm:$0xff]  }
 0x81b   : > { %11387 = vmatpush1.bf16.msra.mxu0 %v14656_v54  ;;  %10855 = vmatprep.subr.bf16.mxu1 %v14661_v61  ;;  %v14740_v54 = vld [vmem:[%s19304_s7 + $0x1748] ss:$16 sps:$4 sm:$0xff]   ;;  %v14745_v61 = vld [vmem:[%s19304_s7 + $0x1764] ss:$16 sps:$4 sm:$0xff]  }
 0x81c   : > { %11388 = vmatprep.subr.bf16.mxu0 %v14664_v12  ;;  %v14748_v12 = vld [vmem:[%s19304_s7 + $0x176c] ss:$16 sps:$4 sm:$0xff]  }
 0x81e   : > { %10856 = vmatpush1.bf16.msra.mxu1 %v14659_v53  ;;  %v14743_v53 = vld [vmem:[%s19304_s7 + $0x1760] ss:$16 sps:$4 sm:$0xff]  }
 0x81f   : > { %11389 = vmatpush1.bf16.msra.mxu0 %v14662_v55  ;;  %10857 = vmatprep.subr.bf16.mxu1 %v14667_v20  ;;  %v14746_v55 = vld [vmem:[%s19304_s7 + $0x1768] ss:$16 sps:$4 sm:$0xff]   ;;  %v14751_v20 = vld [vmem:[%s19304_s7 + $0x1784] ss:$16 sps:$4 sm:$0xff]  }
 0x820   : > { %11390 = vmatprep.subr.bf16.mxu0 %v14670_v58  ;;  %v14754_v58 = vld [vmem:[%s19304_s7 + $0x178c] ss:$16 sps:$4 sm:$0xff]  }
 0x822   : > { %10858 = vmatpush1.bf16.msra.mxu1 %v14665_v0  ;;  %v14749_v0 = vld [vmem:[%s19304_s7 + $0x1780] ss:$16 sps:$4 sm:$0xff]  }
 0x823   : > { %11391 = vmatpush1.bf16.msra.mxu0 %v14668_v29  ;;  %10859 = vmatprep.subr.bf16.mxu1 %v14673_v1  ;;  %v14752_v29 = vld [vmem:[%s19304_s7 + $0x1788] ss:$16 sps:$4 sm:$0xff]   ;;  %v14757_v1 = vld [vmem:[%s19304_s7 + $0x17a4] ss:$16 sps:$4 sm:$0xff]  }
 0x824   : > { %11392 = vmatprep.subr.bf16.mxu0 %v14676_v37  ;;  %v14760_v37 = vld [vmem:[%s19304_s7 + $0x17ac] ss:$16 sps:$4 sm:$0xff]  }
 0x826   : > { %10860 = vmatpush1.bf16.msra.mxu1 %v14671_v43  ;;  %v14755_v43 = vld [vmem:[%s19304_s7 + $0x17a0] ss:$16 sps:$4 sm:$0xff]  }
 0x827   : > { %11393 = vmatpush1.bf16.msra.mxu0 %v14674_v13  ;;  %10870 = vmatprep.subr.bf16.mxu1 %v14679_v46  ;;  %v14758_v13 = vld [vmem:[%s19304_s7 + $0x17a8] ss:$16 sps:$4 sm:$0xff]   ;;  %v14763_v46 = vld [vmem:[%s19304_s7 + $0x17c4] ss:$16 sps:$4 sm:$0xff]  }
 0x828   : > { %11403 = vmatprep.subr.bf16.mxu0 %v14682_v25  ;;  %v14766_v25 = vld [vmem:[%s19304_s7 + $0x17cc] ss:$16 sps:$4 sm:$0xff]  }
 0x829   : > { %10862 = vmatmul.mubr.bf16.vlgmr.msra.gmra.mrb[92].mxu1 %v5676_v22 }
 0x82a   : > { %11395 = vmatmul.mubr.bf16.vlgmr.msra.gmra.mrb[100].mxu0 %v5676_v22  ;;  %10871 = vmatpush1.bf16.msra.mxu1 %v14677_v8  ;;  %v14764_v8 = vld [vmem:[%s19304_s7 + $0x17c8] ss:$16 sps:$4 sm:$0xff]  }
 0x82b   : > { %10902 = vmatprep.mubr.bf16.mxu1 %v5688_v38  ;;  %11404 = vmatpush1.bf16.msra.mxu0 %v14680_v4  ;;  %v14772_v4 = vld [vmem:[%s19304_s7 + $0x17ec] ss:$16 sps:$4 sm:$0xff]   ;;  %v14770_v22 = vld [vmem:[%s19304_s7 + $0x17e8] ss:$16 sps:$4 sm:$0xff]  }
 0x82c   : > { %11435 = vmatprep.mubr.bf16.mxu0 %v5688_v38  ;;  %10872 = vmatprep.subr.bf16.mxu1 %v14685_v47  ;;  %v14862_v47 = vld [vmem:[#allocation4 + $0x14] ss:$0 sps:$4 sm:$0x44]   ;;  %v14773_v38 = vld [vmem:[%s19304_s7 + $0x1800] ss:$16 sps:$4 sm:$0xff]  }
 0x82d   : > { %11405 = vmatprep.subr.bf16.mxu0 %v14688_v18  ;;  %v5641_v18 = vrot.slane %v14862_v47, 2 }
 0x82e   : > { %10873 = vmatpush1.bf16.msra.mxu1 %v14683_v10  ;;  %v14778_v10 = vld [vmem:[%s19304_s7 + $0x1824] ss:$16 sps:$4 sm:$0xff]  }
 0x82f   : > { %11406 = vmatpush1.bf16.msra.mxu0 %v14686_v31  ;;  %10874 = vmatprep.subr.bf16.mxu1 %v14691_v24  ;;  %v5684_v31 = vsel %vm556_vm0, %v5641_v18, %v5647_v9  ;;  %v14776_v24 = vld [vmem:[%s19304_s7 + $0x1820] ss:$16 sps:$4 sm:$0xff]  }
 0x830   : > { %11407 = vmatprep.subr.bf16.mxu0 %v14694_v36  ;;  %v14781_v36 = vld [vmem:[%s19304_s7 + $0x1844] ss:$16 sps:$4 sm:$0xff]  }
 0x832   : > { %10875 = vmatpush1.bf16.msra.mxu1 %v14689_v32  ;;  %v14779_v32 = vld [vmem:[%s19304_s7 + $0x1840] ss:$16 sps:$4 sm:$0xff]  }
 0x833   : > { %11408 = vmatpush1.bf16.msra.mxu0 %v14692_v51  ;;  %10876 = vmatprep.subr.bf16.mxu1 %v14697_v44  ;;  %v14784_v51 = vld [vmem:[%s19304_s7 + $0x1864] ss:$16 sps:$4 sm:$0xff]   ;;  %v14782_v44 = vld [vmem:[%s19304_s7 + $0x1860] ss:$16 sps:$4 sm:$0xff]  }
 0x834   : > { %11409 = vmatprep.subr.bf16.mxu0 %v14700_v2  ;;  %v14787_v2 = vld [vmem:[%s19304_s7 + $0x180c] ss:$16 sps:$4 sm:$0xff]  }
 0x836   : > { %10877 = vmatpush1.bf16.msra.mxu1 %v14695_v42  ;;  %v14785_v42 = vld [vmem:[%s19304_s7 + $0x1808] ss:$16 sps:$4 sm:$0xff]  }
 0x837   : > { %11410 = vmatpush1.bf16.msra.mxu0 %v14698_v23  ;;  %10878 = vmatprep.subr.bf16.mxu1 %v14703_v45  ;;  %v14790_v23 = vld [vmem:[%s19304_s7 + $0x182c] ss:$16 sps:$4 sm:$0xff]  }
 0x838   : > { %11411 = vmatprep.subr.bf16.mxu0 %v14706_v5  ;;  %v5365_v45 = vld [vmem:[#allocation4 + $0x18] sm:$0x1]  ;;  %v14788_v5 = vld [vmem:[%s19304_s7 + $0x1828] ss:$16 sps:$4 sm:$0xff]  }
 0x83a   : > { %10879 = vmatpush1.bf16.msra.mxu1 %v14701_v41  ;;  %v14793_v41 = vld [vmem:[%s19304_s7 + $0x184c] ss:$16 sps:$4 sm:$0xff]  }
 0x83b   : > { %11412 = vmatpush1.bf16.msra.mxu0 %v14704_v7  ;;  %10880 = vmatprep.subr.bf16.mxu1 %v14709_v50  ;;  %v14791_v7 = vld [vmem:[%s19304_s7 + $0x1848] ss:$16 sps:$4 sm:$0xff]   ;;  %v14796_v50 = vld [vmem:[%s19304_s7 + $0x186c] ss:$16 sps:$4 sm:$0xff]  }
 0x83c   : > { %11413 = vmatprep.subr.bf16.mxu0 %v14712_v48 }
 0x83e   : > { %10881 = vmatpush1.bf16.msra.mxu1 %v14707_v63 }
 0x83f   : > { %11414 = vmatpush1.bf16.msra.mxu0 %v14710_v52  ;;  %10882 = vmatprep.subr.bf16.mxu1 %v14715_v16  ;;  %v10396_v52 = vlaneseq }
 0x840   : > { %11415 = vmatprep.subr.bf16.mxu0 %v14718_v60 }
 0x842   : > { %10883 = vmatpush1.bf16.msra.mxu1 %v14713_v28  ;;  %v10397_v28 = vshrl.u32 %v10396_v52, 7 }
 0x843   : > { %11416 = vmatpush1.bf16.msra.mxu0 %v14716_v15  ;;  %10884 = vmatprep.subr.bf16.mxu1 %v14721_v57 }
 0x844   : > { %11417 = vmatprep.subr.bf16.mxu0 %v14724_v11  ;;  %v10398_v15 = vsub.s32 0, %v10397_v28  ;;  %v10402_v57 = vsub.s32 1, %v10397_v28  ;;  %v6474_v11 = vld [vmem:[%s19305_s8] sm:$0xf] }
 0x846   : > { %10885 = vmatpush1.bf16.msra.mxu1 %v14719_v17  ;;  %v10399_v17 = vrot.slane %v6474_v11, %v10398_v15 }
 0x847   : > { %11418 = vmatpush1.bf16.msra.mxu0 %v14722_v62  ;;  %10886 = vmatprep.subr.bf16.mxu1 %v14727_v35  ;;  %v11489_v62 = vld [vmem:[%s19306_s9] sm:$0xf]  ;;  %v10403_v35 = vrot.slane %v6474_v11, %v10402_v57 }
 0x848   : > { %11419 = vmatprep.subr.bf16.mxu0 %v14730_v27 }
 0x84a   : > { %10887 = vmatpush1.bf16.msra.mxu1 %v14725_v19 }
 0x84b   : > { %11420 = vmatpush1.bf16.msra.mxu0 %v14728_v3  ;;  %10888 = vmatprep.subr.bf16.mxu1 %v14733_v6  ;;  %v11494_v3 = vrot.slane %v11489_v62, %v10398_v15 }
 0x84c   : > { %11421 = vmatprep.subr.bf16.mxu0 %v14736_v30 }
 0x84e   : > { %10889 = vmatpush1.bf16.msra.mxu1 %v14731_v26  ;;  %v11498_v26 = vrot.slane %v11489_v62, %v10402_v57 }
 0x84f   : > { %11422 = vmatpush1.bf16.msra.mxu0 %v14734_v33  ;;  %10890 = vmatprep.subr.bf16.mxu1 %v14739_v49 }
 0x850   : > { %11423 = vmatprep.subr.bf16.mxu0 %v14742_v39 }
 0x852   : > { %10891 = vmatpush1.bf16.msra.mxu1 %v14737_v21 }
 0x853   : > { %11424 = vmatpush1.bf16.msra.mxu0 %v14740_v54  ;;  %10892 = vmatprep.subr.bf16.mxu1 %v14745_v61 }
 0x854   : > { %11425 = vmatprep.subr.bf16.mxu0 %v14748_v12  ;;  %v10406_v12 = vsub.s32 2, %v10397_v28 }
 0x856   : > { %10893 = vmatpush1.bf16.msra.mxu1 %v14743_v53 }
 0x857   : > { %11426 = vmatpush1.bf16.msra.mxu0 %v14746_v55  ;;  %10894 = vmatprep.subr.bf16.mxu1 %v14751_v20  ;;  %v10410_v55 = vsub.s32 3, %v10397_v28 }
 0x858   : > { %11427 = vmatprep.subr.bf16.mxu0 %v14754_v58 }
 0x85a   : > { %10895 = vmatpush1.bf16.msra.mxu1 %v14749_v0  ;;  %v10407_v0 = vrot.slane %v6474_v11, %v10406_v12 }
 0x85b   : > { %11428 = vmatpush1.bf16.msra.mxu0 %v14752_v29  ;;  %10896 = vmatprep.subr.bf16.mxu1 %v14757_v1  ;;  %v10411_v29 = vrot.slane %v6474_v11, %v10410_v55 }
 0x85c   : > { %11429 = vmatprep.subr.bf16.mxu0 %v14760_v37 }
 0x85e   : > { %10897 = vmatpush1.bf16.msra.mxu1 %v14755_v43 }
 0x85f   : > { %11430 = vmatpush1.bf16.msra.mxu0 %v14758_v13  ;;  %10898 = vmatprep.subr.bf16.mxu1 %v14763_v46  ;;  %v11502_v46 = vrot.slane %v11489_v62, %v10406_v12 }
 0x860   : > { %11431 = vmatprep.subr.bf16.mxu0 %v14766_v25 }
 0x862   : > { %10899 = vmatpush1.bf16.msra.mxu1 %v14761_v40 }
 0x863   : > { %11432 = vmatpush1.bf16.msra.mxu0 %v14764_v8  ;;  %10900 = vmatprep.subr.bf16.mxu1 %v14769_v59  ;;  %v11506_v8 = vrot.slane %v11489_v62, %v10410_v55 }
 0x864   : > { %11433 = vmatprep.subr.bf16.mxu0 %v14772_v4 }
 0x866   : > { %10901 = vmatpush1.bf16.msra.mxu1 %v14767_v56 }
 0x867   : > { %11434 = vmatpush1.bf16.msra.mxu0 %v14770_v22  ;;  %10911 = vmatprep.subr.bf16.mxu1 %v14775_v14 }
 0x869   : > { %10903 = vmatmul.mubr.bf16.vlgmr.msra.gmra.mrb[92].mxu1 %v5684_v31 }
 0x86a   : > { %11436 = vmatmul.mubr.bf16.vlgmr.msra.gmra.mrb[100].mxu0 %v5684_v31  ;;  %10912 = vmatpush1.bf16.msra.mxu1 %v14773_v38  ;;  %v11524_v31 = vld [vmem:[#allocation5] sm:$0x1] }
 0x86b   : > { %10913 = vmatprep.subr.bf16.mxu1 %v14778_v10  ;;  %10943 = vmatprep.mubr.bf16.mxu1 %v14874_v34 }
 0x86e   : > { %10914 = vmatpush1.bf16.msra.mxu1 %v14776_v24 }
 0x86f   : > { %10915 = vmatprep.subr.bf16.mxu1 %v14781_v36 }
 0x872   : > { %10916 = vmatpush1.bf16.msra.mxu1 %v14779_v32 }
 0x873   : > { %10917 = vmatprep.subr.bf16.mxu1 %v14784_v51 }
 0x876   : > { %10918 = vmatpush1.bf16.msra.mxu1 %v14782_v44 }
 0x877   : > { %11444 = vmatprep.subr.bf16.mxu1 %v14787_v2 }
 0x879   : > { %12795 = vmatmul.mubr.msk.bf16.vlgmr.msra.gmra.mrb[92].mxu1 %vm556_vm0, %v5365_v45 }
 0x87a   : > { %11445 = vmatpush1.bf16.msra.mxu1 %v14785_v42  ;;  %11476 = vmatprep.mubr.bf16.mxu1 %v14874_v34  ;;  %v14794_v34 = vld [vmem:[%s19304_s7 + $0x1868] ss:$16 sps:$4 sm:$0xff]  }
 0x87b   : > { %11446 = vmatprep.subr.bf16.mxu1 %v14790_v23 }
 0x87e   : > { %11447 = vmatpush1.bf16.msra.mxu1 %v14788_v5 }
 0x87f   : > { %11448 = vmatprep.subr.bf16.mxu1 %v14793_v41 }
 0x882   : > { %11449 = vmatpush1.bf16.msra.mxu1 %v14791_v7 }
 0x883   : > { %11450 = vmatprep.subr.bf16.mxu1 %v14796_v50 }
 0x886   : > { %11451 = vmatpush1.bf16.msra.mxu1 %v14794_v34 }
 0x889   : > { %12796 = vmatmul.mubr.msk.bf16.vlgmr.msra.gmra.mrb[96].mxu1 %vm556_vm0, %v5365_v45 }
 0x93d   : > { %v11437_v48 = vpop.f32.mrb[100].mxu0 }
 0x93e   : > { %v11439_v63 = vpop.f32.mrb[101].mxu0  ;;  %v13265_v1 = vadd.f32 %v11437_v48, %v10407_v0 }
 0x93f   : > { %v11441_v16 = vpop.f32.mrb[102].mxu0  ;;  %v13267_v37 = vadd.f32 %v11439_v63, %v10411_v29 }
 0x940   : > { %v11442_v60 = vpop.f32.mrb[103].mxu0 }
 0x94c   : > { %v10945_v27 = vpop.f32.mrb[92].mxu1 }
 0x94d   : > { %v13263_v19 = vadd.f32 %v10945_v27, %v10399_v17  ;;  %v10947_v6 = vpop.f32.mrb[93].mxu1 }
 0x94e   : > { %v13264_v30 = vadd.f32 %v10947_v6, %v10403_v35  ;;  %v10949_v33 = vpop.f32.mrb[94].mxu1 }
 0x94f   : > { %v11485_v49 = vmax.f32 %v13263_v19, 0.0  ;;  %v10950_v39 = vpop.f32.mrb[95].mxu1 }
 0x950   : > { %v11486_v21 = vmax.f32 %v13264_v30, 0.0 }
 0x951   : > { %v11511_v54 = vmul.f32 %v11494_v3, %v11485_v49 }
 0x952   : > { %v11512_v61 = vmul.f32 %v11498_v26, %v11486_v21 }
 0x953   : > { %v11515_v53 = vsel %vm918_vm5, %v11511_v54, 0.0 }
 0x954   : > { %v11516_v20 = vsel %vm918_vm5, %v11512_v61, 0.0 }
 0x955   : > { %v11517_v58 = vadd.f32 %v11516_v20, %v11515_v53 }
 0x95c   : > { %v11478_v43 = vpop.f32.mrb[96].mxu1 }
 0x95d   : > { %v13266_v13 = vadd.f32 %v13265_v1, %v11478_v43  ;;  %v11480_v25 = vpop.f32.mrb[97].mxu1 }
 0x95e   : > { %v13268_v40 = vadd.f32 %v13267_v37, %v11480_v25  ;;  %v11482_v59 = vpop.f32.mrb[98].mxu1 }
 0x95f   : > { %v11487_v4 = vmax.f32 %v13266_v13, 0.0  ;;  %v11483_v56 = vpop.f32.mrb[99].mxu1 }
 0x960   : > { %v11488_v22 = vmax.f32 %v13268_v40, 0.0 }
 0x961   : > { %v11513_v14 = vmul.f32 %v11502_v46, %v11487_v4 }
 0x962   : > { %v11514_v9 = vmul.f32 %v11506_v8, %v11488_v22 }
 0x963   : > { %v11518_v47 = vsel %vm918_vm5, %v11513_v14, 0.0 }
 0x964   : > { %v11519_v18 = vadd.f32 %v11518_v47, %v11517_v58  ;;  %v11520_v38 = vsel %vm918_vm5, %v11514_v9, 0.0 }
 0x966   : > { %v11521_v10 = vadd.f32 %v11520_v38, %v11519_v18 }
 0x968   : > { %11522 = vadd.xlane.f32.xlu0 %v11521_v10 }
 0x9f5   : > { %v11523_v24 = vpop.xlane.xlu0 %11522 }
 0x9f6   : > { %v11525_v36 = vadd.f32 %v11524_v31, %v11523_v24 }
 0x9f8   : > { %11528 = vperm.xlu1 %13374, %v11525_v36  }
 0xa77   : > { %v11529_v32 = vpop.permute.xlu1 %11528 }
 0xa78   : > { %11531 = vst [vmem:[%s384_s21] sm:$0x1] %v11529_v32 }
 0xa79 PF: > { %s23_s19 = sadd.s32 1, %s14869_s19  }
 0xa7a   : > { %p20_p4 = scmp.ge.s32.totalorder %s23_s19, 4  }
 0xa7c   :  { %22 = sbr.rel (!%p20_p4) target bundleno = 3 (0x3), region = 136 }

</bundles_post_ra>
